<compile_context>
chip_gen: v7x
topology: tpu7x:2x2x1
jax: 0.10.0
libtpu: 0.0.40
codegen_flags: <defaults>
</compile_context>

<pallas_src>
import functools
import numpy as np
import jax
import jax.numpy as jnp
from jax import lax
from jax.experimental import pallas as pl
from jax.experimental.pallas import tpu as pltpu

CONFIG = {"front": True, "data": True,
          "multi_camera": {"right_left": False, "rear": False}}

CONV_OUT = 16          # surrogate backbone conv channels
CONV_K = 27            # 3 in-channels * 3x3
CONV_K_PAD = 32        # im2col K padded for clean layout
IMG_FEAT = 128         # feature size of each image branch (matches module)
DATA_IN = 20
LSTM_HIDDEN = 64
LSTM_LAYERS = 3

MULTIPLIER = (int(CONFIG["front"]) + int(CONFIG["data"])
              + 2 * int(CONFIG["multi_camera"]["right_left"])
              + int(CONFIG["multi_camera"]["rear"]))
LSTM_IN = 128 * MULTIPLIER                        # 256
FINAL_CONCAT = 128 * MULTIPLIER + LSTM_HIDDEN     # 320


def _vmem():
    return pl.BlockSpec(memory_space=pltpu.MemorySpace.VMEM)


# ---------------------------------------------------------------------------
# Kernel 1: fused per-frame feature extraction (image branch + data MLP)
# ---------------------------------------------------------------------------
def _features_kernel(p_ref, pool_ref, wc_ref, bc_ref, wf_ref, bf_ref,
                     d_ref, w1_ref, b1_ref, w2_ref, b2_ref, o_ref):
    # image branch surrogate: conv3x3 as one 2-D GEMM over im2col patches,
    # ReLU, global-average-pool (as a matmul), Linear(->128), outer ReLU.
    conv = jnp.dot(p_ref[...], wc_ref[...],
                   preferred_element_type=jnp.float32) + bc_ref[...]
    conv = jnp.maximum(conv, 0.0)                                  # (N*HW, Cc)
    pooled = jnp.dot(pool_ref[...], conv,
                     preferred_element_type=jnp.float32)           # (N, Cc)
    img = jnp.dot(pooled, wf_ref[...],
                  preferred_element_type=jnp.float32) + bf_ref[...]
    img = jnp.maximum(img, 0.0)                                    # (N, 128)

    # data branch: Linear(20,256)+ReLU+Linear(256,128)+ReLU
    h = jnp.dot(d_ref[...], w1_ref[...],
                preferred_element_type=jnp.float32) + b1_ref[...]
    h = jnp.maximum(h, 0.0)
    dat = jnp.dot(h, w2_ref[...],
                  preferred_element_type=jnp.float32) + b2_ref[...]
    dat = jnp.maximum(dat, 0.0)                                    # (N, 128)

    o_ref[:, 0:IMG_FEAT] = img.astype(o_ref.dtype)
    o_ref[:, IMG_FEAT:2 * IMG_FEAT] = dat.astype(o_ref.dtype)


def frame_features(params, cam_frames, data_x):
    """cam_frames: (N, C, H, W), data_x: (N, 20) -> (N, 256) = [img | data]."""
    N, C, H, W = cam_frames.shape
    HW = H * W
    # im2col once for all N = T*B frames (3x3, stride 1, pad 1); K padded 27->32.
    xp = jnp.pad(cam_frames, ((0, 0), (0, 0), (1, 1), (1, 1)))
    cols = [xp[:, :, dh:dh + H, dw:dw + W] for dh in range(3) for dw in range(3)]
    patches = jnp.stack(cols, axis=2)                         # (N, C, 9, H, W)
    patches = patches.transpose(0, 3, 4, 1, 2).reshape(N * HW, C * 9)
    patches = jnp.pad(patches, ((0, 0), (0, CONV_K_PAD - C * 9)))
    # global average pool as a matmul: (N, N*HW) block-structured matrix.
    pool = (jnp.kron(jnp.eye(N, dtype=jnp.float32),
                     jnp.ones((1, HW), jnp.float32)) / HW)
    cp = params["cnn_front"]
    dp = params["nn_data"]
    return pl.pallas_call(
        _features_kernel,
        out_shape=jax.ShapeDtypeStruct((N, 2 * IMG_FEAT), jnp.float32),
        in_specs=[_vmem()] * 11,
        out_specs=_vmem(),
    )(patches, pool, cp["wc_t"], cp["bc"], cp["wf_t"], cp["bf"],
      data_x, dp["w1_t"], dp["b1"], dp["w2_t"], dp["b2"])


# ---------------------------------------------------------------------------
# Kernel 2: fused 3-layer LSTM stack + both control heads
# ---------------------------------------------------------------------------
def _lstm_heads_kernel(seq_ref,
                       wih0_ref, whh0_ref, b0_ref,
                       wih1_ref, whh1_ref, b1_ref,
                       wih2_ref, whh2_ref, b2_ref,
                       hw1s_ref, hw1h_ref, hb1_ref,
                       hw2_ref, hb2_ref, hw3_ref, hb3_ref,
                       hw4_ref, hb4_ref,
                       out_ref, seq_a, seq_b, *, T, B, H):
    def run_layer(read_x, write_h, wih, whh, bias):
        bias_b = jnp.broadcast_to(bias, (B, 4 * H))      # hoisted out of the loop

        def step(t, carry):
            h_prev, c_prev = carry
            g = (jnp.dot(read_x(t), wih, preferred_element_type=jnp.float32)
                 + jnp.dot(h_prev, whh, preferred_element_type=jnp.float32)
                 + bias_b)
            # gate columns pre-permuted to [i, f, o | g]:
            s = jax.nn.sigmoid(g[:, 0:3 * H])            # one 192-wide sigmoid
            gg = jnp.tanh(g[:, 3 * H:4 * H])             # one 64-wide tanh
            c = s[:, H:2 * H] * c_prev + s[:, 0:H] * gg
            h = s[:, 2 * H:3 * H] * jnp.tanh(c)
            write_h(t, h)
            return h, c

        zeros = jnp.zeros((B, H), jnp.float32)
        return lax.fori_loop(0, T, step, (zeros, zeros), unroll=True)

    def write_a(t, h):
        seq_a[t] = h

    def write_b(t, h):
        seq_b[t] = h

    def write_none(t, h):
        pass

    # Inter-layer sequences never leave VMEM.
    run_layer(lambda t: seq_ref[t], write_a,
              wih0_ref[...], whh0_ref[...], b0_ref[...])
    run_layer(lambda t: seq_a[t], write_b,
              wih1_ref[...], whh1_ref[...], b1_ref[...])
    h_last, _ = run_layer(lambda t: seq_b[t], write_none,
                          wih2_ref[...], whh2_ref[...], b2_ref[...])

    # Both control heads on x_cat = [seq[0], h_last].  The 320-wide first-layer
    # weight is pre-split (256 | 64), so no in-kernel concat is needed.
    seq0 = seq_ref[0].astype(jnp.bfloat16)
    hl = h_last.astype(jnp.bfloat16)
    for hd in range(2):                                   # 0: angle, 1: speed
        a = (jnp.dot(seq0, hw1s_ref[hd], preferred_element_type=jnp.float32)
             + jnp.dot(hl, hw1h_ref[hd], preferred_element_type=jnp.float32)
             + hb1_ref[hd])
        a = jnp.maximum(a, 0.0).astype(jnp.bfloat16)      # Dropout -> identity
        a = jnp.dot(a, hw2_ref[hd], preferred_element_type=jnp.float32) + hb2_ref[hd]
        a = jnp.maximum(a, 0.0).astype(jnp.bfloat16)
        a = jnp.dot(a, hw3_ref[hd], preferred_element_type=jnp.float32) + hb3_ref[hd]
        a = jnp.maximum(a, 0.0)
        y = jnp.dot(a, hw4_ref[hd], preferred_element_type=jnp.float32) + hb4_ref[hd]
        out_ref[:, hd:hd + 1] = y.astype(out_ref.dtype)


def lstm_and_heads(params, seq):
    """seq: (T, B, 256) -> (B, 2) = [canSteering | canSpeed]."""
    T, B, _ = seq.shape
    l0, l1, l2 = params["lstm"]
    hp = params["heads"]
    return pl.pallas_call(
        functools.partial(_lstm_heads_kernel, T=T, B=B, H=LSTM_HIDDEN),
        out_shape=jax.ShapeDtypeStruct((B, 2), jnp.float32),
        in_specs=[_vmem()] * 19,
        out_specs=_vmem(),
        scratch_shapes=[pltpu.VMEM((T, B, LSTM_HIDDEN), jnp.float32),
                        pltpu.VMEM((T, B, LSTM_HIDDEN), jnp.float32)],
    )(seq,
      l0["wih_t"], l0["whh_t"], l0["b"],
      l1["wih_t"], l1["whh_t"], l1["b"],
      l2["wih_t"], l2["whh_t"], l2["b"],
      hp["w1s"], hp["w1h"], hp["b1"],
      hp["w2"], hp["b2"], hp["w3"], hp["b3"],
      hp["w4"], hp["b4"])


# ---------------------------------------------------------------------------
# Model forward (thin glue around the two fused Pallas kernels)
# ---------------------------------------------------------------------------
def forward(params, cam_front, here_data):
    # cam_front: (T, B, 3, H, W) NCHW frames; here_data: (T, B, 20)
    T, B = cam_front.shape[:2]
    feats = frame_features(params,
                           cam_front.reshape((T * B,) + cam_front.shape[2:]),
                           here_data.reshape(T * B, DATA_IN))     # (T*B, 256)
    seq = feats.reshape(T, B, LSTM_IN)
    out = lstm_and_heads(params, seq)                             # (B, 2)
    return {"canSteering": jnp.squeeze(out[:, 0:1]),
            "canSpeed": jnp.squeeze(out[:, 1:2])}


# ---------------------------------------------------------------------------
# Deterministic parameter init (PyTorch-style uniform(+-1/sqrt(fan_in)))
# ---------------------------------------------------------------------------
def _u(key, shape, fan_in):
    bound = 1.0 / np.sqrt(fan_in)
    return jax.random.uniform(key, shape, jnp.float32, -bound, bound)


def _linear_params(key, in_dim, out_dim):
    k1, k2 = jax.random.split(key)
    return _u(k1, (in_dim, out_dim), in_dim), _u(k2, (1, out_dim), in_dim)


def _reorder_gates(a):
    """PyTorch LSTM gate order [i,f,g,o] -> kernel order [i,f,o,g] (last axis)."""
    i, f, g, o = jnp.split(a, 4, axis=-1)
    return jnp.concatenate([i, f, o, g], axis=-1)


def init_params(key):
    keys = iter(jax.random.split(key, 16))
    p = {}

    # image branch surrogate: conv3x3(3->CONV_OUT) + fc(CONV_OUT->128)
    wc_t, bc = _linear_params(next(keys), CONV_K, CONV_OUT)
    wc_t = jnp.pad(wc_t, ((0, CONV_K_PAD - CONV_K), (0, 0)))   # K padded 27->32
    wf_t, bf = _linear_params(next(keys), CONV_OUT, IMG_FEAT)
    p["cnn_front"] = {"wc_t": wc_t, "bc": bc, "wf_t": wf_t, "bf": bf}

    # nn_data: Linear(20,256)+ReLU+Linear(256,128)+ReLU
    w1_t, b1 = _linear_params(next(keys), DATA_IN, 256)
    w2_t, b2 = _linear_params(next(keys), 256, 128)
    p["nn_data"] = {"w1_t": w1_t, "b1": b1, "w2_t": w2_t, "b2": b2}

    # LSTM: 3 layers, hidden 64, input LSTM_IN for layer 0 else 64,
    # PyTorch init uniform(+-1/sqrt(hidden)); gate columns permuted to [i,f,o,g].
    lstm = []
    for l in range(LSTM_LAYERS):
        din = LSTM_IN if l == 0 else LSTM_HIDDEN
        k1, k2, k3, k4 = jax.random.split(next(keys), 4)
        wih_t = _u(k1, (din, 4 * LSTM_HIDDEN), LSTM_HIDDEN)
        whh_t = _u(k2, (LSTM_HIDDEN, 4 * LSTM_HIDDEN), LSTM_HIDDEN)
        b = (_u(k3, (1, 4 * LSTM_HIDDEN), LSTM_HIDDEN)
             + _u(k4, (1, 4 * LSTM_HIDDEN), LSTM_HIDDEN))       # b_ih + b_hh
        lstm.append({"wih_t": _reorder_gates(wih_t),
                     "whh_t": _reorder_gates(whh_t),
                     "b": _reorder_gates(b)})
    p["lstm"] = lstm

    # control heads: 320 -> 1024 -> 512 -> 256 -> 1; matmul weights in bf16,
    # first-layer weight split into (256 | 64) to skip the x_cat concat.
    def head(k):
        k1, k2, k3, k4 = jax.random.split(k, 4)
        w1_t, hb1 = _linear_params(k1, FINAL_CONCAT, 1024)
        w2_t, hb2 = _linear_params(k2, 1024, 512)
        w3_t, hb3 = _linear_params(k3, 512, 256)
        w4_t, hb4 = _linear_params(k4, 256, 1)
        return {"w1s": w1_t[:LSTM_IN].astype(jnp.bfloat16),
                "w1h": w1_t[LSTM_IN:].astype(jnp.bfloat16),
                "b1": hb1,
                "w2": w2_t.astype(jnp.bfloat16), "b2": hb2,
                "w3": w3_t.astype(jnp.bfloat16), "b3": hb3,
                "w4": w4_t, "b4": hb4}

    ha = head(next(keys))            # control_angle
    hs = head(next(keys))            # control_speed
    p["heads"] = {k: jnp.stack([ha[k], hs[k]], axis=0) for k in ha}
    return p


if __name__ == "__main__":
    T, B, C, H, W = 4, 2, 3, 16, 16
    key = jax.random.PRNGKey(0)
    kp, kc, kd = jax.random.split(key, 3)
    params = init_params(kp)
    cam_front = jax.random.normal(kc, (T, B, C, H, W), jnp.float32)
    here_data = jax.random.normal(kd, (T, B, DATA_IN), jnp.float32)

    fwd = jax.jit(forward)
    out = jax.block_until_ready(fwd(params, cam_front, here_data))
    assert out["canSteering"].shape == (B,)
    assert out["canSpeed"].shape == (B,)
    assert np.all(np.isfinite(np.asarray(out["canSteering"])))
    assert np.all(np.isfinite(np.asarray(out["canSpeed"])))
    print("KERNEL_OK")
</pallas_src>

<mosaic_0001>
module attributes {stable_mosaic.version = 11 : i64} {
  func.func @_features_kernel(%arg0: memref<2048x32xf32, #tpu.memory_space<vmem>>, %arg1: memref<8x2048xf32, #tpu.memory_space<vmem>>, %arg2: memref<32x16xf32, #tpu.memory_space<vmem>>, %arg3: memref<1x16xf32, #tpu.memory_space<vmem>>, %arg4: memref<16x128xf32, #tpu.memory_space<vmem>>, %arg5: memref<1x128xf32, #tpu.memory_space<vmem>>, %arg6: memref<8x20xf32, #tpu.memory_space<vmem>>, %arg7: memref<20x256xf32, #tpu.memory_space<vmem>>, %arg8: memref<1x256xf32, #tpu.memory_space<vmem>>, %arg9: memref<256x128xf32, #tpu.memory_space<vmem>>, %arg10: memref<1x128xf32, #tpu.memory_space<vmem>>, %arg11: memref<8x256xf32, #tpu.memory_space<vmem>>) attributes {dimension_semantics = [], scalar_prefetch = 0 : i64, scratch_operands = 0 : i64, tpu.core_type = #tpu.core_type<tc>} {
    %c0 = arith.constant 0 : index
    %c0_0 = arith.constant 0 : index
    %0 = vector.load %arg0[%c0, %c0_0] : memref<2048x32xf32, #tpu.memory_space<vmem>>, vector<2048x32xf32>
    %c0_1 = arith.constant 0 : index
    %c0_2 = arith.constant 0 : index
    %1 = vector.load %arg2[%c0_1, %c0_2] : memref<32x16xf32, #tpu.memory_space<vmem>>, vector<32x16xf32>
    %cst = arith.constant dense<0.000000e+00> : vector<2048x16xf32>
    %2 = tpu.matmul %0, %1, %cst {dimension_numbers = #tpu.dot_dimension_numbers<[1], [0], [0], [1], [0, 0, 1, 1], [], []>} : vector<2048x32xf32>, vector<32x16xf32>, vector<2048x16xf32> -> vector<2048x16xf32>
    %c0_3 = arith.constant 0 : index
    %c0_4 = arith.constant 0 : index
    %3 = vector.load %arg3[%c0_3, %c0_4] : memref<1x16xf32, #tpu.memory_space<vmem>>, vector<1x16xf32>
    %4 = vector.broadcast %3 : vector<1x16xf32> to vector<2048x16xf32>
    %5 = arith.addf %2, %4 : vector<2048x16xf32>
    %cst_5 = arith.constant 0.000000e+00 : f32
    %6 = vector.broadcast %cst_5 : f32 to vector<2048x16xf32>
    %7 = arith.maximumf %5, %6 : vector<2048x16xf32>
    %c0_6 = arith.constant 0 : index
    %c0_7 = arith.constant 0 : index
    %8 = vector.load %arg1[%c0_6, %c0_7] : memref<8x2048xf32, #tpu.memory_space<vmem>>, vector<8x2048xf32>
    %cst_8 = arith.constant dense<0.000000e+00> : vector<8x16xf32>
    %9 = tpu.matmul %8, %7, %cst_8 {dimension_numbers = #tpu.dot_dimension_numbers<[1], [0], [0], [1], [0, 0, 1, 1], [], []>} : vector<8x2048xf32>, vector<2048x16xf32>, vector<8x16xf32> -> vector<8x16xf32>
    %c0_9 = arith.constant 0 : index
    %c0_10 = arith.constant 0 : index
    %10 = vector.load %arg4[%c0_9, %c0_10] : memref<16x128xf32, #tpu.memory_space<vmem>>, vector<16x128xf32>
    %cst_11 = arith.constant dense<0.000000e+00> : vector<8x128xf32>
    %11 = tpu.matmul %9, %10, %cst_11 {dimension_numbers = #tpu.dot_dimension_numbers<[1], [0], [0], [1], [0, 0, 1, 1], [], []>} : vector<8x16xf32>, vector<16x128xf32>, vector<8x128xf32> -> vector<8x128xf32>
    %c0_12 = arith.constant 0 : index
    %c0_13 = arith.constant 0 : index
    %12 = vector.load %arg5[%c0_12, %c0_13] : memref<1x128xf32, #tpu.memory_space<vmem>>, vector<1x128xf32>
    %13 = vector.broadcast %12 : vector<1x128xf32> to vector<8x128xf32>
    %14 = arith.addf %11, %13 : vector<8x128xf32>
    %cst_14 = arith.constant 0.000000e+00 : f32
    %15 = vector.broadcast %cst_14 : f32 to vector<8x128xf32>
    %16 = arith.maximumf %14, %15 : vector<8x128xf32>
    %c0_15 = arith.constant 0 : index
    %c0_16 = arith.constant 0 : index
    %17 = vector.load %arg6[%c0_15, %c0_16] : memref<8x20xf32, #tpu.memory_space<vmem>>, vector<8x20xf32>
    %c0_17 = arith.constant 0 : index
    %c0_18 = arith.constant 0 : index
    %18 = vector.load %arg7[%c0_17, %c0_18] : memref<20x256xf32, #tpu.memory_space<vmem>>, vector<20x256xf32>
    %cst_19 = arith.constant dense<0.000000e+00> : vector<8x256xf32>
    %19 = tpu.matmul %17, %18, %cst_19 {dimension_numbers = #tpu.dot_dimension_numbers<[1], [0], [0], [1], [0, 0, 1, 1], [], []>} : vector<8x20xf32>, vector<20x256xf32>, vector<8x256xf32> -> vector<8x256xf32>
    %c0_20 = arith.constant 0 : index
    %c0_21 = arith.constant 0 : index
    %20 = vector.load %arg8[%c0_20, %c0_21] : memref<1x256xf32, #tpu.memory_space<vmem>>, vector<1x256xf32>
    %21 = vector.broadcast %20 : vector<1x256xf32> to vector<8x256xf32>
    %22 = arith.addf %19, %21 : vector<8x256xf32>
    %cst_22 = arith.constant 0.000000e+00 : f32
    %23 = vector.broadcast %cst_22 : f32 to vector<8x256xf32>
    %24 = arith.maximumf %22, %23 : vector<8x256xf32>
    %c0_23 = arith.constant 0 : index
    %c0_24 = arith.constant 0 : index
    %25 = vector.load %arg9[%c0_23, %c0_24] : memref<256x128xf32, #tpu.memory_space<vmem>>, vector<256x128xf32>
    %cst_25 = arith.constant dense<0.000000e+00> : vector<8x128xf32>
    %26 = tpu.matmul %24, %25, %cst_25 {dimension_numbers = #tpu.dot_dimension_numbers<[1], [0], [0], [1], [0, 0, 1, 1], [], []>} : vector<8x256xf32>, vector<256x128xf32>, vector<8x128xf32> -> vector<8x128xf32>
    %c0_26 = arith.constant 0 : index
    %c0_27 = arith.constant 0 : index
    %27 = vector.load %arg10[%c0_26, %c0_27] : memref<1x128xf32, #tpu.memory_space<vmem>>, vector<1x128xf32>
    %28 = vector.broadcast %27 : vector<1x128xf32> to vector<8x128xf32>
    %29 = arith.addf %26, %28 : vector<8x128xf32>
    %cst_28 = arith.constant 0.000000e+00 : f32
    %30 = vector.broadcast %cst_28 : f32 to vector<8x128xf32>
    %31 = arith.maximumf %29, %30 : vector<8x128xf32>
    %c0_29 = arith.constant 0 : index
    %c0_30 = arith.constant 0 : index
    %32 = vector.load %arg11[%c0_29, %c0_30] : memref<8x256xf32, #tpu.memory_space<vmem>>, vector<8x128xf32>
    tpu.vector_store %arg11[%c0_29, %c0_30], %16 {strides = array<i32>} : memref<8x256xf32, #tpu.memory_space<vmem>>, vector<8x128xf32>,
    %c0_31 = arith.constant 0 : index
    %c128 = arith.constant 128 : index
    %33 = vector.load %arg11[%c0_31, %c128] : memref<8x256xf32, #tpu.memory_space<vmem>>, vector<8x128xf32>
    tpu.vector_store %arg11[%c0_31, %c128], %31 {strides = array<i32>} : memref<8x256xf32, #tpu.memory_space<vmem>>, vector<8x128xf32>,
    return
  }
}

module attributes {stable_mosaic.version = 11 : i64} {
  func.func @_lstm_heads_kernel(%arg0: memref<4x2x256xf32, #tpu.memory_space<vmem>>, %arg1: memref<256x256xf32, #tpu.memory_space<vmem>>, %arg2: memref<64x256xf32, #tpu.memory_space<vmem>>, %arg3: memref<1x256xf32, #tpu.memory_space<vmem>>, %arg4: memref<64x256xf32, #tpu.memory_space<vmem>>, %arg5: memref<64x256xf32, #tpu.memory_space<vmem>>, %arg6: memref<1x256xf32, #tpu.memory_space<vmem>>, %arg7: memref<64x256xf32, #tpu.memory_space<vmem>>, %arg8: memref<64x256xf32, #tpu.memory_space<vmem>>, %arg9: memref<1x256xf32, #tpu.memory_space<vmem>>, %arg10: memref<2x256x1024xbf16, #tpu.memory_space<vmem>>, %arg11: memref<2x64x1024xbf16, #tpu.memory_space<vmem>>, %arg12: memref<2x1x1024xf32, #tpu.memory_space<vmem>>, %arg13: memref<2x1024x512xbf16, #tpu.memory_space<vmem>>, %arg14: memref<2x1x512xf32, #tpu.memory_space<vmem>>, %arg15: memref<2x512x256xbf16, #tpu.memory_space<vmem>>, %arg16: memref<2x1x256xf32, #tpu.memory_space<vmem>>, %arg17: memref<2x256x1xf32, #tpu.memory_space<vmem>>, %arg18: memref<2x1x1xf32, #tpu.memory_space<vmem>>, %arg19: memref<2x2xf32, #tpu.memory_space<vmem>>, %arg20: memref<4x2x64xf32, #tpu.memory_space<vmem>>, %arg21: memref<4x2x64xf32, #tpu.memory_space<vmem>>) attributes {dimension_semantics = [], scalar_prefetch = 0 : i64, scratch_operands = 2 : i64, tpu.core_type = #tpu.core_type<tc>} {
    %c0 = arith.constant 0 : index
    %c0_0 = arith.constant 0 : index
    %0 = vector.load %arg1[%c0, %c0_0] : memref<256x256xf32, #tpu.memory_space<vmem>>, vector<256x256xf32>
    %c0_1 = arith.constant 0 : index
    %c0_2 = arith.constant 0 : index
    %1 = vector.load %arg2[%c0_1, %c0_2] : memref<64x256xf32, #tpu.memory_space<vmem>>, vector<64x256xf32>
    %c0_3 = arith.constant 0 : index
    %c0_4 = arith.constant 0 : index
    %2 = vector.load %arg3[%c0_3, %c0_4] : memref<1x256xf32, #tpu.memory_space<vmem>>, vector<1x256xf32>
    %3 = vector.shape_cast %2 : vector<1x256xf32> to vector<1x256xf32>
    %4 = vector.broadcast %3 : vector<1x256xf32> to vector<2x256xf32>
    %cst = arith.constant 0.000000e+00 : f32
    %5 = vector.broadcast %cst : f32 to vector<2x64xf32>
    %c0_i32 = arith.constant 0 : i32
    %6 = arith.index_cast %c0_i32 : i32 to index
    %c0_5 = arith.constant 0 : index
    %c0_6 = arith.constant 0 : index
    %7 = vector.load %arg0[%6, %c0_5, %c0_6] : memref<4x2x256xf32, #tpu.memory_space<vmem>>, vector<1x2x256xf32>
    %8 = vector.shape_cast %7 : vector<1x2x256xf32> to vector<2x256xf32>
    %cst_7 = arith.constant dense<0.000000e+00> : vector<2x256xf32>
    %9 = tpu.matmul %8, %0, %cst_7 {dimension_numbers = #tpu.dot_dimension_numbers<[1], [0], [0], [1], [0, 0, 1, 1], [], []>} : vector<2x256xf32>, vector<256x256xf32>, vector<2x256xf32> -> vector<2x256xf32>
    %cst_8 = arith.constant dense<0.000000e+00> : vector<2x256xf32>
    %10 = tpu.matmul %5, %1, %cst_8 {dimension_numbers = #tpu.dot_dimension_numbers<[1], [0], [0], [1], [0, 0, 1, 1], [], []>} : vector<2x64xf32>, vector<64x256xf32>, vector<2x256xf32> -> vector<2x256xf32>
    %11 = arith.addf %9, %10 : vector<2x256xf32>
    %12 = arith.addf %11, %4 : vector<2x256xf32>
    %13 = vector.extract_strided_slice %12 {offsets = [0, 0], sizes = [2, 192], strides = [1, 1]} : vector<2x256xf32> to vector<2x192xf32>
    %14 = arith.negf %13 : vector<2x192xf32>
    %15 = math.exp %14 : vector<2x192xf32>
    %cst_9 = arith.constant 1.000000e+00 : f32
    %16 = vector.broadcast %cst_9 : f32 to vector<2x192xf32>
    %17 = arith.addf %16, %15 : vector<2x192xf32>
    %18 = arith.divf %16, %17 : vector<2x192xf32>
    %19 = vector.extract_strided_slice %12 {offsets = [0, 192], sizes = [2, 64], strides = [1, 1]} : vector<2x256xf32> to vector<2x64xf32>
    %20 = math.tanh %19 : vector<2x64xf32>
    %21 = vector.extract_strided_slice %18 {offsets = [0, 64], sizes = [2, 64], strides = [1, 1]} : vector<2x192xf32> to vector<2x64xf32>
    %22 = arith.mulf %21, %5 : vector<2x64xf32>
    %23 = vector.extract_strided_slice %18 {offsets = [0, 0], sizes = [2, 64], strides = [1, 1]} : vector<2x192xf32> to vector<2x64xf32>
    %24 = arith.mulf %23, %20 : vector<2x64xf32>
    %25 = arith.addf %22, %24 : vector<2x64xf32>
    %26 = vector.extract_strided_slice %18 {offsets = [0, 128], sizes = [2, 64], strides = [1, 1]} : vector<2x192xf32> to vector<2x64xf32>
    %27 = math.tanh %25 : vector<2x64xf32>
    %28 = arith.mulf %26, %27 : vector<2x64xf32>
    %29 = arith.index_cast %c0_i32 : i32 to index
    %c0_10 = arith.constant 0 : index
    %c0_11 = arith.constant 0 : index
    %30 = vector.load %arg20[%29, %c0_10, %c0_11] : memref<4x2x64xf32, #tpu.memory_space<vmem>>, vector<1x2x64xf32>
    %31 = vector.shape_cast %30 : vector<1x2x64xf32> to vector<2x64xf32>
    %32 = vector.shape_cast %28 : vector<2x64xf32> to vector<1x2x64xf32>
    tpu.vector_store %arg20[%29, %c0_10, %c0_11], %32 {strides = array<i32>} : memref<4x2x64xf32, #tpu.memory_space<vmem>>, vector<1x2x64xf32>,
    %c1_i32 = arith.constant 1 : i32
    %33 = arith.index_cast %c1_i32 : i32 to index
    %c0_12 = arith.constant 0 : index
    %c0_13 = arith.constant 0 : index
    %34 = vector.load %arg0[%33, %c0_12, %c0_13] : memref<4x2x256xf32, #tpu.memory_space<vmem>>, vector<1x2x256xf32>
    %35 = vector.shape_cast %34 : vector<1x2x256xf32> to vector<2x256xf32>
    %cst_14 = arith.constant dense<0.000000e+00> : vector<2x256xf32>
    %36 = tpu.matmul %35, %0, %cst_14 {dimension_numbers = #tpu.dot_dimension_numbers<[1], [0], [0], [1], [0, 0, 1, 1], [], []>} : vector<2x256xf32>, vector<256x256xf32>, vector<2x256xf32> -> vector<2x256xf32>
    %cst_15 = arith.constant dense<0.000000e+00> : vector<2x256xf32>
    %37 = tpu.matmul %28, %1, %cst_15 {dimension_numbers = #tpu.dot_dimension_numbers<[1], [0], [0], [1], [0, 0, 1, 1], [], []>} : vector<2x64xf32>, vector<64x256xf32>, vector<2x256xf32> -> vector<2x256xf32>
    %38 = arith.addf %36, %37 : vector<2x256xf32>
    %39 = arith.addf %38, %4 : vector<2x256xf32>
    %40 = vector.extract_strided_slice %39 {offsets = [0, 0], sizes = [2, 192], strides = [1, 1]} : vector<2x256xf32> to vector<2x192xf32>
    %41 = arith.negf %40 : vector<2x192xf32>
    %42 = math.exp %41 : vector<2x192xf32>
    %cst_16 = arith.constant 1.000000e+00 : f32
    %43 = vector.broadcast %cst_16 : f32 to vector<2x192xf32>
    %44 = arith.addf %43, %42 : vector<2x192xf32>
    %45 = arith.divf %43, %44 : vector<2x192xf32>
    %46 = vector.extract_strided_slice %39 {offsets = [0, 192], sizes = [2, 64], strides = [1, 1]} : vector<2x256xf32> to vector<2x64xf32>
    %47 = math.tanh %46 : vector<2x64xf32>
    %48 = vector.extract_strided_slice %45 {offsets = [0, 64], sizes = [2, 64], strides = [1, 1]} : vector<2x192xf32> to vector<2x64xf32>
    %49 = arith.mulf %48, %25 : vector<2x64xf32>
    %50 = vector.extract_strided_slice %45 {offsets = [0, 0], sizes = [2, 64], strides = [1, 1]} : vector<2x192xf32> to vector<2x64xf32>
    %51 = arith.mulf %50, %47 : vector<2x64xf32>
    %52 = arith.addf %49, %51 : vector<2x64xf32>
    %53 = vector.extract_strided_slice %45 {offsets = [0, 128], sizes = [2, 64], strides = [1, 1]} : vector<2x192xf32> to vector<2x64xf32>
    %54 = math.tanh %52 : vector<2x64xf32>
    %55 = arith.mulf %53, %54 : vector<2x64xf32>
    %56 = arith.index_cast %c1_i32 : i32 to index
    %c0_17 = arith.constant 0 : index
    %c0_18 = arith.constant 0 : index
    %57 = vector.load %arg20[%56, %c0_17, %c0_18] : memref<4x2x64xf32, #tpu.memory_space<vmem>>, vector<1x2x64xf32>
    %58 = vector.shape_cast %57 : vector<1x2x64xf32> to vector<2x64xf32>
    %59 = vector.shape_cast %55 : vector<2x64xf32> to vector<1x2x64xf32>
    tpu.vector_store %arg20[%56, %c0_17, %c0_18], %59 {strides = array<i32>} : memref<4x2x64xf32, #tpu.memory_space<vmem>>, vector<1x2x64xf32>,
    %c2_i32 = arith.constant 2 : i32
    %60 = arith.index_cast %c2_i32 : i32 to index
    %c0_19 = arith.constant 0 : index
    %c0_20 = arith.constant 0 : index
    %61 = vector.load %arg0[%60, %c0_19, %c0_20] : memref<4x2x256xf32, #tpu.memory_space<vmem>>, vector<1x2x256xf32>
    %62 = vector.shape_cast %61 : vector<1x2x256xf32> to vector<2x256xf32>
    %cst_21 = arith.constant dense<0.000000e+00> : vector<2x256xf32>
    %63 = tpu.matmul %62, %0, %cst_21 {dimension_numbers = #tpu.dot_dimension_numbers<[1], [0], [0], [1], [0, 0, 1, 1], [], []>} : vector<2x256xf32>, vector<256x256xf32>, vector<2x256xf32> -> vector<2x256xf32>
    %cst_22 = arith.constant dense<0.000000e+00> : vector<2x256xf32>
    %64 = tpu.matmul %55, %1, %cst_22 {dimension_numbers = #tpu.dot_dimension_numbers<[1], [0], [0], [1], [0, 0, 1, 1], [], []>} : vector<2x64xf32>, vector<64x256xf32>, vector<2x256xf32> -> vector<2x256xf32>
    %65 = arith.addf %63, %64 : vector<2x256xf32>
    %66 = arith.addf %65, %4 : vector<2x256xf32>
    %67 = vector.extract_strided_slice %66 {offsets = [0, 0], sizes = [2, 192], strides = [1, 1]} : vector<2x256xf32> to vector<2x192xf32>
    %68 = arith.negf %67 : vector<2x192xf32>
    %69 = math.exp %68 : vector<2x192xf32>
    %cst_23 = arith.constant 1.000000e+00 : f32
    %70 = vector.broadcast %cst_23 : f32 to vector<2x192xf32>
    %71 = arith.addf %70, %69 : vector<2x192xf32>
    %72 = arith.divf %70, %71 : vector<2x192xf32>
    %73 = vector.extract_strided_slice %66 {offsets = [0, 192], sizes = [2, 64], strides = [1, 1]} : vector<2x256xf32> to vector<2x64xf32>
    %74 = math.tanh %73 : vector<2x64xf32>
    %75 = vector.extract_strided_slice %72 {offsets = [0, 64], sizes = [2, 64], strides = [1, 1]} : vector<2x192xf32> to vector<2x64xf32>
    %76 = arith.mulf %75, %52 : vector<2x64xf32>
    %77 = vector.extract_strided_slice %72 {offsets = [0, 0], sizes = [2, 64], strides = [1, 1]} : vector<2x192xf32> to vector<2x64xf32>
    %78 = arith.mulf %77, %74 : vector<2x64xf32>
    %79 = arith.addf %76, %78 : vector<2x64xf32>
    %80 = vector.extract_strided_slice %72 {offsets = [0, 128], sizes = [2, 64], strides = [1, 1]} : vector<2x192xf32> to vector<2x64xf32>
    %81 = math.tanh %79 : vector<2x64xf32>
    %82 = arith.mulf %80, %81 : vector<2x64xf32>
    %83 = arith.index_cast %c2_i32 : i32 to index
    %c0_24 = arith.constant 0 : index
    %c0_25 = arith.constant 0 : index
    %84 = vector.load %arg20[%83, %c0_24, %c0_25] : memref<4x2x64xf32, #tpu.memory_space<vmem>>, vector<1x2x64xf32>
    %85 = vector.shape_cast %84 : vector<1x2x64xf32> to vector<2x64xf32>
    %86 = vector.shape_cast %82 : vector<2x64xf32> to vector<1x2x64xf32>
    tpu.vector_store %arg20[%83, %c0_24, %c0_25], %86 {strides = array<i32>} : memref<4x2x64xf32, #tpu.memory_space<vmem>>, vector<1x2x64xf32>,
    %c3_i32 = arith.constant 3 : i32
    %87 = arith.index_cast %c3_i32 : i32 to index
    %c0_26 = arith.constant 0 : index
    %c0_27 = arith.constant 0 : index
    %88 = vector.load %arg0[%87, %c0_26, %c0_27] : memref<4x2x256xf32, #tpu.memory_space<vmem>>, vector<1x2x256xf32>
    %89 = vector.shape_cast %88 : vector<1x2x256xf32> to vector<2x256xf32>
    %cst_28 = arith.constant dense<0.000000e+00> : vector<2x256xf32>
    %90 = tpu.matmul %89, %0, %cst_28 {dimension_numbers = #tpu.dot_dimension_numbers<[1], [0], [0], [1], [0, 0, 1, 1], [], []>} : vector<2x256xf32>, vector<256x256xf32>, vector<2x256xf32> -> vector<2x256xf32>
    %cst_29 = arith.constant dense<0.000000e+00> : vector<2x256xf32>
    %91 = tpu.matmul %82, %1, %cst_29 {dimension_numbers = #tpu.dot_dimension_numbers<[1], [0], [0], [1], [0, 0, 1, 1], [], []>} : vector<2x64xf32>, vector<64x256xf32>, vector<2x256xf32> -> vector<2x256xf32>
    %92 = arith.addf %90, %91 : vector<2x256xf32>
    %93 = arith.addf %92, %4 : vector<2x256xf32>
    %94 = vector.extract_strided_slice %93 {offsets = [0, 0], sizes = [2, 192], strides = [1, 1]} : vector<2x256xf32> to vector<2x192xf32>
    %95 = arith.negf %94 : vector<2x192xf32>
    %96 = math.exp %95 : vector<2x192xf32>
    %cst_30 = arith.constant 1.000000e+00 : f32
    %97 = vector.broadcast %cst_30 : f32 to vector<2x192xf32>
    %98 = arith.addf %97, %96 : vector<2x192xf32>
    %99 = arith.divf %97, %98 : vector<2x192xf32>
    %100 = vector.extract_strided_slice %93 {offsets = [0, 192], sizes = [2, 64], strides = [1, 1]} : vector<2x256xf32> to vector<2x64xf32>
    %101 = math.tanh %100 : vector<2x64xf32>
    %102 = vector.extract_strided_slice %99 {offsets = [0, 64], sizes = [2, 64], strides = [1, 1]} : vector<2x192xf32> to vector<2x64xf32>
    %103 = arith.mulf %102, %79 : vector<2x64xf32>
    %104 = vector.extract_strided_slice %99 {offsets = [0, 0], sizes = [2, 64], strides = [1, 1]} : vector<2x192xf32> to vector<2x64xf32>
    %105 = arith.mulf %104, %101 : vector<2x64xf32>
    %106 = arith.addf %103, %105 : vector<2x64xf32>
    %107 = vector.extract_strided_slice %99 {offsets = [0, 128], sizes = [2, 64], strides = [1, 1]} : vector<2x192xf32> to vector<2x64xf32>
    %108 = math.tanh %106 : vector<2x64xf32>
    %109 = arith.mulf %107, %108 : vector<2x64xf32>
    %110 = arith.index_cast %c3_i32 : i32 to index
    %c0_31 = arith.constant 0 : index
    %c0_32 = arith.constant 0 : index
    %111 = vector.load %arg20[%110, %c0_31, %c0_32] : memref<4x2x64xf32, #tpu.memory_space<vmem>>, vector<1x2x64xf32>
    %112 = vector.shape_cast %111 : vector<1x2x64xf32> to vector<2x64xf32>
    %113 = vector.shape_cast %109 : vector<2x64xf32> to vector<1x2x64xf32>
    tpu.vector_store %arg20[%110, %c0_31, %c0_32], %113 {strides = array<i32>} : memref<4x2x64xf32, #tpu.memory_space<vmem>>, vector<1x2x64xf32>,
    %c4_i32 = arith.constant 4 : i32
    %c0_33 = arith.constant 0 : index
    %c0_34 = arith.constant 0 : index
    %114 = vector.load %arg4[%c0_33, %c0_34] : memref<64x256xf32, #tpu.memory_space<vmem>>, vector<64x256xf32>
    %c0_35 = arith.constant 0 : index
    %c0_36 = arith.constant 0 : index
    %115 = vector.load %arg5[%c0_35, %c0_36] : memref<64x256xf32, #tpu.memory_space<vmem>>, vector<64x256xf32>
    %c0_37 = arith.constant 0 : index
    %c0_38 = arith.constant 0 : index
    %116 = vector.load %arg6[%c0_37, %c0_38] : memref<1x256xf32, #tpu.memory_space<vmem>>, vector<1x256xf32>
    %117 = vector.shape_cast %116 : vector<1x256xf32> to vector<1x256xf32>
    %118 = vector.broadcast %117 : vector<1x256xf32> to vector<2x256xf32>
    %cst_39 = arith.constant 0.000000e+00 : f32
    %119 = vector.broadcast %cst_39 : f32 to vector<2x64xf32>
    %c0_i32_40 = arith.constant 0 : i32
    %120 = arith.index_cast %c0_i32_40 : i32 to index
    %c0_41 = arith.constant 0 : index
    %c0_42 = arith.constant 0 : index
    %121 = vector.load %arg20[%120, %c0_41, %c0_42] : memref<4x2x64xf32, #tpu.memory_space<vmem>>, vector<1x2x64xf32>
    %122 = vector.shape_cast %121 : vector<1x2x64xf32> to vector<2x64xf32>
    %cst_43 = arith.constant dense<0.000000e+00> : vector<2x256xf32>
    %123 = tpu.matmul %122, %114, %cst_43 {dimension_numbers = #tpu.dot_dimension_numbers<[1], [0], [0], [1], [0, 0, 1, 1], [], []>} : vector<2x64xf32>, vector<64x256xf32>, vector<2x256xf32> -> vector<2x256xf32>
    %cst_44 = arith.constant dense<0.000000e+00> : vector<2x256xf32>
    %124 = tpu.matmul %119, %115, %cst_44 {dimension_numbers = #tpu.dot_dimension_numbers<[1], [0], [0], [1], [0, 0, 1, 1], [], []>} : vector<2x64xf32>, vector<64x256xf32>, vector<2x256xf32> -> vector<2x256xf32>
    %125 = arith.addf %123, %124 : vector<2x256xf32>
    %126 = arith.addf %125, %118 : vector<2x256xf32>
    %127 = vector.extract_strided_slice %126 {offsets = [0, 0], sizes = [2, 192], strides = [1, 1]} : vector<2x256xf32> to vector<2x192xf32>
    %128 = arith.negf %127 : vector<2x192xf32>
    %129 = math.exp %128 : vector<2x192xf32>
    %cst_45 = arith.constant 1.000000e+00 : f32
    %130 = vector.broadcast %cst_45 : f32 to vector<2x192xf32>
    %131 = arith.addf %130, %129 : vector<2x192xf32>
    %132 = arith.divf %130, %131 : vector<2x192xf32>
    %133 = vector.extract_strided_slice %126 {offsets = [0, 192], sizes = [2, 64], strides = [1, 1]} : vector<2x256xf32> to vector<2x64xf32>
    %134 = math.tanh %133 : vector<2x64xf32>
    %135 = vector.extract_strided_slice %132 {offsets = [0, 64], sizes = [2, 64], strides = [1, 1]} : vector<2x192xf32> to vector<2x64xf32>
    %136 = arith.mulf %135, %119 : vector<2x64xf32>
    %137 = vector.extract_strided_slice %132 {offsets = [0, 0], sizes = [2, 64], strides = [1, 1]} : vector<2x192xf32> to vector<2x64xf32>
    %138 = arith.mulf %137, %134 : vector<2x64xf32>
    %139 = arith.addf %136, %138 : vector<2x64xf32>
    %140 = vector.extract_strided_slice %132 {offsets = [0, 128], sizes = [2, 64], strides = [1, 1]} : vector<2x192xf32> to vector<2x64xf32>
    %141 = math.tanh %139 : vector<2x64xf32>
    %142 = arith.mulf %140, %141 : vector<2x64xf32>
    %143 = arith.index_cast %c0_i32_40 : i32 to index
    %c0_46 = arith.constant 0 : index
    %c0_47 = arith.constant 0 : index
    %144 = vector.load %arg21[%143, %c0_46, %c0_47] : memref<4x2x64xf32, #tpu.memory_space<vmem>>, vector<1x2x64xf32>
    %145 = vector.shape_cast %144 : vector<1x2x64xf32> to vector<2x64xf32>
    %146 = vector.shape_cast %142 : vector<2x64xf32> to vector<1x2x64xf32>
    tpu.vector_store %arg21[%143, %c0_46, %c0_47], %146 {strides = array<i32>} : memref<4x2x64xf32, #tpu.memory_space<vmem>>, vector<1x2x64xf32>,
    %c1_i32_48 = arith.constant 1 : i32
    %147 = arith.index_cast %c1_i32_48 : i32 to index
    %c0_49 = arith.constant 0 : index
    %c0_50 = arith.constant 0 : index
    %148 = vector.load %arg20[%147, %c0_49, %c0_50] : memref<4x2x64xf32, #tpu.memory_space<vmem>>, vector<1x2x64xf32>
    %149 = vector.shape_cast %148 : vector<1x2x64xf32> to vector<2x64xf32>
    %cst_51 = arith.constant dense<0.000000e+00> : vector<2x256xf32>
    %150 = tpu.matmul %149, %114, %cst_51 {dimension_numbers = #tpu.dot_dimension_numbers<[1], [0], [0], [1], [0, 0, 1, 1], [], []>} : vector<2x64xf32>, vector<64x256xf32>, vector<2x256xf32> -> vector<2x256xf32>
    %cst_52 = arith.constant dense<0.000000e+00> : vector<2x256xf32>
    %151 = tpu.matmul %142, %115, %cst_52 {dimension_numbers = #tpu.dot_dimension_numbers<[1], [0], [0], [1], [0, 0, 1, 1], [], []>} : vector<2x64xf32>, vector<64x256xf32>, vector<2x256xf32> -> vector<2x256xf32>
    %152 = arith.addf %150, %151 : vector<2x256xf32>
    %153 = arith.addf %152, %118 : vector<2x256xf32>
    %154 = vector.extract_strided_slice %153 {offsets = [0, 0], sizes = [2, 192], strides = [1, 1]} : vector<2x256xf32> to vector<2x192xf32>
    %155 = arith.negf %154 : vector<2x192xf32>
    %156 = math.exp %155 : vector<2x192xf32>
    %cst_53 = arith.constant 1.000000e+00 : f32
    %157 = vector.broadcast %cst_53 : f32 to vector<2x192xf32>
    %158 = arith.addf %157, %156 : vector<2x192xf32>
    %159 = arith.divf %157, %158 : vector<2x192xf32>
    %160 = vector.extract_strided_slice %153 {offsets = [0, 192], sizes = [2, 64], strides = [1, 1]} : vector<2x256xf32> to vector<2x64xf32>
    %161 = math.tanh %160 : vector<2x64xf32>
    %162 = vector.extract_strided_slice %159 {offsets = [0, 64], sizes = [2, 64], strides = [1, 1]} : vector<2x192xf32> to vector<2x64xf32>
    %163 = arith.mulf %162, %139 : vector<2x64xf32>
    %164 = vector.extract_strided_slice %159 {offsets = [0, 0], sizes = [2, 64], strides = [1, 1]} : vector<2x192xf32> to vector<2x64xf32>
    %165 = arith.mulf %164, %161 : vector<2x64xf32>
    %166 = arith.addf %163, %165 : vector<2x64xf32>
    %167 = vector.extract_strided_slice %159 {offsets = [0, 128], sizes = [2, 64], strides = [1, 1]} : vector<2x192xf32> to vector<2x64xf32>
    %168 = math.tanh %166 : vector<2x64xf32>
    %169 = arith.mulf %167, %168 : vector<2x64xf32>
    %170 = arith.index_cast %c1_i32_48 : i32 to index
    %c0_54 = arith.constant 0 : index
    %c0_55 = arith.constant 0 : index
    %171 = vector.load %arg21[%170, %c0_54, %c0_55] : memref<4x2x64xf32, #tpu.memory_space<vmem>>, vector<1x2x64xf32>
    %172 = vector.shape_cast %171 : vector<1x2x64xf32> to vector<2x64xf32>
    %173 = vector.shape_cast %169 : vector<2x64xf32> to vector<1x2x64xf32>
    tpu.vector_store %arg21[%170, %c0_54, %c0_55], %173 {strides = array<i32>} : memref<4x2x64xf32, #tpu.memory_space<vmem>>, vector<1x2x64xf32>,
    %c2_i32_56 = arith.constant 2 : i32
    %174 = arith.index_cast %c2_i32_56 : i32 to index
    %c0_57 = arith.constant 0 : index
    %c0_58 = arith.constant 0 : index
    %175 = vector.load %arg20[%174, %c0_57, %c0_58] : memref<4x2x64xf32, #tpu.memory_space<vmem>>, vector<1x2x64xf32>
    %176 = vector.shape_cast %175 : vector<1x2x64xf32> to vector<2x64xf32>
    %cst_59 = arith.constant dense<0.000000e+00> : vector<2x256xf32>
    %177 = tpu.matmul %176, %114, %cst_59 {dimension_numbers = #tpu.dot_dimension_numbers<[1], [0], [0], [1], [0, 0, 1, 1], [], []>} : vector<2x64xf32>, vector<64x256xf32>, vector<2x256xf32> -> vector<2x256xf32>
    %cst_60 = arith.constant dense<0.000000e+00> : vector<2x256xf32>
    %178 = tpu.matmul %169, %115, %cst_60 {dimension_numbers = #tpu.dot_dimension_numbers<[1], [0], [0], [1], [0, 0, 1, 1], [], []>} : vector<2x64xf32>, vector<64x256xf32>, vector<2x256xf32> -> vector<2x256xf32>
    %179 = arith.addf %177, %178 : vector<2x256xf32>
    %180 = arith.addf %179, %118 : vector<2x256xf32>
    %181 = vector.extract_strided_slice %180 {offsets = [0, 0], sizes = [2, 192], strides = [1, 1]} : vector<2x256xf32> to vector<2x192xf32>
    %182 = arith.negf %181 : vector<2x192xf32>
    %183 = math.exp %182 : vector<2x192xf32>
    %cst_61 = arith.constant 1.000000e+00 : f32
    %184 = vector.broadcast %cst_61 : f32 to vector<2x192xf32>
    %185 = arith.addf %184, %183 : vector<2x192xf32>
    %186 = arith.divf %184, %185 : vector<2x192xf32>
    %187 = vector.extract_strided_slice %180 {offsets = [0, 192], sizes = [2, 64], strides = [1, 1]} : vector<2x256xf32> to vector<2x64xf32>
    %188 = math.tanh %187 : vector<2x64xf32>
    %189 = vector.extract_strided_slice %186 {offsets = [0, 64], sizes = [2, 64], strides = [1, 1]} : vector<2x192xf32> to vector<2x64xf32>
    %190 = arith.mulf %189, %166 : vector<2x64xf32>
    %191 = vector.extract_strided_slice %186 {offsets = [0, 0], sizes = [2, 64], strides = [1, 1]} : vector<2x192xf32> to vector<2x64xf32>
    %192 = arith.mulf %191, %188 : vector<2x64xf32>
    %193 = arith.addf %190, %192 : vector<2x64xf32>
    %194 = vector.extract_strided_slice %186 {offsets = [0, 128], sizes = [2, 64], strides = [1, 1]} : vector<2x192xf32> to vector<2x64xf32>
    %195 = math.tanh %193 : vector<2x64xf32>
    %196 = arith.mulf %194, %195 : vector<2x64xf32>
    %197 = arith.index_cast %c2_i32_56 : i32 to index
    %c0_62 = arith.constant 0 : index
    %c0_63 = arith.constant 0 : index
    %198 = vector.load %arg21[%197, %c0_62, %c0_63] : memref<4x2x64xf32, #tpu.memory_space<vmem>>, vector<1x2x64xf32>
    %199 = vector.shape_cast %198 : vector<1x2x64xf32> to vector<2x64xf32>
    %200 = vector.shape_cast %196 : vector<2x64xf32> to vector<1x2x64xf32>
    tpu.vector_store %arg21[%197, %c0_62, %c0_63], %200 {strides = array<i32>} : memref<4x2x64xf32, #tpu.memory_space<vmem>>, vector<1x2x64xf32>,
    %c3_i32_64 = arith.constant 3 : i32
    %201 = arith.index_cast %c3_i32_64 : i32 to index
    %c0_65 = arith.constant 0 : index
    %c0_66 = arith.constant 0 : index
    %202 = vector.load %arg20[%201, %c0_65, %c0_66] : memref<4x2x64xf32, #tpu.memory_space<vmem>>, vector<1x2x64xf32>
    %203 = vector.shape_cast %202 : vector<1x2x64xf32> to vector<2x64xf32>
    %cst_67 = arith.constant dense<0.000000e+00> : vector<2x256xf32>
    %204 = tpu.matmul %203, %114, %cst_67 {dimension_numbers = #tpu.dot_dimension_numbers<[1], [0], [0], [1], [0, 0, 1, 1], [], []>} : vector<2x64xf32>, vector<64x256xf32>, vector<2x256xf32> -> vector<2x256xf32>
    %cst_68 = arith.constant dense<0.000000e+00> : vector<2x256xf32>
    %205 = tpu.matmul %196, %115, %cst_68 {dimension_numbers = #tpu.dot_dimension_numbers<[1], [0], [0], [1], [0, 0, 1, 1], [], []>} : vector<2x64xf32>, vector<64x256xf32>, vector<2x256xf32> -> vector<2x256xf32>
    %206 = arith.addf %204, %205 : vector<2x256xf32>
    %207 = arith.addf %206, %118 : vector<2x256xf32>
    %208 = vector.extract_strided_slice %207 {offsets = [0, 0], sizes = [2, 192], strides = [1, 1]} : vector<2x256xf32> to vector<2x192xf32>
    %209 = arith.negf %208 : vector<2x192xf32>
    %210 = math.exp %209 : vector<2x192xf32>
    %cst_69 = arith.constant 1.000000e+00 : f32
    %211 = vector.broadcast %cst_69 : f32 to vector<2x192xf32>
    %212 = arith.addf %211, %210 : vector<2x192xf32>
    %213 = arith.divf %211, %212 : vector<2x192xf32>
    %214 = vector.extract_strided_slice %207 {offsets = [0, 192], sizes = [2, 64], strides = [1, 1]} : vector<2x256xf32> to vector<2x64xf32>
    %215 = math.tanh %214 : vector<2x64xf32>
    %216 = vector.extract_strided_slice %213 {offsets = [0, 64], sizes = [2, 64], strides = [1, 1]} : vector<2x192xf32> to vector<2x64xf32>
    %217 = arith.mulf %216, %193 : vector<2x64xf32>
    %218 = vector.extract_strided_slice %213 {offsets = [0, 0], sizes = [2, 64], strides = [1, 1]} : vector<2x192xf32> to vector<2x64xf32>
    %219 = arith.mulf %218, %215 : vector<2x64xf32>
    %220 = arith.addf %217, %219 : vector<2x64xf32>
    %221 = vector.extract_strided_slice %213 {offsets = [0, 128], sizes = [2, 64], strides = [1, 1]} : vector<2x192xf32> to vector<2x64xf32>
    %222 = math.tanh %220 : vector<2x64xf32>
    %223 = arith.mulf %221, %222 : vector<2x64xf32>
    %224 = arith.index_cast %c3_i32_64 : i32 to index
    %c0_70 = arith.constant 0 : index
    %c0_71 = arith.constant 0 : index
    %225 = vector.load %arg21[%224, %c0_70, %c0_71] : memref<4x2x64xf32, #tpu.memory_space<vmem>>, vector<1x2x64xf32>
    %226 = vector.shape_cast %225 : vector<1x2x64xf32> to vector<2x64xf32>
    %227 = vector.shape_cast %223 : vector<2x64xf32> to vector<1x2x64xf32>
    tpu.vector_store %arg21[%224, %c0_70, %c0_71], %227 {strides = array<i32>} : memref<4x2x64xf32, #tpu.memory_space<vmem>>, vector<1x2x64xf32>,
    %c4_i32_72 = arith.constant 4 : i32
    %c0_73 = arith.constant 0 : index
    %c0_74 = arith.constant 0 : index
    %228 = vector.load %arg7[%c0_73, %c0_74] : memref<64x256xf32, #tpu.memory_space<vmem>>, vector<64x256xf32>
    %c0_75 = arith.constant 0 : index
    %c0_76 = arith.constant 0 : index
    %229 = vector.load %arg8[%c0_75, %c0_76] : memref<64x256xf32, #tpu.memory_space<vmem>>, vector<64x256xf32>
    %c0_77 = arith.constant 0 : index
    %c0_78 = arith.constant 0 : index
    %230 = vector.load %arg9[%c0_77, %c0_78] : memref<1x256xf32, #tpu.memory_space<vmem>>, vector<1x256xf32>
    %231 = vector.shape_cast %230 : vector<1x256xf32> to vector<1x256xf32>
    %232 = vector.broadcast %231 : vector<1x256xf32> to vector<2x256xf32>
    %cst_79 = arith.constant 0.000000e+00 : f32
    %233 = vector.broadcast %cst_79 : f32 to vector<2x64xf32>
    %c0_i32_80 = arith.constant 0 : i32
    %234 = arith.index_cast %c0_i32_80 : i32 to index
    %c0_81 = arith.constant 0 : index
    %c0_82 = arith.constant 0 : index
    %235 = vector.load %arg21[%234, %c0_81, %c0_82] : memref<4x2x64xf32, #tpu.memory_space<vmem>>, vector<1x2x64xf32>
    %236 = vector.shape_cast %235 : vector<1x2x64xf32> to vector<2x64xf32>
    %cst_83 = arith.constant dense<0.000000e+00> : vector<2x256xf32>
    %237 = tpu.matmul %236, %228, %cst_83 {dimension_numbers = #tpu.dot_dimension_numbers<[1], [0], [0], [1], [0, 0, 1, 1], [], []>} : vector<2x64xf32>, vector<64x256xf32>, vector<2x256xf32> -> vector<2x256xf32>
    %cst_84 = arith.constant dense<0.000000e+00> : vector<2x256xf32>
    %238 = tpu.matmul %233, %229, %cst_84 {dimension_numbers = #tpu.dot_dimension_numbers<[1], [0], [0], [1], [0, 0, 1, 1], [], []>} : vector<2x64xf32>, vector<64x256xf32>, vector<2x256xf32> -> vector<2x256xf32>
    %239 = arith.addf %237, %238 : vector<2x256xf32>
    %240 = arith.addf %239, %232 : vector<2x256xf32>
    %241 = vector.extract_strided_slice %240 {offsets = [0, 0], sizes = [2, 192], strides = [1, 1]} : vector<2x256xf32> to vector<2x192xf32>
    %242 = arith.negf %241 : vector<2x192xf32>
    %243 = math.exp %242 : vector<2x192xf32>
    %cst_85 = arith.constant 1.000000e+00 : f32
    %244 = vector.broadcast %cst_85 : f32 to vector<2x192xf32>
    %245 = arith.addf %244, %243 : vector<2x192xf32>
    %246 = arith.divf %244, %245 : vector<2x192xf32>
    %247 = vector.extract_strided_slice %240 {offsets = [0, 192], sizes = [2, 64], strides = [1, 1]} : vector<2x256xf32> to vector<2x64xf32>
    %248 = math.tanh %247 : vector<2x64xf32>
    %249 = vector.extract_strided_slice %246 {offsets = [0, 64], sizes = [2, 64], strides = [1, 1]} : vector<2x192xf32> to vector<2x64xf32>
    %250 = arith.mulf %249, %233 : vector<2x64xf32>
    %251 = vector.extract_strided_slice %246 {offsets = [0, 0], sizes = [2, 64], strides = [1, 1]} : vector<2x192xf32> to vector<2x64xf32>
    %252 = arith.mulf %251, %248 : vector<2x64xf32>
    %253 = arith.addf %250, %252 : vector<2x64xf32>
    %254 = vector.extract_strided_slice %246 {offsets = [0, 128], sizes = [2, 64], strides = [1, 1]} : vector<2x192xf32> to vector<2x64xf32>
    %255 = math.tanh %253 : vector<2x64xf32>
    %256 = arith.mulf %254, %255 : vector<2x64xf32>
    %c1_i32_86 = arith.constant 1 : i32
    %257 = arith.index_cast %c1_i32_86 : i32 to index
    %c0_87 = arith.constant 0 : index
    %c0_88 = arith.constant 0 : index
    %258 = vector.load %arg21[%257, %c0_87, %c0_88] : memref<4x2x64xf32, #tpu.memory_space<vmem>>, vector<1x2x64xf32>
    %259 = vector.shape_cast %258 : vector<1x2x64xf32> to vector<2x64xf32>
    %cst_89 = arith.constant dense<0.000000e+00> : vector<2x256xf32>
    %260 = tpu.matmul %259, %228, %cst_89 {dimension_numbers = #tpu.dot_dimension_numbers<[1], [0], [0], [1], [0, 0, 1, 1], [], []>} : vector<2x64xf32>, vector<64x256xf32>, vector<2x256xf32> -> vector<2x256xf32>
    %cst_90 = arith.constant dense<0.000000e+00> : vector<2x256xf32>
    %261 = tpu.matmul %256, %229, %cst_90 {dimension_numbers = #tpu.dot_dimension_numbers<[1], [0], [0], [1], [0, 0, 1, 1], [], []>} : vector<2x64xf32>, vector<64x256xf32>, vector<2x256xf32> -> vector<2x256xf32>
    %262 = arith.addf %260, %261 : vector<2x256xf32>
    %263 = arith.addf %262, %232 : vector<2x256xf32>
    %264 = vector.extract_strided_slice %263 {offsets = [0, 0], sizes = [2, 192], strides = [1, 1]} : vector<2x256xf32> to vector<2x192xf32>
    %265 = arith.negf %264 : vector<2x192xf32>
    %266 = math.exp %265 : vector<2x192xf32>
    %cst_91 = arith.constant 1.000000e+00 : f32
    %267 = vector.broadcast %cst_91 : f32 to vector<2x192xf32>
    %268 = arith.addf %267, %266 : vector<2x192xf32>
    %269 = arith.divf %267, %268 : vector<2x192xf32>
    %270 = vector.extract_strided_slice %263 {offsets = [0, 192], sizes = [2, 64], strides = [1, 1]} : vector<2x256xf32> to vector<2x64xf32>
    %271 = math.tanh %270 : vector<2x64xf32>
    %272 = vector.extract_strided_slice %269 {offsets = [0, 64], sizes = [2, 64], strides = [1, 1]} : vector<2x192xf32> to vector<2x64xf32>
    %273 = arith.mulf %272, %253 : vector<2x64xf32>
    %274 = vector.extract_strided_slice %269 {offsets = [0, 0], sizes = [2, 64], strides = [1, 1]} : vector<2x192xf32> to vector<2x64xf32>
    %275 = arith.mulf %274, %271 : vector<2x64xf32>
    %276 = arith.addf %273, %275 : vector<2x64xf32>
    %277 = vector.extract_strided_slice %269 {offsets = [0, 128], sizes = [2, 64], strides = [1, 1]} : vector<2x192xf32> to vector<2x64xf32>
    %278 = math.tanh %276 : vector<2x64xf32>
    %279 = arith.mulf %277, %278 : vector<2x64xf32>
    %c2_i32_92 = arith.constant 2 : i32
    %280 = arith.index_cast %c2_i32_92 : i32 to index
    %c0_93 = arith.constant 0 : index
    %c0_94 = arith.constant 0 : index
    %281 = vector.load %arg21[%280, %c0_93, %c0_94] : memref<4x2x64xf32, #tpu.memory_space<vmem>>, vector<1x2x64xf32>
    %282 = vector.shape_cast %281 : vector<1x2x64xf32> to vector<2x64xf32>
    %cst_95 = arith.constant dense<0.000000e+00> : vector<2x256xf32>
    %283 = tpu.matmul %282, %228, %cst_95 {dimension_numbers = #tpu.dot_dimension_numbers<[1], [0], [0], [1], [0, 0, 1, 1], [], []>} : vector<2x64xf32>, vector<64x256xf32>, vector<2x256xf32> -> vector<2x256xf32>
    %cst_96 = arith.constant dense<0.000000e+00> : vector<2x256xf32>
    %284 = tpu.matmul %279, %229, %cst_96 {dimension_numbers = #tpu.dot_dimension_numbers<[1], [0], [0], [1], [0, 0, 1, 1], [], []>} : vector<2x64xf32>, vector<64x256xf32>, vector<2x256xf32> -> vector<2x256xf32>
    %285 = arith.addf %283, %284 : vector<2x256xf32>
    %286 = arith.addf %285, %232 : vector<2x256xf32>
    %287 = vector.extract_strided_slice %286 {offsets = [0, 0], sizes = [2, 192], strides = [1, 1]} : vector<2x256xf32> to vector<2x192xf32>
    %288 = arith.negf %287 : vector<2x192xf32>
    %289 = math.exp %288 : vector<2x192xf32>
    %cst_97 = arith.constant 1.000000e+00 : f32
    %290 = vector.broadcast %cst_97 : f32 to vector<2x192xf32>
    %291 = arith.addf %290, %289 : vector<2x192xf32>
    %292 = arith.divf %290, %291 : vector<2x192xf32>
    %293 = vector.extract_strided_slice %286 {offsets = [0, 192], sizes = [2, 64], strides = [1, 1]} : vector<2x256xf32> to vector<2x64xf32>
    %294 = math.tanh %293 : vector<2x64xf32>
    %295 = vector.extract_strided_slice %292 {offsets = [0, 64], sizes = [2, 64], strides = [1, 1]} : vector<2x192xf32> to vector<2x64xf32>
    %296 = arith.mulf %295, %276 : vector<2x64xf32>
    %297 = vector.extract_strided_slice %292 {offsets = [0, 0], sizes = [2, 64], strides = [1, 1]} : vector<2x192xf32> to vector<2x64xf32>
    %298 = arith.mulf %297, %294 : vector<2x64xf32>
    %299 = arith.addf %296, %298 : vector<2x64xf32>
    %300 = vector.extract_strided_slice %292 {offsets = [0, 128], sizes = [2, 64], strides = [1, 1]} : vector<2x192xf32> to vector<2x64xf32>
    %301 = math.tanh %299 : vector<2x64xf32>
    %302 = arith.mulf %300, %301 : vector<2x64xf32>
    %c3_i32_98 = arith.constant 3 : i32
    %303 = arith.index_cast %c3_i32_98 : i32 to index
    %c0_99 = arith.constant 0 : index
    %c0_100 = arith.constant 0 : index
    %304 = vector.load %arg21[%303, %c0_99, %c0_100] : memref<4x2x64xf32, #tpu.memory_space<vmem>>, vector<1x2x64xf32>
    %305 = vector.shape_cast %304 : vector<1x2x64xf32> to vector<2x64xf32>
    %cst_101 = arith.constant dense<0.000000e+00> : vector<2x256xf32>
    %306 = tpu.matmul %305, %228, %cst_101 {dimension_numbers = #tpu.dot_dimension_numbers<[1], [0], [0], [1], [0, 0, 1, 1], [], []>} : vector<2x64xf32>, vector<64x256xf32>, vector<2x256xf32> -> vector<2x256xf32>
    %cst_102 = arith.constant dense<0.000000e+00> : vector<2x256xf32>
    %307 = tpu.matmul %302, %229, %cst_102 {dimension_numbers = #tpu.dot_dimension_numbers<[1], [0], [0], [1], [0, 0, 1, 1], [], []>} : vector<2x64xf32>, vector<64x256xf32>, vector<2x256xf32> -> vector<2x256xf32>
    %308 = arith.addf %306, %307 : vector<2x256xf32>
    %309 = arith.addf %308, %232 : vector<2x256xf32>
    %310 = vector.extract_strided_slice %309 {offsets = [0, 0], sizes = [2, 192], strides = [1, 1]} : vector<2x256xf32> to vector<2x192xf32>
    %311 = arith.negf %310 : vector<2x192xf32>
    %312 = math.exp %311 : vector<2x192xf32>
    %cst_103 = arith.constant 1.000000e+00 : f32
    %313 = vector.broadcast %cst_103 : f32 to vector<2x192xf32>
    %314 = arith.addf %313, %312 : vector<2x192xf32>
    %315 = arith.divf %313, %314 : vector<2x192xf32>
    %316 = vector.extract_strided_slice %309 {offsets = [0, 192], sizes = [2, 64], strides = [1, 1]} : vector<2x256xf32> to vector<2x64xf32>
    %317 = math.tanh %316 : vector<2x64xf32>
    %318 = vector.extract_strided_slice %315 {offsets = [0, 64], sizes = [2, 64], strides = [1, 1]} : vector<2x192xf32> to vector<2x64xf32>
    %319 = arith.mulf %318, %299 : vector<2x64xf32>
    %320 = vector.extract_strided_slice %315 {offsets = [0, 0], sizes = [2, 64], strides = [1, 1]} : vector<2x192xf32> to vector<2x64xf32>
    %321 = arith.mulf %320, %317 : vector<2x64xf32>
    %322 = arith.addf %319, %321 : vector<2x64xf32>
    %323 = vector.extract_strided_slice %315 {offsets = [0, 128], sizes = [2, 64], strides = [1, 1]} : vector<2x192xf32> to vector<2x64xf32>
    %324 = math.tanh %322 : vector<2x64xf32>
    %325 = arith.mulf %323, %324 : vector<2x64xf32>
    %c4_i32_104 = arith.constant 4 : i32
    %c0_105 = arith.constant 0 : index
    %c0_106 = arith.constant 0 : index
    %c0_107 = arith.constant 0 : index
    %326 = vector.load %arg0[%c0_105, %c0_106, %c0_107] : memref<4x2x256xf32, #tpu.memory_space<vmem>>, vector<1x2x256xf32>
    %327 = vector.shape_cast %326 : vector<1x2x256xf32> to vector<2x256xf32>
    %328 = arith.truncf %327 : vector<2x256xf32> to vector<2x256xbf16>
    %329 = arith.truncf %325 : vector<2x64xf32> to vector<2x64xbf16>
    %c0_108 = arith.constant 0 : index
    %c0_109 = arith.constant 0 : index
    %c0_110 = arith.constant 0 : index
    %330 = vector.load %arg10[%c0_108, %c0_109, %c0_110] : memref<2x256x1024xbf16, #tpu.memory_space<vmem>>, vector<1x256x1024xbf16>
    %331 = vector.shape_cast %330 : vector<1x256x1024xbf16> to vector<256x1024xbf16>
    %cst_111 = arith.constant dense<0.000000e+00> : vector<2x1024xf32>
    %332 = tpu.matmul %328, %331, %cst_111 {dimension_numbers = #tpu.dot_dimension_numbers<[1], [0], [0], [1], [0, 0, 1, 1], [], []>} : vector<2x256xbf16>, vector<256x1024xbf16>, vector<2x1024xf32> -> vector<2x1024xf32>
    %c0_112 = arith.constant 0 : index
    %c0_113 = arith.constant 0 : index
    %c0_114 = arith.constant 0 : index
    %333 = vector.load %arg11[%c0_112, %c0_113, %c0_114] : memref<2x64x1024xbf16, #tpu.memory_space<vmem>>, vector<1x64x1024xbf16>
    %334 = vector.shape_cast %333 : vector<1x64x1024xbf16> to vector<64x1024xbf16>
    %cst_115 = arith.constant dense<0.000000e+00> : vector<2x1024xf32>
    %335 = tpu.matmul %329, %334, %cst_115 {dimension_numbers = #tpu.dot_dimension_numbers<[1], [0], [0], [1], [0, 0, 1, 1], [], []>} : vector<2x64xbf16>, vector<64x1024xbf16>, vector<2x1024xf32> -> vector<2x1024xf32>
    %336 = arith.addf %332, %335 : vector<2x1024xf32>
    %c0_116 = arith.constant 0 : index
    %c0_117 = arith.constant 0 : index
    %c0_118 = arith.constant 0 : index
    %337 = vector.load %arg12[%c0_116, %c0_117, %c0_118] : memref<2x1x1024xf32, #tpu.memory_space<vmem>>, vector<1x1x1024xf32>
    %338 = vector.shape_cast %337 : vector<1x1x1024xf32> to vector<1x1024xf32>
    %339 = vector.broadcast %338 : vector<1x1024xf32> to vector<2x1024xf32>
    %340 = arith.addf %336, %339 : vector<2x1024xf32>
    %cst_119 = arith.constant 0.000000e+00 : f32
    %341 = vector.broadcast %cst_119 : f32 to vector<2x1024xf32>
    %342 = arith.maximumf %340, %341 : vector<2x1024xf32>
    %343 = arith.truncf %342 : vector<2x1024xf32> to vector<2x1024xbf16>
    %c0_120 = arith.constant 0 : index
    %c0_121 = arith.constant 0 : index
    %c0_122 = arith.constant 0 : index
    %344 = vector.load %arg13[%c0_120, %c0_121, %c0_122] : memref<2x1024x512xbf16, #tpu.memory_space<vmem>>, vector<1x1024x512xbf16>
    %345 = vector.shape_cast %344 : vector<1x1024x512xbf16> to vector<1024x512xbf16>
    %cst_123 = arith.constant dense<0.000000e+00> : vector<2x512xf32>
    %346 = tpu.matmul %343, %345, %cst_123 {dimension_numbers = #tpu.dot_dimension_numbers<[1], [0], [0], [1], [0, 0, 1, 1], [], []>} : vector<2x1024xbf16>, vector<1024x512xbf16>, vector<2x512xf32> -> vector<2x512xf32>
    %c0_124 = arith.constant 0 : index
    %c0_125 = arith.constant 0 : index
    %c0_126 = arith.constant 0 : index
    %347 = vector.load %arg14[%c0_124, %c0_125, %c0_126] : memref<2x1x512xf32, #tpu.memory_space<vmem>>, vector<1x1x512xf32>
    %348 = vector.shape_cast %347 : vector<1x1x512xf32> to vector<1x512xf32>
    %349 = vector.broadcast %348 : vector<1x512xf32> to vector<2x512xf32>
    %350 = arith.addf %346, %349 : vector<2x512xf32>
    %cst_127 = arith.constant 0.000000e+00 : f32
    %351 = vector.broadcast %cst_127 : f32 to vector<2x512xf32>
    %352 = arith.maximumf %350, %351 : vector<2x512xf32>
    %353 = arith.truncf %352 : vector<2x512xf32> to vector<2x512xbf16>
    %c0_128 = arith.constant 0 : index
    %c0_129 = arith.constant 0 : index
    %c0_130 = arith.constant 0 : index
    %354 = vector.load %arg15[%c0_128, %c0_129, %c0_130] : memref<2x512x256xbf16, #tpu.memory_space<vmem>>, vector<1x512x256xbf16>
    %355 = vector.shape_cast %354 : vector<1x512x256xbf16> to vector<512x256xbf16>
    %cst_131 = arith.constant dense<0.000000e+00> : vector<2x256xf32>
    %356 = tpu.matmul %353, %355, %cst_131 {dimension_numbers = #tpu.dot_dimension_numbers<[1], [0], [0], [1], [0, 0, 1, 1], [], []>} : vector<2x512xbf16>, vector<512x256xbf16>, vector<2x256xf32> -> vector<2x256xf32>
    %c0_132 = arith.constant 0 : index
    %c0_133 = arith.constant 0 : index
    %c0_134 = arith.constant 0 : index
    %357 = vector.load %arg16[%c0_132, %c0_133, %c0_134] : memref<2x1x256xf32, #tpu.memory_space<vmem>>, vector<1x1x256xf32>
    %358 = vector.shape_cast %357 : vector<1x1x256xf32> to vector<1x256xf32>
    %359 = vector.broadcast %358 : vector<1x256xf32> to vector<2x256xf32>
    %360 = arith.addf %356, %359 : vector<2x256xf32>
    %cst_135 = arith.constant 0.000000e+00 : f32
    %361 = vector.broadcast %cst_135 : f32 to vector<2x256xf32>
    %362 = arith.maximumf %360, %361 : vector<2x256xf32>
    %c0_136 = arith.constant 0 : index
    %c0_137 = arith.constant 0 : index
    %c0_138 = arith.constant 0 : index
    %363 = vector.load %arg17[%c0_136, %c0_137, %c0_138] : memref<2x256x1xf32, #tpu.memory_space<vmem>>, vector<1x256x1xf32>
    %364 = vector.shape_cast %363 : vector<1x256x1xf32> to vector<256x1xf32>
    %cst_139 = arith.constant dense<0.000000e+00> : vector<2x1xf32>
    %365 = tpu.matmul %362, %364, %cst_139 {dimension_numbers = #tpu.dot_dimension_numbers<[1], [0], [0], [1], [0, 0, 1, 1], [], []>} : vector<2x256xf32>, vector<256x1xf32>, vector<2x1xf32> -> vector<2x1xf32>
    %c0_140 = arith.constant 0 : index
    %c0_141 = arith.constant 0 : index
    %c0_142 = arith.constant 0 : index
    %366 = vector.load %arg18[%c0_140, %c0_141, %c0_142] : memref<2x1x1xf32, #tpu.memory_space<vmem>>, vector<1x1x1xf32>
    %367 = vector.shape_cast %366 : vector<1x1x1xf32> to vector<1x1xf32>
    %368 = vector.broadcast %367 : vector<1x1xf32> to vector<2x1xf32>
    %369 = arith.addf %365, %368 : vector<2x1xf32>
    %c0_143 = arith.constant 0 : index
    %c0_144 = arith.constant 0 : index
    %370 = vector.load %arg19[%c0_143, %c0_144] : memref<2x2xf32, #tpu.memory_space<vmem>>, vector<2x1xf32>
    tpu.vector_store %arg19[%c0_143, %c0_144], %369 {strides = array<i32>} : memref<2x2xf32, #tpu.memory_space<vmem>>, vector<2x1xf32>,
    %c1 = arith.constant 1 : index
    %c0_145 = arith.constant 0 : index
    %c0_146 = arith.constant 0 : index
    %371 = vector.load %arg10[%c1, %c0_145, %c0_146] : memref<2x256x1024xbf16, #tpu.memory_space<vmem>>, vector<1x256x1024xbf16>
    %372 = vector.shape_cast %371 : vector<1x256x1024xbf16> to vector<256x1024xbf16>
    %cst_147 = arith.constant dense<0.000000e+00> : vector<2x1024xf32>
    %373 = tpu.matmul %328, %372, %cst_147 {dimension_numbers = #tpu.dot_dimension_numbers<[1], [0], [0], [1], [0, 0, 1, 1], [], []>} : vector<2x256xbf16>, vector<256x1024xbf16>, vector<2x1024xf32> -> vector<2x1024xf32>
    %c1_148 = arith.constant 1 : index
    %c0_149 = arith.constant 0 : index
    %c0_150 = arith.constant 0 : index
    %374 = vector.load %arg11[%c1_148, %c0_149, %c0_150] : memref<2x64x1024xbf16, #tpu.memory_space<vmem>>, vector<1x64x1024xbf16>
    %375 = vector.shape_cast %374 : vector<1x64x1024xbf16> to vector<64x1024xbf16>
    %cst_151 = arith.constant dense<0.000000e+00> : vector<2x1024xf32>
    %376 = tpu.matmul %329, %375, %cst_151 {dimension_numbers = #tpu.dot_dimension_numbers<[1], [0], [0], [1], [0, 0, 1, 1], [], []>} : vector<2x64xbf16>, vector<64x1024xbf16>, vector<2x1024xf32> -> vector<2x1024xf32>
    %377 = arith.addf %373, %376 : vector<2x1024xf32>
    %c1_152 = arith.constant 1 : index
    %c0_153 = arith.constant 0 : index
    %c0_154 = arith.constant 0 : index
    %378 = vector.load %arg12[%c1_152, %c0_153, %c0_154] : memref<2x1x1024xf32, #tpu.memory_space<vmem>>, vector<1x1x1024xf32>
    %379 = vector.shape_cast %378 : vector<1x1x1024xf32> to vector<1x1024xf32>
    %380 = vector.broadcast %379 : vector<1x1024xf32> to vector<2x1024xf32>
    %381 = arith.addf %377, %380 : vector<2x1024xf32>
    %cst_155 = arith.constant 0.000000e+00 : f32
    %382 = vector.broadcast %cst_155 : f32 to vector<2x1024xf32>
    %383 = arith.maximumf %381, %382 : vector<2x1024xf32>
    %384 = arith.truncf %383 : vector<2x1024xf32> to vector<2x1024xbf16>
    %c1_156 = arith.constant 1 : index
    %c0_157 = arith.constant 0 : index
    %c0_158 = arith.constant 0 : index
    %385 = vector.load %arg13[%c1_156, %c0_157, %c0_158] : memref<2x1024x512xbf16, #tpu.memory_space<vmem>>, vector<1x1024x512xbf16>
    %386 = vector.shape_cast %385 : vector<1x1024x512xbf16> to vector<1024x512xbf16>
    %cst_159 = arith.constant dense<0.000000e+00> : vector<2x512xf32>
    %387 = tpu.matmul %384, %386, %cst_159 {dimension_numbers = #tpu.dot_dimension_numbers<[1], [0], [0], [1], [0, 0, 1, 1], [], []>} : vector<2x1024xbf16>, vector<1024x512xbf16>, vector<2x512xf32> -> vector<2x512xf32>
    %c1_160 = arith.constant 1 : index
    %c0_161 = arith.constant 0 : index
    %c0_162 = arith.constant 0 : index
    %388 = vector.load %arg14[%c1_160, %c0_161, %c0_162] : memref<2x1x512xf32, #tpu.memory_space<vmem>>, vector<1x1x512xf32>
    %389 = vector.shape_cast %388 : vector<1x1x512xf32> to vector<1x512xf32>
    %390 = vector.broadcast %389 : vector<1x512xf32> to vector<2x512xf32>
    %391 = arith.addf %387, %390 : vector<2x512xf32>
    %cst_163 = arith.constant 0.000000e+00 : f32
    %392 = vector.broadcast %cst_163 : f32 to vector<2x512xf32>
    %393 = arith.maximumf %391, %392 : vector<2x512xf32>
    %394 = arith.truncf %393 : vector<2x512xf32> to vector<2x512xbf16>
    %c1_164 = arith.constant 1 : index
    %c0_165 = arith.constant 0 : index
    %c0_166 = arith.constant 0 : index
    %395 = vector.load %arg15[%c1_164, %c0_165, %c0_166] : memref<2x512x256xbf16, #tpu.memory_space<vmem>>, vector<1x512x256xbf16>
    %396 = vector.shape_cast %395 : vector<1x512x256xbf16> to vector<512x256xbf16>
    %cst_167 = arith.constant dense<0.000000e+00> : vector<2x256xf32>
    %397 = tpu.matmul %394, %396, %cst_167 {dimension_numbers = #tpu.dot_dimension_numbers<[1], [0], [0], [1], [0, 0, 1, 1], [], []>} : vector<2x512xbf16>, vector<512x256xbf16>, vector<2x256xf32> -> vector<2x256xf32>
    %c1_168 = arith.constant 1 : index
    %c0_169 = arith.constant 0 : index
    %c0_170 = arith.constant 0 : index
    %398 = vector.load %arg16[%c1_168, %c0_169, %c0_170] : memref<2x1x256xf32, #tpu.memory_space<vmem>>, vector<1x1x256xf32>
    %399 = vector.shape_cast %398 : vector<1x1x256xf32> to vector<1x256xf32>
    %400 = vector.broadcast %399 : vector<1x256xf32> to vector<2x256xf32>
    %401 = arith.addf %397, %400 : vector<2x256xf32>
    %cst_171 = arith.constant 0.000000e+00 : f32
    %402 = vector.broadcast %cst_171 : f32 to vector<2x256xf32>
    %403 = arith.maximumf %401, %402 : vector<2x256xf32>
    %c1_172 = arith.constant 1 : index
    %c0_173 = arith.constant 0 : index
    %c0_174 = arith.constant 0 : index
    %404 = vector.load %arg17[%c1_172, %c0_173, %c0_174] : memref<2x256x1xf32, #tpu.memory_space<vmem>>, vector<1x256x1xf32>
    %405 = vector.shape_cast %404 : vector<1x256x1xf32> to vector<256x1xf32>
    %cst_175 = arith.constant dense<0.000000e+00> : vector<2x1xf32>
    %406 = tpu.matmul %403, %405, %cst_175 {dimension_numbers = #tpu.dot_dimension_numbers<[1], [0], [0], [1], [0, 0, 1, 1], [], []>} : vector<2x256xf32>, vector<256x1xf32>, vector<2x1xf32> -> vector<2x1xf32>
    %c1_176 = arith.constant 1 : index
    %c0_177 = arith.constant 0 : index
    %c0_178 = arith.constant 0 : index
    %407 = vector.load %arg18[%c1_176, %c0_177, %c0_178] : memref<2x1x1xf32, #tpu.memory_space<vmem>>, vector<1x1x1xf32>
    %408 = vector.shape_cast %407 : vector<1x1x1xf32> to vector<1x1xf32>
    %409 = vector.broadcast %408 : vector<1x1xf32> to vector<2x1xf32>
    %410 = arith.addf %406, %409 : vector<2x1xf32>
    %c0_179 = arith.constant 0 : index
    %c1_180 = arith.constant 1 : index
    %411 = vector.load %arg19[%c0_179, %c1_180] : memref<2x2xf32, #tpu.memory_space<vmem>>, vector<2x1xf32>
    tpu.vector_store %arg19[%c0_179, %c1_180], %410 {strides = array<i32>} : memref<2x2xf32, #tpu.memory_space<vmem>>, vector<2x1xf32>,
    return
  }
}

</mosaic_0001>

<bundles_post_ra>
// kernel: forward.2
= control target key start
LH: loop header
LB: loop body
LE: loop exit
PB: predicated region body
PF: predicated region fallthrough
CT: control target
= control target key end

     0   :  { %vm305_vm0 = vcmask 261120   ;;  %vm5107_vm1 = vmmov 0   ;;  %vm3260_vm2 = vcmask 130048   ;;  %vm3358_vm3 = vcmask 1043456   ;;  %s6904_s2 = inlined_call_operand.vmem [shape: f32[32,16], index: 2, kind: input, shape index: {}]   ;;  %s6905_s0 = inlined_call_operand.vmem [shape: f32[2048,32], index: 0, kind: input, shape index: {}]   ;;  %s6906_s1 = inlined_call_operand.vmem [shape: f32[8,2048], index: 1, kind: input, shape index: {}]   ;;  %s6907_s3 = inlined_call_operand.vmem [shape: f32[1,16], index: 3, kind: input, shape index: {}]   ;;  %s6908_s4 = inlined_call_operand.vmem [shape: f32[16,128], index: 4, kind: input, shape index: {}]   ;;  %s6909_s7 = inlined_call_operand.vmem [shape: f32[20,256], index: 7, kind: input, shape index: {}]   ;;  %s6910_s9 = inlined_call_operand.vmem [shape: f32[256,128], index: 9, kind: input, shape index: {}]   ;;  %s6911_s6 = inlined_call_operand.vmem [shape: f32[8,20], index: 6, kind: input, shape index: {}]   ;;  %s6912_s5 = inlined_call_operand.vmem [shape: f32[1,128], index: 5, kind: input, shape index: {}]   ;;  %s6913_s8 = inlined_call_operand.vmem [shape: f32[1,256], index: 8, kind: input, shape index: {}]   ;;  %s6914_s11 = inlined_call_operand.vmem [shape: f32[8,256], index: 11, kind: output, shape index: {}]   ;;  %s6915_s10 = inlined_call_operand.vmem [shape: f32[1,128], index: 10, kind: input, shape index: {}]  }
   0x1   :  { %v294_v0 = vld [vmem:[%s6904_s2] sm:$0xff]  ;;  %v295_v1 = vld [vmem:[%s6904_s2 + $0x8] sm:$0xff]  ;;  %v296_v2 = vld [vmem:[%s6904_s2 + $0x10] sm:$0xff]  ;;  %vm3354_vm4 = vcmask 162816  }
   0x2   :  { %v4794_v3 = vpack.c.bf16 %v295_v1, %v294_v0  ;;  %v297_v4 = vld [vmem:[%s6904_s2 + $0x18] sm:$0xff]  ;;  %v38_v5 = vld [vmem:[%s6905_s0] sm:$0xff]  ;;  %v39_v7 = vld [vmem:[%s6905_s0 + $0x8] sm:$0xff] }
   0x3   :  { %v4798_v6 = vpack.c.bf16 %v297_v4, %v296_v2  ;;  %4403 = vmatprep.mubr.msk.f32.mxu0 %vm305_vm0, %v38_v5  ;;  %v40_v8 = vld [vmem:[%s6905_s0 + $0x10] sm:$0xff]  ;;  %v41_v9 = vld [vmem:[%s6905_s0 + $0x18] sm:$0xff]  ;;  %v42_v10 = vld [vmem:[%s6905_s0 + $0x20] sm:$0xff] }
   0x4   :  { %4795 = vmatprep.subr.bf16.mxu0 %v4794_v3  ;;  %5097 = vmatprep.subr.bf16.mxu1 %v4794_v3  ;;  %v43_v11 = vld [vmem:[%s6905_s0 + $0x28] sm:$0xff]  ;;  %v44_v12 = vld [vmem:[%s6905_s0 + $0x30] sm:$0xff]  ;;  %v45_v13 = vld [vmem:[%s6905_s0 + $0x38] sm:$0xff] }
   0x5   :  { %4797 = vmatpush3.bf16.msra.mxu0 %v4794_v3  ;;  %5099 = vmatpush3.bf16.msra.mxu1 %v4794_v3  ;;  %v46_v14 = vld [vmem:[%s6905_s0 + $0x40] sm:$0xff]  ;;  %v47_v15 = vld [vmem:[%s6905_s0 + $0x48] sm:$0xff]  ;;  %v48_v16 = vld [vmem:[%s6905_s0 + $0x50] sm:$0xff] }
   0x6   :  { %4799 = vmatprep.subr.bf16.mxu0 %v4798_v6  ;;  %5098 = vmatprep.subr.bf16.mxu1 %v4798_v6  ;;  %v49_v17 = vld [vmem:[%s6905_s0 + $0x58] sm:$0xff]  ;;  %v50_v18 = vld [vmem:[%s6905_s0 + $0x60] sm:$0xff]  ;;  %v51_v19 = vld [vmem:[%s6905_s0 + $0x68] sm:$0xff] }
   0x7   :  { %v52_v20 = vld [vmem:[%s6905_s0 + $0x70] sm:$0xff]  ;;  %v53_v21 = vld [vmem:[%s6905_s0 + $0x78] sm:$0xff]  ;;  %v54_v22 = vld [vmem:[%s6905_s0 + $0x80] sm:$0xff] }
   0x8   :  { %v55_v23 = vld [vmem:[%s6905_s0 + $0x88] sm:$0xff]  ;;  %v56_v24 = vld [vmem:[%s6905_s0 + $0x90] sm:$0xff]  ;;  %v57_v25 = vld [vmem:[%s6905_s0 + $0x98] sm:$0xff] }
   0x9   :  { %4801 = vmatpush3.bf16.msra.mxu0 %v4798_v6  ;;  %5100 = vmatpush3.bf16.msra.mxu1 %v4798_v6  ;;  %v58_v26 = vld [vmem:[%s6905_s0 + $0xa0] sm:$0xff]  ;;  %v59_v27 = vld [vmem:[%s6905_s0 + $0xa8] sm:$0xff]  ;;  %v60_v28 = vld [vmem:[%s6905_s0 + $0xb0] sm:$0xff] }
   0xa   :  { %v61_v29 = vld [vmem:[%s6905_s0 + $0xb8] sm:$0xff]  ;;  %v62_v30 = vld [vmem:[%s6905_s0 + $0xc0] sm:$0xff]  ;;  %v63_v31 = vld [vmem:[%s6905_s0 + $0xc8] sm:$0xff] }
   0xb   :  { %v64_v32 = vld [vmem:[%s6905_s0 + $0xd0] sm:$0xff]  ;;  %v65_v33 = vld [vmem:[%s6905_s0 + $0xd8] sm:$0xff]  ;;  %v66_v34 = vld [vmem:[%s6905_s0 + $0xe0] sm:$0xff] }
   0xc   :  { %4404 = vmatmul.mubr.msk.f32.vlgmr.msra.gmra.mrb[0].mxu0 %vm305_vm0, %v39_v7  ;;  %v67_v35 = vld [vmem:[%s6905_s0 + $0xe8] sm:$0xff]  ;;  %v68_v36 = vld [vmem:[%s6905_s0 + $0xf0] sm:$0xff]  ;;  %v69_v37 = vld [vmem:[%s6905_s0 + $0xf8] sm:$0xff] }
   0xd   :  { %4406 = vmatprep.mubr.msk.f32.mxu0 %vm305_vm0, %v40_v8  ;;  %v70_v38 = vld [vmem:[%s6905_s0 + $0x100] sm:$0xff]  ;;  %v71_v39 = vld [vmem:[%s6905_s0 + $0x108] sm:$0xff]  ;;  %v72_v40 = vld [vmem:[%s6905_s0 + $0x110] sm:$0xff] }
   0xe   :  { %v73_v41 = vld [vmem:[%s6905_s0 + $0x118] sm:$0xff]  ;;  %v234_v42 = vld [vmem:[%s6905_s0 + $0x620] sm:$0xff]  ;;  %v235_v44 = vld [vmem:[%s6905_s0 + $0x628] sm:$0xff] }
   0xf   :  { %v74_v43 = vld [vmem:[%s6905_s0 + $0x120] sm:$0xff]  ;;  %4697 = vmatprep.mubr.msk.f32.mxu1 %vm305_vm0, %v234_v42  ;;  %v75_v45 = vld [vmem:[%s6905_s0 + $0x128] sm:$0xff]  ;;  %v236_v46 = vld [vmem:[%s6905_s0 + $0x630] sm:$0xff] }
  0x10   :  { %4407 = vmatmul.mubr.msk.f32.gmra.mrb[2].mxu0 %vm305_vm0, %v41_v9  ;;  %4698 = vmatmul.mubr.msk.f32.vlgmr.msra.gmra.mrb[0].mxu1 %vm305_vm0, %v235_v44  ;;  %v76_v47 = vld [vmem:[%s6905_s0 + $0x130] sm:$0xff]  ;;  %v237_v48 = vld [vmem:[%s6905_s0 + $0x638] sm:$0xff]  ;;  %v238_v50 = vld [vmem:[%s6905_s0 + $0x640] sm:$0xff] }
  0x11   :  { %4409 = vmatprep.mubr.msk.f32.mxu0 %vm305_vm0, %v42_v10  ;;  %4700 = vmatprep.mubr.msk.f32.mxu1 %vm305_vm0, %v236_v46  ;;  %v77_v49 = vld [vmem:[%s6905_s0 + $0x138] sm:$0xff]  ;;  %v78_v51 = vld [vmem:[%s6905_s0 + $0x140] sm:$0xff]  ;;  %v239_v52 = vld [vmem:[%s6905_s0 + $0x648] sm:$0xff] }
  0x12   :  { %v79_v53 = vld [vmem:[%s6905_s0 + $0x148] sm:$0xff]  ;;  %v240_v54 = vld [vmem:[%s6905_s0 + $0x650] sm:$0xff]  ;;  %v241_v56 = vld [vmem:[%s6905_s0 + $0x658] sm:$0xff] }
  0x13   :  { %v80_v55 = vld [vmem:[%s6905_s0 + $0x150] sm:$0xff]  ;;  %v81_v57 = vld [vmem:[%s6905_s0 + $0x158] sm:$0xff]  ;;  %v82_v58 = vld [vmem:[%s6905_s0 + $0x160] sm:$0xff] }
  0x14   :  { %4410 = vmatmul.mubr.msk.f32.gmra.mrb[4].mxu0 %vm305_vm0, %v43_v11  ;;  %4701 = vmatmul.mubr.msk.f32.gmra.mrb[2].mxu1 %vm305_vm0, %v237_v48  ;;  %v242_v59 = vld [vmem:[%s6905_s0 + $0x660] sm:$0xff]  ;;  %v243_v60 = vld [vmem:[%s6905_s0 + $0x668] sm:$0xff]  ;;  %v84_v62 = vld [vmem:[%s6905_s0 + $0x170] sm:$0xff] }
  0x15   :  { %4412 = vmatprep.mubr.msk.f32.mxu0 %vm305_vm0, %v44_v12  ;;  %4703 = vmatprep.mubr.msk.f32.mxu1 %vm305_vm0, %v238_v50  ;;  %v83_v61 = vld [vmem:[%s6905_s0 + $0x168] sm:$0xff]  ;;  %v244_v63 = vld [vmem:[%s6905_s0 + $0x670] sm:$0xff]  ;;  %v245_v0 = vld [vmem:[%s6905_s0 + $0x678] sm:$0xff] }
  0x16   :  { %v85_v1 = vld [vmem:[%s6905_s0 + $0x178] sm:$0xff]  ;;  %v86_v2 = vld [vmem:[%s6905_s0 + $0x180] sm:$0xff]  ;;  %v247_v4 = vld [vmem:[%s6905_s0 + $0x688] sm:$0xff] }
  0x17   :  { %v246_v3 = vld [vmem:[%s6905_s0 + $0x680] sm:$0xff]  ;;  %v87_v5 = vld [vmem:[%s6905_s0 + $0x188] sm:$0xff]  ;;  %v88_v6 = vld [vmem:[%s6905_s0 + $0x190] sm:$0xff] }
  0x18   :  { %4413 = vmatmul.mubr.msk.f32.gmra.mrb[6].mxu0 %vm305_vm0, %v45_v13  ;;  %4704 = vmatmul.mubr.msk.f32.gmra.mrb[4].mxu1 %vm305_vm0, %v239_v52  ;;  %v248_v7 = vld [vmem:[%s6905_s0 + $0x690] sm:$0xff]  ;;  %v249_v8 = vld [vmem:[%s6905_s0 + $0x698] sm:$0xff]  ;;  %v90_v10 = vld [vmem:[%s6905_s0 + $0x1a0] sm:$0xff] }
  0x19   :  { %4415 = vmatprep.mubr.msk.f32.mxu0 %vm305_vm0, %v46_v14  ;;  %4706 = vmatprep.mubr.msk.f32.mxu1 %vm305_vm0, %v240_v54  ;;  %v89_v9 = vld [vmem:[%s6905_s0 + $0x198] sm:$0xff]  ;;  %v250_v11 = vld [vmem:[%s6905_s0 + $0x6a0] sm:$0xff]  ;;  %v251_v12 = vld [vmem:[%s6905_s0 + $0x6a8] sm:$0xff] }
  0x1a   :  { %v91_v13 = vld [vmem:[%s6905_s0 + $0x1a8] sm:$0xff]  ;;  %v92_v14 = vld [vmem:[%s6905_s0 + $0x1b0] sm:$0xff]  ;;  %v106_v42 = vld [vmem:[%s6905_s0 + $0x220] sm:$0xff] }
  0x1b   :  { %v267_v44 = vld [vmem:[%s6905_s0 + $0x728] sm:$0xff]  ;;  %v108_v46 = vld [vmem:[%s6905_s0 + $0x230] sm:$0xff]  ;;  %v269_v48 = vld [vmem:[%s6905_s0 + $0x738] sm:$0xff] }
  0x1c   :  { %4416 = vmatmul.mubr.msk.f32.gmra.mrb[8].mxu0 %vm305_vm0, %v47_v15  ;;  %4707 = vmatmul.mubr.msk.f32.gmra.mrb[6].mxu1 %vm305_vm0, %v241_v56  ;;  %v252_v15 = vld [vmem:[%s6905_s0 + $0x6b0] sm:$0xff]  ;;  %v110_v50 = vld [vmem:[%s6905_s0 + $0x240] sm:$0xff]  ;;  %v271_v52 = vld [vmem:[%s6905_s0 + $0x748] sm:$0xff] }
  0x1d   :  { %4418 = vmatprep.mubr.msk.f32.mxu0 %vm305_vm0, %v48_v16  ;;  %4709 = vmatprep.mubr.msk.f32.mxu1 %vm305_vm0, %v242_v59  ;;  %v253_v16 = vld [vmem:[%s6905_s0 + $0x6b8] sm:$0xff]  ;;  %v112_v54 = vld [vmem:[%s6905_s0 + $0x250] sm:$0xff]  ;;  %v274_v59 = vld [vmem:[%s6905_s0 + $0x760] sm:$0xff] }
  0x1e   :  { %v273_v56 = vld [vmem:[%s6905_s0 + $0x758] sm:$0xff] }
  0x20   :  { %4419 = vmatmul.mubr.msk.f32.gmra.mrb[10].mxu0 %vm305_vm0, %v49_v17  ;;  %4710 = vmatmul.mubr.msk.f32.gmra.mrb[8].mxu1 %vm305_vm0, %v243_v60  ;;  %v93_v17 = vld [vmem:[%s6905_s0 + $0x1b8] sm:$0xff]  ;;  %v275_v60 = vld [vmem:[%s6905_s0 + $0x768] sm:$0xff] }
  0x21   :  { %4421 = vmatprep.mubr.msk.f32.mxu0 %vm305_vm0, %v50_v18  ;;  %4712 = vmatprep.mubr.msk.f32.mxu1 %vm305_vm0, %v244_v63  ;;  %v94_v18 = vld [vmem:[%s6905_s0 + $0x1c0] sm:$0xff]  ;;  %v276_v63 = vld [vmem:[%s6905_s0 + $0x770] sm:$0xff] }
  0x24   :  { %4422 = vmatmul.mubr.msk.f32.gmra.mrb[12].mxu0 %vm305_vm0, %v51_v19  ;;  %4713 = vmatmul.mubr.msk.f32.gmra.mrb[10].mxu1 %vm305_vm0, %v245_v0  ;;  %v254_v19 = vld [vmem:[%s6905_s0 + $0x6c0] sm:$0xff]  ;;  %v277_v0 = vld [vmem:[%s6905_s0 + $0x778] sm:$0xff] }
  0x25   :  { %4424 = vmatprep.mubr.msk.f32.mxu0 %vm305_vm0, %v52_v20  ;;  %4715 = vmatprep.mubr.msk.f32.mxu1 %vm305_vm0, %v246_v3  ;;  %v255_v20 = vld [vmem:[%s6905_s0 + $0x6c8] sm:$0xff]  ;;  %v278_v3 = vld [vmem:[%s6905_s0 + $0x780] sm:$0xff] }
  0x28   :  { %4425 = vmatmul.mubr.msk.f32.gmra.mrb[14].mxu0 %vm305_vm0, %v53_v21  ;;  %4716 = vmatmul.mubr.msk.f32.gmra.mrb[12].mxu1 %vm305_vm0, %v247_v4  ;;  %v95_v21 = vld [vmem:[%s6905_s0 + $0x1c8] sm:$0xff] }
  0x29   :  { %4427 = vmatprep.mubr.msk.f32.mxu0 %vm305_vm0, %v54_v22  ;;  %4718 = vmatprep.mubr.msk.f32.mxu1 %vm305_vm0, %v248_v7  ;;  %v96_v22 = vld [vmem:[%s6905_s0 + $0x1d0] sm:$0xff]  ;;  %v279_v4 = vld [vmem:[%s6905_s0 + $0x788] sm:$0xff] }
  0x2a   :  { %v280_v7 = vld [vmem:[%s6905_s0 + $0x790] sm:$0xff] }
  0x2c   :  { %4428 = vmatmul.mubr.msk.f32.gmra.mrb[16].mxu0 %vm305_vm0, %v55_v23  ;;  %4719 = vmatmul.mubr.msk.f32.gmra.mrb[14].mxu1 %vm305_vm0, %v249_v8  ;;  %v256_v23 = vld [vmem:[%s6905_s0 + $0x6d0] sm:$0xff]  ;;  %v281_v8 = vld [vmem:[%s6905_s0 + $0x798] sm:$0xff] }
  0x2d   :  { %4430 = vmatprep.mubr.msk.f32.mxu0 %vm305_vm0, %v56_v24  ;;  %4721 = vmatprep.mubr.msk.f32.mxu1 %vm305_vm0, %v250_v11  ;;  %v257_v24 = vld [vmem:[%s6905_s0 + $0x6d8] sm:$0xff]  ;;  %v282_v11 = vld [vmem:[%s6905_s0 + $0x7a0] sm:$0xff] }
  0x30   :  { %4431 = vmatmul.mubr.msk.f32.gmra.mrb[18].mxu0 %vm305_vm0, %v57_v25  ;;  %4722 = vmatmul.mubr.msk.f32.gmra.mrb[16].mxu1 %vm305_vm0, %v251_v12  ;;  %v97_v25 = vld [vmem:[%s6905_s0 + $0x1d8] sm:$0xff]  ;;  %v283_v12 = vld [vmem:[%s6905_s0 + $0x7a8] sm:$0xff] }
  0x31   :  { %4433 = vmatprep.mubr.msk.f32.mxu0 %vm305_vm0, %v58_v26  ;;  %4724 = vmatprep.mubr.msk.f32.mxu1 %vm305_vm0, %v252_v15  ;;  %v98_v26 = vld [vmem:[%s6905_s0 + $0x1e0] sm:$0xff]  ;;  %v284_v15 = vld [vmem:[%s6905_s0 + $0x7b0] sm:$0xff] }
  0x34   :  { %4434 = vmatmul.mubr.msk.f32.gmra.mrb[20].mxu0 %vm305_vm0, %v59_v27  ;;  %4725 = vmatmul.mubr.msk.f32.gmra.mrb[18].mxu1 %vm305_vm0, %v253_v16  ;;  %v258_v27 = vld [vmem:[%s6905_s0 + $0x6e0] sm:$0xff]  ;;  %v285_v16 = vld [vmem:[%s6905_s0 + $0x7b8] sm:$0xff] }
  0x35   :  { %4436 = vmatprep.mubr.msk.f32.mxu0 %vm305_vm0, %v60_v28  ;;  %4727 = vmatprep.mubr.msk.f32.mxu1 %vm305_vm0, %v254_v19  ;;  %v259_v28 = vld [vmem:[%s6905_s0 + $0x6e8] sm:$0xff]  ;;  %v286_v19 = vld [vmem:[%s6905_s0 + $0x7c0] sm:$0xff] }
  0x38   :  { %4437 = vmatmul.mubr.msk.f32.gmra.mrb[22].mxu0 %vm305_vm0, %v61_v29  ;;  %4728 = vmatmul.mubr.msk.f32.gmra.mrb[20].mxu1 %vm305_vm0, %v255_v20  ;;  %v99_v29 = vld [vmem:[%s6905_s0 + $0x1e8] sm:$0xff] }
  0x39   :  { %4439 = vmatprep.mubr.msk.f32.mxu0 %vm305_vm0, %v62_v30  ;;  %4730 = vmatprep.mubr.msk.f32.mxu1 %vm305_vm0, %v256_v23  ;;  %v100_v30 = vld [vmem:[%s6905_s0 + $0x1f0] sm:$0xff]  ;;  %v287_v20 = vld [vmem:[%s6905_s0 + $0x7c8] sm:$0xff] }
  0x3a   :  { %v288_v23 = vld [vmem:[%s6905_s0 + $0x7d0] sm:$0xff] }
  0x3c   :  { %4440 = vmatmul.mubr.msk.f32.gmra.mrb[24].mxu0 %vm305_vm0, %v63_v31  ;;  %4731 = vmatmul.mubr.msk.f32.gmra.mrb[22].mxu1 %vm305_vm0, %v257_v24  ;;  %v260_v31 = vld [vmem:[%s6905_s0 + $0x6f0] sm:$0xff]  ;;  %v289_v24 = vld [vmem:[%s6905_s0 + $0x7d8] sm:$0xff] }
  0x3d   :  { %4442 = vmatprep.mubr.msk.f32.mxu0 %vm305_vm0, %v64_v32  ;;  %4733 = vmatprep.mubr.msk.f32.mxu1 %vm305_vm0, %v258_v27  ;;  %v261_v32 = vld [vmem:[%s6905_s0 + $0x6f8] sm:$0xff]  ;;  %v290_v27 = vld [vmem:[%s6905_s0 + $0x7e0] sm:$0xff] }
  0x40   :  { %4443 = vmatmul.mubr.msk.f32.gmra.mrb[26].mxu0 %vm305_vm0, %v65_v33  ;;  %4734 = vmatmul.mubr.msk.f32.gmra.mrb[24].mxu1 %vm305_vm0, %v259_v28  ;;  %v101_v33 = vld [vmem:[%s6905_s0 + $0x1f8] sm:$0xff]  ;;  %v291_v28 = vld [vmem:[%s6905_s0 + $0x7e8] sm:$0xff] }
  0x41   :  { %4445 = vmatprep.mubr.msk.f32.mxu0 %vm305_vm0, %v66_v34  ;;  %4736 = vmatprep.mubr.msk.f32.mxu1 %vm305_vm0, %v260_v31  ;;  %v102_v34 = vld [vmem:[%s6905_s0 + $0x200] sm:$0xff]  ;;  %v292_v31 = vld [vmem:[%s6905_s0 + $0x7f0] sm:$0xff] }
  0x44   :  { %4446 = vmatmul.mubr.msk.f32.gmra.mrb[28].mxu0 %vm305_vm0, %v67_v35  ;;  %4737 = vmatmul.mubr.msk.f32.gmra.mrb[26].mxu1 %vm305_vm0, %v261_v32  ;;  %v262_v35 = vld [vmem:[%s6905_s0 + $0x700] sm:$0xff]  ;;  %v293_v32 = vld [vmem:[%s6905_s0 + $0x7f8] sm:$0xff] }
  0x45   :  { %4448 = vmatprep.mubr.msk.f32.mxu0 %vm305_vm0, %v68_v36  ;;  %4739 = vmatprep.mubr.msk.f32.mxu1 %vm305_vm0, %v262_v35  ;;  %v263_v36 = vld [vmem:[%s6905_s0 + $0x708] sm:$0xff] }
  0x46   :  { %v2676_v35 = vld [vmem:[%s6906_s1 + $0x8] sm:$0xff] }
  0x48   :  { %4449 = vmatmul.mubr.msk.f32.gmra.mrb[30].mxu0 %vm305_vm0, %v69_v37  ;;  %4740 = vmatmul.mubr.msk.f32.gmra.mrb[28].mxu1 %vm305_vm0, %v263_v36  ;;  %v103_v37 = vld [vmem:[%s6905_s0 + $0x208] sm:$0xff] }
  0x49   :  { %4451 = vmatprep.mubr.msk.f32.mxu0 %vm305_vm0, %v70_v38  ;;  %v104_v38 = vld [vmem:[%s6905_s0 + $0x210] sm:$0xff]  ;;  %v135_v36 = vld [vmem:[%s6905_s0 + $0x308] sm:$0xff] }
  0x4c   :  { %4452 = vmatmul.mubr.msk.f32.gmra.mrb[32].mxu0 %vm305_vm0, %v71_v39  ;;  %v264_v39 = vld [vmem:[%s6905_s0 + $0x710] sm:$0xff] }
  0x4d   :  { %4454 = vmatprep.mubr.msk.f32.mxu0 %vm305_vm0, %v72_v40  ;;  %4742 = vmatprep.mubr.msk.f32.mxu1 %vm305_vm0, %v264_v39  ;;  %v265_v40 = vld [vmem:[%s6905_s0 + $0x718] sm:$0xff]  ;;  %v138_v39 = vld [vmem:[%s6905_s0 + $0x320] sm:$0xff] }
  0x4e   :  { %4743 = vmatmul.mubr.msk.f32.gmra.mrb[30].mxu1 %vm305_vm0, %v265_v40  ;;  %v139_v40 = vld [vmem:[%s6905_s0 + $0x328] sm:$0xff] }
  0x50   :  { %4455 = vmatmul.mubr.msk.f32.gmra.mrb[34].mxu0 %vm305_vm0, %v73_v41  ;;  %v105_v41 = vld [vmem:[%s6905_s0 + $0x218] sm:$0xff] }
  0x51   :  { %4457 = vmatprep.mubr.msk.f32.mxu0 %vm305_vm0, %v74_v43  ;;  %v266_v43 = vld [vmem:[%s6905_s0 + $0x720] sm:$0xff] }
  0x52   :  { %4745 = vmatprep.mubr.msk.f32.mxu1 %vm305_vm0, %v266_v43  ;;  %v142_v43 = vld [vmem:[%s6905_s0 + $0x340] sm:$0xff] }
  0x53   :  { %4746 = vmatmul.mubr.msk.f32.gmra.mrb[32].mxu1 %vm305_vm0, %v267_v44  ;;  %v143_v44 = vld [vmem:[%s6905_s0 + $0x348] sm:$0xff] }
  0x54   :  { %4458 = vmatmul.mubr.msk.f32.gmra.mrb[36].mxu0 %vm305_vm0, %v75_v45  ;;  %v107_v45 = vld [vmem:[%s6905_s0 + $0x228] sm:$0xff] }
  0x55   :  { %4460 = vmatprep.mubr.msk.f32.mxu0 %vm305_vm0, %v76_v47  ;;  %v268_v47 = vld [vmem:[%s6905_s0 + $0x730] sm:$0xff] }
  0x56   :  { %4748 = vmatprep.mubr.msk.f32.mxu1 %vm305_vm0, %v268_v47  ;;  %v145_v47 = vld [vmem:[%s6905_s0 + $0x358] sm:$0xff] }
  0x57   :  { %4749 = vmatmul.mubr.msk.f32.gmra.mrb[34].mxu1 %vm305_vm0, %v269_v48  ;;  %v146_v48 = vld [vmem:[%s6905_s0 + $0x360] sm:$0xff] }
  0x58   :  { %4461 = vmatmul.mubr.msk.f32.gmra.mrb[38].mxu0 %vm305_vm0, %v77_v49  ;;  %v109_v49 = vld [vmem:[%s6905_s0 + $0x238] sm:$0xff] }
  0x59   :  { %4463 = vmatprep.mubr.msk.f32.mxu0 %vm305_vm0, %v78_v51  ;;  %v270_v51 = vld [vmem:[%s6905_s0 + $0x740] sm:$0xff] }
  0x5a   :  { %4751 = vmatprep.mubr.msk.f32.mxu1 %vm305_vm0, %v270_v51 }
  0x5b   :  { %4752 = vmatmul.mubr.msk.f32.gmra.mrb[36].mxu1 %vm305_vm0, %v271_v52 }
  0x5c   :  { %4464 = vmatmul.mubr.msk.f32.gmra.mrb[40].mxu0 %vm305_vm0, %v79_v53  ;;  %v111_v53 = vld [vmem:[%s6905_s0 + $0x248] sm:$0xff] }
  0x5d   :  { %4466 = vmatprep.mubr.msk.f32.mxu0 %vm305_vm0, %v80_v55  ;;  %v272_v55 = vld [vmem:[%s6905_s0 + $0x750] sm:$0xff] }
  0x5e   :  { %4754 = vmatprep.mubr.msk.f32.mxu1 %vm305_vm0, %v272_v55  ;;  %v148_v55 = vld [vmem:[%s6905_s0 + $0x370] sm:$0xff] }
  0x5f   :  { %4755 = vmatmul.mubr.msk.f32.gmra.mrb[38].mxu1 %vm305_vm0, %v273_v56 }
  0x60   :  { %4467 = vmatmul.mubr.msk.f32.gmra.mrb[42].mxu0 %vm305_vm0, %v81_v57  ;;  %v113_v57 = vld [vmem:[%s6905_s0 + $0x258] sm:$0xff]  ;;  %4757 = vmatprep.mubr.msk.f32.mxu1 %vm305_vm0, %v274_v59 }
  0x61   :  { %4469 = vmatprep.mubr.msk.f32.mxu0 %vm305_vm0, %v82_v58  ;;  %v114_v58 = vld [vmem:[%s6905_s0 + $0x260] sm:$0xff] }
  0x63   :  { %4758 = vmatmul.mubr.msk.f32.gmra.mrb[40].mxu1 %vm305_vm0, %v275_v60 }
  0x64   :  { %4470 = vmatmul.mubr.msk.f32.gmra.mrb[44].mxu0 %vm305_vm0, %v83_v61  ;;  %v115_v61 = vld [vmem:[%s6905_s0 + $0x268] sm:$0xff]  ;;  %4760 = vmatprep.mubr.msk.f32.mxu1 %vm305_vm0, %v276_v63 }
  0x65   :  { %4472 = vmatprep.mubr.msk.f32.mxu0 %vm305_vm0, %v84_v62  ;;  %v116_v62 = vld [vmem:[%s6905_s0 + $0x270] sm:$0xff] }
  0x67   :  { %4761 = vmatmul.mubr.msk.f32.gmra.mrb[42].mxu1 %vm305_vm0, %v277_v0  ;;  %v150_v0 = vld [vmem:[%s6905_s0 + $0x380] sm:$0xff] }
  0x68   :  { %4473 = vmatmul.mubr.msk.f32.gmra.mrb[46].mxu0 %vm305_vm0, %v85_v1  ;;  %v117_v1 = vld [vmem:[%s6905_s0 + $0x278] sm:$0xff]  ;;  %4763 = vmatprep.mubr.msk.f32.mxu1 %vm305_vm0, %v278_v3 }
  0x69   :  { %4475 = vmatprep.mubr.msk.f32.mxu0 %vm305_vm0, %v86_v2  ;;  %v118_v2 = vld [vmem:[%s6905_s0 + $0x280] sm:$0xff] }
  0x6b   :  { %4764 = vmatmul.mubr.msk.f32.gmra.mrb[44].mxu1 %vm305_vm0, %v279_v4 }
  0x6c   :  { %4476 = vmatmul.mubr.msk.f32.gmra.mrb[48].mxu0 %vm305_vm0, %v87_v5  ;;  %v119_v5 = vld [vmem:[%s6905_s0 + $0x288] sm:$0xff]  ;;  %4766 = vmatprep.mubr.msk.f32.mxu1 %vm305_vm0, %v280_v7 }
  0x6d   :  { %4478 = vmatprep.mubr.msk.f32.mxu0 %vm305_vm0, %v88_v6  ;;  %v120_v6 = vld [vmem:[%s6905_s0 + $0x290] sm:$0xff]  ;;  %v151_v7 = vld [vmem:[%s6905_s0 + $0x388] sm:$0xff] }
  0x6f   :  { %4767 = vmatmul.mubr.msk.f32.gmra.mrb[46].mxu1 %vm305_vm0, %v281_v8 }
  0x70   :  { %4479 = vmatmul.mubr.msk.f32.gmra.mrb[50].mxu0 %vm305_vm0, %v89_v9  ;;  %v121_v9 = vld [vmem:[%s6905_s0 + $0x298] sm:$0xff]  ;;  %4769 = vmatprep.mubr.msk.f32.mxu1 %vm305_vm0, %v282_v11 }
  0x71   :  { %4481 = vmatprep.mubr.msk.f32.mxu0 %vm305_vm0, %v90_v10  ;;  %v122_v10 = vld [vmem:[%s6905_s0 + $0x2a0] sm:$0xff] }
  0x73   :  { %4770 = vmatmul.mubr.msk.f32.gmra.mrb[48].mxu1 %vm305_vm0, %v283_v12 }
  0x74   :  { %4482 = vmatmul.mubr.msk.f32.gmra.mrb[52].mxu0 %vm305_vm0, %v91_v13  ;;  %v123_v13 = vld [vmem:[%s6905_s0 + $0x2a8] sm:$0xff]  ;;  %4772 = vmatprep.mubr.msk.f32.mxu1 %vm305_vm0, %v284_v15 }
  0x75   :  { %4484 = vmatprep.mubr.msk.f32.mxu0 %vm305_vm0, %v92_v14  ;;  %v124_v14 = vld [vmem:[%s6905_s0 + $0x2b0] sm:$0xff] }
  0x77   :  { %4773 = vmatmul.mubr.msk.f32.gmra.mrb[50].mxu1 %vm305_vm0, %v285_v16  ;;  %v153_v16 = vld [vmem:[%s6905_s0 + $0x398] sm:$0xff] }
  0x78   :  { %4485 = vmatmul.mubr.msk.f32.gmra.mrb[54].mxu0 %vm305_vm0, %v93_v17  ;;  %v125_v17 = vld [vmem:[%s6905_s0 + $0x2b8] sm:$0xff]  ;;  %4775 = vmatprep.mubr.msk.f32.mxu1 %vm305_vm0, %v286_v19 }
  0x79   :  { %4487 = vmatprep.mubr.msk.f32.mxu0 %vm305_vm0, %v94_v18  ;;  %v126_v18 = vld [vmem:[%s6905_s0 + $0x2c0] sm:$0xff] }
  0x7b   :  { %4776 = vmatmul.mubr.msk.f32.gmra.mrb[52].mxu1 %vm305_vm0, %v287_v20 }
  0x7c   :  { %4488 = vmatmul.mubr.msk.f32.gmra.mrb[56].mxu0 %vm305_vm0, %v95_v21  ;;  %v127_v21 = vld [vmem:[%s6905_s0 + $0x2c8] sm:$0xff]  ;;  %4778 = vmatprep.mubr.msk.f32.mxu1 %vm305_vm0, %v288_v23 }
  0x7d   :  { %4490 = vmatprep.mubr.msk.f32.mxu0 %vm305_vm0, %v96_v22  ;;  %v128_v22 = vld [vmem:[%s6905_s0 + $0x2d0] sm:$0xff] }
  0x7f   :  { %4779 = vmatmul.mubr.msk.f32.gmra.mrb[54].mxu1 %vm305_vm0, %v289_v24 }
  0x80   :  { %4491 = vmatmul.mubr.msk.f32.gmra.mrb[58].mxu0 %vm305_vm0, %v97_v25  ;;  %v129_v25 = vld [vmem:[%s6905_s0 + $0x2d8] sm:$0xff]  ;;  %4781 = vmatprep.mubr.msk.f32.mxu1 %vm305_vm0, %v290_v27  ;;  %v156_v27 = vld [vmem:[%s6905_s0 + $0x3b0] sm:$0xff] }
  0x81   :  { %4493 = vmatprep.mubr.msk.f32.mxu0 %vm305_vm0, %v98_v26  ;;  %v130_v26 = vld [vmem:[%s6905_s0 + $0x2e0] sm:$0xff] }
  0x83   :  { %4782 = vmatmul.mubr.msk.f32.gmra.mrb[56].mxu1 %vm305_vm0, %v291_v28 }
  0x84   :  { %4494 = vmatmul.mubr.msk.f32.gmra.mrb[60].mxu0 %vm305_vm0, %v99_v29  ;;  %v131_v29 = vld [vmem:[%s6905_s0 + $0x2e8] sm:$0xff]  ;;  %4784 = vmatprep.mubr.msk.f32.mxu1 %vm305_vm0, %v292_v31 }
  0x85   :  { %4496 = vmatprep.mubr.msk.f32.mxu0 %vm305_vm0, %v100_v30  ;;  %v132_v30 = vld [vmem:[%s6905_s0 + $0x2f0] sm:$0xff] }
  0x87   :  { %4785 = vmatmul.mubr.msk.f32.gmra.mrb[58].mxu1 %vm305_vm0, %v293_v32 }
  0x88   :  { %4497 = vmatmul.mubr.msk.f32.gmra.mrb[62].mxu0 %vm305_vm0, %v101_v33  ;;  %v133_v33 = vld [vmem:[%s6905_s0 + $0x2f8] sm:$0xff]  ;;  %2755 = vmatprep.mubr.f32.mxu1 %v2676_v35 }
  0x89   :  { %4499 = vmatprep.mubr.msk.f32.mxu0 %vm305_vm0, %v102_v34  ;;  %v134_v34 = vld [vmem:[%s6905_s0 + $0x300] sm:$0xff] }
  0x8c   :  { %4500 = vmatmul.mubr.msk.f32.gmra.mrb[64].mxu0 %vm305_vm0, %v103_v37  ;;  %v136_v37 = vld [vmem:[%s6905_s0 + $0x310] sm:$0xff] }
  0x8d   :  { %4502 = vmatprep.mubr.msk.f32.mxu0 %vm305_vm0, %v104_v38  ;;  %v137_v38 = vld [vmem:[%s6905_s0 + $0x318] sm:$0xff] }
  0x90   :  { %4503 = vmatmul.mubr.msk.f32.gmra.mrb[66].mxu0 %vm305_vm0, %v105_v41  ;;  %v140_v41 = vld [vmem:[%s6905_s0 + $0x330] sm:$0xff] }
  0x91   :  { %4505 = vmatprep.mubr.msk.f32.mxu0 %vm305_vm0, %v106_v42  ;;  %v141_v42 = vld [vmem:[%s6905_s0 + $0x338] sm:$0xff] }
  0x94   :  { %4506 = vmatmul.mubr.msk.f32.gmra.mrb[68].mxu0 %vm305_vm0, %v107_v45  ;;  %v144_v45 = vld [vmem:[%s6905_s0 + $0x350] sm:$0xff] }
  0x95   :  { %4508 = vmatprep.mubr.msk.f32.mxu0 %vm305_vm0, %v108_v46  ;;  %v5854_v46 = vld [vmem:[%s6907_s3] ss:$0 sm:$0xff] }
  0x98   :  { %4509 = vmatmul.mubr.msk.f32.gmra.mrb[70].mxu0 %vm305_vm0, %v109_v49 }
  0x99   :  { %4511 = vmatprep.mubr.msk.f32.mxu0 %vm305_vm0, %v110_v50 }
  0x9c   :  { %4512 = vmatmul.mubr.msk.f32.gmra.mrb[72].mxu0 %vm305_vm0, %v111_v53  ;;  %v147_v53 = vld [vmem:[%s6905_s0 + $0x368] sm:$0xff] }
  0x9d   :  { %4514 = vmatprep.mubr.msk.f32.mxu0 %vm305_vm0, %v112_v54 }
  0xa0   :  { %4515 = vmatmul.mubr.msk.f32.gmra.mrb[74].mxu0 %vm305_vm0, %v113_v57 }
  0xa1   :  { %4517 = vmatprep.mubr.msk.f32.mxu0 %vm305_vm0, %v114_v58 }
  0xa4   :  { %4518 = vmatmul.mubr.msk.f32.gmra.mrb[76].mxu0 %vm305_vm0, %v115_v61 }
  0xa5   :  { %4520 = vmatprep.mubr.msk.f32.mxu0 %vm305_vm0, %v116_v62  ;;  %v149_v62 = vld [vmem:[%s6905_s0 + $0x378] sm:$0xff] }
  0xa8   :  { %4521 = vmatmul.mubr.msk.f32.gmra.mrb[78].mxu0 %vm305_vm0, %v117_v1 }
  0xa9   :  { %4523 = vmatprep.mubr.msk.f32.mxu0 %vm305_vm0, %v118_v2 }
  0xac   :  { %4524 = vmatmul.mubr.msk.f32.gmra.mrb[80].mxu0 %vm305_vm0, %v119_v5 }
  0xad   :  { %4526 = vmatprep.mubr.msk.f32.mxu0 %vm305_vm0, %v120_v6 }
  0xb0   :  { %4527 = vmatmul.mubr.msk.f32.gmra.mrb[82].mxu0 %vm305_vm0, %v121_v9  ;;  %v152_v9 = vld [vmem:[%s6905_s0 + $0x390] sm:$0xff] }
  0xb1   :  { %4529 = vmatprep.mubr.msk.f32.mxu0 %vm305_vm0, %v122_v10 }
  0xb4   :  { %4530 = vmatmul.mubr.msk.f32.gmra.mrb[84].mxu0 %vm305_vm0, %v123_v13 }
  0xb5   :  { %4532 = vmatprep.mubr.msk.f32.mxu0 %vm305_vm0, %v124_v14 }
  0xb8   :  { %4533 = vmatmul.mubr.msk.f32.gmra.mrb[86].mxu0 %vm305_vm0, %v125_v17 }
  0xb9   :  { %4535 = vmatprep.mubr.msk.f32.mxu0 %vm305_vm0, %v126_v18  ;;  %v154_v18 = vld [vmem:[%s6905_s0 + $0x3a0] sm:$0xff] }
  0xbc   :  { %4536 = vmatmul.mubr.msk.f32.gmra.mrb[88].mxu0 %vm305_vm0, %v127_v21 }
  0xbd   :  { %4538 = vmatprep.mubr.msk.f32.mxu0 %vm305_vm0, %v128_v22 }
  0xc0   :  { %4539 = vmatmul.mubr.msk.f32.gmra.mrb[90].mxu0 %vm305_vm0, %v129_v25  ;;  %v155_v25 = vld [vmem:[%s6905_s0 + $0x3a8] sm:$0xff] }
  0xc1   :  { %4541 = vmatprep.mubr.msk.f32.mxu0 %vm305_vm0, %v130_v26 }
  0xc4   :  { %4542 = vmatmul.mubr.msk.f32.gmra.mrb[92].mxu0 %vm305_vm0, %v131_v29 }
  0xc5   :  { %4544 = vmatprep.mubr.msk.f32.mxu0 %vm305_vm0, %v132_v30 }
  0xc8   :  { %4545 = vmatmul.mubr.msk.f32.gmra.mrb[94].mxu0 %vm305_vm0, %v133_v33 }
  0xc9   :  { %4547 = vmatprep.mubr.msk.f32.mxu0 %vm305_vm0, %v134_v34  ;;  %v157_v34 = vld [vmem:[%s6905_s0 + $0x3b8] sm:$0xff] }
  0xcc   :  { %4548 = vmatmul.mubr.msk.f32.gmra.mrb[96].mxu0 %vm305_vm0, %v135_v36  ;;  %v158_v36 = vld [vmem:[%s6905_s0 + $0x3c0] sm:$0xff] }
  0xcd   :  { %4550 = vmatprep.mubr.msk.f32.mxu0 %vm305_vm0, %v136_v37 }
  0xd0   :  { %4551 = vmatmul.mubr.msk.f32.gmra.mrb[98].mxu0 %vm305_vm0, %v137_v38 }
  0xd1   :  { %4553 = vmatprep.mubr.msk.f32.mxu0 %vm305_vm0, %v138_v39 }
  0xd4   :  { %4554 = vmatmul.mubr.msk.f32.gmra.mrb[100].mxu0 %vm305_vm0, %v139_v40 }
  0xd5   :  { %4556 = vmatprep.mubr.msk.f32.mxu0 %vm305_vm0, %v140_v41 }
  0xd8   :  { %4557 = vmatmul.mubr.msk.f32.gmra.mrb[102].mxu0 %vm305_vm0, %v141_v42 }
  0xd9   :  { %4559 = vmatprep.mubr.msk.f32.mxu0 %vm305_vm0, %v142_v43  ;;  %v159_v43 = vld [vmem:[%s6905_s0 + $0x3c8] sm:$0xff] }
  0xdc   :  { %4560 = vmatmul.mubr.msk.f32.gmra.mrb[104].mxu0 %vm305_vm0, %v143_v44 }
  0xdd   :  { %4562 = vmatprep.mubr.msk.f32.mxu0 %vm305_vm0, %v144_v45  ;;  %v160_v45 = vld [vmem:[%s6905_s0 + $0x3d0] sm:$0xff] }
  0xdf   :  { %v4405_v49 = vpop.f32.mrb[0].mxu0 }
  0xe0   :  { %v1146_v50 = vadd.f32 %v4405_v49, %v5854_v46  ;;  %v1140_v51 = vpop.f32.mrb[1].mxu0  ;;  %4563 = vmatmul.mubr.msk.f32.gmra.mrb[106].mxu0 %vm305_vm0, %v145_v47 }
  0xe1   :  { %v1141_v52 = vadd.f32 %v5854_v46, %v1140_v51  ;;  %4565 = vmatprep.mubr.msk.f32.mxu0 %vm305_vm0, %v146_v48 }
  0xe2   :  { %v2420_v54 = vmax.f32 %v1146_v50, 0.0 }
  0xe3   :  { %v2419_v56 = vmax.f32 %v1141_v52, 0.0  ;;  %v4408_v57 = vpop.f32.mrb[2].mxu0 }
  0xe4   :  { %v1156_v58 = vadd.f32 %v4408_v57, %v5854_v46  ;;  %v1150_v59 = vpop.f32.mrb[3].mxu0  ;;  %4566 = vmatmul.mubr.msk.f32.gmra.mrb[108].mxu0 %vm305_vm0, %v147_v53  ;;  %v161_v53 = vld [vmem:[%s6905_s0 + $0x3d8] sm:$0xff] }
  0xe5   :  { %v5875_v60 = vpack.c.bf16 %v2420_v54, %v2419_v56  ;;  %v1151_v61 = vadd.f32 %v5854_v46, %v1150_v59  ;;  %4568 = vmatprep.mubr.msk.f32.mxu0 %vm305_vm0, %v148_v55  ;;  %v162_v55 = vld [vmem:[%s6905_s0 + $0x3e0] sm:$0xff] }
  0xe6   :  { %v2422_v63 = vmax.f32 %v1156_v58, 0.0 }
  0xe7   :  { %v2421_v1 = vmax.f32 %v1151_v61, 0.0  ;;  %v4411_v2 = vpop.f32.mrb[4].mxu0 }
  0xe8   :  { %v1166_v3 = vadd.f32 %v4411_v2, %v5854_v46  ;;  %v1160_v4 = vpop.f32.mrb[5].mxu0  ;;  %4569 = vmatmul.mubr.msk.f32.gmra.mrb[110].mxu0 %vm305_vm0, %v149_v62 }
  0xe9   :  { %v5887_v5 = vpack.c.bf16 %v2422_v63, %v2421_v1  ;;  %v1161_v6 = vadd.f32 %v5854_v46, %v1160_v4  ;;  %4571 = vmatprep.mubr.msk.f32.mxu0 %vm305_vm0, %v150_v0  ;;  %v163_v63 = vld [vmem:[%s6905_s0 + $0x3e8] sm:$0xff]  ;;  %v164_v1 = vld [vmem:[%s6905_s0 + $0x3f0] sm:$0xff] }
  0xea   :  { %v2424_v8 = vmax.f32 %v1166_v3, 0.0 }
  0xeb   :  { %v2423_v10 = vmax.f32 %v1161_v6, 0.0  ;;  %v4414_v11 = vpop.f32.mrb[6].mxu0 }
  0xec   :  { %v1176_v12 = vadd.f32 %v4414_v11, %v5854_v46  ;;  %v1170_v13 = vpop.f32.mrb[7].mxu0  ;;  %4572 = vmatmul.mubr.msk.f32.gmra.mrb[112].mxu0 %vm305_vm0, %v151_v7  ;;  %v166_v11 = vld [vmem:[%s6905_s0 + $0x400] sm:$0xff] }
  0xed   :  { %v5899_v14 = vpack.c.bf16 %v2424_v8, %v2423_v10  ;;  %v1171_v15 = vadd.f32 %v5854_v46, %v1170_v13  ;;  %4574 = vmatprep.mubr.msk.f32.mxu0 %vm305_vm0, %v152_v9  ;;  %v165_v9 = vld [vmem:[%s6905_s0 + $0x3f8] sm:$0xff] }
  0xee   :  { %v2426_v17 = vmax.f32 %v1176_v12, 0.0 }
  0xef   :  { %v2425_v19 = vmax.f32 %v1171_v15, 0.0  ;;  %v4417_v20 = vpop.f32.mrb[8].mxu0 }
  0xf0   :  { %v1186_v21 = vadd.f32 %v4417_v20, %v5854_v46  ;;  %v1180_v22 = vpop.f32.mrb[9].mxu0  ;;  %4575 = vmatmul.mubr.msk.f32.gmra.mrb[114].mxu0 %vm305_vm0, %v153_v16 }
  0xf1   :  { %v5911_v23 = vpack.c.bf16 %v2426_v17, %v2425_v19  ;;  %v1181_v24 = vadd.f32 %v5854_v46, %v1180_v22  ;;  %4577 = vmatprep.mubr.msk.f32.mxu0 %vm305_vm0, %v154_v18  ;;  %v167_v19 = vld [vmem:[%s6905_s0 + $0x408] sm:$0xff] }
  0xf2   :  { %v2428_v26 = vmax.f32 %v1186_v21, 0.0  ;;  %v168_v21 = vld [vmem:[%s6905_s0 + $0x410] sm:$0xff] }
  0xf3   :  { %v2427_v28 = vmax.f32 %v1181_v24, 0.0  ;;  %v4420_v29 = vpop.f32.mrb[10].mxu0 }
  0xf4   :  { %v1196_v30 = vadd.f32 %v4420_v29, %v5854_v46  ;;  %v1190_v31 = vpop.f32.mrb[11].mxu0  ;;  %4578 = vmatmul.mubr.msk.f32.gmra.mrb[116].mxu0 %vm305_vm0, %v155_v25 }
  0xf5   :  { %v5923_v32 = vpack.c.bf16 %v2428_v26, %v2427_v28  ;;  %v1191_v33 = vadd.f32 %v5854_v46, %v1190_v31  ;;  %4580 = vmatprep.mubr.msk.f32.mxu0 %vm305_vm0, %v156_v27  ;;  %v169_v28 = vld [vmem:[%s6905_s0 + $0x418] sm:$0xff] }
  0xf6   :  { %v2430_v35 = vmax.f32 %v1196_v30, 0.0  ;;  %v170_v30 = vld [vmem:[%s6905_s0 + $0x420] sm:$0xff] }
  0xf7   :  { %v2429_v37 = vmax.f32 %v1191_v33, 0.0  ;;  %v4423_v38 = vpop.f32.mrb[12].mxu0 }
  0xf8   :  { %v1206_v39 = vadd.f32 %v4423_v38, %v5854_v46  ;;  %v1200_v40 = vpop.f32.mrb[13].mxu0  ;;  %4581 = vmatmul.mubr.msk.f32.gmra.mrb[118].mxu0 %vm305_vm0, %v157_v34 }
  0xf9   :  { %v5935_v41 = vpack.c.bf16 %v2430_v35, %v2429_v37  ;;  %v1201_v42 = vadd.f32 %v5854_v46, %v1200_v40  ;;  %4583 = vmatprep.mubr.msk.f32.mxu0 %vm305_vm0, %v158_v36  ;;  %v171_v37 = vld [vmem:[%s6905_s0 + $0x428] sm:$0xff] }
  0xfa   :  { %v2432_v44 = vmax.f32 %v1206_v39, 0.0  ;;  %v172_v39 = vld [vmem:[%s6905_s0 + $0x430] sm:$0xff] }
  0xfb   :  { %v2431_v47 = vmax.f32 %v1201_v42, 0.0  ;;  %v4426_v48 = vpop.f32.mrb[14].mxu0 }
  0xfc   :  { %v1216_v49 = vadd.f32 %v4426_v48, %v5854_v46  ;;  %v1210_v50 = vpop.f32.mrb[15].mxu0  ;;  %4584 = vmatmul.mubr.msk.f32.gmra.mrb[120].mxu0 %vm305_vm0, %v159_v43 }
  0xfd   :  { %v5947_v51 = vpack.c.bf16 %v2432_v44, %v2431_v47  ;;  %v1211_v52 = vadd.f32 %v5854_v46, %v1210_v50  ;;  %4586 = vmatprep.mubr.msk.f32.mxu0 %vm305_vm0, %v160_v45  ;;  %v173_v47 = vld [vmem:[%s6905_s0 + $0x438] sm:$0xff] }
  0xfe   :  { %v2434_v54 = vmax.f32 %v1216_v49, 0.0  ;;  %v174_v49 = vld [vmem:[%s6905_s0 + $0x440] sm:$0xff] }
  0xff   :  { %v2433_v56 = vmax.f32 %v1211_v52, 0.0  ;;  %v4429_v57 = vpop.f32.mrb[16].mxu0 }
 0x100   :  { %v1226_v58 = vadd.f32 %v4429_v57, %v5854_v46  ;;  %v1220_v59 = vpop.f32.mrb[17].mxu0  ;;  %4587 = vmatmul.mubr.msk.f32.gmra.mrb[122].mxu0 %vm305_vm0, %v161_v53 }
 0x101   :  { %v5959_v61 = vpack.c.bf16 %v2434_v54, %v2433_v56  ;;  %v1221_v62 = vadd.f32 %v5854_v46, %v1220_v59  ;;  %4589 = vmatprep.mubr.msk.f32.mxu0 %vm305_vm0, %v162_v55  ;;  %v175_v56 = vld [vmem:[%s6905_s0 + $0x448] sm:$0xff] }
 0x102   :  { %v2436_v0 = vmax.f32 %v1226_v58, 0.0  ;;  %v176_v58 = vld [vmem:[%s6905_s0 + $0x450] sm:$0xff] }
 0x103   :  { %v2435_v2 = vmax.f32 %v1221_v62, 0.0  ;;  %v4432_v3 = vpop.f32.mrb[18].mxu0 }
 0x104   :  { %v1236_v4 = vadd.f32 %v4432_v3, %v5854_v46  ;;  %v1230_v6 = vpop.f32.mrb[19].mxu0  ;;  %4590 = vmatmul.mubr.msk.f32.gmra.mrb[124].mxu0 %vm305_vm0, %v163_v63 }
 0x105   :  { %v4802_v7 = vpack.c.bf16 %v2436_v0, %v2435_v2  ;;  %v1231_v8 = vadd.f32 %v5854_v46, %v1230_v6  ;;  %4592 = vmatprep.mubr.msk.f32.mxu0 %vm305_vm0, %v164_v1  ;;  %v177_v2 = vld [vmem:[%s6905_s0 + $0x458] sm:$0xff] }
 0x106   :  { %v2438_v10 = vmax.f32 %v1236_v4, 0.0  ;;  %v178_v4 = vld [vmem:[%s6905_s0 + $0x460] sm:$0xff] }
 0x107   :  { %v2437_v12 = vmax.f32 %v1231_v8, 0.0  ;;  %v4435_v13 = vpop.f32.mrb[20].mxu0  ;;  %4803 = vmatprep.subr.bf16.mxu1 %v4802_v7 }
 0x108   :  { %v1246_v15 = vadd.f32 %v4435_v13, %v5854_v46  ;;  %v1240_v16 = vpop.f32.mrb[21].mxu0  ;;  %4593 = vmatmul.mubr.msk.f32.gmra.mrb[126].mxu0 %vm305_vm0, %v165_v9  ;;  %4805 = vmatpush3.bf16.msra.mxu1 %v5875_v60  ;;  %v180_v13 = vld [vmem:[%s6905_s0 + $0x470] sm:$0xff] }
 0x109   :  { %v4806_v17 = vpack.c.bf16 %v2438_v10, %v2437_v12  ;;  %v1241_v18 = vadd.f32 %v5854_v46, %v1240_v16  ;;  %4595 = vmatprep.mubr.msk.f32.mxu0 %vm305_vm0, %v166_v11  ;;  %v179_v11 = vld [vmem:[%s6905_s0 + $0x468] sm:$0xff] }
 0x10a   :  { %v2440_v20 = vmax.f32 %v1246_v15, 0.0 }
 0x10b   :  { %v2439_v22 = vmax.f32 %v1241_v18, 0.0  ;;  %v4438_v24 = vpop.f32.mrb[22].mxu0  ;;  %4807 = vmatprep.subr.bf16.mxu1 %v4806_v17  ;;  %v2675_v18 = vld [vmem:[%s6906_s1] sm:$0xff] }
 0x10c   :  { %v1256_v25 = vadd.f32 %v4438_v24, %v5854_v46  ;;  %v1250_v60 = vpop.f32.mrb[23].mxu0  ;;  %4596 = vmatmul.mubr.msk.f32.gmra.mrb[128].mxu0 %vm305_vm0, %v167_v19  ;;  %4809 = vmatpush3.bf16.msra.mxu1 %v5887_v5 }
 0x10d   :  { %v4810_v26 = vpack.c.bf16 %v2440_v20, %v2439_v22  ;;  %v1251_v27 = vadd.f32 %v5854_v46, %v1250_v60  ;;  %4598 = vmatprep.mubr.msk.f32.mxu0 %vm305_vm0, %v168_v21  ;;  %v181_v21 = vld [vmem:[%s6905_s0 + $0x478] sm:$0xff] }
 0x10e   :  { %v2442_v29 = vmax.f32 %v1256_v25, 0.0  ;;  %v2678_v22 = vld [vmem:[%s6906_s1 + $0x18] sm:$0xff] }
 0x10f   :  { %v2441_v31 = vmax.f32 %v1251_v27, 0.0  ;;  %v4441_v33 = vpop.f32.mrb[24].mxu0  ;;  %4811 = vmatprep.subr.bf16.mxu1 %v4810_v26 }
 0x110   :  { %v1266_v34 = vadd.f32 %v4441_v33, %v5854_v46  ;;  %v1260_v5 = vpop.f32.mrb[25].mxu0  ;;  %4599 = vmatmul.mubr.msk.f32.gmra.mrb[130].mxu0 %vm305_vm0, %v169_v28  ;;  %4813 = vmatpush3.bf16.msra.mxu1 %v5899_v14  ;;  %v184_v33 = vld [vmem:[%s6905_s0 + $0x490] sm:$0xff] }
 0x111   :  { %v4814_v35 = vpack.c.bf16 %v2442_v29, %v2441_v31  ;;  %v1261_v36 = vadd.f32 %v5854_v46, %v1260_v5  ;;  %4601 = vmatprep.mubr.msk.f32.mxu0 %vm305_vm0, %v170_v30  ;;  %v183_v30 = vld [vmem:[%s6905_s0 + $0x488] sm:$0xff] }
 0x112   :  { %v2444_v38 = vmax.f32 %v1266_v34, 0.0 }
 0x113   :  { %v2443_v40 = vmax.f32 %v1261_v36, 0.0  ;;  %v4444_v42 = vpop.f32.mrb[26].mxu0  ;;  %4815 = vmatprep.subr.bf16.mxu1 %v4814_v35 }
 0x114   :  { %v1276_v43 = vadd.f32 %v4444_v42, %v5854_v46  ;;  %v1270_v14 = vpop.f32.mrb[27].mxu0  ;;  %4602 = vmatmul.mubr.msk.f32.gmra.mrb[132].mxu0 %vm305_vm0, %v171_v37  ;;  %4817 = vmatpush3.bf16.msra.mxu1 %v5911_v23  ;;  %v186_v42 = vld [vmem:[%s6905_s0 + $0x4a0] sm:$0xff] }
 0x115   :  { %v4818_v44 = vpack.c.bf16 %v2444_v38, %v2443_v40  ;;  %v1271_v45 = vadd.f32 %v5854_v46, %v1270_v14  ;;  %4604 = vmatprep.mubr.msk.f32.mxu0 %vm305_vm0, %v172_v39  ;;  %v185_v39 = vld [vmem:[%s6905_s0 + $0x498] sm:$0xff] }
 0x116   :  { %v2446_v48 = vmax.f32 %v1276_v43, 0.0 }
 0x117   :  { %v2445_v50 = vmax.f32 %v1271_v45, 0.0  ;;  %v4447_v52 = vpop.f32.mrb[28].mxu0  ;;  %4819 = vmatprep.subr.bf16.mxu1 %v4818_v44 }
 0x118   :  { %v1286_v53 = vadd.f32 %v4447_v52, %v5854_v46  ;;  %v1280_v23 = vpop.f32.mrb[29].mxu0  ;;  %4605 = vmatmul.mubr.msk.f32.gmra.mrb[134].mxu0 %vm305_vm0, %v173_v47  ;;  %4821 = vmatpush3.bf16.msra.mxu1 %v5923_v32  ;;  %v188_v52 = vld [vmem:[%s6905_s0 + $0x4b0] sm:$0xff] }
 0x119   :  { %v4822_v54 = vpack.c.bf16 %v2446_v48, %v2445_v50  ;;  %v1281_v55 = vadd.f32 %v5854_v46, %v1280_v23  ;;  %4607 = vmatprep.mubr.msk.f32.mxu0 %vm305_vm0, %v174_v49  ;;  %v187_v49 = vld [vmem:[%s6905_s0 + $0x4a8] sm:$0xff] }
 0x11a   :  { %v2448_v57 = vmax.f32 %v1286_v53, 0.0 }
 0x11b   :  { %v2447_v59 = vmax.f32 %v1281_v55, 0.0  ;;  %v4450_v62 = vpop.f32.mrb[30].mxu0  ;;  %4823 = vmatprep.subr.bf16.mxu1 %v4822_v54 }
 0x11c   :  { %v1296_v63 = vadd.f32 %v4450_v62, %v5854_v46  ;;  %v1290_v32 = vpop.f32.mrb[31].mxu0  ;;  %4608 = vmatmul.mubr.msk.f32.gmra.mrb[136].mxu0 %vm305_vm0, %v175_v56  ;;  %4825 = vmatpush3.bf16.msra.mxu1 %v5935_v41  ;;  %v190_v62 = vld [vmem:[%s6905_s0 + $0x4c0] sm:$0xff] }
 0x11d   :  { %v4826_v0 = vpack.c.bf16 %v2448_v57, %v2447_v59  ;;  %v1291_v1 = vadd.f32 %v5854_v46, %v1290_v32  ;;  %4610 = vmatprep.mubr.msk.f32.mxu0 %vm305_vm0, %v176_v58  ;;  %v189_v58 = vld [vmem:[%s6905_s0 + $0x4b8] sm:$0xff] }
 0x11e   :  { %v2450_v3 = vmax.f32 %v1296_v63, 0.0 }
 0x11f   :  { %v2449_v6 = vmax.f32 %v1291_v1, 0.0  ;;  %v4453_v7 = vpop.f32.mrb[32].mxu0  ;;  %4827 = vmatprep.subr.bf16.mxu1 %v4826_v0 }
 0x120   :  { %v1306_v8 = vadd.f32 %v4453_v7, %v5854_v46  ;;  %v1300_v41 = vpop.f32.mrb[33].mxu0  ;;  %4611 = vmatmul.mubr.msk.f32.gmra.mrb[138].mxu0 %vm305_vm0, %v177_v2  ;;  %4829 = vmatpush3.bf16.msra.mxu1 %v5947_v51  ;;  %v192_v7 = vld [vmem:[%s6905_s0 + $0x4d0] sm:$0xff] }
 0x121   :  { %v4830_v9 = vpack.c.bf16 %v2450_v3, %v2449_v6  ;;  %v1301_v10 = vadd.f32 %v5854_v46, %v1300_v41  ;;  %4613 = vmatprep.mubr.msk.f32.mxu0 %vm305_vm0, %v178_v4  ;;  %v191_v4 = vld [vmem:[%s6905_s0 + $0x4c8] sm:$0xff] }
 0x122   :  { %v2452_v12 = vmax.f32 %v1306_v8, 0.0 }
 0x123   :  { %v2451_v15 = vmax.f32 %v1301_v10, 0.0  ;;  %v4456_v16 = vpop.f32.mrb[34].mxu0  ;;  %4831 = vmatprep.subr.bf16.mxu1 %v4830_v9 }
 0x124   :  { %v1316_v17 = vadd.f32 %v4456_v16, %v5854_v46  ;;  %v1310_v51 = vpop.f32.mrb[35].mxu0  ;;  %4614 = vmatmul.mubr.msk.f32.gmra.mrb[140].mxu0 %vm305_vm0, %v179_v11  ;;  %4833 = vmatpush3.bf16.msra.mxu1 %v5959_v61  ;;  %v182_v61 = vld [vmem:[%s6905_s0 + $0x480] sm:$0xff] }
 0x125   :  { %v6062_v19 = vpack.c.bf16 %v2452_v12, %v2451_v15  ;;  %v1311_v20 = vadd.f32 %v5854_v46, %v1310_v51  ;;  %4616 = vmatprep.mubr.msk.f32.mxu0 %vm305_vm0, %v180_v13  ;;  %v193_v13 = vld [vmem:[%s6905_s0 + $0x4d8] sm:$0xff]  ;;  %v194_v16 = vld [vmem:[%s6905_s0 + $0x4e0] sm:$0xff] }
 0x126   :  { %v2454_v24 = vmax.f32 %v1316_v17, 0.0 }
 0x127   :  { %v2453_v25 = vmax.f32 %v1311_v20, 0.0  ;;  %v4459_v60 = vpop.f32.mrb[36].mxu0  ;;  %2756 = vmatmul.mubr.f32.vlgmr.msra.gmra.mrb[60].mxu1 %v2675_v18 }
 0x128   :  { %v1326_v26 = vadd.f32 %v4459_v60, %v5854_v46  ;;  %v1320_v27 = vpop.f32.mrb[37].mxu0  ;;  %4617 = vmatmul.mubr.msk.f32.gmra.mrb[142].mxu0 %vm305_vm0, %v181_v21  ;;  %2825 = vmatprep.mubr.f32.mxu1 %v2678_v22 }
 0x129   :  { %v6077_v28 = vpack.c.bf16 %v2454_v24, %v2453_v25  ;;  %v1321_v29 = vadd.f32 %v5854_v46, %v1320_v27  ;;  %4619 = vmatprep.mubr.msk.f32.mxu0 %vm305_vm0, %v182_v61  ;;  %v195_v24 = vld [vmem:[%s6905_s0 + $0x4e8] sm:$0xff]  ;;  %v196_v25 = vld [vmem:[%s6905_s0 + $0x4f0] sm:$0xff] }
 0x12a   :  { %v2456_v31 = vmax.f32 %v1326_v26, 0.0 }
 0x12b   :  { %v2455_v34 = vmax.f32 %v1321_v29, 0.0  ;;  %v4462_v5 = vpop.f32.mrb[38].mxu0 }
 0x12c   :  { %v1336_v35 = vadd.f32 %v4462_v5, %v5854_v46  ;;  %v1330_v36 = vpop.f32.mrb[39].mxu0  ;;  %4620 = vmatmul.mubr.msk.f32.gmra.mrb[144].mxu0 %vm305_vm0, %v183_v30  ;;  %v198_v5 = vld [vmem:[%s6905_s0 + $0x500] sm:$0xff] }
 0x12d   :  { %v6089_v37 = vpack.c.bf16 %v2456_v31, %v2455_v34  ;;  %v1331_v38 = vadd.f32 %v5854_v46, %v1330_v36  ;;  %4622 = vmatprep.mubr.msk.f32.mxu0 %vm305_vm0, %v184_v33  ;;  %v197_v33 = vld [vmem:[%s6905_s0 + $0x4f8] sm:$0xff] }
 0x12e   :  { %v2458_v40 = vmax.f32 %v1336_v35, 0.0 }
 0x12f   :  { %v2457_v43 = vmax.f32 %v1331_v38, 0.0  ;;  %v4465_v14 = vpop.f32.mrb[40].mxu0 }
 0x130   :  { %v1346_v44 = vadd.f32 %v4465_v14, %v5854_v46  ;;  %v1340_v45 = vpop.f32.mrb[41].mxu0  ;;  %4623 = vmatmul.mubr.msk.f32.gmra.mrb[146].mxu0 %vm305_vm0, %v185_v39 }
 0x131   :  { %v6101_v47 = vpack.c.bf16 %v2458_v40, %v2457_v43  ;;  %v1341_v48 = vadd.f32 %v5854_v46, %v1340_v45  ;;  %4625 = vmatprep.mubr.msk.f32.mxu0 %vm305_vm0, %v186_v42  ;;  %v199_v43 = vld [vmem:[%s6905_s0 + $0x508] sm:$0xff] }
 0x132   :  { %v2460_v50 = vmax.f32 %v1346_v44, 0.0  ;;  %v200_v44 = vld [vmem:[%s6905_s0 + $0x510] sm:$0xff] }
 0x133   :  { %v2459_v53 = vmax.f32 %v1341_v48, 0.0  ;;  %v4468_v23 = vpop.f32.mrb[42].mxu0 }
 0x134   :  { %v1356_v54 = vadd.f32 %v4468_v23, %v5854_v46  ;;  %v1350_v55 = vpop.f32.mrb[43].mxu0  ;;  %4626 = vmatmul.mubr.msk.f32.gmra.mrb[148].mxu0 %vm305_vm0, %v187_v49 }
 0x135   :  { %v6113_v56 = vpack.c.bf16 %v2460_v50, %v2459_v53  ;;  %v1351_v57 = vadd.f32 %v5854_v46, %v1350_v55  ;;  %4628 = vmatprep.mubr.msk.f32.mxu0 %vm305_vm0, %v188_v52  ;;  %v201_v53 = vld [vmem:[%s6905_s0 + $0x518] sm:$0xff] }
 0x136   :  { %v2462_v59 = vmax.f32 %v1356_v54, 0.0  ;;  %v202_v54 = vld [vmem:[%s6905_s0 + $0x520] sm:$0xff] }
 0x137   :  { %v2461_v63 = vmax.f32 %v1351_v57, 0.0  ;;  %v4471_v32 = vpop.f32.mrb[44].mxu0 }
 0x138   :  { %v1366_v0 = vadd.f32 %v4471_v32, %v5854_v46  ;;  %v1360_v1 = vpop.f32.mrb[45].mxu0  ;;  %4629 = vmatmul.mubr.msk.f32.gmra.mrb[150].mxu0 %vm305_vm0, %v189_v58 }
 0x139   :  { %v6125_v2 = vpack.c.bf16 %v2462_v59, %v2461_v63  ;;  %v1361_v3 = vadd.f32 %v5854_v46, %v1360_v1  ;;  %4631 = vmatprep.mubr.msk.f32.mxu0 %vm305_vm0, %v190_v62  ;;  %v203_v63 = vld [vmem:[%s6905_s0 + $0x528] sm:$0xff] }
 0x13a   :  { %v2464_v6 = vmax.f32 %v1366_v0, 0.0  ;;  %v204_v0 = vld [vmem:[%s6905_s0 + $0x530] sm:$0xff] }
 0x13b   :  { %v2463_v8 = vmax.f32 %v1361_v3, 0.0  ;;  %v4474_v41 = vpop.f32.mrb[46].mxu0 }
 0x13c   :  { %v1376_v9 = vadd.f32 %v4474_v41, %v5854_v46  ;;  %v1370_v10 = vpop.f32.mrb[47].mxu0  ;;  %4632 = vmatmul.mubr.msk.f32.gmra.mrb[152].mxu0 %vm305_vm0, %v191_v4 }
 0x13d   :  { %v6137_v11 = vpack.c.bf16 %v2464_v6, %v2463_v8  ;;  %v1371_v12 = vadd.f32 %v5854_v46, %v1370_v10  ;;  %4634 = vmatprep.mubr.msk.f32.mxu0 %vm305_vm0, %v192_v7  ;;  %v205_v8 = vld [vmem:[%s6905_s0 + $0x538] sm:$0xff] }
 0x13e   :  { %v2466_v15 = vmax.f32 %v1376_v9, 0.0  ;;  %v206_v9 = vld [vmem:[%s6905_s0 + $0x540] sm:$0xff] }
 0x13f   :  { %v2465_v17 = vmax.f32 %v1371_v12, 0.0  ;;  %v4477_v51 = vpop.f32.mrb[48].mxu0 }
 0x140   :  { %v1386_v18 = vadd.f32 %v4477_v51, %v5854_v46  ;;  %v1380_v20 = vpop.f32.mrb[49].mxu0  ;;  %4635 = vmatmul.mubr.msk.f32.gmra.mrb[154].mxu0 %vm305_vm0, %v193_v13 }
 0x141   :  { %v6149_v21 = vpack.c.bf16 %v2466_v15, %v2465_v17  ;;  %v1381_v22 = vadd.f32 %v5854_v46, %v1380_v20  ;;  %4637 = vmatprep.mubr.msk.f32.mxu0 %vm305_vm0, %v194_v16  ;;  %v207_v17 = vld [vmem:[%s6905_s0 + $0x548] sm:$0xff] }
 0x142   :  { %v2468_v61 = vmax.f32 %v1386_v18, 0.0  ;;  %v208_v18 = vld [vmem:[%s6905_s0 + $0x550] sm:$0xff] }
 0x143   :  { %v2467_v60 = vmax.f32 %v1381_v22, 0.0  ;;  %v4480_v26 = vpop.f32.mrb[50].mxu0 }
 0x144   :  { %v1396_v27 = vadd.f32 %v4480_v26, %v5854_v46  ;;  %v1390_v29 = vpop.f32.mrb[51].mxu0  ;;  %4638 = vmatmul.mubr.msk.f32.gmra.mrb[156].mxu0 %vm305_vm0, %v195_v24 }
 0x145   :  { %v4834_v30 = vpack.c.bf16 %v2468_v61, %v2467_v60  ;;  %v1391_v31 = vadd.f32 %v5854_v46, %v1390_v29  ;;  %4640 = vmatprep.mubr.msk.f32.mxu0 %vm305_vm0, %v196_v25  ;;  %v209_v60 = vld [vmem:[%s6905_s0 + $0x558] sm:$0xff] }
 0x146   :  { %v2470_v34 = vmax.f32 %v1396_v27, 0.0  ;;  %v210_v27 = vld [vmem:[%s6905_s0 + $0x560] sm:$0xff] }
 0x147   :  { %v2469_v35 = vmax.f32 %v1391_v31, 0.0  ;;  %v4483_v36 = vpop.f32.mrb[52].mxu0  ;;  %4835 = vmatprep.subr.bf16.mxu1 %v4834_v30 }
 0x148   :  { %v1406_v38 = vadd.f32 %v4483_v36, %v5854_v46  ;;  %v1400_v39 = vpop.f32.mrb[53].mxu0  ;;  %4641 = vmatmul.mubr.msk.f32.gmra.mrb[158].mxu0 %vm305_vm0, %v197_v33  ;;  %4837 = vmatpush3.bf16.msra.mxu1 %v6062_v19  ;;  %v212_v36 = vld [vmem:[%s6905_s0 + $0x570] sm:$0xff] }
 0x149   :  { %v4838_v40 = vpack.c.bf16 %v2470_v34, %v2469_v35  ;;  %v1401_v42 = vadd.f32 %v5854_v46, %v1400_v39  ;;  %4643 = vmatprep.mubr.msk.f32.mxu0 %vm305_vm0, %v198_v5  ;;  %v211_v5 = vld [vmem:[%s6905_s0 + $0x568] sm:$0xff] }
 0x14a   :  { %v2472_v14 = vmax.f32 %v1406_v38, 0.0 }
 0x14b   :  { %v2471_v45 = vmax.f32 %v1401_v42, 0.0  ;;  %v4486_v48 = vpop.f32.mrb[54].mxu0  ;;  %4839 = vmatprep.subr.bf16.mxu1 %v4838_v40  ;;  %v2677_v42 = vld [vmem:[%s6906_s1 + $0x10] sm:$0xff] }
 0x14c   :  { %v1416_v49 = vadd.f32 %v4486_v48, %v5854_v46  ;;  %v1410_v19 = vpop.f32.mrb[55].mxu0  ;;  %4644 = vmatmul.mubr.msk.f32.gmra.mrb[160].mxu0 %vm305_vm0, %v199_v43  ;;  %4841 = vmatpush3.bf16.msra.mxu1 %v6077_v28 }
 0x14d   :  { %v4842_v50 = vpack.c.bf16 %v2472_v14, %v2471_v45  ;;  %v1411_v52 = vadd.f32 %v5854_v46, %v1410_v19  ;;  %4646 = vmatprep.mubr.msk.f32.mxu0 %vm305_vm0, %v200_v44  ;;  %v213_v44 = vld [vmem:[%s6905_s0 + $0x578] sm:$0xff]  ;;  %v2680_v45 = vld [vmem:[%s6906_s1 + $0x28] sm:$0xff] }
 0x14e   :  { %v2474_v23 = vmax.f32 %v1416_v49, 0.0 }
 0x14f   :  { %v2473_v55 = vmax.f32 %v1411_v52, 0.0  ;;  %v4489_v57 = vpop.f32.mrb[56].mxu0  ;;  %4843 = vmatprep.subr.bf16.mxu1 %v4842_v50 }
 0x150   :  { %v1426_v58 = vadd.f32 %v4489_v57, %v5854_v46  ;;  %v1420_v28 = vpop.f32.mrb[57].mxu0  ;;  %4647 = vmatmul.mubr.msk.f32.gmra.mrb[162].mxu0 %vm305_vm0, %v201_v53  ;;  %4845 = vmatpush3.bf16.msra.mxu1 %v6089_v37  ;;  %v216_v57 = vld [vmem:[%s6905_s0 + $0x590] sm:$0xff] }
 0x151   :  { %v4846_v59 = vpack.c.bf16 %v2474_v23, %v2473_v55  ;;  %v1421_v62 = vadd.f32 %v5854_v46, %v1420_v28  ;;  %4649 = vmatprep.mubr.msk.f32.mxu0 %vm305_vm0, %v202_v54  ;;  %v215_v54 = vld [vmem:[%s6905_s0 + $0x588] sm:$0xff] }
 0x152   :  { %v2476_v32 = vmax.f32 %v1426_v58, 0.0 }
 0x153   :  { %v2475_v1 = vmax.f32 %v1421_v62, 0.0  ;;  %v4492_v3 = vpop.f32.mrb[58].mxu0  ;;  %4847 = vmatprep.subr.bf16.mxu1 %v4846_v59 }
 0x154   :  { %v1436_v4 = vadd.f32 %v4492_v3, %v5854_v46  ;;  %v1430_v37 = vpop.f32.mrb[59].mxu0  ;;  %4650 = vmatmul.mubr.msk.f32.gmra.mrb[164].mxu0 %vm305_vm0, %v203_v63  ;;  %4849 = vmatpush3.bf16.msra.mxu1 %v6101_v47  ;;  %v218_v3 = vld [vmem:[%s6905_s0 + $0x5a0] sm:$0xff] }
 0x155   :  { %v4850_v6 = vpack.c.bf16 %v2476_v32, %v2475_v1  ;;  %v1431_v7 = vadd.f32 %v5854_v46, %v1430_v37  ;;  %4652 = vmatprep.mubr.msk.f32.mxu0 %vm305_vm0, %v204_v0  ;;  %v217_v0 = vld [vmem:[%s6905_s0 + $0x598] sm:$0xff] }
 0x156   :  { %v2478_v41 = vmax.f32 %v1436_v4, 0.0 }
 0x157   :  { %v2477_v10 = vmax.f32 %v1431_v7, 0.0  ;;  %v4495_v12 = vpop.f32.mrb[60].mxu0  ;;  %4851 = vmatprep.subr.bf16.mxu1 %v4850_v6 }
 0x158   :  { %v1446_v13 = vadd.f32 %v4495_v12, %v5854_v46  ;;  %v1440_v47 = vpop.f32.mrb[61].mxu0  ;;  %4653 = vmatmul.mubr.msk.f32.gmra.mrb[166].mxu0 %vm305_vm0, %v205_v8  ;;  %4853 = vmatpush3.bf16.msra.mxu1 %v6113_v56  ;;  %v220_v12 = vld [vmem:[%s6905_s0 + $0x5b0] sm:$0xff] }
 0x159   :  { %v4854_v15 = vpack.c.bf16 %v2478_v41, %v2477_v10  ;;  %v1441_v16 = vadd.f32 %v5854_v46, %v1440_v47  ;;  %4655 = vmatprep.mubr.msk.f32.mxu0 %vm305_vm0, %v206_v9  ;;  %v219_v9 = vld [vmem:[%s6905_s0 + $0x5a8] sm:$0xff] }
 0x15a   :  { %v2480_v51 = vmax.f32 %v1446_v13, 0.0 }
 0x15b   :  { %v2479_v20 = vmax.f32 %v1441_v16, 0.0  ;;  %v4498_v22 = vpop.f32.mrb[62].mxu0  ;;  %4855 = vmatprep.subr.bf16.mxu1 %v4854_v15 }
 0x15c   :  { %v1456_v24 = vadd.f32 %v4498_v22, %v5854_v46  ;;  %v1450_v56 = vpop.f32.mrb[63].mxu0  ;;  %4656 = vmatmul.mubr.msk.f32.gmra.mrb[168].mxu0 %vm305_vm0, %v207_v17  ;;  %4857 = vmatpush3.bf16.msra.mxu1 %v6125_v2  ;;  %v222_v22 = vld [vmem:[%s6905_s0 + $0x5c0] sm:$0xff] }
 0x15d   :  { %v4858_v61 = vpack.c.bf16 %v2480_v51, %v2479_v20  ;;  %v1451_v25 = vadd.f32 %v5854_v46, %v1450_v56  ;;  %4658 = vmatprep.mubr.msk.f32.mxu0 %vm305_vm0, %v208_v18  ;;  %v221_v18 = vld [vmem:[%s6905_s0 + $0x5b8] sm:$0xff] }
 0x15e   :  { %v2482_v26 = vmax.f32 %v1456_v24, 0.0 }
 0x15f   :  { %v2481_v29 = vmax.f32 %v1451_v25, 0.0  ;;  %v4501_v30 = vpop.f32.mrb[64].mxu0  ;;  %4859 = vmatprep.subr.bf16.mxu1 %v4858_v61 }
 0x160   :  { %v1466_v31 = vadd.f32 %v4501_v30, %v5854_v46  ;;  %v1460_v2 = vpop.f32.mrb[65].mxu0  ;;  %4659 = vmatmul.mubr.msk.f32.gmra.mrb[170].mxu0 %vm305_vm0, %v209_v60  ;;  %4861 = vmatpush3.bf16.msra.mxu1 %v6137_v11  ;;  %v224_v30 = vld [vmem:[%s6905_s0 + $0x5d0] sm:$0xff] }
 0x161   :  { %v4862_v33 = vpack.c.bf16 %v2482_v26, %v2481_v29  ;;  %v1461_v34 = vadd.f32 %v5854_v46, %v1460_v2  ;;  %4661 = vmatprep.mubr.msk.f32.mxu0 %vm305_vm0, %v210_v27  ;;  %v223_v27 = vld [vmem:[%s6905_s0 + $0x5c8] sm:$0xff] }
 0x162   :  { %v2484_v35 = vmax.f32 %v1466_v31, 0.0 }
 0x163   :  { %v2483_v38 = vmax.f32 %v1461_v34, 0.0  ;;  %v4504_v39 = vpop.f32.mrb[66].mxu0  ;;  %4863 = vmatprep.subr.bf16.mxu1 %v4862_v33 }
 0x164   :  { %v1476_v40 = vadd.f32 %v4504_v39, %v5854_v46  ;;  %v1470_v11 = vpop.f32.mrb[67].mxu0  ;;  %4662 = vmatmul.mubr.msk.f32.gmra.mrb[172].mxu0 %vm305_vm0, %v211_v5  ;;  %4865 = vmatpush3.bf16.msra.mxu1 %v6149_v21  ;;  %v214_v21 = vld [vmem:[%s6905_s0 + $0x580] sm:$0xff] }
 0x165   :  { %v6252_v43 = vpack.c.bf16 %v2484_v35, %v2483_v38  ;;  %v1471_v14 = vadd.f32 %v5854_v46, %v1470_v11  ;;  %4664 = vmatprep.mubr.msk.f32.mxu0 %vm305_vm0, %v212_v36  ;;  %v225_v36 = vld [vmem:[%s6905_s0 + $0x5d8] sm:$0xff]  ;;  %v226_v39 = vld [vmem:[%s6905_s0 + $0x5e0] sm:$0xff] }
 0x166   :  { %v2486_v48 = vmax.f32 %v1476_v40, 0.0 }
 0x167   :  { %v2485_v49 = vmax.f32 %v1471_v14, 0.0  ;;  %v4507_v19 = vpop.f32.mrb[68].mxu0  ;;  %2826 = vmatmul.mubr.f32.vlgmr.msra.gmra.mrb[62].mxu1 %v2677_v42 }
 0x168   :  { %v1486_v50 = vadd.f32 %v4507_v19, %v5854_v46  ;;  %v1480_v52 = vpop.f32.mrb[69].mxu0  ;;  %4665 = vmatmul.mubr.msk.f32.gmra.mrb[174].mxu0 %vm305_vm0, %v213_v44  ;;  %2895 = vmatprep.mubr.f32.mxu1 %v2680_v45 }
 0x169   :  { %v6267_v53 = vpack.c.bf16 %v2486_v48, %v2485_v49  ;;  %v1481_v23 = vadd.f32 %v5854_v46, %v1480_v52  ;;  %4667 = vmatprep.mubr.msk.f32.mxu0 %vm305_vm0, %v214_v21  ;;  %v227_v48 = vld [vmem:[%s6905_s0 + $0x5e8] sm:$0xff]  ;;  %v228_v49 = vld [vmem:[%s6905_s0 + $0x5f0] sm:$0xff] }
 0x16a   :  { %v2488_v55 = vmax.f32 %v1486_v50, 0.0 }
 0x16b   :  { %v2487_v58 = vmax.f32 %v1481_v23, 0.0  ;;  %v4510_v28 = vpop.f32.mrb[70].mxu0 }
 0x16c   :  { %v1496_v59 = vadd.f32 %v4510_v28, %v5854_v46  ;;  %v1490_v62 = vpop.f32.mrb[71].mxu0  ;;  %4668 = vmatmul.mubr.msk.f32.gmra.mrb[176].mxu0 %vm305_vm0, %v215_v54  ;;  %v230_v28 = vld [vmem:[%s6905_s0 + $0x600] sm:$0xff] }
 0x16d   :  { %v6279_v63 = vpack.c.bf16 %v2488_v55, %v2487_v58  ;;  %v1491_v32 = vadd.f32 %v5854_v46, %v1490_v62  ;;  %4670 = vmatprep.mubr.msk.f32.mxu0 %vm305_vm0, %v216_v57  ;;  %v229_v57 = vld [vmem:[%s6905_s0 + $0x5f8] sm:$0xff] }
 0x16e   :  { %v2490_v1 = vmax.f32 %v1496_v59, 0.0 }
 0x16f   :  { %v2489_v4 = vmax.f32 %v1491_v32, 0.0  ;;  %v4513_v37 = vpop.f32.mrb[72].mxu0 }
 0x170   :  { %v1506_v6 = vadd.f32 %v4513_v37, %v5854_v46  ;;  %v1500_v7 = vpop.f32.mrb[73].mxu0  ;;  %4671 = vmatmul.mubr.msk.f32.gmra.mrb[178].mxu0 %vm305_vm0, %v217_v0  ;;  %v231_v37 = vld [vmem:[%s6905_s0 + $0x608] sm:$0xff] }
 0x171   :  { %v6291_v8 = vpack.c.bf16 %v2490_v1, %v2489_v4  ;;  %v1501_v41 = vadd.f32 %v5854_v46, %v1500_v7  ;;  %4673 = vmatprep.mubr.msk.f32.mxu0 %vm305_vm0, %v218_v3  ;;  %v6365_v3 = vld [vmem:[%s6907_s3] ss:$0 sm:$0xff] }
 0x172   :  { %v2492_v10 = vmax.f32 %v1506_v6, 0.0  ;;  %v232_v6 = vld [vmem:[%s6905_s0 + $0x610] sm:$0xff] }
 0x173   :  { %v2491_v13 = vmax.f32 %v1501_v41, 0.0  ;;  %v4516_v47 = vpop.f32.mrb[74].mxu0 }
 0x174   :  { %v1516_v15 = vadd.f32 %v4516_v47, %v5854_v46  ;;  %v1510_v16 = vpop.f32.mrb[75].mxu0  ;;  %4674 = vmatmul.mubr.msk.f32.gmra.mrb[180].mxu0 %vm305_vm0, %v219_v9 }
 0x175   :  { %v6303_v17 = vpack.c.bf16 %v2492_v10, %v2491_v13  ;;  %v1511_v51 = vadd.f32 %v5854_v46, %v1510_v16  ;;  %4676 = vmatprep.mubr.msk.f32.mxu0 %vm305_vm0, %v220_v12  ;;  %v233_v13 = vld [vmem:[%s6905_s0 + $0x618] sm:$0xff] }
 0x176   :  { %v2494_v20 = vmax.f32 %v1516_v15, 0.0 }
 0x177   :  { %v2493_v24 = vmax.f32 %v1511_v51, 0.0  ;;  %v4519_v56 = vpop.f32.mrb[76].mxu0 }
 0x178   :  { %v1526_v61 = vadd.f32 %v4519_v56, %v5854_v46  ;;  %v1520_v25 = vpop.f32.mrb[77].mxu0  ;;  %4677 = vmatmul.mubr.msk.f32.gmra.mrb[182].mxu0 %vm305_vm0, %v221_v18 }
 0x179   :  { %v6315_v60 = vpack.c.bf16 %v2494_v20, %v2493_v24  ;;  %v1521_v26 = vadd.f32 %v5854_v46, %v1520_v25  ;;  %4679 = vmatprep.mubr.msk.f32.mxu0 %vm305_vm0, %v222_v22 }
 0x17a   :  { %v2496_v29 = vmax.f32 %v1526_v61, 0.0 }
 0x17b   :  { %v2495_v31 = vmax.f32 %v1521_v26, 0.0  ;;  %v4522_v2 = vpop.f32.mrb[78].mxu0 }
 0x17c   :  { %v1536_v33 = vadd.f32 %v4522_v2, %v5854_v46  ;;  %v1530_v34 = vpop.f32.mrb[79].mxu0  ;;  %4680 = vmatmul.mubr.msk.f32.gmra.mrb[184].mxu0 %vm305_vm0, %v223_v27 }
 0x17d   :  { %v6327_v5 = vpack.c.bf16 %v2496_v29, %v2495_v31  ;;  %v1531_v35 = vadd.f32 %v5854_v46, %v1530_v34  ;;  %4682 = vmatprep.mubr.msk.f32.mxu0 %vm305_vm0, %v224_v30 }
 0x17e   :  { %v2498_v38 = vmax.f32 %v1536_v33, 0.0 }
 0x17f   :  { %v2497_v40 = vmax.f32 %v1531_v35, 0.0  ;;  %v4525_v11 = vpop.f32.mrb[80].mxu0 }
 0x180   :  { %v1546_v42 = vadd.f32 %v4525_v11, %v5854_v46  ;;  %v1540_v14 = vpop.f32.mrb[81].mxu0  ;;  %4683 = vmatmul.mubr.msk.f32.gmra.mrb[186].mxu0 %vm305_vm0, %v225_v36 }
 0x181   :  { %v6339_v44 = vpack.c.bf16 %v2498_v38, %v2497_v40  ;;  %v1541_v45 = vadd.f32 %v5854_v46, %v1540_v14  ;;  %4685 = vmatprep.mubr.msk.f32.mxu0 %vm305_vm0, %v226_v39 }
 0x182   :  { %v2500_v21 = vmax.f32 %v1546_v42, 0.0 }
 0x183   :  { %v2499_v19 = vmax.f32 %v1541_v45, 0.0  ;;  %v4528_v50 = vpop.f32.mrb[82].mxu0 }
 0x184   :  { %v1556_v52 = vadd.f32 %v4528_v50, %v5854_v46  ;;  %v1550_v23 = vpop.f32.mrb[83].mxu0  ;;  %4686 = vmatmul.mubr.msk.f32.gmra.mrb[188].mxu0 %vm305_vm0, %v227_v48  ;;  %v4699_v50 = vpop.f32.mrb[0].mxu1 }
 0x185   :  { %v4866_v54 = vpack.c.bf16 %v2500_v21, %v2499_v19  ;;  %v1551_v55 = vadd.f32 %v5854_v46, %v1550_v23  ;;  %4688 = vmatprep.mubr.msk.f32.mxu0 %vm305_vm0, %v228_v49 }
 0x186   :  { %v2502_v58 = vmax.f32 %v1556_v52, 0.0 }
 0x187   :  { %v2501_v59 = vmax.f32 %v1551_v55, 0.0  ;;  %v4531_v62 = vpop.f32.mrb[84].mxu0  ;;  %4867 = vmatprep.subr.bf16.mxu1 %v4866_v54 }
 0x188   :  { %v1566_v32 = vadd.f32 %v4531_v62, %v5854_v46  ;;  %v1560_v0 = vpop.f32.mrb[85].mxu0  ;;  %4689 = vmatmul.mubr.msk.f32.gmra.mrb[190].mxu0 %vm305_vm0, %v229_v57  ;;  %4869 = vmatpush3.bf16.msra.mxu1 %v6252_v43  ;;  %v2679_v57 = vld [vmem:[%s6906_s1 + $0x20] sm:$0xff]  ;;  %v2682_v62 = vld [vmem:[%s6906_s1 + $0x38] sm:$0xff] }
 0x189   :  { %v4870_v1 = vpack.c.bf16 %v2502_v58, %v2501_v59  ;;  %v1561_v4 = vadd.f32 %v6365_v3, %v1560_v0  ;;  %4691 = vmatprep.mubr.msk.f32.mxu0 %vm305_vm0, %v230_v28 }
 0x18a   :  { %v2504_v46 = vmax.f32 %v1566_v32, 0.0 }
 0x18b   :  { %v2503_v43 = vmax.f32 %v1561_v4, 0.0  ;;  %v4534_v7 = vpop.f32.mrb[86].mxu0  ;;  %4871 = vmatprep.subr.bf16.mxu1 %v4870_v1 }
 0x18c   :  { %v1576_v41 = vadd.f32 %v6365_v3, %v4534_v7  ;;  %v1570_v9 = vpop.f32.mrb[87].mxu0  ;;  %4692 = vmatmul.mubr.msk.f32.gmra.mrb[192].mxu0 %vm305_vm0, %v231_v37  ;;  %4873 = vmatpush3.bf16.msra.mxu1 %v6267_v53 }
 0x18d   :  { %v4874_v10 = vpack.c.bf16 %v2504_v46, %v2503_v43  ;;  %v1571_v12 = vadd.f32 %v6365_v3, %v1570_v9  ;;  %4694 = vmatprep.mubr.msk.f32.mxu0 %vm305_vm0, %v232_v6 }
 0x18e   :  { %v2506_v47 = vmax.f32 %v1576_v41, 0.0 }
 0x18f   :  { %v2505_v15 = vmax.f32 %v1571_v12, 0.0  ;;  %v4537_v16 = vpop.f32.mrb[88].mxu0  ;;  %4875 = vmatprep.subr.bf16.mxu1 %v4874_v10 }
 0x190   :  { %v1586_v51 = vadd.f32 %v6365_v3, %v4537_v16  ;;  %v1580_v18 = vpop.f32.mrb[89].mxu0  ;;  %4695 = vmatmul.mubr.msk.f32.gmra.mrb[194].mxu0 %vm305_vm0, %v233_v13  ;;  %4877 = vmatpush3.bf16.msra.mxu1 %v6279_v63 }
 0x191   :  { %v4878_v53 = vpack.c.bf16 %v2506_v47, %v2505_v15  ;;  %v1581_v20 = vadd.f32 %v6365_v3, %v1580_v18 }
 0x192   :  { %v2508_v22 = vmax.f32 %v1586_v51, 0.0 }
 0x193   :  { %v2507_v24 = vmax.f32 %v1581_v20, 0.0  ;;  %v4540_v56 = vpop.f32.mrb[90].mxu0  ;;  %4879 = vmatprep.subr.bf16.mxu1 %v4878_v53 }
 0x194   :  { %v1596_v61 = vadd.f32 %v6365_v3, %v4540_v56  ;;  %v1590_v25 = vpop.f32.mrb[91].mxu0  ;;  %4881 = vmatpush3.bf16.msra.mxu1 %v6291_v8 }
 0x195   :  { %v4882_v26 = vpack.c.bf16 %v2508_v22, %v2507_v24  ;;  %v1591_v27 = vadd.f32 %v6365_v3, %v1590_v25 }
 0x196   :  { %v2510_v29 = vmax.f32 %v1596_v61, 0.0 }
 0x197   :  { %v2509_v30 = vmax.f32 %v1591_v27, 0.0  ;;  %v4543_v31 = vpop.f32.mrb[92].mxu0  ;;  %4883 = vmatprep.subr.bf16.mxu1 %v4882_v26 }
 0x198   :  { %v1606_v63 = vadd.f32 %v6365_v3, %v4543_v31  ;;  %v1600_v2 = vpop.f32.mrb[93].mxu0  ;;  %4885 = vmatpush3.bf16.msra.mxu1 %v6303_v17 }
 0x199   :  { %v4886_v33 = vpack.c.bf16 %v2510_v29, %v2509_v30  ;;  %v1601_v34 = vadd.f32 %v6365_v3, %v1600_v2 }
 0x19a   :  { %v2512_v35 = vmax.f32 %v1606_v63, 0.0 }
 0x19b   :  { %v2511_v36 = vmax.f32 %v1601_v34, 0.0  ;;  %v4546_v38 = vpop.f32.mrb[94].mxu0  ;;  %4887 = vmatprep.subr.bf16.mxu1 %v4886_v33 }
 0x19c   :  { %v1616_v8 = vadd.f32 %v6365_v3, %v4546_v38  ;;  %v1610_v39 = vpop.f32.mrb[95].mxu0  ;;  %4889 = vmatpush3.bf16.msra.mxu1 %v6315_v60  ;;  %v2120_v60 = vpop.f32.mrb[1].mxu1 }
 0x19d   :  { %v4890_v40 = vpack.c.bf16 %v2512_v35, %v2511_v36  ;;  %v1611_v11 = vadd.f32 %v6365_v3, %v1610_v39  ;;  %v2121_v58 = vadd.f32 %v6365_v3, %v2120_v60 }
 0x19e   :  { %v2514_v42 = vmax.f32 %v1616_v8, 0.0 }
 0x19f   :  { %v2513_v14 = vmax.f32 %v1611_v11, 0.0  ;;  %v4549_v45 = vpop.f32.mrb[96].mxu0  ;;  %4891 = vmatprep.subr.bf16.mxu1 %v4890_v40  ;;  %v2615_v1 = vmax.f32 %v2121_v58, 0.0 }
 0x1a0   :  { %v1626_v17 = vadd.f32 %v6365_v3, %v4549_v45  ;;  %v1620_v48 = vpop.f32.mrb[97].mxu0  ;;  %4893 = vmatpush3.bf16.msra.mxu1 %v6327_v5  ;;  %v2126_v5 = vadd.f32 %v6365_v3, %v4699_v50 }
 0x1a1   :  { %v4894_v21 = vpack.c.bf16 %v2514_v42, %v2513_v14  ;;  %v1621_v49 = vadd.f32 %v6365_v3, %v1620_v48 }
 0x1a2   :  { %v2516_v19 = vmax.f32 %v1626_v17, 0.0  ;;  %v2616_v0 = vmax.f32 %v2126_v5, 0.0 }
 0x1a3   :  { %v2515_v52 = vmax.f32 %v1621_v49, 0.0  ;;  %v4552_v23 = vpop.f32.mrb[98].mxu0  ;;  %4895 = vmatprep.subr.bf16.mxu1 %v4894_v21 }
 0x1a4   :  { %v1636_v54 = vadd.f32 %v6365_v3, %v4552_v23  ;;  %v1630_v55 = vpop.f32.mrb[99].mxu0  ;;  %4897 = vmatpush3.bf16.msra.mxu1 %v6339_v44  ;;  %v4702_v44 = vpop.f32.mrb[2].mxu1  ;;  %v6413_v7 = vpack.c.bf16 %v2616_v0, %v2615_v1 }
 0x1a5   :  { %v6406_v28 = vpack.c.bf16 %v2516_v19, %v2515_v52  ;;  %v1631_v59 = vadd.f32 %v6365_v3, %v1630_v55  ;;  %v2130_v46 = vpop.f32.mrb[3].mxu1  ;;  %v2136_v41 = vadd.f32 %v6365_v3, %v4702_v44 }
 0x1a6   :  { %v2518_v32 = vmax.f32 %v1636_v54, 0.0  ;;  %v2131_v9 = vadd.f32 %v6365_v3, %v2130_v46  ;;  %v4705_v16 = vpop.f32.mrb[4].mxu1 }
 0x1a7   :  { %v2517_v4 = vmax.f32 %v1631_v59, 0.0  ;;  %v4555_v37 = vpop.f32.mrb[100].mxu0  ;;  %2896 = vmatmul.mubr.f32.vlgmr.msra.gmra.mrb[64].mxu1 %v2679_v57  ;;  %v2618_v47 = vmax.f32 %v2136_v41, 0.0  ;;  %v2140_v53 = vpop.f32.mrb[5].mxu1  ;;  %v2146_v56 = vadd.f32 %v6365_v3, %v4705_v16 }
 0x1a8   :  { %v1646_v6 = vadd.f32 %v6365_v3, %v4555_v37  ;;  %v1640_v43 = vpop.f32.mrb[101].mxu0  ;;  %2965 = vmatprep.mubr.f32.mxu1 %v2682_v62  ;;  %v2617_v15 = vmax.f32 %v2131_v9, 0.0  ;;  %v2141_v61 = vadd.f32 %v6365_v3, %v2140_v53  ;;  %v4708_v31 = vpop.f32.mrb[6].mxu1 }
 0x1a9   :  { %v6417_v10 = vpack.c.bf16 %v2518_v32, %v2517_v4  ;;  %v1641_v12 = vadd.f32 %v6365_v3, %v1640_v43  ;;  %v2620_v29 = vmax.f32 %v2146_v56, 0.0  ;;  %v2150_v33 = vpop.f32.mrb[7].mxu1  ;;  %v2156_v38 = vadd.f32 %v6365_v3, %v4708_v31 }
 0x1aa   :  { %v2520_v13 = vmax.f32 %v1646_v6, 0.0  ;;  %v6421_v24 = vpack.c.bf16 %v2618_v47, %v2617_v15  ;;  %v2619_v30 = vmax.f32 %v2141_v61, 0.0  ;;  %v2151_v8 = vadd.f32 %v6365_v3, %v2150_v33  ;;  %v4711_v45 = vpop.f32.mrb[8].mxu1 }
 0x1ab   :  { %v2519_v51 = vmax.f32 %v1641_v12, 0.0  ;;  %v4558_v18 = vpop.f32.mrb[102].mxu0  ;;  %v2622_v42 = vmax.f32 %v2156_v38, 0.0  ;;  %v2160_v21 = vpop.f32.mrb[9].mxu1  ;;  %v2166_v52 = vadd.f32 %v6365_v3, %v4711_v45 }
 0x1ac   :  { %v1656_v20 = vadd.f32 %v6365_v3, %v4558_v18  ;;  %v1650_v22 = vpop.f32.mrb[103].mxu0  ;;  %v6429_v36 = vpack.c.bf16 %v2620_v29, %v2619_v30  ;;  %v2621_v14 = vmax.f32 %v2151_v8, 0.0  ;;  %v2161_v23 = vadd.f32 %v6365_v3, %v2160_v21  ;;  %v4714_v58 = vpop.f32.mrb[10].mxu1 }
 0x1ad   :  { %v6425_v25 = vpack.c.bf16 %v2520_v13, %v2519_v51  ;;  %v1651_v26 = vadd.f32 %v6365_v3, %v1650_v22  ;;  %v2624_v57 = vmax.f32 %v2166_v52, 0.0  ;;  %v2170_v32 = vpop.f32.mrb[11].mxu1  ;;  %v2176_v4 = vadd.f32 %v6365_v3, %v4714_v58 }
 0x1ae   :  { %v2522_v27 = vmax.f32 %v1656_v20, 0.0  ;;  %v6437_v50 = vpack.c.bf16 %v2622_v42, %v2621_v14  ;;  %v2623_v5 = vmax.f32 %v2161_v23, 0.0  ;;  %v2171_v37 = vadd.f32 %v6365_v3, %v2170_v32  ;;  %v4717_v12 = vpop.f32.mrb[12].mxu1 }
 0x1af   :  { %v2521_v63 = vmax.f32 %v1651_v26, 0.0  ;;  %v4561_v2 = vpop.f32.mrb[104].mxu0  ;;  %v2626_v41 = vmax.f32 %v2176_v4, 0.0  ;;  %v2180_v15 = vpop.f32.mrb[13].mxu1  ;;  %v2186_v53 = vadd.f32 %v6365_v3, %v4717_v12 }
 0x1b0   :  { %v1666_v34 = vadd.f32 %v6365_v3, %v4561_v2  ;;  %v1660_v35 = vpop.f32.mrb[105].mxu0  ;;  %v6445_v44 = vpack.c.bf16 %v2624_v57, %v2623_v5  ;;  %v2625_v9 = vmax.f32 %v2171_v37, 0.0  ;;  %v2181_v20 = vadd.f32 %v6365_v3, %v2180_v15  ;;  %v4720_v29 = vpop.f32.mrb[14].mxu1 }
 0x1b1   :  { %v6433_v39 = vpack.c.bf16 %v2522_v27, %v2521_v63  ;;  %v1661_v40 = vadd.f32 %v6365_v3, %v1660_v35  ;;  %v2628_v26 = vmax.f32 %v2186_v53, 0.0  ;;  %v2190_v63 = vpop.f32.mrb[15].mxu1  ;;  %v2196_v35 = vadd.f32 %v6365_v3, %v4720_v29 }
 0x1b2   :  { %v2524_v11 = vmax.f32 %v1666_v34, 0.0  ;;  %v6453_v18 = vpack.c.bf16 %v2626_v41, %v2625_v9  ;;  %v2627_v27 = vmax.f32 %v2181_v20, 0.0  ;;  %v2191_v38 = vadd.f32 %v6365_v3, %v2190_v63  ;;  %v4723_v45 = vpop.f32.mrb[16].mxu1 }
 0x1b3   :  { %v2523_v17 = vmax.f32 %v1661_v40, 0.0  ;;  %v4564_v48 = vpop.f32.mrb[106].mxu0  ;;  %v2630_v42 = vmax.f32 %v2196_v35, 0.0  ;;  %v2200_v21 = vpop.f32.mrb[17].mxu1  ;;  %v2206_v23 = vadd.f32 %v6365_v3, %v4723_v45 }
 0x1b4   :  { %v1676_v49 = vadd.f32 %v6365_v3, %v4564_v48  ;;  %v1670_v19 = vpop.f32.mrb[107].mxu0  ;;  %v6461_v34 = vpack.c.bf16 %v2628_v26, %v2627_v27  ;;  %v2629_v14 = vmax.f32 %v2191_v38, 0.0 }
 0x1b5   :  { %v6441_v60 = vpack.c.bf16 %v2524_v11, %v2523_v17  ;;  %v1671_v54 = vadd.f32 %v6365_v3, %v1670_v19  ;;  %v2632_v58 = vmax.f32 %v2206_v23, 0.0 }
 0x1b6   :  { %v2526_v55 = vmax.f32 %v1676_v49, 0.0  ;;  %v6469_v52 = vpack.c.bf16 %v2630_v42, %v2629_v14 }
 0x1b7   :  { %v2525_v59 = vmax.f32 %v1671_v54, 0.0  ;;  %v4567_v62 = vpop.f32.mrb[108].mxu0  ;;  %v2201_v54 = vadd.f32 %v6365_v3, %v2200_v21 }
 0x1b8   :  { %v1686_v0 = vadd.f32 %v6365_v3, %v4567_v62  ;;  %v1680_v1 = vpop.f32.mrb[109].mxu0  ;;  %v4726_v62 = vpop.f32.mrb[18].mxu1 }
 0x1b9   :  { %v6449_v46 = vpack.c.bf16 %v2526_v55, %v2525_v59  ;;  %v1681_v6 = vadd.f32 %v6365_v3, %v1680_v1  ;;  %v2631_v59 = vmax.f32 %v2201_v54, 0.0  ;;  %v2210_v1 = vpop.f32.mrb[19].mxu1 }
 0x1ba   :  { %v2528_v43 = vmax.f32 %v1686_v0, 0.0  ;;  %v2211_v41 = vadd.f32 %v6365_v3, %v2210_v1 }
 0x1bb   :  { %v2527_v13 = vmax.f32 %v1681_v6, 0.0  ;;  %v4570_v47 = vpop.f32.mrb[110].mxu0  ;;  %v6476_v6 = vpack.c.bf16 %v2632_v58, %v2631_v59 }
 0x1bc   :  { %v1696_v16 = vadd.f32 %v6365_v3, %v4570_v47  ;;  %v1690_v51 = vpop.f32.mrb[111].mxu0  ;;  %v2633_v15 = vmax.f32 %v2211_v41, 0.0 }
 0x1bd   :  { %v6457_v22 = vpack.c.bf16 %v2528_v43, %v2527_v13  ;;  %v1691_v56 = vadd.f32 %v6365_v3, %v1690_v51  ;;  %v2216_v43 = vadd.f32 %v6365_v3, %v4726_v62 }
 0x1be   :  { %v2530_v61 = vmax.f32 %v1696_v16, 0.0  ;;  %v4729_v16 = vpop.f32.mrb[20].mxu1 }
 0x1bf   :  { %v2529_v30 = vmax.f32 %v1691_v56, 0.0  ;;  %v4573_v31 = vpop.f32.mrb[112].mxu0  ;;  %v2634_v47 = vmax.f32 %v2216_v43, 0.0  ;;  %v2220_v20 = vpop.f32.mrb[21].mxu1  ;;  %v2226_v26 = vadd.f32 %v6365_v3, %v4729_v16 }
 0x1c0   :  { %v1706_v2 = vadd.f32 %v6365_v3, %v4573_v31  ;;  %v1700_v33 = vpop.f32.mrb[113].mxu0  ;;  %v2221_v27 = vadd.f32 %v6365_v3, %v2220_v20 }
 0x1c1   :  { %v6465_v8 = vpack.c.bf16 %v2530_v61, %v2529_v30  ;;  %v1701_v40 = vadd.f32 %v6365_v3, %v1700_v33  ;;  %v6483_v61 = vpack.c.bf16 %v2634_v47, %v2633_v15  ;;  %v2636_v63 = vmax.f32 %v2226_v26, 0.0  ;;  %v4732_v33 = vpop.f32.mrb[22].mxu1 }
 0x1c2   :  { %v2532_v11 = vmax.f32 %v1706_v2, 0.0  ;;  %v2635_v2 = vmax.f32 %v2221_v27, 0.0  ;;  %v2236_v14 = vadd.f32 %v6365_v3, %v4732_v33 }
 0x1c3   :  { %v2531_v17 = vmax.f32 %v1701_v40, 0.0  ;;  %v4576_v48 = vpop.f32.mrb[114].mxu0  ;;  %v2230_v40 = vpop.f32.mrb[23].mxu1 }
 0x1c4   :  { %v1716_v49 = vadd.f32 %v6365_v3, %v4576_v48  ;;  %v1710_v19 = vpop.f32.mrb[115].mxu0  ;;  %v6490_v42 = vpack.c.bf16 %v2636_v63, %v2635_v2  ;;  %v2231_v45 = vadd.f32 %v6365_v3, %v2230_v40  ;;  %v4735_v23 = vpop.f32.mrb[24].mxu1 }
 0x1c5   :  { %v4898_v55 = vpack.c.bf16 %v2532_v11, %v2531_v17  ;;  %v1711_v57 = vadd.f32 %v6365_v3, %v1710_v19  ;;  %v2246_v59 = vadd.f32 %v6365_v3, %v4735_v23 }
 0x1c6   :  { %v2534_v5 = vmax.f32 %v1716_v49, 0.0  ;;  %v2638_v49 = vmax.f32 %v2236_v14, 0.0  ;;  %v2637_v19 = vmax.f32 %v2231_v45, 0.0 }
 0x1c7   :  { %v2533_v32 = vmax.f32 %v1711_v57, 0.0  ;;  %v4579_v0 = vpop.f32.mrb[116].mxu0  ;;  %4899 = vmatprep.subr.bf16.mxu1 %v4898_v55  ;;  %v2240_v57 = vpop.f32.mrb[25].mxu1 }
 0x1c8   :  { %v1726_v4 = vadd.f32 %v6365_v3, %v4579_v0  ;;  %v1720_v37 = vpop.f32.mrb[117].mxu0  ;;  %4901 = vmatpush3.bf16.msra.mxu1 %v6406_v28  ;;  %v6497_v58 = vpack.c.bf16 %v2638_v49, %v2637_v19  ;;  %v2241_v62 = vadd.f32 %v6365_v3, %v2240_v57  ;;  %v4738_v43 = vpop.f32.mrb[26].mxu1 }
 0x1c9   :  { %v4902_v9 = vpack.c.bf16 %v2534_v5, %v2533_v32  ;;  %v1721_v12 = vadd.f32 %v6365_v3, %v1720_v37  ;;  %v2256_v15 = vadd.f32 %v6365_v3, %v4738_v43 }
 0x1ca   :  { %v2536_v13 = vmax.f32 %v1726_v4, 0.0  ;;  %v2640_v4 = vmax.f32 %v2246_v59, 0.0  ;;  %v2639_v37 = vmax.f32 %v2241_v62, 0.0 }
 0x1cb   :  { %v2535_v51 = vmax.f32 %v1721_v12, 0.0  ;;  %v4582_v53 = vpop.f32.mrb[118].mxu0  ;;  %4903 = vmatprep.subr.bf16.mxu1 %v4902_v9  ;;  %v2250_v12 = vpop.f32.mrb[27].mxu1 }
 0x1cc   :  { %v1736_v56 = vadd.f32 %v6365_v3, %v4582_v53  ;;  %v1730_v28 = vpop.f32.mrb[119].mxu0  ;;  %4905 = vmatpush3.bf16.msra.mxu1 %v6417_v10  ;;  %v6504_v47 = vpack.c.bf16 %v2640_v4, %v2639_v37  ;;  %v2251_v16 = vadd.f32 %v6365_v3, %v2250_v12  ;;  %v4741_v26 = vpop.f32.mrb[28].mxu1  ;;  %v2681_v4 = vld [vmem:[%s6906_s1 + $0x30] sm:$0xff] }
 0x1cd   :  { %v4906_v29 = vpack.c.bf16 %v2536_v13, %v2535_v51  ;;  %v1731_v30 = vadd.f32 %v6365_v3, %v1730_v28  ;;  %v2266_v2 = vadd.f32 %v6365_v3, %v4741_v26 }
 0x1ce   :  { %v2538_v31 = vmax.f32 %v1736_v56, 0.0  ;;  %v2642_v56 = vmax.f32 %v2256_v15, 0.0  ;;  %v2641_v28 = vmax.f32 %v2251_v16, 0.0 }
 0x1cf   :  { %v2537_v35 = vmax.f32 %v1731_v30, 0.0  ;;  %v4585_v38 = vpop.f32.mrb[120].mxu0  ;;  %4907 = vmatprep.subr.bf16.mxu1 %v4906_v29  ;;  %v2260_v30 = vpop.f32.mrb[29].mxu1 }
 0x1d0   :  { %v1746_v11 = vadd.f32 %v6365_v3, %v4585_v38  ;;  %v1740_v10 = vpop.f32.mrb[121].mxu0  ;;  %4909 = vmatpush3.bf16.msra.mxu1 %v6425_v25  ;;  %v6511_v63 = vpack.c.bf16 %v2642_v56, %v2641_v28  ;;  %v2261_v33 = vadd.f32 %v6365_v3, %v2260_v30  ;;  %v4744_v14 = vpop.f32.mrb[30].mxu1 }
 0x1d1   :  { %v4910_v17 = vpack.c.bf16 %v2538_v31, %v2537_v35  ;;  %v1741_v48 = vadd.f32 %v6365_v3, %v1740_v10  ;;  %v2276_v19 = vadd.f32 %v6365_v3, %v4744_v14 }
 0x1d2   :  { %v2540_v21 = vmax.f32 %v1746_v11, 0.0  ;;  %v2644_v11 = vmax.f32 %v2266_v2, 0.0  ;;  %v2643_v10 = vmax.f32 %v2261_v33, 0.0 }
 0x1d3   :  { %v2539_v54 = vmax.f32 %v1741_v48, 0.0  ;;  %v4588_v55 = vpop.f32.mrb[122].mxu0  ;;  %4911 = vmatprep.subr.bf16.mxu1 %v4910_v17  ;;  %v2270_v48 = vpop.f32.mrb[31].mxu1 }
 0x1d4   :  { %v1756_v5 = vadd.f32 %v6365_v3, %v4588_v55  ;;  %v1750_v25 = vpop.f32.mrb[123].mxu0  ;;  %4913 = vmatpush3.bf16.msra.mxu1 %v6433_v39  ;;  %v6518_v49 = vpack.c.bf16 %v2644_v11, %v2643_v10  ;;  %v2271_v23 = vadd.f32 %v6365_v3, %v2270_v48  ;;  %v4747_v59 = vpop.f32.mrb[32].mxu1 }
 0x1d5   :  { %v4914_v32 = vpack.c.bf16 %v2540_v21, %v2539_v54  ;;  %v1751_v0 = vadd.f32 %v6365_v3, %v1750_v25  ;;  %v2286_v43 = vadd.f32 %v6365_v3, %v4747_v59 }
 0x1d6   :  { %v2542_v1 = vmax.f32 %v1756_v5, 0.0  ;;  %v2646_v5 = vmax.f32 %v2276_v19, 0.0  ;;  %v2645_v25 = vmax.f32 %v2271_v23, 0.0 }
 0x1d7   :  { %v2541_v41 = vmax.f32 %v1751_v0, 0.0  ;;  %v4591_v9 = vpop.f32.mrb[124].mxu0  ;;  %4915 = vmatprep.subr.bf16.mxu1 %v4914_v32  ;;  %v2280_v0 = vpop.f32.mrb[33].mxu1 }
 0x1d8   :  { %v1766_v13 = vadd.f32 %v6365_v3, %v4591_v9  ;;  %v1760_v39 = vpop.f32.mrb[125].mxu0  ;;  %4917 = vmatpush3.bf16.msra.mxu1 %v6441_v60  ;;  %v6528_v37 = vpack.c.bf16 %v2646_v5, %v2645_v25  ;;  %v4750_v16 = vpop.f32.mrb[34].mxu1 }
 0x1d9   :  { %v4918_v51 = vpack.c.bf16 %v2542_v1, %v2541_v41  ;;  %v1761_v53 = vadd.f32 %v6365_v3, %v1760_v39  ;;  %v2281_v41 = vadd.f32 %v6365_v3, %v2280_v0 }
 0x1da   :  { %v2544_v20 = vmax.f32 %v1766_v13, 0.0  ;;  %v2684_v13 = vld [vmem:[%s6906_s1 + $0x48] sm:$0xff] }
 0x1db   :  { %v2543_v27 = vmax.f32 %v1761_v53, 0.0  ;;  %v4594_v29 = vpop.f32.mrb[126].mxu0  ;;  %4919 = vmatprep.subr.bf16.mxu1 %v4918_v51  ;;  %v2647_v15 = vmax.f32 %v2281_v41, 0.0 }
 0x1dc   :  { %v1776_v31 = vadd.f32 %v6365_v3, %v4594_v29  ;;  %v1770_v60 = vpop.f32.mrb[127].mxu0  ;;  %4921 = vmatpush3.bf16.msra.mxu1 %v6449_v46 }
 0x1dd   :  { %v4922_v35 = vpack.c.bf16 %v2544_v20, %v2543_v27  ;;  %v1771_v38 = vadd.f32 %v6365_v3, %v1770_v60  ;;  %v2290_v20 = vpop.f32.mrb[35].mxu1  ;;  %v2296_v27 = vadd.f32 %v6365_v3, %v4750_v16 }
 0x1de   :  { %v2546_v40 = vmax.f32 %v1776_v31, 0.0  ;;  %v2291_v29 = vadd.f32 %v6365_v3, %v2290_v20  ;;  %v4753_v60 = vpop.f32.mrb[36].mxu1 }
 0x1df   :  { %v2545_v45 = vmax.f32 %v1771_v38, 0.0  ;;  %v4597_v17 = vpop.f32.mrb[128].mxu0  ;;  %4923 = vmatprep.subr.bf16.mxu1 %v4922_v35  ;;  %v2650_v33 = vmax.f32 %v2296_v27, 0.0  ;;  %v2306_v38 = vadd.f32 %v6365_v3, %v4753_v60 }
 0x1e0   :  { %v1786_v21 = vadd.f32 %v6365_v3, %v4597_v17  ;;  %v1780_v46 = vpop.f32.mrb[129].mxu0  ;;  %4925 = vmatpush3.bf16.msra.mxu1 %v6457_v22  ;;  %v2649_v35 = vmax.f32 %v2291_v29, 0.0 }
 0x1e1   :  { %v4926_v54 = vpack.c.bf16 %v2546_v40, %v2545_v45  ;;  %v1781_v55 = vadd.f32 %v6365_v3, %v1780_v46  ;;  %v2300_v40 = vpop.f32.mrb[37].mxu1 }
 0x1e2   :  { %v2548_v57 = vmax.f32 %v1786_v21, 0.0  ;;  %v2301_v14 = vadd.f32 %v6365_v3, %v2300_v40  ;;  %v6549_v48 = vpack.c.bf16 %v2650_v33, %v2649_v35  ;;  %v2652_v21 = vmax.f32 %v2306_v38, 0.0 }
 0x1e3   :  { %v2547_v62 = vmax.f32 %v1781_v55, 0.0  ;;  %v4600_v32 = vpop.f32.mrb[130].mxu0  ;;  %4927 = vmatprep.subr.bf16.mxu1 %v4926_v54  ;;  %v4756_v54 = vpop.f32.mrb[38].mxu1 }
 0x1e4   :  { %v1796_v1 = vadd.f32 %v6365_v3, %v4600_v32  ;;  %v1790_v22 = vpop.f32.mrb[131].mxu0  ;;  %4929 = vmatpush3.bf16.msra.mxu1 %v6465_v8  ;;  %v2648_v8 = vmax.f32 %v2286_v43, 0.0  ;;  %v2651_v23 = vmax.f32 %v2301_v14, 0.0  ;;  %v2310_v5 = vpop.f32.mrb[39].mxu1 }
 0x1e5   :  { %v6532_v9 = vpack.c.bf16 %v2548_v57, %v2547_v62  ;;  %v1791_v12 = vadd.f32 %v6365_v3, %v1790_v22  ;;  %v2316_v57 = vadd.f32 %v6365_v3, %v4756_v54  ;;  %v2311_v32 = vadd.f32 %v6365_v3, %v2310_v5 }
 0x1e6   :  { %v2550_v39 = vmax.f32 %v1796_v1, 0.0  ;;  %v6539_v26 = vpack.c.bf16 %v2648_v8, %v2647_v15  ;;  %v6555_v62 = vpack.c.bf16 %v2652_v21, %v2651_v23 }
 0x1e7   :  { %v2549_v51 = vmax.f32 %v1791_v12, 0.0  ;;  %v4603_v53 = vpop.f32.mrb[132].mxu0  ;;  %2966 = vmatmul.mubr.f32.vlgmr.msra.gmra.mrb[66].mxu1 %v2681_v4  ;;  %v2654_v22 = vmax.f32 %v2316_v57, 0.0  ;;  %v2653_v41 = vmax.f32 %v2311_v32, 0.0  ;;  %v4759_v12 = vpop.f32.mrb[40].mxu1 }
 0x1e8   :  { %v1806_v56 = vadd.f32 %v6365_v3, %v4603_v53  ;;  %v1800_v28 = vpop.f32.mrb[133].mxu0  ;;  %3035 = vmatprep.mubr.f32.mxu1 %v2684_v13  ;;  %v2320_v8 = vpop.f32.mrb[41].mxu1 }
 0x1e9   :  { %v6543_v30 = vpack.c.bf16 %v2550_v39, %v2549_v51  ;;  %v1801_v31 = vadd.f32 %v6365_v3, %v1800_v28  ;;  %v2326_v39 = vadd.f32 %v6365_v3, %v4759_v12  ;;  %v6563_v51 = vpack.c.bf16 %v2654_v22, %v2653_v41  ;;  %v4762_v60 = vpop.f32.mrb[42].mxu1 }
 0x1ea   :  { %v2552_v2 = vmax.f32 %v1806_v56, 0.0  ;;  %v2321_v53 = vadd.f32 %v6365_v3, %v2320_v8  ;;  %v2336_v33 = vadd.f32 %v6365_v3, %v4762_v60  ;;  %v2330_v35 = vpop.f32.mrb[43].mxu1 }
 0x1eb   :  { %v2551_v11 = vmax.f32 %v1801_v31, 0.0  ;;  %v4606_v10 = vpop.f32.mrb[134].mxu0  ;;  %v2656_v28 = vmax.f32 %v2326_v39, 0.0  ;;  %v4765_v54 = vpop.f32.mrb[44].mxu1 }
 0x1ec   :  { %v1816_v45 = vadd.f32 %v6365_v3, %v4606_v10  ;;  %v1810_v17 = vpop.f32.mrb[135].mxu0  ;;  %v2655_v31 = vmax.f32 %v2321_v53, 0.0  ;;  %v2331_v10 = vadd.f32 %v6365_v3, %v2330_v35  ;;  %v2346_v57 = vadd.f32 %v6365_v3, %v4765_v54  ;;  %v2340_v5 = vpop.f32.mrb[45].mxu1 }
 0x1ed   :  { %v6551_v46 = vpack.c.bf16 %v2552_v2, %v2551_v11  ;;  %v1811_v19 = vadd.f32 %v6365_v3, %v1810_v17  ;;  %v2658_v17 = vmax.f32 %v2336_v33, 0.0  ;;  %v4768_v39 = vpop.f32.mrb[46].mxu1 }
 0x1ee   :  { %v2554_v55 = vmax.f32 %v1816_v45, 0.0  ;;  %v6571_v11 = vpack.c.bf16 %v2656_v28, %v2655_v31  ;;  %v2657_v23 = vmax.f32 %v2331_v10, 0.0 }
 0x1ef   :  { %v2553_v25 = vmax.f32 %v1811_v19, 0.0  ;;  %v4609_v59 = vpop.f32.mrb[136].mxu0 }
 0x1f0   :  { %v1826_v0 = vadd.f32 %v6365_v3, %v4609_v59  ;;  %v1820_v1 = vpop.f32.mrb[137].mxu0  ;;  %v6579_v32 = vpack.c.bf16 %v2658_v17, %v2657_v23 }
 0x1f1   :  { %v6559_v4 = vpack.c.bf16 %v2554_v55, %v2553_v25  ;;  %v1821_v43 = vadd.f32 %v6365_v3, %v1820_v1 }
 0x1f2   :  { %v2556_v13 = vmax.f32 %v1826_v0, 0.0  ;;  %v2341_v0 = vadd.f32 %v6365_v3, %v2340_v5 }
 0x1f3   :  { %v2555_v15 = vmax.f32 %v1821_v43, 0.0  ;;  %v4612_v16 = vpop.f32.mrb[138].mxu0  ;;  %v2660_v43 = vmax.f32 %v2346_v57, 0.0 }
 0x1f4   :  { %v1836_v20 = vadd.f32 %v6365_v3, %v4612_v16  ;;  %v1830_v56 = vpop.f32.mrb[139].mxu0  ;;  %v2350_v16 = vpop.f32.mrb[47].mxu1 }
 0x1f5   :  { %v6567_v27 = vpack.c.bf16 %v2556_v13, %v2555_v15  ;;  %v1831_v29 = vadd.f32 %v6365_v3, %v1830_v56  ;;  %v2659_v13 = vmax.f32 %v2341_v0, 0.0  ;;  %v2356_v15 = vadd.f32 %v6365_v3, %v4768_v39 }
 0x1f6   :  { %v2558_v2 = vmax.f32 %v1836_v20, 0.0  ;;  %v2351_v28 = vadd.f32 %v6365_v3, %v2350_v16 }
 0x1f7   :  { %v2557_v38 = vmax.f32 %v1831_v29, 0.0  ;;  %v4615_v40 = vpop.f32.mrb[140].mxu0  ;;  %v6587_v56 = vpack.c.bf16 %v2660_v43, %v2659_v13  ;;  %v2662_v60 = vmax.f32 %v2356_v15, 0.0 }
 0x1f8   :  { %v1846_v14 = vadd.f32 %v6365_v3, %v4615_v40  ;;  %v1840_v45 = vpop.f32.mrb[141].mxu0  ;;  %v2661_v35 = vmax.f32 %v2351_v28, 0.0 }
 0x1f9   :  { %v6575_v21 = vpack.c.bf16 %v2558_v2, %v2557_v38  ;;  %v1841_v19 = vadd.f32 %v6365_v3, %v1840_v45  ;;  %v4771_v38 = vpop.f32.mrb[48].mxu1 }
 0x1fa   :  { %v2560_v55 = vmax.f32 %v1846_v14, 0.0  ;;  %v2366_v10 = vadd.f32 %v6365_v3, %v4771_v38  ;;  %v2360_v14 = vpop.f32.mrb[49].mxu1 }
 0x1fb   :  { %v2559_v25 = vmax.f32 %v1841_v19, 0.0  ;;  %v4618_v59 = vpop.f32.mrb[142].mxu0  ;;  %v6595_v19 = vpack.c.bf16 %v2662_v60, %v2661_v35  ;;  %v2361_v23 = vadd.f32 %v6365_v3, %v2360_v14  ;;  %v4774_v0 = vpop.f32.mrb[50].mxu1 }
 0x1fc   :  { %v1856_v1 = vadd.f32 %v6365_v3, %v4618_v59  ;;  %v1850_v22 = vpop.f32.mrb[143].mxu0  ;;  %v2664_v57 = vmax.f32 %v2366_v10, 0.0  ;;  %v2370_v43 = vpop.f32.mrb[51].mxu1 }
 0x1fd   :  { %v6583_v41 = vpack.c.bf16 %v2560_v55, %v2559_v25  ;;  %v1851_v12 = vadd.f32 %v6365_v3, %v1850_v22  ;;  %v2663_v59 = vmax.f32 %v2361_v23, 0.0  ;;  %v2376_v22 = vadd.f32 %v6365_v3, %v4774_v0 }
 0x1fe   :  { %v2562_v8 = vmax.f32 %v1856_v1, 0.0 }
 0x1ff   :  { %v2561_v53 = vmax.f32 %v1851_v12, 0.0  ;;  %v4621_v20 = vpop.f32.mrb[144].mxu0  ;;  %v6601_v39 = vpack.c.bf16 %v2664_v57, %v2663_v59 }
 0x200   :  { %v1866_v29 = vadd.f32 %v6365_v3, %v4621_v20  ;;  %v1860_v31 = vpop.f32.mrb[145].mxu0 }
 0x201   :  { %v6591_v2 = vpack.c.bf16 %v2562_v8, %v2561_v53  ;;  %v1861_v33 = vadd.f32 %v6365_v3, %v1860_v31  ;;  %v2371_v8 = vadd.f32 %v6365_v3, %v2370_v43  ;;  %v2666_v53 = vmax.f32 %v2376_v22, 0.0  ;;  %v4777_v31 = vpop.f32.mrb[52].mxu1 }
 0x202   :  { %v2564_v40 = vmax.f32 %v1866_v29, 0.0  ;;  %v2380_v35 = vpop.f32.mrb[53].mxu1 }
 0x203   :  { %v2563_v45 = vmax.f32 %v1861_v33, 0.0  ;;  %v4624_v17 = vpop.f32.mrb[146].mxu0  ;;  %v2665_v29 = vmax.f32 %v2371_v8, 0.0  ;;  %v2386_v33 = vadd.f32 %v6365_v3, %v4777_v31  ;;  %v2381_v14 = vadd.f32 %v6365_v3, %v2380_v35  ;;  %v4780_v57 = vpop.f32.mrb[54].mxu1 }
 0x204   :  { %v1876_v54 = vadd.f32 %v6365_v3, %v4624_v17  ;;  %v1870_v55 = vpop.f32.mrb[147].mxu0  ;;  %v2390_v59 = vpop.f32.mrb[55].mxu1 }
 0x205   :  { %v4930_v5 = vpack.c.bf16 %v2564_v40, %v2563_v45  ;;  %v1871_v25 = vadd.f32 %v6365_v3, %v1870_v55  ;;  %v6608_v10 = vpack.c.bf16 %v2666_v53, %v2665_v29  ;;  %v2668_v17 = vmax.f32 %v2386_v33, 0.0  ;;  %v4783_v53 = vpop.f32.mrb[56].mxu1 }
 0x206   :  { %v2566_v1 = vmax.f32 %v1876_v54, 0.0  ;;  %v2667_v55 = vmax.f32 %v2381_v14, 0.0  ;;  %v2391_v43 = vadd.f32 %v6365_v3, %v2390_v59  ;;  %v2400_v29 = vpop.f32.mrb[57].mxu1 }
 0x207   :  { %v2565_v12 = vmax.f32 %v1871_v25, 0.0  ;;  %v4627_v13 = vpop.f32.mrb[148].mxu0  ;;  %4931 = vmatprep.subr.bf16.mxu1 %v4930_v5  ;;  %v2396_v25 = vadd.f32 %v6365_v3, %v4780_v57  ;;  %v2401_v35 = vadd.f32 %v6365_v3, %v2400_v29 }
 0x208   :  { %v1886_v15 = vadd.f32 %v6365_v3, %v4627_v13  ;;  %v1880_v16 = vpop.f32.mrb[149].mxu0  ;;  %4933 = vmatpush3.bf16.msra.mxu1 %v6532_v9  ;;  %v6615_v22 = vpack.c.bf16 %v2668_v17, %v2667_v55  ;;  %v4786_v17 = vpop.f32.mrb[58].mxu1 }
 0x209   :  { %v4934_v20 = vpack.c.bf16 %v2566_v1, %v2565_v12  ;;  %v1881_v28 = vadd.f32 %v6365_v3, %v1880_v16  ;;  %v2670_v13 = vmax.f32 %v2396_v25, 0.0  ;;  %v2669_v16 = vmax.f32 %v2391_v43, 0.0  ;;  %v2410_v55 = vpop.f32.mrb[59].mxu1 }
 0x20a   :  { %v2568_v60 = vmax.f32 %v1886_v15, 0.0  ;;  %v2411_v59 = vadd.f32 %v6365_v3, %v2410_v55 }
 0x20b   :  { %v2567_v38 = vmax.f32 %v1881_v28, 0.0  ;;  %v4630_v40 = vpop.f32.mrb[150].mxu0  ;;  %4935 = vmatprep.subr.bf16.mxu1 %v4934_v20  ;;  %v2406_v28 = vadd.f32 %v6365_v3, %v4783_v53  ;;  %v6622_v33 = vpack.c.bf16 %v2670_v13, %v2669_v16  ;;  %v6637_v13 = vld [vmem:[%s6907_s3] ss:$0 sm:$0xff] }
 0x20c   :  { %v1896_v45 = vadd.f32 %v6365_v3, %v4630_v40  ;;  %v1890_v9 = vpop.f32.mrb[151].mxu0  ;;  %4937 = vmatpush3.bf16.msra.mxu1 %v6543_v30 }
 0x20d   :  { %v4938_v23 = vpack.c.bf16 %v2568_v60, %v2567_v38  ;;  %v1891_v54 = vadd.f32 %v6365_v3, %v1890_v9  ;;  %v2672_v40 = vmax.f32 %v2406_v28, 0.0  ;;  %v2671_v9 = vmax.f32 %v2401_v35, 0.0 }
 0x20e   :  { %v2570_v5 = vmax.f32 %v1896_v45, 0.0 }
 0x20f   :  { %v2569_v0 = vmax.f32 %v1891_v54, 0.0  ;;  %v4633_v1 = vpop.f32.mrb[152].mxu0  ;;  %4939 = vmatprep.subr.bf16.mxu1 %v4938_v23  ;;  %v2416_v54 = vadd.f32 %v6365_v3, %v4786_v17  ;;  %v6629_v25 = vpack.c.bf16 %v2672_v40, %v2671_v9 }
 0x210   :  { %v1906_v12 = vadd.f32 %v6365_v3, %v4633_v1  ;;  %v1900_v30 = vpop.f32.mrb[153].mxu0  ;;  %4941 = vmatpush3.bf16.msra.mxu1 %v6551_v46 }
 0x211   :  { %v4942_v8 = vpack.c.bf16 %v2570_v5, %v2569_v0  ;;  %v1901_v15 = vadd.f32 %v6365_v3, %v1900_v30  ;;  %v4109_v0 = vpop.f32.mrb[60].mxu1  ;;  %v2674_v43 = vmax.f32 %v2416_v54, 0.0 }
 0x212   :  { %v2572_v20 = vmax.f32 %v1906_v12, 0.0  ;;  %v4110_v12 = vpop.f32.mrb[61].mxu1 }
 0x213   :  { %v2571_v31 = vmax.f32 %v1901_v15, 0.0  ;;  %v4636_v60 = vpop.f32.mrb[154].mxu0  ;;  %4943 = vmatprep.subr.bf16.mxu1 %v4942_v8  ;;  %v2673_v15 = vmax.f32 %v2411_v59, 0.0  ;;  %v6640_v16 = vadd.f32 %v4110_v12, %v4109_v0  ;;  %v2686_v59 = vld [vmem:[%s6906_s1 + $0x58] sm:$0xff] }
 0x214   :  { %v1916_v38 = vadd.f32 %v6365_v3, %v4636_v60  ;;  %v1910_v46 = vpop.f32.mrb[155].mxu0  ;;  %4945 = vmatpush3.bf16.msra.mxu1 %v6559_v4 }
 0x215   :  { %v4946_v14 = vpack.c.bf16 %v2572_v20, %v2571_v31  ;;  %v1911_v45 = vadd.f32 %v6365_v3, %v1910_v46 }
 0x216   :  { %v2574_v23 = vmax.f32 %v1916_v38, 0.0 }
 0x217   :  { %v2573_v57 = vmax.f32 %v1911_v45, 0.0  ;;  %v4639_v5 = vpop.f32.mrb[156].mxu0  ;;  %4947 = vmatprep.subr.bf16.mxu1 %v4946_v14 }
 0x218   :  { %v1926_v4 = vadd.f32 %v6365_v3, %v4639_v5  ;;  %v1920_v1 = vpop.f32.mrb[157].mxu0  ;;  %4949 = vmatpush3.bf16.msra.mxu1 %v6567_v27  ;;  %v6642_v3 = vpack.c.bf16 %v2674_v43, %v2673_v15 }
 0x219   :  { %v4950_v30 = vpack.c.bf16 %v2574_v23, %v2573_v57  ;;  %v1921_v8 = vadd.f32 %v6637_v13, %v1920_v1  ;;  %v2683_v57 = vld [vmem:[%s6906_s1 + $0x40] sm:$0xff] }
 0x21a   :  { %v2576_v53 = vmax.f32 %v1926_v4, 0.0 }
 0x21b   :  { %v2575_v20 = vmax.f32 %v1921_v8, 0.0  ;;  %v4642_v28 = vpop.f32.mrb[158].mxu0  ;;  %4951 = vmatprep.subr.bf16.mxu1 %v4950_v30 }
 0x21c   :  { %v1936_v27 = vadd.f32 %v6637_v13, %v4642_v28  ;;  %v1930_v29 = vpop.f32.mrb[159].mxu0  ;;  %4953 = vmatpush3.bf16.msra.mxu1 %v6575_v21 }
 0x21d   :  { %v4954_v31 = vpack.c.bf16 %v2576_v53, %v2575_v20  ;;  %v1931_v60 = vadd.f32 %v6637_v13, %v1930_v29 }
 0x21e   :  { %v2578_v35 = vmax.f32 %v1936_v27, 0.0 }
 0x21f   :  { %v2577_v38 = vmax.f32 %v1931_v60, 0.0  ;;  %v4645_v46 = vpop.f32.mrb[160].mxu0  ;;  %4955 = vmatprep.subr.bf16.mxu1 %v4954_v31 }
 0x220   :  { %v1946_v40 = vadd.f32 %v6637_v13, %v4645_v46  ;;  %v1940_v14 = vpop.f32.mrb[161].mxu0  ;;  %4957 = vmatpush3.bf16.msra.mxu1 %v6583_v41 }
 0x221   :  { %v4958_v45 = vpack.c.bf16 %v2578_v35, %v2577_v38  ;;  %v1941_v9 = vadd.f32 %v6637_v13, %v1940_v14 }
 0x222   :  { %v2580_v17 = vmax.f32 %v1946_v40, 0.0 }
 0x223   :  { %v2579_v23 = vmax.f32 %v1941_v9, 0.0  ;;  %v4648_v54 = vpop.f32.mrb[162].mxu0  ;;  %4959 = vmatprep.subr.bf16.mxu1 %v4958_v45 }
 0x224   :  { %v1956_v21 = vadd.f32 %v6637_v13, %v4648_v54  ;;  %v1950_v55 = vpop.f32.mrb[163].mxu0  ;;  %4961 = vmatpush3.bf16.msra.mxu1 %v6591_v2 }
 0x225   :  { %v6655_v5 = vpack.c.bf16 %v2580_v17, %v2579_v23  ;;  %v1951_v41 = vadd.f32 %v6637_v13, %v1950_v55 }
 0x226   :  { %v2582_v0 = vmax.f32 %v1956_v21, 0.0 }
 0x227   :  { %v2581_v4 = vmax.f32 %v1951_v41, 0.0  ;;  %v4651_v1 = vpop.f32.mrb[164].mxu0  ;;  %3036 = vmatmul.mubr.f32.vlgmr.msra.gmra.mrb[68].mxu1 %v2683_v57 }
 0x228   :  { %v1966_v43 = vadd.f32 %v6637_v13, %v4651_v1  ;;  %v1960_v12 = vpop.f32.mrb[165].mxu0  ;;  %3105 = vmatprep.mubr.f32.mxu1 %v2686_v59 }
 0x229   :  { %v6662_v2 = vpack.c.bf16 %v2582_v0, %v2581_v4  ;;  %v1961_v30 = vadd.f32 %v6637_v13, %v1960_v12 }
 0x22a   :  { %v2584_v8 = vmax.f32 %v1966_v43, 0.0 }
 0x22b   :  { %v2583_v15 = vmax.f32 %v1961_v30, 0.0  ;;  %v4654_v53 = vpop.f32.mrb[166].mxu0 }
 0x22c   :  { %v1976_v20 = vadd.f32 %v6637_v13, %v4654_v53  ;;  %v1970_v28 = vpop.f32.mrb[167].mxu0 }
 0x22d   :  { %v6666_v27 = vpack.c.bf16 %v2584_v8, %v2583_v15  ;;  %v1971_v29 = vadd.f32 %v6637_v13, %v1970_v28 }
 0x22e   :  { %v2586_v31 = vmax.f32 %v1976_v20, 0.0 }
 0x22f   :  { %v2585_v60 = vmax.f32 %v1971_v29, 0.0  ;;  %v4657_v35 = vpop.f32.mrb[168].mxu0 }
 0x230   :  { %v1986_v38 = vadd.f32 %v6637_v13, %v4657_v35  ;;  %v1980_v46 = vpop.f32.mrb[169].mxu0 }
 0x231   :  { %v6670_v40 = vpack.c.bf16 %v2586_v31, %v2585_v60  ;;  %v1981_v14 = vadd.f32 %v6637_v13, %v1980_v46 }
 0x232   :  { %v2588_v45 = vmax.f32 %v1986_v38, 0.0 }
 0x233   :  { %v2587_v9 = vmax.f32 %v1981_v14, 0.0  ;;  %v4660_v17 = vpop.f32.mrb[170].mxu0 }
 0x234   :  { %v1996_v23 = vadd.f32 %v6637_v13, %v4660_v17  ;;  %v1990_v54 = vpop.f32.mrb[171].mxu0 }
 0x235   :  { %v6674_v21 = vpack.c.bf16 %v2588_v45, %v2587_v9  ;;  %v1991_v55 = vadd.f32 %v6637_v13, %v1990_v54 }
 0x236   :  { %v2590_v57 = vmax.f32 %v1996_v23, 0.0 }
 0x237   :  { %v2589_v41 = vmax.f32 %v1991_v55, 0.0  ;;  %v4663_v59 = vpop.f32.mrb[172].mxu0 }
 0x238   :  { %v2006_v0 = vadd.f32 %v6637_v13, %v4663_v59  ;;  %v2000_v4 = vpop.f32.mrb[173].mxu0 }
 0x239   :  { %v6678_v1 = vpack.c.bf16 %v2590_v57, %v2589_v41  ;;  %v2001_v43 = vadd.f32 %v6637_v13, %v2000_v4 }
 0x23a   :  { %v2592_v12 = vmax.f32 %v2006_v0, 0.0  ;;  %v4144_v30 = vpop.f32.mrb[62].mxu1 }
 0x23b   :  { %v2591_v8 = vmax.f32 %v2001_v43, 0.0  ;;  %v4666_v15 = vpop.f32.mrb[174].mxu0  ;;  %v4145_v53 = vpop.f32.mrb[63].mxu1 }
 0x23c   :  { %v2016_v20 = vadd.f32 %v6637_v13, %v4666_v15  ;;  %v2010_v28 = vpop.f32.mrb[175].mxu0  ;;  %v4146_v29 = vadd.f32 %v4145_v53, %v4144_v30 }
 0x23d   :  { %v6682_v31 = vpack.c.bf16 %v2592_v12, %v2591_v8  ;;  %v2011_v60 = vadd.f32 %v6637_v13, %v2010_v28 }
 0x23e   :  { %v2594_v35 = vmax.f32 %v2016_v20, 0.0  ;;  %v6686_v38 = vadd.f32 %v4146_v29, %v6640_v16 }
 0x23f   :  { %v2593_v46 = vmax.f32 %v2011_v60, 0.0  ;;  %v4669_v14 = vpop.f32.mrb[176].mxu0 }
 0x240   :  { %v2026_v45 = vadd.f32 %v6637_v13, %v4669_v14  ;;  %v2020_v9 = vpop.f32.mrb[177].mxu0 }
 0x241   :  { %v6689_v17 = vpack.c.bf16 %v2594_v35, %v2593_v46  ;;  %v2021_v23 = vadd.f32 %v6637_v13, %v2020_v9 }
 0x242   :  { %v2596_v54 = vmax.f32 %v2026_v45, 0.0 }
 0x243   :  { %v2595_v55 = vmax.f32 %v2021_v23, 0.0  ;;  %v4672_v57 = vpop.f32.mrb[178].mxu0 }
 0x244   :  { %v2036_v41 = vadd.f32 %v6637_v13, %v4672_v57  ;;  %v2030_v59 = vpop.f32.mrb[179].mxu0 }
 0x245   :  { %v4962_v0 = vpack.c.bf16 %v2596_v54, %v2595_v55  ;;  %v2031_v4 = vadd.f32 %v6637_v13, %v2030_v59 }
 0x246   :  { %v2598_v16 = vmax.f32 %v2036_v41, 0.0 }
 0x247   :  { %v2597_v43 = vmax.f32 %v2031_v4, 0.0  ;;  %v4675_v12 = vpop.f32.mrb[180].mxu0  ;;  %4963 = vmatprep.subr.bf16.mxu1 %v4962_v0 }
 0x248   :  { %v2046_v30 = vadd.f32 %v6637_v13, %v4675_v12  ;;  %v2040_v8 = vpop.f32.mrb[181].mxu0  ;;  %4965 = vmatpush3.bf16.msra.mxu1 %v6655_v5 }
 0x249   :  { %v4966_v15 = vpack.c.bf16 %v2598_v16, %v2597_v43  ;;  %v2041_v53 = vadd.f32 %v6637_v13, %v2040_v8 }
 0x24a   :  { %v2600_v20 = vmax.f32 %v2046_v30, 0.0 }
 0x24b   :  { %v2599_v28 = vmax.f32 %v2041_v53, 0.0  ;;  %v4678_v29 = vpop.f32.mrb[182].mxu0  ;;  %4967 = vmatprep.subr.bf16.mxu1 %v4966_v15 }
 0x24c   :  { %v2056_v60 = vadd.f32 %v6637_v13, %v4678_v29  ;;  %v2050_v35 = vpop.f32.mrb[183].mxu0  ;;  %4969 = vmatpush3.bf16.msra.mxu1 %v6662_v2 }
 0x24d   :  { %v4970_v46 = vpack.c.bf16 %v2600_v20, %v2599_v28  ;;  %v2051_v14 = vadd.f32 %v6637_v13, %v2050_v35 }
 0x24e   :  { %v2602_v45 = vmax.f32 %v2056_v60, 0.0 }
 0x24f   :  { %v2601_v9 = vmax.f32 %v2051_v14, 0.0  ;;  %v4681_v23 = vpop.f32.mrb[184].mxu0  ;;  %4971 = vmatprep.subr.bf16.mxu1 %v4970_v46 }
 0x250   :  { %v2066_v5 = vadd.f32 %v6637_v13, %v4681_v23  ;;  %v2060_v54 = vpop.f32.mrb[185].mxu0  ;;  %4973 = vmatpush3.bf16.msra.mxu1 %v6666_v27 }
 0x251   :  { %v4974_v55 = vpack.c.bf16 %v2602_v45, %v2601_v9  ;;  %v2061_v57 = vadd.f32 %v6637_v13, %v2060_v54 }
 0x252   :  { %v2604_v41 = vmax.f32 %v2066_v5, 0.0 }
 0x253   :  { %v2603_v59 = vmax.f32 %v2061_v57, 0.0  ;;  %v4684_v0 = vpop.f32.mrb[186].mxu0  ;;  %4975 = vmatprep.subr.bf16.mxu1 %v4974_v55 }
 0x254   :  { %v2076_v2 = vadd.f32 %v6637_v13, %v4684_v0  ;;  %v2070_v4 = vpop.f32.mrb[187].mxu0  ;;  %4977 = vmatpush3.bf16.msra.mxu1 %v6670_v40 }
 0x255   :  { %v4978_v16 = vpack.c.bf16 %v2604_v41, %v2603_v59  ;;  %v2071_v43 = vadd.f32 %v6637_v13, %v2070_v4 }
 0x256   :  { %v2606_v12 = vmax.f32 %v2076_v2, 0.0  ;;  %v2685_v2 = vld [vmem:[%s6906_s1 + $0x50] sm:$0xff] }
 0x257   :  { %v2605_v30 = vmax.f32 %v2071_v43, 0.0  ;;  %v4687_v8 = vpop.f32.mrb[188].mxu0  ;;  %4979 = vmatprep.subr.bf16.mxu1 %v4978_v16 }
 0x258   :  { %v2086_v27 = vadd.f32 %v6637_v13, %v4687_v8  ;;  %v2080_v15 = vpop.f32.mrb[189].mxu0  ;;  %4981 = vmatpush3.bf16.msra.mxu1 %v6674_v21  ;;  %v3338_v8 = vld [vmem:[%s6909_s7 + $0x10] sm:$0xff] }
 0x259   :  { %v4982_v53 = vpack.c.bf16 %v2606_v12, %v2605_v30  ;;  %v2081_v20 = vadd.f32 %v6637_v13, %v2080_v15 }
 0x25a   :  { %v2608_v28 = vmax.f32 %v2086_v27, 0.0 }
 0x25b   :  { %v2607_v29 = vmax.f32 %v2081_v20, 0.0  ;;  %v4690_v60 = vpop.f32.mrb[190].mxu0  ;;  %4983 = vmatprep.subr.bf16.mxu1 %v4982_v53 }
 0x25c   :  { %v2096_v40 = vadd.f32 %v6637_v13, %v4690_v60  ;;  %v2090_v35 = vpop.f32.mrb[191].mxu0  ;;  %4985 = vmatpush3.bf16.msra.mxu1 %v6678_v1  ;;  %v3455_v60 = vld [vmem:[%s6910_s9 + $0x88] sm:$0xff] }
 0x25d   :  { %v4986_v46 = vpack.c.bf16 %v2608_v28, %v2607_v29  ;;  %v2091_v14 = vadd.f32 %v6637_v13, %v2090_v35  ;;  %v3341_v28 = vld [vmem:[%s6909_s7 + $0x28] sm:$0xf]  ;;  %v3454_v29 = vld [vmem:[%s6910_s9 + $0x80] sm:$0xff] }
 0x25e   :  { %v2610_v45 = vmax.f32 %v2096_v40, 0.0  ;;  %v3438_v40 = vld [vmem:[%s6910_s9] sm:$0xff]  ;;  %v3439_v35 = vld [vmem:[%s6910_s9 + $0x8] sm:$0xff] }
 0x25f   :  { %v2609_v9 = vmax.f32 %v2091_v14, 0.0  ;;  %v4693_v23 = vpop.f32.mrb[192].mxu0  ;;  %4987 = vmatprep.subr.bf16.mxu1 %v4986_v46  ;;  %v3456_v46 = vld [vmem:[%s6910_s9 + $0x90] sm:$0xff]  ;;  %v3457_v14 = vld [vmem:[%s6910_s9 + $0x98] sm:$0xff] }
 0x260   :  { %v2106_v21 = vadd.f32 %v6637_v13, %v4693_v23  ;;  %v2100_v5 = vpop.f32.mrb[193].mxu0  ;;  %4989 = vmatpush3.bf16.msra.mxu1 %v6682_v31  ;;  %v2688_v31 = vld [vmem:[%s6906_s1 + $0x68] sm:$0xff]  ;;  %v3335_v23 = vld [vmem:[%s6911_s6] sm:$0xff] }
 0x261   :  { %v4990_v54 = vpack.c.bf16 %v2610_v45, %v2609_v9  ;;  %v2101_v55 = vadd.f32 %v6637_v13, %v2100_v5  ;;  %v3340_v45 = vld [vmem:[%s6909_s7 + $0x20] sm:$0xf]  ;;  %v5065_v9 = vpack.c.bf16 %v3455_v60, %v3454_v29  ;;  %v5069_v5 = vpack.c.bf16 %v3457_v14, %v3456_v46 }
 0x262   :  { %v2612_v57 = vmax.f32 %v2106_v21, 0.0  ;;  %v5067_v21 = vpack.c.bf16 %v3439_v35, %v3438_v40  ;;  %v3816_v14 = vld [vmem:[%s6915_s10] ss:$0 sm:$0xff] }
 0x263   :  { %v2611_v41 = vmax.f32 %v2101_v55, 0.0  ;;  %v4696_v59 = vpop.f32.mrb[194].mxu0  ;;  %4991 = vmatprep.subr.bf16.mxu1 %v4990_v54  ;;  %v3440_v54 = vld [vmem:[%s6910_s9 + $0x10] sm:$0xff]  ;;  %v3441_v55 = vld [vmem:[%s6910_s9 + $0x18] sm:$0xff] }
 0x264   :  { %v2116_v1 = vadd.f32 %v6637_v13, %v4696_v59  ;;  %v2110_v0 = vpop.f32.mrb[195].mxu0  ;;  %4993 = vmatpush3.bf16.msra.mxu1 %v6689_v17  ;;  %v3336_v17 = vld [vmem:[%s6909_s7] sm:$0xff]  ;;  %v5071_v59 = vpack.c.bf16 %v3441_v55, %v3440_v54 }
 0x265   :  { %v4996_v4 = vpack.c.bf16 %v2612_v57, %v2611_v41  ;;  %v2111_v16 = vadd.f32 %v6637_v13, %v2110_v0  ;;  %4995 = vmatprep.subr.bf16.mxu1 %v6461_v34  ;;  %v5063_v53 = vpack.c.bf16 %v3338_v8, %v3336_v17  ;;  %v3458_v57 = vld [vmem:[%s6910_s9 + $0xa0] sm:$0xff]  ;;  %v3459_v41 = vld [vmem:[%s6910_s9 + $0xa8] sm:$0xff] }
 0x266   :  { %v2614_v43 = vmax.f32 %v2116_v1, 0.0  ;;  %v5073_v1 = vpack.c.bf16 %v3459_v41, %v3458_v57  ;;  %v3442_v0 = vld [vmem:[%s6910_s9 + $0x20] sm:$0xff] }
 0x267   :  { %v2613_v12 = vmax.f32 %v2111_v16, 0.0  ;;  %3106 = vmatmul.mubr.f32.vlgmr.msra.gmra.mrb[70].mxu1 %v2685_v2  ;;  %v3443_v2 = vld [vmem:[%s6910_s9 + $0x28] sm:$0xff]  ;;  %v3461_v16 = vld [vmem:[%s6910_s9 + $0xb8] sm:$0xff] }
 0x268   :  { %4997 = vmatpush3.bf16.msra.mxu1 %v4996_v4  ;;  %3175 = vmatprep.mubr.f32.mxu1 %v2688_v31  ;;  %v3460_v4 = vld [vmem:[%s6910_s9 + $0xb0] sm:$0xff]  ;;  %v5075_v31 = vpack.c.bf16 %v3443_v2, %v3442_v0 }
 0x269   :  { %v5000_v30 = vpack.c.bf16 %v2614_v43, %v2613_v12  ;;  %4999 = vmatprep.subr.bf16.mxu1 %v6469_v52  ;;  %v5077_v43 = vpack.c.bf16 %v3461_v16, %v3460_v4  ;;  %v3444_v12 = vld [vmem:[%s6910_s9 + $0x30] sm:$0xff] }
 0x26c   :  { %5001 = vmatpush3.bf16.msra.mxu1 %v5000_v30  ;;  %v3445_v30 = vld [vmem:[%s6910_s9 + $0x38] sm:$0xff] }
 0x26d   :  { %5003 = vmatprep.subr.bf16.mxu1 %v6476_v6 }
 0x270   :  { %5005 = vmatpush3.bf16.msra.mxu1 %v6413_v7  ;;  %v2687_v7 = vld [vmem:[%s6906_s1 + $0x60] sm:$0xff] }
 0x271   :  { %5007 = vmatprep.subr.bf16.mxu1 %v6483_v61 }
 0x274   :  { %5009 = vmatpush3.bf16.msra.mxu1 %v6421_v24  ;;  %v2690_v24 = vld [vmem:[%s6906_s1 + $0x78] sm:$0xff] }
 0x275   :  { %5011 = vmatprep.subr.bf16.mxu1 %v6490_v42  ;;  %v3251_v42 = vld [vmem:[%s6908_s4] sm:$0xff] }
 0x278   :  { %5013 = vmatpush3.bf16.msra.mxu1 %v6429_v36  ;;  %v2689_v36 = vld [vmem:[%s6906_s1 + $0x70] sm:$0xff] }
 0x279   :  { %5015 = vmatprep.subr.bf16.mxu1 %v6497_v58  ;;  %v3252_v58 = vld [vmem:[%s6908_s4 + $0x8] sm:$0xff] }
 0x27a   :  { %v4179_v34 = vpop.f32.mrb[64].mxu1 }
 0x27b   :  { %v4180_v13 = vpop.f32.mrb[65].mxu1 }
 0x27c   :  { %5017 = vmatpush3.bf16.msra.mxu1 %v6437_v50  ;;  %v4181_v52 = vadd.f32 %v4180_v13, %v4179_v34  ;;  %v3462_v34 = vld [vmem:[%s6910_s9 + $0xc0] sm:$0xff]  ;;  %v3463_v13 = vld [vmem:[%s6910_s9 + $0xc8] sm:$0xff] }
 0x27d   :  { %5019 = vmatprep.subr.bf16.mxu1 %v6504_v47 }
 0x27e   :  { %v2898_v6 = vadd.f32 %v4181_v52, %v6686_v38  ;;  %v5079_v52 = vpack.c.bf16 %v3445_v30, %v3444_v12 }
 0x280   :  { %5021 = vmatpush3.bf16.msra.mxu1 %v6445_v44 }
 0x281   :  { %5023 = vmatprep.subr.bf16.mxu1 %v6511_v63  ;;  %v5059_v63 = vpack.c.bf16 %v3252_v58, %v3251_v42  ;;  %v3449_v42 = vld [vmem:[%s6910_s9 + $0x58] sm:$0xff] }
 0x284   :  { %5025 = vmatpush3.bf16.msra.mxu1 %v6453_v18 }
 0x285   :  { %5027 = vmatprep.subr.bf16.mxu1 %v6587_v56 }
 0x287   :  { %3176 = vmatmul.mubr.f32.vlgmr.msra.gmra.mrb[72].mxu1 %v2687_v7  ;;  %v3446_v7 = vld [vmem:[%s6910_s9 + $0x40] sm:$0xff] }
 0x288   :  { %5029 = vmatpush3.bf16.msra.mxu1 %v6518_v49  ;;  %3245 = vmatprep.mubr.f32.mxu1 %v2690_v24  ;;  %v3447_v24 = vld [vmem:[%s6910_s9 + $0x48] sm:$0xff] }
 0x289   :  { %5031 = vmatprep.subr.bf16.mxu1 %v6595_v19 }
 0x28c   :  { %5033 = vmatpush3.bf16.msra.mxu1 %v6528_v37  ;;  %v5106_v37 = vmov 0.0|0.0  }
 0x28d   :  { %5035 = vmatprep.subr.bf16.mxu1 %v6601_v39 }
 0x290   :  { %5037 = vmatpush3.bf16.msra.mxu1 %v6539_v26 }
 0x291   :  { %5039 = vmatprep.subr.bf16.mxu1 %v6608_v10 }
 0x294   :  { %5041 = vmatpush3.bf16.msra.mxu1 %v6549_v48  ;;  %v3337_v48 = vld [vmem:[%s6909_s7 + $0x8] sm:$0xff] }
 0x295   :  { %5043 = vmatprep.subr.bf16.mxu1 %v6615_v22 }
 0x298   :  { %5045 = vmatpush3.bf16.msra.mxu1 %v6555_v62  ;;  %v3339_v62 = vld [vmem:[%s6909_s7 + $0x18] sm:$0xff] }
 0x299   :  { %5047 = vmatprep.subr.bf16.mxu1 %v6622_v33 }
 0x29c   :  { %5049 = vmatpush3.bf16.msra.mxu1 %v6563_v51  ;;  %v5061_v51 = vpack.c.bf16 %v3339_v62, %v3337_v48  ;;  %v3468_v62 = vld [vmem:[%s6910_s9 + $0xf0] sm:$0xff] }
 0x29d   :  { %5051 = vmatprep.subr.bf16.mxu1 %v6629_v25 }
 0x2a0   :  { %5053 = vmatpush3.bf16.msra.mxu1 %v6571_v11 }
 0x2a1   :  { %5055 = vmatprep.subr.bf16.mxu1 %v6642_v3 }
 0x2a4   :  { %5057 = vmatpush3.bf16.msra.mxu1 %v6579_v32  ;;  %v5108_v32 = vmov 0.0  }
 0x2a5   :  { %5058 = vmatprep.subr.bf16.mxu1 %v5106_v37  ;;  %v3450_v37 = vld [vmem:[%s6910_s9 + $0x60] sm:$0xff] }
 0x2a7   :  { %3246 = vmatmul.mubr.f32.vlgmr.msra.gmra.mrb[74].mxu1 %v2689_v36  ;;  %v5083_v36 = vpack.c.bf16 %v3447_v24, %v3446_v7 }
 0x2a8   :  { %5060 = vmatpush3.bf16.msra.mxu1 %v5059_v63  ;;  %4791 = vmatprep.mubr.msk.f32.mxu1 %vm5107_vm1, %v5108_v32  ;;  %v3467_v63 = vld [vmem:[%s6910_s9 + $0xe8] sm:$0xff] }
 0x2a9   :  { %5062 = vmatprep.subr.bf16.mxu1 %v5061_v51  ;;  %v3469_v51 = vld [vmem:[%s6910_s9 + $0xf8] sm:$0xff] }
 0x2ba   :  { %v4214_v50 = vpop.f32.mrb[66].mxu1 }
 0x2bb   :  { %v4215_v44 = vpop.f32.mrb[67].mxu1 }
 0x2bc   :  { %v4216_v18 = vadd.f32 %v4215_v44, %v4214_v50  ;;  %v3464_v50 = vld [vmem:[%s6910_s9 + $0xd0] sm:$0xff]  ;;  %v3465_v44 = vld [vmem:[%s6910_s9 + $0xd8] sm:$0xff] }
 0x2be   :  { %v2968_v61 = vadd.f32 %v4216_v18, %v2898_v6  ;;  %v5081_v6 = vpack.c.bf16 %v3463_v13, %v3462_v34  ;;  %v5085_v18 = vpack.c.bf16 %v3465_v44, %v3464_v50 }
 0x2fa   :  { %v4249_v47 = vpop.f32.mrb[68].mxu1 }
 0x2fb   :  { %v4250_v49 = vpop.f32.mrb[69].mxu1 }
 0x2fc   :  { %v4251_v26 = vadd.f32 %v4250_v49, %v4249_v47  ;;  %v3466_v47 = vld [vmem:[%s6910_s9 + $0xe0] sm:$0xff] }
 0x2fd   :  { %v5089_v49 = vpack.c.bf16 %v3467_v63, %v3466_v47 }
 0x2fe   :  { %v3038_v11 = vadd.f32 %v4251_v26, %v2968_v61  ;;  %v3448_v61 = vld [vmem:[%s6910_s9 + $0x50] sm:$0xff]  ;;  %v3451_v26 = vld [vmem:[%s6910_s9 + $0x68] sm:$0xff] }
 0x2ff   :  { %v5087_v58 = vpack.c.bf16 %v3449_v42, %v3448_v61  ;;  %v5091_v48 = vpack.c.bf16 %v3451_v26, %v3450_v37 }
 0x33a   :  { %v4284_v56 = vpop.f32.mrb[70].mxu1 }
 0x33b   :  { %v4285_v19 = vpop.f32.mrb[71].mxu1 }
 0x33c   :  { %v4286_v39 = vadd.f32 %v4285_v19, %v4284_v56  ;;  %v3453_v56 = vld [vmem:[%s6910_s9 + $0x78] sm:$0xff] }
 0x33e   :  { %v3108_v10 = vadd.f32 %v4286_v39, %v3038_v11  ;;  %v5093_v11 = vpack.c.bf16 %v3469_v51, %v3468_v62  ;;  %v3344_v39 = vlaneseq }
 0x35a   :  { %v4319_v22 = vpop.f32.mrb[72].mxu1 }
 0x35b   :  { %v4320_v33 = vpop.f32.mrb[73].mxu1 }
 0x35c   :  { %v4321_v25 = vadd.f32 %v4320_v33, %v4319_v22  ;;  %v3811_v22 = vld [vmem:[%s6912_s5] ss:$0 sm:$0xff] }
 0x35e   :  { %v3178_v3 = vadd.f32 %v4321_v25, %v3108_v10  ;;  %v3345_v10 = vshrl.u32 %v3344_v39, 7 }
 0x360   :  { %v3346_v33 = vsub.s32 0, %v3345_v10 }
 0x37a   :  { %v4354_v38 = vpop.f32.mrb[74].mxu1 }
 0x37b   :  { %v4355_v27 = vpop.f32.mrb[75].mxu1 }
 0x37c   :  { %v4356_v15 = vadd.f32 %v4355_v27, %v4354_v38  ;;  %v3350_v38 = vsub.s32 1, %v3345_v10 }
 0x37e   :  { %v3248_v20 = vadd.f32 %v4356_v15, %v3178_v3  ;;  %v3342_v3 = vld [vmem:[%s6913_s8] sm:$0x3] }
 0x37f   :  { %v3347_v15 = vrot.slane %v3342_v3, %v3346_v33 }
 0x380   :  { %4792 = vmatmul.mubr.msk.f32.vlgmr.msra.gmra.mrb[76].mxu1 %vm3260_vm2, %v3248_v20 }
 0x381   :  { %5064 = vmatpush1.bf16.msra.mxu1 %v5063_v53  ;;  %3429 = vmatprep.mubr.f32.mxu1 %v5108_v32  ;;  %v3452_v32 = vld [vmem:[%s6910_s9 + $0x70] sm:$0xff]  ;;  %v3351_v53 = vrot.slane %v3342_v3, %v3350_v38 }
 0x382   :  { %3813 = vmatprep.subr.msk.mxu1 %vm3358_vm3, %v3341_v28  ;;  %v5095_v19 = vpack.c.bf16 %v3453_v56, %v3452_v32 }
 0x385   :  { %3814 = vmatpush1.msk.msra.mxu1 %vm3358_vm3, %v3340_v45 }
 0x386   :  { %3815 = vmatmul.mubr.msk.f32.vlgmr.msra.gmra.mrb[78].mxu1 %vm3354_vm4, %v3335_v23  ;;  %5066 = vmatprep.subr.bf16.mxu1 %v5065_v9 }
 0x387   :  { %5068 = vmatpush3.bf16.msra.mxu1 %v5067_v21 }
 0x388   :  { %5070 = vmatprep.subr.bf16.mxu1 %v5069_v5 }
 0x38b   :  { %5072 = vmatpush3.bf16.msra.mxu1 %v5071_v59 }
 0x38c   :  { %5074 = vmatprep.subr.bf16.mxu1 %v5073_v1 }
 0x38f   :  { %5076 = vmatpush3.bf16.msra.mxu1 %v5075_v31 }
 0x390   :  { %5078 = vmatprep.subr.bf16.mxu1 %v5077_v43 }
 0x393   :  { %5080 = vmatpush3.bf16.msra.mxu1 %v5079_v52 }
 0x394   :  { %5082 = vmatprep.subr.bf16.mxu1 %v5081_v6 }
 0x397   :  { %5084 = vmatpush3.bf16.msra.mxu1 %v5083_v36 }
 0x398   :  { %5086 = vmatprep.subr.bf16.mxu1 %v5085_v18 }
 0x39b   :  { %5088 = vmatpush3.bf16.msra.mxu1 %v5087_v58 }
 0x39c   :  { %5090 = vmatprep.subr.bf16.mxu1 %v5089_v49 }
 0x39f   :  { %5092 = vmatpush3.bf16.msra.mxu1 %v5091_v48 }
 0x3a0   :  { %5094 = vmatprep.subr.bf16.mxu1 %v5093_v11 }
 0x3a3   :  { %5096 = vmatpush3.bf16.msra.mxu1 %v5095_v19 }
 0x453   :  { %v3330_v25 = vpop.f32.mrb[76].mxu1 }
 0x454   :  { %v3331_v17 = vadd.f32 %v3811_v22, %v3330_v25  ;;  %v4793_v8 = vpop.f32.mrb[77].mxu1 }
 0x456   :  { %v3334_v27 = vmax.f32 %v3331_v17, 0.0 }
 0x458   :  { %3548 = vst [vmem:[%s6914_s11] sm:$0xff] %v3334_v27 }
 0x459   :  { %v3431_v20 = vpop.f32.mrb[78].mxu1 }
 0x45a   :  { %v3432_v28 = vadd.f32 %v3431_v20, %v3347_v15  ;;  %v3433_v29 = vpop.f32.mrb[79].mxu1 }
 0x45b   :  { %v3434_v60 = vadd.f32 %v3433_v29, %v3351_v53 }
 0x45c   :  { %v3436_v35 = vmax.f32 %v3432_v28, 0.0 }
 0x45d   :  { %v3437_v40 = vmax.f32 %v3434_v60, 0.0 }
 0x45f   :  { %3541 = vmatprep.mubr.f32.mxu1 %v3437_v40 }
 0x460   :  { %3542 = vmatmul.mubr.f32.vlgmr.msra.gmra.mrb[80].mxu1 %v3436_v35 }
 0x533   :  { %v4392_v46 = vpop.f32.mrb[80].mxu1 }
 0x534   :  { %v4393_v45 = vpop.f32.mrb[81].mxu1 }
 0x535   :  { %v4394_v9 = vadd.f32 %v4393_v45, %v4392_v46 }
 0x537   :  { %v3544_v23 = vadd.f32 %v4394_v9, %v3816_v14 }
 0x539   :  { %v3547_v21 = vmax.f32 %v3544_v23, 0.0 }
 0x53b   :  { %3549 = vst [vmem:[%s6914_s11 + $0x8] sm:$0xff] %v3547_v21 }

// kernel: forward.3
= control target key start
LH: loop header
LB: loop body
LE: loop exit
PB: predicated region body
PF: predicated region fallthrough
CT: control target
= control target key end

     0   :  { %v18133_v3 = vmov 0.0   ;;  %s13622_s22 = smov 64   ;;  %vm345_vm0 = vcmask 517120   ;;  %vm156_vm1 = vcmask 523264   ;;  %vm6315_vm2 = vcmask 1024   ;;  %s18110_s2 = inlined_call_operand.vmem [shape: f32[64,256], index: 2, kind: input, shape index: {}]   ;;  %s18111_s1 = inlined_call_operand.vmem [shape: f32[256,256], index: 1, kind: input, shape index: {}]   ;;  %s18112_s0 = inlined_call_operand.vmem [shape: f32[4,2,256], index: 0, kind: input, shape index: {}]   ;;  %s18113_s3 = inlined_call_operand.vmem [shape: f32[1,256], index: 3, kind: input, shape index: {}]   ;;  %s18114_s5 = inlined_call_operand.vmem [shape: f32[64,256], index: 5, kind: input, shape index: {}]   ;;  %s18115_s4 = inlined_call_operand.vmem [shape: f32[64,256], index: 4, kind: input, shape index: {}]   ;;  %s18116_s6 = inlined_call_operand.vmem [shape: f32[1,256], index: 6, kind: input, shape index: {}]   ;;  %s18117_s8 = inlined_call_operand.vmem [shape: f32[64,256], index: 8, kind: input, shape index: {}]   ;;  %s18118_s7 = inlined_call_operand.vmem [shape: f32[64,256], index: 7, kind: input, shape index: {}]   ;;  %s18119_s9 = inlined_call_operand.vmem [shape: f32[1,256], index: 9, kind: input, shape index: {}]   ;;  %s18120_s11 = inlined_call_operand.vmem [shape: bf16[2,64,1024], index: 11, kind: input, shape index: {}]   ;;  %s18121_s10 = inlined_call_operand.vmem [shape: bf16[2,256,1024], index: 10, kind: input, shape index: {}]   ;;  %s18122_s13 = inlined_call_operand.vmem [shape: bf16[2,1024,512], index: 13, kind: input, shape index: {}]   ;;  %s18123_s12 = inlined_call_operand.vmem [shape: f32[2,1,1024], index: 12, kind: input, shape index: {}]   ;;  %s18124_s15 = inlined_call_operand.vmem [shape: bf16[2,512,256], index: 15, kind: input, shape index: {}]   ;;  %s18125_s14 = inlined_call_operand.vmem [shape: f32[2,1,512], index: 14, kind: input, shape index: {}]   ;;  %s18126_s17 = inlined_call_operand.vmem [shape: f32[2,256,1], index: 17, kind: input, shape index: {}]   ;;  %s18127_s16 = inlined_call_operand.vmem [shape: f32[2,1,256], index: 16, kind: input, shape index: {}]   ;;  %s18128_s18 = inlined_call_operand.vmem [shape: f32[2,1,1], index: 18, kind: input, shape index: {}]   ;;  %s18129_s19 = inlined_call_operand.vmem [shape: f32[2,2], index: 19, kind: output, shape index: {}]  }
   0x1   :  { %18149 = sst [smem:[#allocation12_spill]] %s18110_s2  ;;  %224 = vmatprep.mubr.f32.mxu0 %v18133_v3  ;;  %416 = vmatprep.mubr.f32.mxu1 %v18133_v3  ;;  %vm10167_vm3 = vcmask 9224  }
   0x2   :  { %18150 = sst [smem:[#allocation13_spill]] %s18111_s1  ;;  %s18153_s20 = sld [smem:[#allocation12_spill]] }
   0x3   :  { %18151 = sst [smem:[#allocation14_spill]] %s18112_s0  ;;  %s18154_s23 = sld [smem:[#allocation13_spill]] }
   0x4   :  { %18152 = sst [smem:[#allocation15_spill]] %s18113_s3  ;;  %s18155_s2 = sld [smem:[#allocation14_spill]] }
   0x5   :  { %s18159_s1 = sld [smem:[#allocation15_spill]] }
   0x8   :  { %v128_v0 = vld [vmem:[%s18153_s20 + $0x8] sm:$0xff]  ;;  %v130_v1 = vld [vmem:[%s18153_s20 + $0x18] sm:$0xff]  ;;  %v127_v2 = vld [vmem:[%s18153_s20] sm:$0xff] }
   0x9   :  { %v13736_v4 = vpack.c.bf16 %v130_v1, %v128_v0  ;;  %v129_v5 = vld [vmem:[%s18153_s20 + $0x10] sm:$0xff]  ;;  %v132_v6 = vld [vmem:[%s18153_s20 + $0x28] sm:$0xff]  ;;  %v134_v7 = vld [vmem:[%s18153_s20 + $0x38] sm:$0xff] }
   0xa   :  { %v13747_v8 = vpack.c.bf16 %v129_v5, %v127_v2  ;;  %v13749_v9 = vpack.c.bf16 %v134_v7, %v132_v6  ;;  %v131_v10 = vld [vmem:[%s18153_s20 + $0x20] sm:$0xff]  ;;  %v133_v11 = vld [vmem:[%s18153_s20 + $0x30] sm:$0xff]  ;;  %v136_v12 = vld [vmem:[%s18153_s20 + $0x48] sm:$0xff] }
   0xb   :  { %11779 = vmatprep.subr.bf16.mxu0 %v13736_v4  ;;  %v138_v13 = vld [vmem:[%s18153_s20 + $0x58] sm:$0xff]  ;;  %11859 = vmatprep.subr.bf16.mxu1 %v13736_v4  ;;  %v13766_v14 = vpack.c.bf16 %v133_v11, %v131_v10  ;;  %v135_v16 = vld [vmem:[%s18153_s20 + $0x40] sm:$0xff]  ;;  %v137_v17 = vld [vmem:[%s18153_s20 + $0x50] sm:$0xff] }
   0xc   :  { %11781 = vmatpush1.bf16.msra.mxu0 %v13747_v8  ;;  %11861 = vmatpush1.bf16.msra.mxu1 %v13747_v8  ;;  %v13770_v15 = vpack.c.bf16 %v138_v13, %v136_v12  ;;  %v140_v18 = vld [vmem:[%s18153_s20 + $0x68] sm:$0xff]  ;;  %v142_v19 = vld [vmem:[%s18153_s20 + $0x78] sm:$0xff]  ;;  %v13786_v20 = vpack.c.bf16 %v137_v17, %v135_v16  ;;  %v139_v22 = vld [vmem:[%s18153_s20 + $0x60] sm:$0xff] }
   0xd   :  { %11783 = vmatprep.subr.bf16.mxu0 %v13749_v9  ;;  %11863 = vmatprep.subr.bf16.mxu1 %v13749_v9  ;;  %v13790_v21 = vpack.c.bf16 %v142_v19, %v140_v18  ;;  %v141_v23 = vld [vmem:[%s18153_s20 + $0x70] sm:$0xff]  ;;  %v64_v24 = vld [vmem:[%s18154_s23 + $0x8] sm:$0xff]  ;;  %v66_v25 = vld [vmem:[%s18154_s23 + $0x18] sm:$0xff] }
   0xe   :  { %v13806_v26 = vpack.c.bf16 %v141_v23, %v139_v22  ;;  %v13810_v27 = vpack.c.bf16 %v66_v25, %v64_v24  ;;  %v63_v28 = vld [vmem:[%s18154_s23] sm:$0xff]  ;;  %v65_v29 = vld [vmem:[%s18154_s23 + $0x10] sm:$0xff]  ;;  %v68_v30 = vld [vmem:[%s18154_s23 + $0x28] sm:$0xff] }
   0xf   :  { %v70_v31 = vld [vmem:[%s18154_s23 + $0x38] sm:$0xff]  ;;  %v13826_v32 = vpack.c.bf16 %v65_v29, %v63_v28  ;;  %v67_v34 = vld [vmem:[%s18154_s23 + $0x20] sm:$0xff]  ;;  %v69_v35 = vld [vmem:[%s18154_s23 + $0x30] sm:$0xff] }
  0x10   :  { %11785 = vmatpush1.bf16.msra.mxu0 %v13766_v14  ;;  %11865 = vmatpush1.bf16.msra.mxu1 %v13766_v14  ;;  %v13830_v33 = vpack.c.bf16 %v70_v31, %v68_v30  ;;  %v72_v36 = vld [vmem:[%s18154_s23 + $0x48] sm:$0xff]  ;;  %v74_v37 = vld [vmem:[%s18154_s23 + $0x58] sm:$0xff]  ;;  %v13847_v38 = vpack.c.bf16 %v69_v35, %v67_v34  ;;  %v71_v40 = vld [vmem:[%s18154_s23 + $0x40] sm:$0xff] }
  0x11   :  { %11787 = vmatprep.subr.bf16.mxu0 %v13770_v15  ;;  %11867 = vmatprep.subr.bf16.mxu1 %v13770_v15  ;;  %v13850_v39 = vpack.c.bf16 %v74_v37, %v72_v36  ;;  %v73_v41 = vld [vmem:[%s18154_s23 + $0x50] sm:$0xff]  ;;  %v76_v42 = vld [vmem:[%s18154_s23 + $0x68] sm:$0xff]  ;;  %v78_v43 = vld [vmem:[%s18154_s23 + $0x78] sm:$0xff] }
  0x12   :  { %v13865_v44 = vpack.c.bf16 %v73_v41, %v71_v40  ;;  %v13868_v45 = vpack.c.bf16 %v78_v43, %v76_v42  ;;  %v75_v46 = vld [vmem:[%s18154_s23 + $0x60] sm:$0xff]  ;;  %v77_v47 = vld [vmem:[%s18154_s23 + $0x70] sm:$0xff]  ;;  %v80_v48 = vld [vmem:[%s18154_s23 + $0x88] sm:$0xff] }
  0x13   :  { %v82_v49 = vld [vmem:[%s18154_s23 + $0x98] sm:$0xff]  ;;  %v13885_v50 = vld.sshfl [vmem:[%s18155_s2] sm:$0x33 pattern:$0x76325410]  ;;  %v13892_v52 = vpack.c.bf16 %v77_v47, %v75_v46  ;;  %v81_v55 = vld [vmem:[%s18154_s23 + $0x90] sm:$0xff] }
  0x14   :  { %11789 = vmatpush1.bf16.msra.mxu0 %v13786_v20  ;;  %11869 = vmatpush1.bf16.msra.mxu1 %v13786_v20  ;;  %v13889_v51 = vcombine.high %v13885_v50, %v13885_v50  ;;  %v13895_v53 = vpack.c.bf16 %v82_v49, %v80_v48  ;;  %v79_v54 = vld [vmem:[%s18154_s23 + $0x80] sm:$0xff]  ;;  %v84_v56 = vld [vmem:[%s18154_s23 + $0xa8] sm:$0xff]  ;;  %v86_v57 = vld [vmem:[%s18154_s23 + $0xb8] sm:$0xff] }
  0x15   :  { %11791 = vmatprep.subr.bf16.mxu0 %v13790_v21  ;;  %11871 = vmatprep.subr.bf16.mxu1 %v13790_v21  ;;  %v13911_v58 = vpack.c.bf16 %v81_v55, %v79_v54  ;;  %v13914_v59 = vpack.c.bf16 %v86_v57, %v84_v56  ;;  %v83_v60 = vld [vmem:[%s18154_s23 + $0xa0] sm:$0xff]  ;;  %v85_v61 = vld [vmem:[%s18154_s23 + $0xb0] sm:$0xff]  ;;  %v88_v62 = vld [vmem:[%s18154_s23 + $0xc8] sm:$0xff] }
  0x16   :  { %18156 = vst [vmem:[#allocation4_spill] sm:$0xff] %v13889_v51  ;;  %v90_v63 = vld [vmem:[%s18154_s23 + $0xd8] sm:$0xff]  ;;  %v13929_v0 = vpack.c.bf16 %v85_v61, %v83_v60  ;;  %v87_v2 = vld [vmem:[%s18154_s23 + $0xc0] sm:$0xff]  ;;  %v89_v5 = vld [vmem:[%s18154_s23 + $0xd0] sm:$0xff] }
  0x17   :  { %v13932_v1 = vpack.c.bf16 %v90_v63, %v88_v62  ;;  %v92_v6 = vld [vmem:[%s18154_s23 + $0xe8] sm:$0xff]  ;;  %v94_v7 = vld [vmem:[%s18154_s23 + $0xf8] sm:$0xff]  ;;  %v13947_v10 = vpack.c.bf16 %v89_v5, %v87_v2  ;;  %v91_v12 = vld [vmem:[%s18154_s23 + $0xe0] sm:$0xff] }
  0x18   :  { %11793 = vmatpush1.bf16.msra.mxu0 %v13806_v26  ;;  %11873 = vmatpush1.bf16.msra.mxu1 %v13806_v26  ;;  %v13950_v11 = vpack.c.bf16 %v94_v7, %v92_v6  ;;  %v93_v13 = vld [vmem:[%s18154_s23 + $0xf0] sm:$0xff]  ;;  %v96_v16 = vld [vmem:[%s18154_s23 + $0x108] sm:$0xff]  ;;  %v98_v17 = vld [vmem:[%s18154_s23 + $0x118] sm:$0xff] }
  0x19   :  { %11795 = vmatprep.subr.bf16.mxu0 %v13810_v27  ;;  %11875 = vmatprep.subr.bf16.mxu1 %v13810_v27  ;;  %v13965_v18 = vpack.c.bf16 %v93_v13, %v91_v12  ;;  %v13968_v19 = vpack.c.bf16 %v98_v17, %v96_v16  ;;  %v95_v22 = vld [vmem:[%s18154_s23 + $0x100] sm:$0xff]  ;;  %v97_v23 = vld [vmem:[%s18154_s23 + $0x110] sm:$0xff]  ;;  %v100_v24 = vld [vmem:[%s18154_s23 + $0x128] sm:$0xff] }
  0x1a   :  { %v102_v25 = vld [vmem:[%s18154_s23 + $0x138] sm:$0xff]  ;;  %v13983_v28 = vpack.c.bf16 %v97_v23, %v95_v22  ;;  %v99_v30 = vld [vmem:[%s18154_s23 + $0x120] sm:$0xff]  ;;  %v101_v31 = vld [vmem:[%s18154_s23 + $0x130] sm:$0xff] }
  0x1b   :  { %225 = vmatmul.mubr.f32.vlgmr.msra.gmra.mrb[0].mxu0 %v18133_v3  ;;  %v13986_v29 = vpack.c.bf16 %v102_v25, %v100_v24  ;;  %v104_v34 = vld [vmem:[%s18154_s23 + $0x148] sm:$0xff]  ;;  %v106_v35 = vld [vmem:[%s18154_s23 + $0x158] sm:$0xff]  ;;  %v14001_v36 = vpack.c.bf16 %v101_v31, %v99_v30  ;;  %v103_v40 = vld [vmem:[%s18154_s23 + $0x140] sm:$0xff] }
  0x1c   :  { %11797 = vmatpush1.bf16.msra.mxu0 %v13826_v32  ;;  %306 = vmatprep.mubr.f32.mxu0 %v13889_v51  ;;  %v14004_v37 = vpack.c.bf16 %v106_v35, %v104_v34  ;;  %v105_v41 = vld [vmem:[%s18154_s23 + $0x150] sm:$0xff]  ;;  %v108_v42 = vld [vmem:[%s18154_s23 + $0x168] sm:$0xff]  ;;  %v110_v43 = vld [vmem:[%s18154_s23 + $0x178] sm:$0xff] }
  0x1d   :  { %11799 = vmatprep.subr.bf16.mxu0 %v13830_v33  ;;  %v14019_v46 = vpack.c.bf16 %v105_v41, %v103_v40  ;;  %v14022_v47 = vpack.c.bf16 %v110_v43, %v108_v42  ;;  %v107_v48 = vld [vmem:[%s18154_s23 + $0x160] sm:$0xff]  ;;  %v109_v49 = vld [vmem:[%s18154_s23 + $0x170] sm:$0xff]  ;;  %v112_v54 = vld [vmem:[%s18154_s23 + $0x188] sm:$0xff]  ;;  %v145_v41 = vlaneseq }
  0x1e   :  { %v114_v55 = vld [vmem:[%s18154_s23 + $0x198] sm:$0xff]  ;;  %v14037_v56 = vpack.c.bf16 %v109_v49, %v107_v48  ;;  %v111_v60 = vld [vmem:[%s18154_s23 + $0x180] sm:$0xff]  ;;  %v113_v61 = vld [vmem:[%s18154_s23 + $0x190] sm:$0xff] }
  0x1f   :  { %v14040_v57 = vpack.c.bf16 %v114_v55, %v112_v54  ;;  %v116_v62 = vld [vmem:[%s18154_s23 + $0x1a8] sm:$0xff]  ;;  %v118_v63 = vld [vmem:[%s18154_s23 + $0x1b8] sm:$0xff]  ;;  %v14055_v2 = vpack.c.bf16 %v113_v61, %v111_v60  ;;  %v115_v6 = vld [vmem:[%s18154_s23 + $0x1a0] sm:$0xff] }
  0x20   :  { %11801 = vmatpush1.bf16.msra.mxu0 %v13847_v38  ;;  %v14058_v5 = vpack.c.bf16 %v118_v63, %v116_v62  ;;  %v117_v7 = vld [vmem:[%s18154_s23 + $0x1b0] sm:$0xff]  ;;  %v120_v12 = vld [vmem:[%s18154_s23 + $0x1c8] sm:$0xff]  ;;  %v122_v13 = vld [vmem:[%s18154_s23 + $0x1d8] sm:$0xff] }
  0x21   :  { %11803 = vmatprep.subr.bf16.mxu0 %v13850_v39  ;;  %v14073_v16 = vpack.c.bf16 %v117_v7, %v115_v6  ;;  %v14076_v17 = vpack.c.bf16 %v122_v13, %v120_v12  ;;  %v119_v22 = vld [vmem:[%s18154_s23 + $0x1c0] sm:$0xff]  ;;  %v121_v23 = vld [vmem:[%s18154_s23 + $0x1d0] sm:$0xff]  ;;  %v124_v24 = vld [vmem:[%s18154_s23 + $0x1e8] sm:$0xff] }
  0x22   :  { %v126_v25 = vld [vmem:[%s18154_s23 + $0x1f8] sm:$0xff]  ;;  %v14091_v30 = vpack.c.bf16 %v121_v23, %v119_v22  ;;  %v123_v34 = vld [vmem:[%s18154_s23 + $0x1e0] sm:$0xff]  ;;  %v125_v35 = vld [vmem:[%s18154_s23 + $0x1f0] sm:$0xff] }
  0x23   :  { %v14094_v31 = vpack.c.bf16 %v126_v25, %v124_v24  ;;  %v14103_v40 = vpack.c.bf16 %v125_v35, %v123_v34  ;;  %v143_v43 = vld [vmem:[%s18159_s1] sm:$0x3] }
  0x24   :  { %11805 = vmatpush1.bf16.msra.mxu0 %v13865_v44 }
  0x25   :  { %11807 = vmatprep.subr.bf16.mxu0 %v13868_v45 }
  0x28   :  { %11809 = vmatpush1.bf16.msra.mxu0 %v13892_v52 }
  0x29   :  { %11811 = vmatprep.subr.bf16.mxu0 %v13895_v53 }
  0x2c   :  { %11813 = vmatpush1.bf16.msra.mxu0 %v13911_v58 }
  0x2d   :  { %11815 = vmatprep.subr.bf16.mxu0 %v13914_v59 }
  0x30   :  { %11817 = vmatpush1.bf16.msra.mxu0 %v13929_v0 }
  0x31   :  { %11819 = vmatprep.subr.bf16.mxu0 %v13932_v1 }
  0x34   :  { %11821 = vmatpush1.bf16.msra.mxu0 %v13947_v10 }
  0x35   :  { %11823 = vmatprep.subr.bf16.mxu0 %v13950_v11 }
  0x38   :  { %11825 = vmatpush1.bf16.msra.mxu0 %v13965_v18 }
  0x39   :  { %11827 = vmatprep.subr.bf16.mxu0 %v13968_v19 }
  0x3c   :  { %11829 = vmatpush1.bf16.msra.mxu0 %v13983_v28 }
  0x3d   :  { %11831 = vmatprep.subr.bf16.mxu0 %v13986_v29 }
  0x40   :  { %11833 = vmatpush1.bf16.msra.mxu0 %v14001_v36 }
  0x41   :  { %11835 = vmatprep.subr.bf16.mxu0 %v14004_v37 }
  0x44   :  { %11837 = vmatpush1.bf16.msra.mxu0 %v14019_v46 }
  0x45   :  { %11839 = vmatprep.subr.bf16.mxu0 %v14022_v47 }
  0x48   :  { %11841 = vmatpush1.bf16.msra.mxu0 %v14037_v56 }
  0x49   :  { %11843 = vmatprep.subr.bf16.mxu0 %v14040_v57 }
  0x4c   :  { %11845 = vmatpush1.bf16.msra.mxu0 %v14055_v2 }
  0x4d   :  { %11847 = vmatprep.subr.bf16.mxu0 %v14058_v5 }
  0x50   :  { %11849 = vmatpush1.bf16.msra.mxu0 %v14073_v16 }
  0x51   :  { %11851 = vmatprep.subr.bf16.mxu0 %v14076_v17 }
  0x54   :  { %11853 = vmatpush1.bf16.msra.mxu0 %v14091_v30 }
  0x55   :  { %11855 = vmatprep.subr.bf16.mxu0 %v14094_v31 }
  0x58   :  { %11857 = vmatpush1.bf16.msra.mxu0 %v14103_v40 }
  0x59   :  { %11939 = vmatprep.subr.bf16.mxu0 %v13736_v4 }
  0x5b   :  { %307 = vmatmul.mubr.f32.vlgmr.msra.gmra.mrb[0].mxu0 %v13885_v50  ;;  %v14118_v50 = vshrl.u32 %v145_v41, 7 }
  0x5c   :  { %11941 = vmatpush1.bf16.msra.mxu0 %v13747_v8  ;;  %608 = vmatprep.mubr.f32.mxu0 %v18133_v3 }
  0x5d   :  { %11943 = vmatprep.subr.bf16.mxu0 %v13749_v9  ;;  %18157 = vst [vmem:[#allocation5_spill] sm:$0xff] %v14118_v50  ;;  %v14121_v42 = vsub.s32 1, %v14118_v50  ;;  %v14132_v61 = vsub.s32 0, %v14118_v50 }
  0x5f   :  { %18158 = vst [vmem:[#allocation6_spill] sm:$0xff] %v14121_v42  ;;  %v14127_v48 = vrot.slane %v143_v43, %v14121_v42  ;;  %v14135_v62 = vrot.slane %v143_v43, %v14132_v61 }
  0x60   :  { %11945 = vmatpush1.bf16.msra.mxu0 %v13766_v14 }
  0x61   :  { %11947 = vmatprep.subr.bf16.mxu0 %v13770_v15  ;;  %18160 = vst [vmem:[#allocation7_spill] sm:$0xff] %v14127_v48 }
  0x64   :  { %11949 = vmatpush1.bf16.msra.mxu0 %v13786_v20 }
  0x65   :  { %11951 = vmatprep.subr.bf16.mxu0 %v13790_v21 }
  0x68   :  { %11953 = vmatpush1.bf16.msra.mxu0 %v13806_v26 }
  0x69   :  { %11955 = vmatprep.subr.bf16.mxu0 %v13810_v27 }
 0x12e   :  { %v308_v49 = vpop.f32.mrb[0].mxu0 }
 0x12f   :  { %v310_v54 = vpop.f32.mrb[1].mxu0  ;;  %v313_v63 = vadd.f32 %v308_v49, %v14135_v62 }
 0x130   :  { %v314_v55 = vadd.f32 %v310_v54, %v14127_v48  ;;  %v10178_v54 = vld.sshfl [vmem:[%s18155_s2 + $0x4] sm:$0x33 pattern:$0x76325410] }
 0x131   :  { %v10174_v6 = vmul.f32 -1.442695, %v313_v63 }
 0x132   :  { %13474 = vtanh.f32 %v314_v55  ;;  %v10175_v41 = vmul.f32 -1.442695, %v314_v55 }
 0x133   :  { %13476 = vpow2.f32 %v10174_v6  ;;  %v431_v6 = vcombine.high %v10178_v54, %v10178_v54 }
 0x13c   :  { %v13475_v60 = vpop.eup %13474 }
 0x13d   :  { %330 = vrot.lane.b32.xlu0 %v13475_v60, %s13622_s22  ;;  %v13477_v7 = vpop.eup %13476 }
 0x13e   :  { %v321_v12 = vadd.f32 1.0, %v13477_v7 }
 0x140   :  { %13478 = vrcp.f32 %v321_v12 }
 0x14a   :  { %v13479_v13 = vpop.eup %13478 }
 0x14b   :  { %v328_v24 = vmul.f32 0.0, %v13479_v13 }
 0x1af   :  { %v331_v22 = vpop.permute.xlu0 %330 }
 0x1b0   :  { %v333_v23 = vmul.f32 %v13479_v13, %v331_v22 }
 0x1b2   :  { %335 = vrot.lane.b32.xlu0 %v333_v23, %s13622_s22 }
 0x224   :  { %v336_v25 = vpop.permute.xlu0 %335 }
 0x225   :  { %v14139_v34 = vadd.f32 %v336_v25, %v328_v24 }
 0x227   :  { %13480 = vtanh.f32 %v14139_v34 }
 0x228   :  { %13482 = vpow2.f32 %v10175_v41 }
 0x231   :  { %v13481_v35 = vpop.eup %13480 }
 0x232   :  { %341 = vrot.lane.b32.xlu1 %v13481_v35, %s13622_s22  ;;  %v13483_v43 = vpop.eup %13482 }
 0x233   :  { %v322_v49 = vadd.f32 1.0, %v13483_v43  ;;  %v10183_v43 = vld.sshfl [vmem:[%s18155_s2 + $0x8] sm:$0x33 pattern:$0x76325410] }
 0x235   :  { %13484 = vrcp.f32 %v322_v49 }
 0x23f   :  { %v13485_v60 = vpop.eup %13484 }
 0x2a4   :  { %v342_v63 = vpop.permute.xlu1 %341 }
 0x2a5   :  { %v344_v7 = vmul.f32 %v13485_v60, %v342_v63  ;;  %v940_v63 = vld [vmem:[%s18114_s5 + $0x8] sm:$0xff] }
 0x2a7   :  { %346 = vst.msk [vmem:[#allocation2] sm:$0x3] %vm345_vm0, %v344_v7  ;;  %10177 = vmatmul.mubr.msk.f32.vlgmr.msra.gmra.mrb[0].mxu1 %vm156_vm1, %v344_v7 }
 0x2a8   :  { %11877 = vmatpush1.bf16.msra.mxu1 %v13826_v32  ;;  %498 = vmatprep.mubr.f32.mxu1 %v431_v6  ;;  %v942_v6 = vld [vmem:[%s18114_s5 + $0x18] sm:$0xff] }
 0x2a9   :  { %11879 = vmatprep.subr.bf16.mxu1 %v13830_v33  ;;  %v14239_v7 = vpack.c.bf16 %v942_v6, %v940_v63 }
 0x2ac   :  { %11881 = vmatpush1.bf16.msra.mxu1 %v13847_v38 }
 0x2ad   :  { %11883 = vmatprep.subr.bf16.mxu1 %v13850_v39 }
 0x2b0   :  { %11885 = vmatpush1.bf16.msra.mxu1 %v13865_v44 }
 0x2b1   :  { %11887 = vmatprep.subr.bf16.mxu1 %v13868_v45 }
 0x2b4   :  { %11889 = vmatpush1.bf16.msra.mxu1 %v13892_v52 }
 0x2b5   :  { %11891 = vmatprep.subr.bf16.mxu1 %v13895_v53 }
 0x2b8   :  { %11893 = vmatpush1.bf16.msra.mxu1 %v13911_v58 }
 0x2b9   :  { %11895 = vmatprep.subr.bf16.mxu1 %v13914_v59 }
 0x2bc   :  { %11897 = vmatpush1.bf16.msra.mxu1 %v13929_v0 }
 0x2bd   :  { %11899 = vmatprep.subr.bf16.mxu1 %v13932_v1 }
 0x2c0   :  { %11901 = vmatpush1.bf16.msra.mxu1 %v13947_v10 }
 0x2c1   :  { %11903 = vmatprep.subr.bf16.mxu1 %v13950_v11 }
 0x2c4   :  { %11905 = vmatpush1.bf16.msra.mxu1 %v13965_v18 }
 0x2c5   :  { %11907 = vmatprep.subr.bf16.mxu1 %v13968_v19 }
 0x2c8   :  { %11909 = vmatpush1.bf16.msra.mxu1 %v13983_v28 }
 0x2c9   :  { %11911 = vmatprep.subr.bf16.mxu1 %v13986_v29 }
 0x2cc   :  { %11913 = vmatpush1.bf16.msra.mxu1 %v14001_v36 }
 0x2cd   :  { %11915 = vmatprep.subr.bf16.mxu1 %v14004_v37 }
 0x2d0   :  { %11917 = vmatpush1.bf16.msra.mxu1 %v14019_v46 }
 0x2d1   :  { %11919 = vmatprep.subr.bf16.mxu1 %v14022_v47 }
 0x2d4   :  { %11921 = vmatpush1.bf16.msra.mxu1 %v14037_v56 }
 0x2d5   :  { %11923 = vmatprep.subr.bf16.mxu1 %v14040_v57 }
 0x2d8   :  { %11925 = vmatpush1.bf16.msra.mxu1 %v14055_v2 }
 0x2d9   :  { %11927 = vmatprep.subr.bf16.mxu1 %v14058_v5 }
 0x2dc   :  { %11929 = vmatpush1.bf16.msra.mxu1 %v14073_v16 }
 0x2dd   :  { %11931 = vmatprep.subr.bf16.mxu1 %v14076_v17 }
 0x2e0   :  { %11933 = vmatpush1.bf16.msra.mxu1 %v14091_v30 }
 0x2e1   :  { %11935 = vmatprep.subr.bf16.mxu1 %v14094_v31 }
 0x2e4   :  { %11937 = vmatpush1.bf16.msra.mxu1 %v14103_v40 }
 0x2e5   :  { %12019 = vmatprep.subr.bf16.mxu1 %v13736_v4 }
 0x2e7   :  { %499 = vmatmul.mubr.f32.vlgmr.msra.gmra.mrb[0].mxu1 %v10178_v54 }
 0x2e8   :  { %12021 = vmatpush1.bf16.msra.mxu1 %v13747_v8  ;;  %800 = vmatprep.mubr.f32.mxu1 %v18133_v3 }
 0x2e9   :  { %12023 = vmatprep.subr.bf16.mxu1 %v13749_v9 }
 0x2ec   :  { %12025 = vmatpush1.bf16.msra.mxu1 %v13766_v14 }
 0x2ed   :  { %12027 = vmatprep.subr.bf16.mxu1 %v13770_v15 }
 0x2f0   :  { %12029 = vmatpush1.bf16.msra.mxu1 %v13786_v20 }
 0x2f1   :  { %12031 = vmatprep.subr.bf16.mxu1 %v13790_v21 }
 0x2f4   :  { %12033 = vmatpush1.bf16.msra.mxu1 %v13806_v26 }
 0x2f5   :  { %12035 = vmatprep.subr.bf16.mxu1 %v13810_v27 }
 0x3ba   :  { %v500_v4 = vpop.f32.mrb[0].mxu1 }
 0x3bb   :  { %v502_v55 = vpop.f32.mrb[1].mxu1  ;;  %v505_v9 = vadd.f32 %v500_v4, %v14135_v62  ;;  %v939_v4 = vld [vmem:[%s18114_s5] sm:$0xff] }
 0x3bc   :  { %v506_v8 = vadd.f32 %v502_v55, %v14127_v48  ;;  %v941_v55 = vld [vmem:[%s18114_s5 + $0x10] sm:$0xff] }
 0x3bd   :  { %v10179_v14 = vmul.f32 -1.442695, %v505_v9  ;;  %v14254_v9 = vpack.c.bf16 %v941_v55, %v939_v4  ;;  %v923_v4 = vld [vmem:[%s18115_s4] sm:$0xff]  ;;  %v925_v55 = vld [vmem:[%s18115_s4 + $0x10] sm:$0xff] }
 0x3be   :  { %13486 = vtanh.f32 %v506_v8  ;;  %v10180_v25 = vmul.f32 -1.442695, %v506_v8  ;;  %v944_v8 = vld [vmem:[%s18114_s5 + $0x28] sm:$0xff] }
 0x3bf   :  { %13488 = vpow2.f32 %v10179_v14 }
 0x3c8   :  { %v13487_v12 = vpop.eup %13486 }
 0x3c9   :  { %522 = vrot.lane.b32.xlu1 %v13487_v12, %s13622_s22  ;;  %v13489_v15 = vpop.eup %13488  ;;  %v946_v12 = vld [vmem:[%s18114_s5 + $0x38] sm:$0xff] }
 0x3ca   :  { %v513_v20 = vadd.f32 1.0, %v13489_v15  ;;  %v14257_v14 = vpack.c.bf16 %v946_v12, %v944_v8  ;;  %v943_v15 = vld [vmem:[%s18114_s5 + $0x20] sm:$0xff]  ;;  %v928_v8 = vld [vmem:[%s18115_s4 + $0x28] sm:$0xff]  ;;  %v930_v12 = vld [vmem:[%s18115_s4 + $0x38] sm:$0xff] }
 0x3cc   :  { %13490 = vrcp.f32 %v513_v20  ;;  %v945_v20 = vld [vmem:[%s18114_s5 + $0x30] sm:$0xff] }
 0x3d6   :  { %v13491_v21 = vpop.eup %13490 }
 0x3d7   :  { %v520_v27 = vmul.f32 %v13491_v21, %v14139_v34  ;;  %v623_v34 = vcombine.high %v10183_v43, %v10183_v43 }
 0x43b   :  { %v523_v13 = vpop.permute.xlu1 %522 }
 0x43c   :  { %v525_v26 = vmul.f32 %v13491_v21, %v523_v13  ;;  %v948_v21 = vld [vmem:[%s18114_s5 + $0x48] sm:$0xff]  ;;  %v950_v13 = vld [vmem:[%s18114_s5 + $0x58] sm:$0xff] }
 0x43e   :  { %527 = vrot.lane.b32.xlu0 %v525_v26, %s13622_s22  ;;  %v14272_v26 = vpack.c.bf16 %v945_v20, %v943_v15  ;;  %v14327_v15 = vpack.c.bf16 %v925_v55, %v923_v4  ;;  %v14330_v20 = vpack.c.bf16 %v930_v12, %v928_v8  ;;  %v935_v8 = vld [vmem:[%s18115_s4 + $0x60] sm:$0xff]  ;;  %v937_v12 = vld [vmem:[%s18115_s4 + $0x70] sm:$0xff] }
 0x4b0   :  { %v528_v22 = vpop.permute.xlu0 %527 }
 0x4b1   :  { %v14194_v23 = vadd.f32 %v528_v22, %v520_v27  ;;  %v14276_v27 = vpack.c.bf16 %v950_v13, %v948_v21  ;;  %v947_v22 = vld [vmem:[%s18114_s5 + $0x40] sm:$0xff]  ;;  %v929_v13 = vld [vmem:[%s18115_s4 + $0x30] sm:$0xff] }
 0x4b2   :  { %v927_v21 = vld [vmem:[%s18115_s4 + $0x20] sm:$0xff] }
 0x4b3   :  { %13492 = vtanh.f32 %v14194_v23 }
 0x4b4   :  { %13494 = vpow2.f32 %v10180_v25  ;;  %v952_v25 = vld [vmem:[%s18114_s5 + $0x68] sm:$0xff] }
 0x4bd   :  { %v13493_v24 = vpop.eup %13492 }
 0x4be   :  { %533 = vrot.lane.b32.xlu1 %v13493_v24, %s13622_s22  ;;  %v13495_v35 = vpop.eup %13494  ;;  %v949_v24 = vld [vmem:[%s18114_s5 + $0x50] sm:$0xff] }
 0x4bf   :  { %v514_v41 = vadd.f32 1.0, %v13495_v35  ;;  %v954_v35 = vld [vmem:[%s18114_s5 + $0x78] sm:$0xff] }
 0x4c1   :  { %13496 = vrcp.f32 %v514_v41  ;;  %v14291_v41 = vpack.c.bf16 %v949_v24, %v947_v22  ;;  %v932_v22 = vld [vmem:[%s18115_s4 + $0x48] sm:$0xff]  ;;  %v934_v24 = vld [vmem:[%s18115_s4 + $0x58] sm:$0xff] }
 0x4cb   :  { %v13497_v49 = vpop.eup %13496 }
 0x530   :  { %v534_v54 = vpop.permute.xlu1 %533 }
 0x531   :  { %v536_v60 = vmul.f32 %v13497_v49, %v534_v54  ;;  %v951_v49 = vld [vmem:[%s18114_s5 + $0x60] sm:$0xff]  ;;  %v953_v54 = vld [vmem:[%s18114_s5 + $0x70] sm:$0xff] }
 0x532   :  { %v14309_v63 = vpack.c.bf16 %v953_v54, %v951_v49  ;;  %v931_v49 = vld [vmem:[%s18115_s4 + $0x40] sm:$0xff]  ;;  %v933_v54 = vld [vmem:[%s18115_s4 + $0x50] sm:$0xff] }
 0x533   :  { %538 = vst.msk [vmem:[#allocation2 + $0x2] sm:$0x3] %vm345_vm0, %v536_v60  ;;  %10182 = vmatmul.mubr.msk.f32.vlgmr.msra.gmra.mrb[2].mxu0 %vm156_vm1, %v536_v60  ;;  %v926_v60 = vld [vmem:[%s18115_s4 + $0x18] sm:$0xff]  ;;  %v14365_v4 = vpack.c.bf16 %v933_v54, %v931_v49 }
 0x534   :  { %11957 = vmatpush1.bf16.msra.mxu0 %v13826_v32  ;;  %690 = vmatprep.mubr.f32.mxu0 %v623_v34  ;;  %v924_v34 = vld [vmem:[%s18115_s4 + $0x8] sm:$0xff] }
 0x535   :  { %11959 = vmatprep.subr.bf16.mxu0 %v13830_v33  ;;  %v14312_v6 = vpack.c.bf16 %v926_v60, %v924_v34  ;;  %v936_v34 = vld [vmem:[%s18115_s4 + $0x68] sm:$0xff]  ;;  %v938_v60 = vld [vmem:[%s18115_s4 + $0x78] sm:$0xff]  ;;  %18161 = vst [vmem:[#allocation8_spill] sm:$0xff] %v14365_v4 }
 0x536   :  { %v14368_v55 = vpack.c.bf16 %v938_v60, %v936_v34  ;;  %v955_v34 = vld [vmem:[%s18116_s6] sm:$0x3] }
 0x537   :  { %v14398_v60 = vrot.slane %v955_v34, %v14121_v42 }
 0x538   :  { %11961 = vmatpush1.bf16.msra.mxu0 %v13847_v38  ;;  %18162 = vst [vmem:[#allocation9_spill] sm:$0xff] %v14368_v55 }
 0x539   :  { %11963 = vmatprep.subr.bf16.mxu0 %v13850_v39  ;;  %18164 = vst [vmem:[#allocation11_spill] sm:$0xff] %v14398_v60 }
 0x53c   :  { %11965 = vmatpush1.bf16.msra.mxu0 %v13865_v44 }
 0x53d   :  { %11967 = vmatprep.subr.bf16.mxu0 %v13868_v45 }
 0x540   :  { %11969 = vmatpush1.bf16.msra.mxu0 %v13892_v52 }
 0x541   :  { %11971 = vmatprep.subr.bf16.mxu0 %v13895_v53 }
 0x544   :  { %11973 = vmatpush1.bf16.msra.mxu0 %v13911_v58 }
 0x545   :  { %11975 = vmatprep.subr.bf16.mxu0 %v13914_v59 }
 0x548   :  { %11977 = vmatpush1.bf16.msra.mxu0 %v13929_v0 }
 0x549   :  { %11979 = vmatprep.subr.bf16.mxu0 %v13932_v1 }
 0x54c   :  { %11981 = vmatpush1.bf16.msra.mxu0 %v13947_v10 }
 0x54d   :  { %11983 = vmatprep.subr.bf16.mxu0 %v13950_v11 }
 0x550   :  { %11985 = vmatpush1.bf16.msra.mxu0 %v13965_v18 }
 0x551   :  { %11987 = vmatprep.subr.bf16.mxu0 %v13968_v19 }
 0x554   :  { %11989 = vmatpush1.bf16.msra.mxu0 %v13983_v28 }
 0x555   :  { %11991 = vmatprep.subr.bf16.mxu0 %v13986_v29 }
 0x558   :  { %11993 = vmatpush1.bf16.msra.mxu0 %v14001_v36 }
 0x559   :  { %11995 = vmatprep.subr.bf16.mxu0 %v14004_v37 }
 0x55c   :  { %11997 = vmatpush1.bf16.msra.mxu0 %v14019_v46 }
 0x55d   :  { %11999 = vmatprep.subr.bf16.mxu0 %v14022_v47 }
 0x560   :  { %12001 = vmatpush1.bf16.msra.mxu0 %v14037_v56 }
 0x561   :  { %12003 = vmatprep.subr.bf16.mxu0 %v14040_v57 }
 0x564   :  { %12005 = vmatpush1.bf16.msra.mxu0 %v14055_v2 }
 0x565   :  { %12007 = vmatprep.subr.bf16.mxu0 %v14058_v5 }
 0x568   :  { %12009 = vmatpush1.bf16.msra.mxu0 %v14073_v16 }
 0x569   :  { %12011 = vmatprep.subr.bf16.mxu0 %v14076_v17 }
 0x56c   :  { %12013 = vmatpush1.bf16.msra.mxu0 %v14091_v30 }
 0x56d   :  { %12015 = vmatprep.subr.bf16.mxu0 %v14094_v31 }
 0x570   :  { %12017 = vmatpush1.bf16.msra.mxu0 %v14103_v40 }
 0x571   :  { %12099 = vmatprep.subr.bf16.mxu0 %v14239_v7 }
 0x573   :  { %691 = vmatmul.mubr.f32.vlgmr.msra.gmra.mrb[2].mxu0 %v10183_v43  ;;  %v14294_v43 = vpack.c.bf16 %v954_v35, %v952_v25  ;;  %v14346_v25 = vpack.c.bf16 %v929_v13, %v927_v21  ;;  %v14350_v35 = vpack.c.bf16 %v934_v24, %v932_v22  ;;  %v14377_v21 = vpack.c.bf16 %v937_v12, %v935_v8  ;;  %v967_v13 = vld [vmem:[#allocation2] sm:$0x3] }
 0x574   :  { %12101 = vmatpush1.bf16.msra.mxu0 %v14254_v9  ;;  %1032 = vmatprep.mubr.f32.mxu0 %v18133_v3 }
 0x575   :  { %12103 = vmatprep.subr.bf16.mxu0 %v14257_v14  ;;  %18163 = vst [vmem:[#allocation10_spill] sm:$0xff] %v14377_v21 }
 0x578   :  { %12105 = vmatpush1.bf16.msra.mxu0 %v14272_v26 }
 0x579   :  { %12107 = vmatprep.subr.bf16.mxu0 %v14276_v27 }
 0x57c   :  { %12109 = vmatpush1.bf16.msra.mxu0 %v14291_v41 }
 0x57d   :  { %12111 = vmatprep.subr.bf16.mxu0 %v14294_v43 }
 0x580   :  { %12113 = vmatpush1.bf16.msra.mxu0 %v14309_v63 }
 0x581   :  { %12115 = vmatprep.subr.bf16.mxu0 %v14312_v6 }
 0x583   :  { %1033 = vmatmul.mubr.f32.vlgmr.msra.gmra.mrb[4].mxu0 %v18133_v3 }
 0x584   :  { %12117 = vmatpush1.bf16.msra.mxu0 %v14327_v15  ;;  %1106 = vmatprep.mubr.f32.mxu0 %v18133_v3 }
 0x585   :  { %12119 = vmatprep.subr.bf16.mxu0 %v14330_v20 }
 0x588   :  { %12121 = vmatpush1.bf16.msra.mxu0 %v14346_v25 }
 0x589   :  { %12123 = vmatprep.subr.bf16.mxu0 %v14350_v35 }
 0x58c   :  { %12125 = vmatpush1.bf16.msra.mxu0 %v14365_v4 }
 0x58d   :  { %12127 = vmatprep.subr.bf16.mxu0 %v14368_v55 }
 0x590   :  { %12129 = vmatpush1.bf16.msra.mxu0 %v14377_v21 }
 0x591   :  { %12163 = vmatprep.subr.bf16.mxu0 %v14239_v7 }
 0x593   :  { %10191 = vmatmul.mubr.msk.f32.vlgmr.msra.gmra.mrb[4].mxu0 %vm156_vm1, %v967_v13 }
 0x594   :  { %12165 = vmatpush1.bf16.msra.mxu0 %v14254_v9  ;;  %1397 = vmatprep.mubr.f32.mxu0 %v18133_v3 }
 0x595   :  { %12167 = vmatprep.subr.bf16.mxu0 %v14257_v14 }
 0x598   :  { %12169 = vmatpush1.bf16.msra.mxu0 %v14272_v26 }
 0x599   :  { %12171 = vmatprep.subr.bf16.mxu0 %v14276_v27 }
 0x59c   :  { %12173 = vmatpush1.bf16.msra.mxu0 %v14291_v41 }
 0x59d   :  { %12175 = vmatprep.subr.bf16.mxu0 %v14294_v43 }
 0x5a0   :  { %12177 = vmatpush1.bf16.msra.mxu0 %v14309_v63 }
 0x5a1   :  { %12179 = vmatprep.subr.bf16.mxu0 %v14312_v6 }
 0x646   :  { %v692_v22 = vpop.f32.mrb[2].mxu0 }
 0x647   :  { %v694_v24 = vpop.f32.mrb[3].mxu0 }
 0x648   :  { %v698_v49 = vadd.f32 %v694_v24, %v14127_v48  ;;  %v697_v24 = vadd.f32 %v692_v22, %v14135_v62  ;;  %v14404_v48 = vrot.slane %v955_v34, %v14132_v61 }
 0x64a   :  { %13498 = vtanh.f32 %v698_v49  ;;  %v10184_v50 = vmul.f32 -1.442695, %v697_v24 }
 0x654   :  { %v13499_v54 = vpop.eup %13498 }
 0x655   :  { %714 = vrot.lane.b32.xlu0 %v13499_v54, %s13622_s22 }
 0x666   :  { %v1108_v8 = vpop.f32.mrb[4].mxu0 }
 0x667   :  { %v1110_v12 = vpop.f32.mrb[5].mxu0  ;;  %v1113_v42 = vadd.f32 %v1108_v8, %v14404_v48 }
 0x668   :  { %v1114_v13 = vadd.f32 %v1110_v12, %v14398_v60 }
 0x669   :  { %v10192_v4 = vmul.f32 -1.442695, %v1113_v42 }
 0x66a   :  { %13500 = vtanh.f32 %v1114_v13 }
 0x66b   :  { %13502 = vpow2.f32 %v10184_v50 }
 0x674   :  { %v13501_v3 = vpop.eup %13500 }
 0x675   :  { %1130 = vrot.lane.b32.xlu0 %v13501_v3, %s13622_s22  ;;  %v13503_v54 = vpop.eup %13502 }
 0x676   :  { %v705_v51 = vadd.f32 1.0, %v13503_v54 }
 0x678   :  { %13504 = vrcp.f32 %v705_v51 }
 0x679   :  { %13506 = vpow2.f32 %v10192_v4 }
 0x682   :  { %v13505_v21 = vpop.eup %13504 }
 0x683   :  { %v13507_v3 = vpop.eup %13506  ;;  %v712_v51 = vmul.f32 %v13505_v21, %v14194_v23 }
 0x684   :  { %v1121_v60 = vadd.f32 1.0, %v13507_v3  ;;  %v10188_v3 = vld.sshfl [vmem:[%s18155_s2 + $0xc] sm:$0x33 pattern:$0x76325410] }
 0x686   :  { %13508 = vrcp.f32 %v1121_v60 }
 0x690   :  { %v13509_v22 = vpop.eup %13508 }
 0x6c7   :  { %v715_v55 = vpop.permute.xlu0 %714 }
 0x6c8   :  { %v717_v12 = vmul.f32 %v13505_v21, %v715_v55  ;;  %v1128_v55 = vmul.f32 0.0, %v13509_v22 }
 0x6ca   :  { %719 = vrot.lane.b32.xlu1 %v717_v12, %s13622_s22  ;;  %v10185_v12 = vmul.f32 -1.442695, %v698_v49 }
 0x6e7   :  { %v1131_v50 = vpop.permute.xlu0 %1130 }
 0x6e8   :  { %v1133_v24 = vmul.f32 %v13509_v22, %v1131_v50  ;;  %v815_v22 = vcombine.high %v10188_v3, %v10188_v3 }
 0x6ea   :  { %1135 = vrot.lane.b32.xlu0 %v1133_v24, %s13622_s22 }
 0x73c   :  { %v720_v34 = vpop.permute.xlu1 %719 }
 0x73d   :  { %v14410_v54 = vadd.f32 %v720_v34, %v712_v51  ;;  %v10193_v51 = vmul.f32 -1.442695, %v1114_v13 }
 0x73f   :  { %13510 = vtanh.f32 %v14410_v54 }
 0x749   :  { %v13511_v42 = vpop.eup %13510 }
 0x74a   :  { %725 = vrot.lane.b32.xlu1 %v13511_v42, %s13622_s22  ;;  %v1716_v42 = vld [vmem:[%s18117_s8 + $0x28] sm:$0xff] }
 0x75c   :  { %v1136_v4 = vpop.permute.xlu0 %1135 }
 0x75d   :  { %v14414_v8 = vadd.f32 %v1136_v4, %v1128_v55  ;;  %v1718_v55 = vld [vmem:[%s18117_s8 + $0x38] sm:$0xff] }
 0x75f   :  { %13512 = vtanh.f32 %v14414_v8 }
 0x760   :  { %13514 = vpow2.f32 %v10185_v12  ;;  %v1717_v12 = vld [vmem:[%s18117_s8 + $0x30] sm:$0xff] }
 0x769   :  { %v13513_v60 = vpop.eup %13512 }
 0x76a   :  { %1141 = vrot.lane.b32.xlu1 %v13513_v60, %s13622_s22  ;;  %v13515_v23 = vpop.eup %13514  ;;  %v1715_v60 = vld [vmem:[%s18117_s8 + $0x20] sm:$0xff] }
 0x76b   :  { %v706_v21 = vadd.f32 1.0, %v13515_v23 }
 0x76d   :  { %13516 = vrcp.f32 %v706_v21  ;;  %v1720_v21 = vld [vmem:[%s18117_s8 + $0x48] sm:$0xff] }
 0x76e   :  { %13518 = vpow2.f32 %v10193_v51  ;;  %v1721_v51 = vld [vmem:[%s18117_s8 + $0x50] sm:$0xff] }
 0x777   :  { %v13517_v50 = vpop.eup %13516 }
 0x778   :  { %v13519_v49 = vpop.eup %13518 }
 0x779   :  { %v1122_v13 = vadd.f32 1.0, %v13519_v49  ;;  %v1726_v49 = vld [vmem:[%s18117_s8 + $0x78] sm:$0xff] }
 0x77b   :  { %13520 = vrcp.f32 %v1122_v13 }
 0x7bc   :  { %v726_v24 = vpop.permute.xlu1 %725 }
 0x7bd   :  { %v728_v34 = vmul.f32 %v13517_v50, %v726_v24  ;;  %v14550_v50 = vpack.c.bf16 %v1717_v12, %v1715_v60 }
 0x7bf   :  { %730 = vst.msk [vmem:[#allocation2 + $0x4] sm:$0x3] %vm345_vm0, %v728_v34  ;;  %10187 = vmatmul.mubr.msk.f32.vlgmr.msra.gmra.mrb[2].mxu1 %vm156_vm1, %v728_v34  ;;  %v1724_v34 = vld [vmem:[%s18117_s8 + $0x68] sm:$0xff] }
 0x7c0   :  { %12037 = vmatpush1.bf16.msra.mxu1 %v13826_v32  ;;  %882 = vmatprep.mubr.f32.mxu1 %v815_v22  ;;  %v13521_v32 = vpop.eup %13520  ;;  %v1719_v22 = vld [vmem:[%s18117_s8 + $0x40] sm:$0xff] }
 0x7c1   :  { %12039 = vmatprep.subr.bf16.mxu1 %v13830_v33  ;;  %v14569_v13 = vpack.c.bf16 %v1721_v51, %v1719_v22 }
 0x7c4   :  { %12041 = vmatpush1.bf16.msra.mxu1 %v13847_v38 }
 0x7c5   :  { %12043 = vmatprep.subr.bf16.mxu1 %v13850_v39  ;;  %v18165_v39 = vmov 0.0  }
 0x7c6   :  { %v1329_v23 = vld [vmem:[#allocation2 + $0x4] sm:$0x3] }
 0x7c8   :  { %12045 = vmatpush1.bf16.msra.mxu1 %v13865_v44  ;;  %v18166_v44 = vld [vmem:[#allocation8_spill] sm:$0xff] }
 0x7c9   :  { %12047 = vmatprep.subr.bf16.mxu1 %v13868_v45  ;;  %v18167_v45 = vld [vmem:[#allocation9_spill] sm:$0xff] }
 0x7cc   :  { %12049 = vmatpush1.bf16.msra.mxu1 %v13892_v52  ;;  %v18168_v52 = vld [vmem:[#allocation10_spill] sm:$0xff] }
 0x7cd   :  { %12051 = vmatprep.subr.bf16.mxu1 %v13895_v53  ;;  %v1146_v53 = vld [vmem:[#allocation2 + $0x2] sm:$0x3] }
 0x7d0   :  { %12053 = vmatpush1.bf16.msra.mxu1 %v13911_v58 }
 0x7d1   :  { %12055 = vmatprep.subr.bf16.mxu1 %v13914_v59 }
 0x7d4   :  { %12057 = vmatpush1.bf16.msra.mxu1 %v13929_v0 }
 0x7d5   :  { %12059 = vmatprep.subr.bf16.mxu1 %v13932_v1 }
 0x7d8   :  { %12061 = vmatpush1.bf16.msra.mxu1 %v13947_v10  ;;  %v18169_v10 = vld [vmem:[#allocation11_spill] sm:$0xff] }
 0x7d9   :  { %12063 = vmatprep.subr.bf16.mxu1 %v13950_v11 }
 0x7dc   :  { %12065 = vmatpush1.bf16.msra.mxu1 %v13965_v18  ;;  %v1142_v33 = vpop.permute.xlu1 %1141 }
 0x7dd   :  { %v1144_v38 = vmul.f32 %v13521_v32, %v1142_v33  ;;  %12067 = vmatprep.subr.bf16.mxu1 %v13968_v19  ;;  %v14572_v32 = vpack.c.bf16 %v1726_v49, %v1724_v34  ;;  %v1723_v33 = vld [vmem:[%s18117_s8 + $0x60] sm:$0xff] }
 0x7df   :  { %1145 = vst.msk [vmem:[#allocation3] sm:$0x3] %vm345_vm0, %v1144_v38 }
 0x7e0   :  { %12069 = vmatpush1.bf16.msra.mxu1 %v13983_v28 }
 0x7e1   :  { %12071 = vmatprep.subr.bf16.mxu1 %v13986_v29 }
 0x7e4   :  { %12073 = vmatpush1.bf16.msra.mxu1 %v14001_v36 }
 0x7e5   :  { %12075 = vmatprep.subr.bf16.mxu1 %v14004_v37 }
 0x7e8   :  { %12077 = vmatpush1.bf16.msra.mxu1 %v14019_v46 }
 0x7e9   :  { %12079 = vmatprep.subr.bf16.mxu1 %v14022_v47 }
 0x7ec   :  { %12081 = vmatpush1.bf16.msra.mxu1 %v14037_v56 }
 0x7ed   :  { %12083 = vmatprep.subr.bf16.mxu1 %v14040_v57 }
 0x7f0   :  { %12085 = vmatpush1.bf16.msra.mxu1 %v14055_v2 }
 0x7f1   :  { %12087 = vmatprep.subr.bf16.mxu1 %v14058_v5  ;;  %v18170_v5 = vld [vmem:[#allocation7_spill] sm:$0xff] }
 0x7f4   :  { %12089 = vmatpush1.bf16.msra.mxu1 %v14073_v16 }
 0x7f5   :  { %12091 = vmatprep.subr.bf16.mxu1 %v14076_v17 }
 0x7f8   :  { %12093 = vmatpush1.bf16.msra.mxu1 %v14091_v30 }
 0x7f9   :  { %12095 = vmatprep.subr.bf16.mxu1 %v14094_v31 }
 0x7fc   :  { %12097 = vmatpush1.bf16.msra.mxu1 %v14103_v40 }
 0x7fd   :  { %12131 = vmatprep.subr.bf16.mxu1 %v14239_v7 }
 0x7ff   :  { %883 = vmatmul.mubr.f32.vlgmr.msra.gmra.mrb[2].mxu1 %v10188_v3  ;;  %v1722_v3 = vld [vmem:[%s18117_s8 + $0x58] sm:$0xff] }
 0x800   :  { %12133 = vmatpush1.bf16.msra.mxu1 %v14254_v9  ;;  %1214 = vmatprep.mubr.f32.mxu1 %v18165_v39  ;;  %v14554_v24 = vpack.c.bf16 %v1722_v3, %v1720_v21  ;;  %v18171_v21 = vld [vmem:[#allocation6_spill] sm:$0xff] }
 0x801   :  { %12135 = vmatprep.subr.bf16.mxu1 %v14257_v14 }
 0x804   :  { %12137 = vmatpush1.bf16.msra.mxu1 %v14272_v26 }
 0x805   :  { %12139 = vmatprep.subr.bf16.mxu1 %v14276_v27 }
 0x808   :  { %12141 = vmatpush1.bf16.msra.mxu1 %v14291_v41 }
 0x809   :  { %12143 = vmatprep.subr.bf16.mxu1 %v14294_v43 }
 0x80c   :  { %12145 = vmatpush1.bf16.msra.mxu1 %v14309_v63 }
 0x80d   :  { %12147 = vmatprep.subr.bf16.mxu1 %v14312_v6 }
 0x80f   :  { %10194 = vmatmul.mubr.msk.f32.vlgmr.msra.gmra.mrb[4].mxu1 %vm156_vm1, %v1144_v38  ;;  %v1725_v38 = vld [vmem:[%s18117_s8 + $0x70] sm:$0xff] }
 0x810   :  { %12149 = vmatpush1.bf16.msra.mxu1 %v14327_v15  ;;  %1288 = vmatprep.mubr.f32.mxu1 %v18165_v39 }
 0x811   :  { %12151 = vmatprep.subr.bf16.mxu1 %v14330_v20 }
 0x814   :  { %12153 = vmatpush1.bf16.msra.mxu1 %v14346_v25 }
 0x815   :  { %12155 = vmatprep.subr.bf16.mxu1 %v14350_v35 }
 0x818   :  { %12157 = vmatpush1.bf16.msra.mxu1 %v18166_v44 }
 0x819   :  { %12159 = vmatprep.subr.bf16.mxu1 %v18167_v45 }
 0x81c   :  { %12161 = vmatpush1.bf16.msra.mxu1 %v18168_v52 }
 0x81d   :  { %12195 = vmatprep.subr.bf16.mxu1 %v14239_v7 }
 0x81f   :  { %10195 = vmatmul.mubr.msk.f32.vlgmr.msra.gmra.mrb[4].mxu1 %vm156_vm1, %v1146_v53  ;;  %v1696_v53 = vld [vmem:[%s18118_s7 + $0x8] sm:$0xff] }
 0x820   :  { %12197 = vmatpush1.bf16.msra.mxu1 %v14254_v9  ;;  %1580 = vmatprep.mubr.f32.mxu1 %v18165_v39 }
 0x821   :  { %12199 = vmatprep.subr.bf16.mxu1 %v14257_v14 }
 0x824   :  { %12201 = vmatpush1.bf16.msra.mxu1 %v14272_v26 }
 0x825   :  { %12203 = vmatprep.subr.bf16.mxu1 %v14276_v27  ;;  %v1712_v27 = vld [vmem:[%s18117_s8 + $0x8] sm:$0xff] }
 0x828   :  { %12205 = vmatpush1.bf16.msra.mxu1 %v14291_v41  ;;  %v1714_v41 = vld [vmem:[%s18117_s8 + $0x18] sm:$0xff] }
 0x829   :  { %12207 = vmatprep.subr.bf16.mxu1 %v14294_v43  ;;  %v14516_v43 = vpack.c.bf16 %v1714_v41, %v1712_v27  ;;  %v1739_v41 = vld [vmem:[#allocation3] sm:$0x3] }
 0x82c   :  { %12209 = vmatpush1.bf16.msra.mxu1 %v14309_v63  ;;  %v1711_v63 = vld [vmem:[%s18117_s8] sm:$0xff] }
 0x82d   :  { %12211 = vmatprep.subr.bf16.mxu1 %v14312_v6  ;;  %v1713_v6 = vld [vmem:[%s18117_s8 + $0x10] sm:$0xff] }
 0x82e   :  { %v14531_v4 = vpack.c.bf16 %v1713_v6, %v1711_v63 }
 0x8d2   :  { %v14485_v58 = vpop.f32.mrb[2].mxu1 }
 0x8d3   :  { %v886_v59 = vpop.f32.mrb[3].mxu1 }
 0x8d4   :  { %v14495_v16 = vadd.f32 %v886_v59, %v18170_v5  ;;  %v1698_v59 = vld [vmem:[%s18118_s7 + $0x18] sm:$0xff] }
 0x8f2   :  { %v1290_v0 = vpop.f32.mrb[4].mxu1 }
 0x8f3   :  { %v1292_v1 = vpop.f32.mrb[5].mxu1  ;;  %v1295_v19 = vadd.f32 %v1290_v0, %v14404_v48  ;;  %v14587_v0 = vpack.c.bf16 %v1725_v38, %v1723_v33 }
 0x8f4   :  { %v1296_v11 = vadd.f32 %v1292_v1, %v18169_v10  ;;  %v14590_v1 = vpack.c.bf16 %v1698_v59, %v1696_v53 }
 0x8f5   :  { %v10196_v28 = vmul.f32 -1.442695, %v1295_v19  ;;  %v1700_v19 = vld [vmem:[%s18118_s7 + $0x28] sm:$0xff] }
 0x8f6   :  { %13522 = vtanh.f32 %v1296_v11  ;;  %v10197_v31 = vmul.f32 -1.442695, %v1296_v11  ;;  %v1695_v11 = vld [vmem:[%s18118_s7] sm:$0xff] }
 0x8f7   :  { %13524 = vpow2.f32 %v10196_v28  ;;  %v1702_v28 = vld [vmem:[%s18118_s7 + $0x38] sm:$0xff] }
 0x900   :  { %v13523_v18 = vpop.eup %13522 }
 0x901   :  { %1312 = vrot.lane.b32.xlu0 %v13523_v18, %s13622_s22  ;;  %v13525_v29 = vpop.eup %13524  ;;  %v1697_v18 = vld [vmem:[%s18118_s7 + $0x10] sm:$0xff] }
 0x902   :  { %v1303_v36 = vadd.f32 1.0, %v13525_v29  ;;  %v14605_v29 = vpack.c.bf16 %v1697_v18, %v1695_v11 }
 0x904   :  { %13526 = vrcp.f32 %v1303_v36  ;;  %v14608_v36 = vpack.c.bf16 %v1702_v28, %v1700_v19 }
 0x90e   :  { %v13527_v37 = vpop.eup %13526 }
 0x90f   :  { %v1310_v56 = vmul.f32 %v13527_v37, %v14414_v8  ;;  %v14534_v8 = vpack.c.bf16 %v1718_v55, %v1716_v42  ;;  %v889_v55 = vadd.f32 %v14485_v58, %v14135_v62 }
 0x911   :  { %v10189_v12 = vmul.f32 -1.442695, %v889_v55 }
 0x973   :  { %v1313_v46 = vpop.permute.xlu0 %1312 }
 0x974   :  { %v1315_v47 = vmul.f32 %v13527_v37, %v1313_v46  ;;  %v1699_v37 = vld [vmem:[%s18118_s7 + $0x20] sm:$0xff]  ;;  %v1701_v46 = vld [vmem:[%s18118_s7 + $0x30] sm:$0xff] }
 0x976   :  { %1317 = vrot.lane.b32.xlu1 %v1315_v47, %s13622_s22  ;;  %v1704_v47 = vld [vmem:[%s18118_s7 + $0x48] sm:$0xff] }
 0x9e8   :  { %v1318_v57 = vpop.permute.xlu1 %1317 }
 0x9e9   :  { %v14492_v2 = vadd.f32 %v1318_v57, %v1310_v56  ;;  %v1706_v56 = vld [vmem:[%s18118_s7 + $0x58] sm:$0xff]  ;;  %v14624_v57 = vpack.c.bf16 %v1701_v46, %v1699_v37 }
 0x9ea   :  { %v14628_v5 = vpack.c.bf16 %v1706_v56, %v1704_v47 }
 0x9eb   :  { %13528 = vtanh.f32 %v14492_v2 }
 0x9ec   :  { %13530 = vtanh.f32 %v14495_v16 }
 0x9ed   :  { %13532 = vpow2.f32 %v10197_v31  ;;  %v1708_v31 = vld [vmem:[%s18118_s7 + $0x68] sm:$0xff] }
 0x9f5   :  { %v13529_v17 = vpop.eup %13528 }
 0x9f6   :  { %1323 = vrot.lane.b32.xlu0 %v13529_v17, %s13622_s22  ;;  %v13531_v30 = vpop.eup %13530  ;;  %v1703_v17 = vld [vmem:[%s18118_s7 + $0x40] sm:$0xff] }
 0x9f7   :  { %v13533_v40 = vpop.eup %13532 }
 0x9f8   :  { %v1304_v7 = vadd.f32 1.0, %v13533_v40  ;;  %v1710_v40 = vld [vmem:[%s18118_s7 + $0x78] sm:$0xff] }
 0x9fa   :  { %906 = vrot.lane.b32.xlu0 %v13531_v30, %s13622_s22  ;;  %13534 = vrcp.f32 %v1304_v7  ;;  %v1705_v30 = vld [vmem:[%s18118_s7 + $0x50] sm:$0xff] }
 0x9fb   :  { %v14643_v7 = vpack.c.bf16 %v1705_v30, %v1703_v17 }
 0xa04   :  { %v13535_v9 = vpop.eup %13534 }
 0xa68   :  { %v1324_v14 = vpop.permute.xlu0 %1323 }
 0xa69   :  { %v1326_v26 = vmul.f32 %v13535_v9, %v1324_v14  ;;  %v14646_v9 = vpack.c.bf16 %v1710_v40, %v1708_v31  ;;  %v1707_v14 = vld [vmem:[%s18118_s7 + $0x60] sm:$0xff] }
 0xa6b   :  { %1328 = vst.msk [vmem:[#allocation3 + $0x2] sm:$0x3] %vm345_vm0, %v1326_v26  ;;  %10198 = vmatmul.mubr.msk.f32.vlgmr.msra.gmra.mrb[6].mxu0 %vm156_vm1, %v1326_v26  ;;  %v1709_v26 = vld [vmem:[%s18118_s7 + $0x70] sm:$0xff] }
 0xa6c   :  { %12181 = vmatpush1.bf16.msra.mxu0 %v14327_v15  ;;  %1471 = vmatprep.mubr.f32.mxu0 %v18165_v39  ;;  %v14655_v27 = vpack.c.bf16 %v1709_v26, %v1707_v14  ;;  %v907_v58 = vpop.permute.xlu0 %906 }
 0xa6d   :  { %12183 = vmatprep.subr.bf16.mxu0 %v14330_v20 }
 0xa70   :  { %12185 = vmatpush1.bf16.msra.mxu0 %v14346_v25 }
 0xa71   :  { %12187 = vmatprep.subr.bf16.mxu0 %v14350_v35 }
 0xa74   :  { %12189 = vmatpush1.bf16.msra.mxu0 %v18166_v44 }
 0xa75   :  { %12191 = vmatprep.subr.bf16.mxu0 %v18167_v45 }
 0xa78   :  { %12193 = vmatpush1.bf16.msra.mxu0 %v18168_v52 }
 0xa79   :  { %12227 = vmatprep.subr.bf16.mxu0 %v14516_v43 }
 0xa7b   :  { %10199 = vmatmul.mubr.msk.f32.vlgmr.msra.gmra.mrb[6].mxu0 %vm156_vm1, %v1329_v23  ;;  %v1727_v23 = vld [vmem:[%s18119_s9] sm:$0x3] }
 0xa7c   :  { %12229 = vmatpush1.bf16.msra.mxu0 %v14531_v4  ;;  %1804 = vmatprep.mubr.f32.mxu0 %v18165_v39  ;;  %v14681_v3 = vrot.slane %v1727_v23, %v18171_v21  ;;  %v14691_v28 = vrot.slane %v1727_v23, %v14132_v61 }
 0xa7d   :  { %12231 = vmatprep.subr.bf16.mxu0 %v14534_v8 }
 0xa80   :  { %12233 = vmatpush1.bf16.msra.mxu0 %v14550_v50 }
 0xa81   :  { %12235 = vmatprep.subr.bf16.mxu0 %v14554_v24 }
 0xa84   :  { %12237 = vmatpush1.bf16.msra.mxu0 %v14569_v13 }
 0xa85   :  { %12239 = vmatprep.subr.bf16.mxu0 %v14572_v32 }
 0xa88   :  { %12241 = vmatpush1.bf16.msra.mxu0 %v14587_v0 }
 0xa89   :  { %12243 = vmatprep.subr.bf16.mxu0 %v14590_v1 }
 0xa8b   :  { %1805 = vmatmul.mubr.f32.vlgmr.msra.gmra.mrb[8].mxu0 %v18165_v39 }
 0xa8c   :  { %12245 = vmatpush1.bf16.msra.mxu0 %v14605_v29  ;;  %1878 = vmatprep.mubr.f32.mxu0 %v18165_v39 }
 0xa8d   :  { %12247 = vmatprep.subr.bf16.mxu0 %v14608_v36 }
 0xa90   :  { %12249 = vmatpush1.bf16.msra.mxu0 %v14624_v57 }
 0xa91   :  { %12251 = vmatprep.subr.bf16.mxu0 %v14628_v5 }
 0xa94   :  { %12253 = vmatpush1.bf16.msra.mxu0 %v14643_v7 }
 0xa95   :  { %12255 = vmatprep.subr.bf16.mxu0 %v14646_v9 }
 0xa98   :  { %12257 = vmatpush1.bf16.msra.mxu0 %v14655_v27 }
 0xa99   :  { %12291 = vmatprep.subr.bf16.mxu0 %v14516_v43 }
 0xa9b   :  { %10206 = vmatmul.mubr.msk.f32.vlgmr.msra.gmra.mrb[8].mxu0 %vm156_vm1, %v1739_v41 }
 0xa9c   :  { %12293 = vmatpush1.bf16.msra.mxu0 %v14531_v4  ;;  %2166 = vmatprep.mubr.f32.mxu0 %v18165_v39 }
 0xa9d   :  { %12295 = vmatprep.subr.bf16.mxu0 %v14534_v8 }
 0xaa0   :  { %12297 = vmatpush1.bf16.msra.mxu0 %v14550_v50 }
 0xaa1   :  { %12299 = vmatprep.subr.bf16.mxu0 %v14554_v24 }
 0xaa4   :  { %12301 = vmatpush1.bf16.msra.mxu0 %v14569_v13 }
 0xaa5   :  { %12303 = vmatprep.subr.bf16.mxu0 %v14572_v32 }
 0xaa8   :  { %12305 = vmatpush1.bf16.msra.mxu0 %v14587_v0 }
 0xaa9   :  { %12307 = vmatprep.subr.bf16.mxu0 %v14590_v1 }
 0xb4e   :  { %v1473_v63 = vpop.f32.mrb[6].mxu0 }
 0xb4f   :  { %v1475_v6 = vpop.f32.mrb[7].mxu0  ;;  %v1478_v59 = vadd.f32 %v1473_v63, %v14404_v48 }
 0xb50   :  { %v14671_v42 = vadd.f32 %v1475_v6, %v18169_v10 }
 0xb51   :  { %v10200_v11 = vmul.f32 -1.442695, %v1478_v59 }
 0xb52   :  { %13536 = vtanh.f32 %v14671_v42 }
 0xb53   :  { %13538 = vpow2.f32 %v10189_v12 }
 0xb5c   :  { %v13537_v60 = vpop.eup %13536 }
 0xb5d   :  { %1495 = vrot.lane.b32.xlu1 %v13537_v60, %s13622_s22  ;;  %v13539_v22 = vpop.eup %13538 }
 0xb5e   :  { %v897_v49 = vadd.f32 1.0, %v13539_v22 }
 0xb6e   :  { %v1880_v51 = vpop.f32.mrb[8].mxu0 }
 0xb6f   :  { %v1882_v34 = vpop.f32.mrb[9].mxu0  ;;  %v1885_v37 = vadd.f32 %v1880_v51, %v14691_v28  ;;  %v10190_v51 = vmul.f32 -1.442695, %v14495_v16  ;;  %v10201_v16 = vmul.f32 -1.442695, %v14671_v42 }
 0xb70   :  { %v14684_v33 = vadd.f32 %v1882_v34, %v14681_v3 }
 0xb71   :  { %v10207_v56 = vmul.f32 -1.442695, %v1885_v37 }
 0xb72   :  { %13540 = vtanh.f32 %v14684_v33 }
 0xb73   :  { %13542 = vrcp.f32 %v897_v49 }
 0xb74   :  { %13544 = vpow2.f32 %v10200_v11 }
 0xb7c   :  { %v13541_v62 = vpop.eup %13540 }
 0xb7d   :  { %1902 = vrot.lane.b32.xlu1 %v13541_v62, %s13622_s22  ;;  %v13543_v38 = vpop.eup %13542 }
 0xb7e   :  { %v909_v53 = vmul.f32 %v13543_v38, %v907_v58  ;;  %v13545_v18 = vpop.eup %13544  ;;  %v904_v41 = vmul.f32 %v13543_v38, %v14410_v54 }
 0xb7f   :  { %v1486_v19 = vadd.f32 1.0, %v13545_v18 }
 0xb81   :  { %911 = vrot.lane.b32.xlu1 %v909_v53, %s13622_s22  ;;  %13546 = vrcp.f32 %v1486_v19 }
 0xb82   :  { %13548 = vpow2.f32 %v10207_v56 }
 0xb8b   :  { %v13547_v46 = vpop.eup %13546 }
 0xb8c   :  { %v13549_v30 = vpop.eup %13548  ;;  %v1493_v60 = vmul.f32 %v13547_v46, %v14492_v2 }
 0xb8d   :  { %v1893_v31 = vadd.f32 1.0, %v13549_v30 }
 0xb8f   :  { %13550 = vrcp.f32 %v1893_v31 }
 0xb99   :  { %v13551_v40 = vpop.eup %13550 }
 0xb9a   :  { %v1900_v34 = vmul.f32 0.0, %v13551_v40 }
 0xbcf   :  { %v1496_v47 = vpop.permute.xlu1 %1495 }
 0xbd0   :  { %v1498_v17 = vmul.f32 %v13547_v46, %v1496_v47  ;;  %v10208_v46 = vmul.f32 -1.442695, %v14684_v33 }
 0xbd2   :  { %1500 = vrot.lane.b32.xlu0 %v1498_v17, %s13622_s22 }
 0xbef   :  { %v1903_v14 = vpop.permute.xlu1 %1902 }
 0xbf0   :  { %v1905_v26 = vmul.f32 %v13551_v40, %v1903_v14 }
 0xbf2   :  { %1907 = vrot.lane.b32.xlu0 %v1905_v26, %s13622_s22 }
 0xbf3   :  { %v912_v63 = vpop.permute.xlu1 %911 }
 0xbf4   :  { %v914_v6 = vadd.f32 %v912_v63, %v904_v41 }
 0xbf6   :  { %13552 = vtanh.f32 %v914_v6 }
 0xc00   :  { %v13553_v55 = vpop.eup %13552 }
 0xc01   :  { %917 = vrot.lane.b32.xlu0 %v13553_v55, %s13622_s22 }
 0xc44   :  { %v1501_v12 = vpop.permute.xlu0 %1500 }
 0xc45   :  { %v14699_v23 = vadd.f32 %v1501_v12, %v1493_v60 }
 0xc47   :  { %13554 = vtanh.f32 %v14699_v23 }
 0xc48   :  { %13556 = vpow2.f32 %v10190_v51 }
 0xc51   :  { %v13555_v22 = vpop.eup %13554 }
 0xc52   :  { %1506 = vrot.lane.b32.xlu1 %v13555_v22, %s13622_s22  ;;  %v13557_v54 = vpop.eup %13556 }
 0xc53   :  { %v898_v62 = vadd.f32 1.0, %v13557_v54 }
 0xc64   :  { %v1908_v49 = vpop.permute.xlu0 %1907 }
 0xc65   :  { %v14704_v58 = vadd.f32 %v1908_v49, %v1900_v34 }
 0xc67   :  { %13558 = vtanh.f32 %v14704_v58 }
 0xc68   :  { %13560 = vrcp.f32 %v898_v62 }
 0xc69   :  { %13562 = vpow2.f32 %v10201_v16 }
 0xc71   :  { %v13559_v2 = vpop.eup %13558 }
 0xc72   :  { %1913 = vrot.lane.b32.xlu1 %v13559_v2, %s13622_s22  ;;  %v13561_v38 = vpop.eup %13560 }
 0xc73   :  { %v918_v53 = vpop.permute.xlu0 %917  ;;  %v13563_v11 = vpop.eup %13562 }
 0xc74   :  { %v920_v59 = vmul.f32 %v13561_v38, %v918_v53  ;;  %v1487_v18 = vadd.f32 1.0, %v13563_v11 }
 0xc76   :  { %922 = vst.msk [vmem:[#allocation2 + $0x6] sm:$0x3] %vm345_vm0, %v920_v59  ;;  %13564 = vrcp.f32 %v1487_v18 }
 0xc77   :  { %13566 = vpow2.f32 %v10208_v46 }
 0xc80   :  { %v13565_v19 = vpop.eup %13564 }
 0xc81   :  { %v13567_v42 = vpop.eup %13566 }
 0xc82   :  { %v1894_v33 = vadd.f32 1.0, %v13567_v42 }
 0xc84   :  { %13568 = vrcp.f32 %v1894_v33 }
 0xcc4   :  { %v1507_v37 = vpop.permute.xlu1 %1506 }
 0xcc5   :  { %v1509_v47 = vmul.f32 %v13565_v19, %v1507_v37 }
 0xcc7   :  { %1511 = vst.msk [vmem:[#allocation3 + $0x4] sm:$0x3] %vm345_vm0, %v1509_v47  ;;  %10202 = vmatmul.mubr.msk.f32.vlgmr.msra.gmra.mrb[6].mxu1 %vm156_vm1, %v1509_v47 }
 0xcc8   :  { %12213 = vmatpush1.bf16.msra.mxu1 %v14327_v15  ;;  %1654 = vmatprep.mubr.f32.mxu1 %v18165_v39  ;;  %v1512_v15 = vld [vmem:[#allocation2 + $0x6] sm:$0x3] }
 0xcc9   :  { %12215 = vmatprep.subr.bf16.mxu1 %v14330_v20  ;;  %v13569_v20 = vpop.eup %13568 }
 0xccc   :  { %12217 = vmatpush1.bf16.msra.mxu1 %v14346_v25 }
 0xccd   :  { %12219 = vmatprep.subr.bf16.mxu1 %v14350_v35 }
 0xcd0   :  { %12221 = vmatpush1.bf16.msra.mxu1 %v18166_v44  ;;  %v1917_v44 = vld [vmem:[#allocation3 + $0x2] sm:$0x3] }
 0xcd1   :  { %12223 = vmatprep.subr.bf16.mxu1 %v18167_v45 }
 0xcd4   :  { %12225 = vmatpush1.bf16.msra.mxu1 %v18168_v52 }
 0xcd5   :  { %12259 = vmatprep.subr.bf16.mxu1 %v14516_v43 }
 0xcd7   :  { %10203 = vmatmul.mubr.msk.f32.vlgmr.msra.gmra.mrb[6].mxu1 %vm156_vm1, %v1512_v15 }
 0xcd8   :  { %12261 = vmatpush1.bf16.msra.mxu1 %v14531_v4  ;;  %1985 = vmatprep.mubr.f32.mxu1 %v18165_v39 }
 0xcd9   :  { %12263 = vmatprep.subr.bf16.mxu1 %v14534_v8 }
 0xcdc   :  { %12265 = vmatpush1.bf16.msra.mxu1 %v14550_v50 }
 0xcdd   :  { %12267 = vmatprep.subr.bf16.mxu1 %v14554_v24 }
 0xce0   :  { %12269 = vmatpush1.bf16.msra.mxu1 %v14569_v13 }
 0xce1   :  { %12271 = vmatprep.subr.bf16.mxu1 %v14572_v32 }
 0xce4   :  { %12273 = vmatpush1.bf16.msra.mxu1 %v14587_v0  ;;  %v1914_v25 = vpop.permute.xlu1 %1913 }
 0xce5   :  { %v1916_v35 = vmul.f32 %v13569_v20, %v1914_v25  ;;  %12275 = vmatprep.subr.bf16.mxu1 %v14590_v1 }
 0xce7   :  { %10209 = vmatmul.mubr.msk.f32.vlgmr.msra.gmra.mrb[8].mxu1 %vm156_vm1, %v1916_v35 }
 0xce8   :  { %12277 = vmatpush1.bf16.msra.mxu1 %v14605_v29  ;;  %2059 = vmatprep.mubr.f32.mxu1 %v18165_v39 }
 0xce9   :  { %12279 = vmatprep.subr.bf16.mxu1 %v14608_v36 }
 0xcec   :  { %12281 = vmatpush1.bf16.msra.mxu1 %v14624_v57 }
 0xced   :  { %12283 = vmatprep.subr.bf16.mxu1 %v14628_v5 }
 0xcf0   :  { %12285 = vmatpush1.bf16.msra.mxu1 %v14643_v7 }
 0xcf1   :  { %12287 = vmatprep.subr.bf16.mxu1 %v14646_v9 }
 0xcf4   :  { %12289 = vmatpush1.bf16.msra.mxu1 %v14655_v27 }
 0xcf5   :  { %12323 = vmatprep.subr.bf16.mxu1 %v14516_v43 }
 0xcf7   :  { %10210 = vmatmul.mubr.msk.f32.vlgmr.msra.gmra.mrb[8].mxu1 %vm156_vm1, %v1917_v44 }
 0xcf8   :  { %12325 = vmatpush1.bf16.msra.mxu1 %v14531_v4  ;;  %2347 = vmatprep.mubr.f32.mxu1 %v18165_v39 }
 0xcf9   :  { %12327 = vmatprep.subr.bf16.mxu1 %v14534_v8 }
 0xcfc   :  { %12329 = vmatpush1.bf16.msra.mxu1 %v14550_v50 }
 0xcfd   :  { %12331 = vmatprep.subr.bf16.mxu1 %v14554_v24 }
 0xd00   :  { %12333 = vmatpush1.bf16.msra.mxu1 %v14569_v13 }
 0xd01   :  { %12335 = vmatprep.subr.bf16.mxu1 %v14572_v32 }
 0xd04   :  { %12337 = vmatpush1.bf16.msra.mxu1 %v14587_v0 }
 0xd05   :  { %12339 = vmatprep.subr.bf16.mxu1 %v14590_v1 }
 0xdaa   :  { %v1656_v45 = vpop.f32.mrb[6].mxu1 }
 0xdab   :  { %v1658_v52 = vpop.f32.mrb[7].mxu1  ;;  %v1661_v63 = vadd.f32 %v1656_v45, %v14404_v48 }
 0xdac   :  { %v1662_v14 = vadd.f32 %v1658_v52, %v18169_v10 }
 0xdad   :  { %v10204_v55 = vmul.f32 -1.442695, %v1661_v63  ;;  %v2608_v63 = vld [vmem:[%s18120_s11 + $0x28] sm:$0xff] }
 0xdae   :  { %v10205_v16 = vmul.f32 -1.442695, %v1662_v14 }
 0xdca   :  { %v2061_v43 = vpop.f32.mrb[8].mxu1 }
 0xdcb   :  { %v2063_v4 = vpop.f32.mrb[9].mxu1  ;;  %v2066_v50 = vadd.f32 %v2061_v43, %v14691_v28 }
 0xdcc   :  { %v2067_v56 = vadd.f32 %v2063_v4, %v14681_v3 }
 0xdcd   :  { %v10211_v24 = vmul.f32 -1.442695, %v2066_v50 }
 0xdce   :  { %13570 = vtanh.f32 %v2067_v56  ;;  %v10212_v6 = vmul.f32 -1.442695, %v2067_v56 }
 0xdcf   :  { %13572 = vpow2.f32 %v10211_v24 }
 0xdd8   :  { %v13571_v8 = vpop.eup %13570 }
 0xdd9   :  { %2083 = vrot.lane.b32.xlu0 %v13571_v8, %s13622_s22  ;;  %v13573_v13 = vpop.eup %13572 }
 0xdda   :  { %v2074_v32 = vadd.f32 1.0, %v13573_v13 }
 0xddc   :  { %13574 = vrcp.f32 %v2074_v32 }
 0xde6   :  { %v13575_v0 = vpop.eup %13574 }
 0xde7   :  { %v2081_v30 = vmul.f32 %v13575_v0, %v14704_v58  ;;  %v2098_v58 = vld [vmem:[#allocation3 + $0x4] sm:$0x3] }
 0xe4b   :  { %v2084_v17 = vpop.permute.xlu0 %2083 }
 0xe4c   :  { %v2086_v1 = vmul.f32 %v13575_v0, %v2084_v17 }
 0xe4e   :  { %2088 = vrot.lane.b32.xlu1 %v2086_v1, %s13622_s22 }
 0xec0   :  { %v2089_v31 = vpop.permute.xlu1 %2088 }
 0xec1   :  { %v14757_v40 = vadd.f32 %v2089_v31, %v2081_v30 }
 0xec3   :  { %13576 = vtanh.f32 %v14757_v40 }
 0xec4   :  { %13578 = vtanh.f32 %v1662_v14  ;;  %v2607_v14 = vld [vmem:[%s18120_s11 + $0x20] sm:$0xff] }
 0xec5   :  { %13580 = vpow2.f32 %v10212_v6  ;;  %v2611_v6 = vld [vmem:[%s18120_s11 + $0x40] sm:$0xff] }
 0xec6   :  { %13582 = vpow2.f32 %v10204_v55  ;;  %v2615_v55 = vld [vmem:[%s18120_s11 + $0x60] sm:$0xff] }
 0xecd   :  { %v13577_v26 = vpop.eup %13576 }
 0xece   :  { %2094 = vrot.lane.b32.xlu0 %v13577_v26, %s13622_s22  ;;  %v13579_v41 = vpop.eup %13578 }
 0xecf   :  { %v13581_v60 = vpop.eup %13580 }
 0xed0   :  { %v2075_v12 = vadd.f32 1.0, %v13581_v60  ;;  %v13583_v22 = vpop.eup %13582 }
 0xed1   :  { %v1669_v51 = vadd.f32 1.0, %v13583_v22  ;;  %v10231_v22 = vcombine.high %v2611_v6, %v2615_v55 }
 0xed2   :  { %1678 = vrot.lane.b32.xlu0 %v13579_v41, %s13622_s22  ;;  %13584 = vrcp.f32 %v2075_v12 }
 0xed3   :  { %13586 = vrcp.f32 %v1669_v51  ;;  %v2612_v51 = vld [vmem:[%s18120_s11 + $0x48] sm:$0xff] }
 0xedc   :  { %v13585_v10 = vpop.eup %13584 }
 0xedd   :  { %v13587_v49 = vpop.eup %13586 }
 0xede   :  { %v1676_v2 = vmul.f32 %v13587_v49, %v14699_v23 }
 0xf40   :  { %v2095_v54 = vpop.permute.xlu0 %2094 }
 0xf41   :  { %v2097_v34 = vmul.f32 %v13585_v10, %v2095_v54  ;;  %v2616_v10 = vld [vmem:[%s18120_s11 + $0x68] sm:$0xff]  ;;  %v2619_v54 = vld [vmem:[%s18120_s11 + $0x80] sm:$0xff] }
 0xf43   :  { %10213 = vmatmul.mubr.msk.f32.vlgmr.msra.gmra.mrb[10].mxu0 %vm156_vm1, %v2097_v34  ;;  %v10233_v34 = vcombine.high %v2612_v51, %v2616_v10 }
 0xf44   :  { %12309 = vmatpush1.bf16.msra.mxu0 %v14605_v29  ;;  %v1679_v62 = vpop.permute.xlu0 %1678  ;;  %2240 = vmatprep.mubr.f32.mxu0 %v18165_v39 }
 0xf45   :  { %v1681_v48 = vmul.f32 %v13587_v49, %v1679_v62  ;;  %12311 = vmatprep.subr.bf16.mxu0 %v14608_v36  ;;  %v2623_v49 = vld [vmem:[%s18120_s11 + $0xa0] sm:$0xff]  ;;  %v2620_v62 = vld [vmem:[%s18120_s11 + $0x88] sm:$0xff] }
 0xf47   :  { %1683 = vrot.lane.b32.xlu0 %v1681_v48, %s13622_s22  ;;  %v2624_v48 = vld [vmem:[%s18120_s11 + $0xa8] sm:$0xff] }
 0xf48   :  { %12313 = vmatpush1.bf16.msra.mxu0 %v14624_v57 }
 0xf49   :  { %12315 = vmatprep.subr.bf16.mxu0 %v14628_v5 }
 0xf4c   :  { %12317 = vmatpush1.bf16.msra.mxu0 %v14643_v7 }
 0xf4d   :  { %12319 = vmatprep.subr.bf16.mxu0 %v14646_v9 }
 0xf50   :  { %12321 = vmatpush1.bf16.msra.mxu0 %v14655_v27 }
 0xf53   :  { %10214 = vmatmul.mubr.msk.f32.vlgmr.msra.gmra.mrb[10].mxu0 %vm156_vm1, %v2098_v58  ;;  %v10230_v58 = vcombine.low %v2611_v6, %v2615_v55  ;;  %v2630_v6 = vld [vmem:[%s18120_s11 + $0xd8] sm:$0xff] }
 0xf54   :  { %v2634_v55 = vld [vmem:[%s18120_s11 + $0xf8] sm:$0xff] }
 0xfb9   :  { %v1684_v38 = vpop.permute.xlu0 %1683 }
 0xfba   :  { %v1686_v53 = vadd.f32 %v1684_v38, %v1676_v2  ;;  %v10232_v2 = vcombine.low %v2612_v51, %v2616_v10  ;;  %v10239_v38 = vcombine.high %v2619_v54, %v2623_v49  ;;  %v10253_v51 = vcombine.high %v2630_v6, %v2634_v55  ;;  %v2475_v10 = vld [vmem:[%s18121_s10] sm:$0xff] }
 0xfbc   :  { %13588 = vtanh.f32 %v1686_v53  ;;  %v10241_v53 = vcombine.high %v2620_v62, %v2624_v48 }
 0xfbd   :  { %13590 = vpow2.f32 %v10205_v16  ;;  %v2631_v16 = vld [vmem:[%s18120_s11 + $0xe0] sm:$0xff] }
 0xfc6   :  { %v13589_v59 = vpop.eup %13588 }
 0xfc7   :  { %1689 = vrot.lane.b32.xlu0 %v13589_v59, %s13622_s22  ;;  %v13591_v19 = vpop.eup %13590  ;;  %v2627_v59 = vld [vmem:[%s18120_s11 + $0xc0] sm:$0xff] }
 0xfc8   :  { %v1670_v46 = vadd.f32 1.0, %v13591_v19  ;;  %v10238_v19 = vcombine.low %v2619_v54, %v2623_v49  ;;  %v2479_v54 = vld [vmem:[%s18121_s10 + $0x20] sm:$0xff]  ;;  %v2480_v49 = vld [vmem:[%s18121_s10 + $0x28] sm:$0xff] }
0x1026   :  { %v2242_v11 = vpop.f32.mrb[10].mxu0 }
0x1027   :  { %v2244_v18 = vpop.f32.mrb[11].mxu0  ;;  %v2247_v15 = vadd.f32 %v2242_v11, %v14691_v28  ;;  %v2628_v11 = vld [vmem:[%s18120_s11 + $0xc8] sm:$0xff] }
0x1028   :  { %v2248_v37 = vadd.f32 %v2244_v18, %v14681_v3  ;;  %v2632_v18 = vld [vmem:[%s18120_s11 + $0xe8] sm:$0xff] }
0x1029   :  { %v10215_v20 = vmul.f32 -1.442695, %v2247_v15 }
0x102a   :  { %13592 = vtanh.f32 %v2248_v37  ;;  %v10216_v50 = vmul.f32 -1.442695, %v2248_v37  ;;  %v10240_v37 = vcombine.low %v2620_v62, %v2624_v48  ;;  %v10252_v48 = vcombine.low %v2630_v6, %v2634_v55 }
0x102b   :  { %13594 = vrcp.f32 %v1670_v46  ;;  %v10247_v46 = vcombine.high %v2627_v59, %v2631_v16 }
0x102c   :  { %13596 = vpow2.f32 %v10215_v20 }
0x1034   :  { %v13593_v47 = vpop.eup %13592 }
0x1035   :  { %2264 = vrot.lane.b32.xlu1 %v13593_v47, %s13622_s22  ;;  %v13595_v23 = vpop.eup %13594  ;;  %v10249_v47 = vcombine.high %v2628_v11, %v2632_v18 }
0x1036   :  { %v13597_v25 = vpop.eup %13596 }
0x1037   :  { %v2255_v35 = vadd.f32 1.0, %v13597_v25  ;;  %v2605_v25 = vld [vmem:[%s18120_s11 + $0x10] sm:$0xff] }
0x1039   :  { %v1690_v42 = vpop.permute.xlu0 %1689  ;;  %13598 = vrcp.f32 %v2255_v35  ;;  %v2609_v35 = vld [vmem:[%s18120_s11 + $0x30] sm:$0xff] }
0x103a   :  { %v1692_v33 = vmul.f32 %v13595_v23, %v1690_v42  ;;  %v10246_v23 = vcombine.low %v2627_v59, %v2631_v16  ;;  %v10248_v42 = vcombine.low %v2628_v11, %v2632_v18  ;;  %v2484_v59 = vld [vmem:[%s18121_s10 + $0x48] sm:$0xff]  ;;  %v10258_v11 = vcombine.low %v2475_v10, %v2479_v54 }
0x103b   :  { %v2488_v16 = vld [vmem:[%s18121_s10 + $0x68] sm:$0xff] }
0x103c   :  { %1694 = vst.msk [vmem:[#allocation3 + $0x6] sm:$0x3] %vm345_vm0, %v1692_v33 }
0x1043   :  { %v13599_v44 = vpop.eup %13598  ;;  %v2279_v1 = vld [vmem:[#allocation3 + $0x6] sm:$0x3] }
0x1044   :  { %v2262_v43 = vmul.f32 %v13599_v44, %v14757_v40 }
0x10a7   :  { %v2265_v45 = vpop.permute.xlu1 %2264 }
0x10a8   :  { %v2267_v52 = vmul.f32 %v13599_v44, %v2265_v45  ;;  %v2606_v44 = vld [vmem:[%s18120_s11 + $0x18] sm:$0xff]  ;;  %v10227_v45 = vcombine.high %v2605_v25, %v2609_v35 }
0x10aa   :  { %2269 = vrot.lane.b32.xlu1 %v2267_v52, %s13622_s22  ;;  %v2610_v52 = vld [vmem:[%s18120_s11 + $0x38] sm:$0xff] }
0x111c   :  { %v2270_v4 = vpop.permute.xlu1 %2269 }
0x111d   :  { %v14783_v56 = vadd.f32 %v2270_v4, %v2262_v43  ;;  %v10226_v43 = vcombine.low %v2605_v25, %v2609_v35  ;;  %v10228_v4 = vcombine.low %v2606_v44, %v2610_v52  ;;  %v10268_v25 = vcombine.low %v2484_v59, %v2488_v16 }
0x111f   :  { %13600 = vtanh.f32 %v14783_v56 }
0x1120   :  { %13602 = vpow2.f32 %v10216_v50 }
0x1129   :  { %v13601_v8 = vpop.eup %13600 }
0x112a   :  { %2275 = vrot.lane.b32.xlu1 %v13601_v8, %s13622_s22  ;;  %v13603_v24 = vpop.eup %13602  ;;  %v10229_v8 = vcombine.high %v2606_v44, %v2610_v52  ;;  %v2503_v52 = vld [vmem:[%s18121_s10 + $0xe0] sm:$0xff] }
0x112b   :  { %v2256_v13 = vadd.f32 1.0, %v13603_v24 }
0x112d   :  { %13604 = vrcp.f32 %v2256_v13 }
0x1137   :  { %v13605_v32 = vpop.eup %13604 }
0x119c   :  { %v2276_v0 = vpop.permute.xlu1 %2275 }
0x119d   :  { %v2278_v17 = vmul.f32 %v13605_v32, %v2276_v0  ;;  %v2613_v0 = vld [vmem:[%s18120_s11 + $0x50] sm:$0xff] }
0x119f   :  { %10217 = vmatmul.mubr.msk.f32.vlgmr.msra.gmra.mrb[10].mxu1 %vm156_vm1, %v2278_v17 }
0x11a0   :  { %12341 = vmatpush1.bf16.msra.mxu1 %v14605_v29  ;;  %2421 = vmatprep.mubr.f32.mxu1 %v18165_v39 }
0x11a1   :  { %12343 = vmatprep.subr.bf16.mxu1 %v14608_v36 }
0x11a4   :  { %12345 = vmatpush1.bf16.msra.mxu1 %v14624_v57 }
0x11a5   :  { %12347 = vmatprep.subr.bf16.mxu1 %v14628_v5 }
0x11a8   :  { %12349 = vmatpush1.bf16.msra.mxu1 %v14643_v7 }
0x11a9   :  { %12351 = vmatprep.subr.bf16.mxu1 %v14646_v9 }
0x11ac   :  { %12353 = vmatpush1.bf16.msra.mxu1 %v14655_v27 }
0x11af   :  { %10218 = vmatmul.mubr.msk.f32.vlgmr.msra.gmra.mrb[10].mxu1 %vm156_vm1, %v2279_v1 }
0x1282   :  { %v2423_v30 = vpop.f32.mrb[10].mxu1 }
0x1283   :  { %v2425_v31 = vpop.f32.mrb[11].mxu1  ;;  %v2428_v36 = vadd.f32 %v2423_v30, %v14691_v28  ;;  %v2604_v28 = vld [vmem:[%s18120_s11 + $0x8] sm:$0xff]  ;;  %v2617_v30 = vld [vmem:[%s18120_s11 + $0x70] sm:$0xff] }
0x1284   :  { %v14798_v29 = vadd.f32 %v2425_v31, %v14681_v3  ;;  %v2603_v3 = vld [vmem:[%s18120_s11] sm:$0xff]  ;;  %v10224_v60 = vcombine.low %v2604_v28, %v2608_v63  ;;  %v10225_v12 = vcombine.high %v2604_v28, %v2608_v63  ;;  %v2614_v31 = vld [vmem:[%s18120_s11 + $0x58] sm:$0xff]  ;;  %v2633_v63 = vld [vmem:[%s18120_s11 + $0xf0] sm:$0xff] }
0x1285   :  { %v10219_v57 = vmul.f32 -1.442695, %v2428_v36  ;;  %v10222_v26 = vcombine.low %v2603_v3, %v2607_v14  ;;  %v10223_v41 = vcombine.high %v2603_v3, %v2607_v14  ;;  %v10234_v3 = vcombine.low %v2613_v0, %v2617_v30 }
0x1286   :  { %13606 = vtanh.f32 %v14798_v29  ;;  %2839 = vmatprep.subr.bf16.mxu1 %v10225_v12  ;;  %v10220_v24 = vmul.f32 -1.442695, %v14798_v29  ;;  %v2618_v29 = vld [vmem:[%s18120_s11 + $0x78] sm:$0xff] }
0x1287   :  { %13608 = vpow2.f32 %v10219_v57  ;;  %2798 = vmatprep.subr.bf16.mxu0 %v10223_v41  ;;  %2840 = vmatpush1.bf16.msra.mxu1 %v10224_v60  ;;  %v10235_v57 = vcombine.high %v2613_v0, %v2617_v30  ;;  %v10236_v14 = vcombine.low %v2614_v31, %v2618_v29  ;;  %v2629_v41 = vld [vmem:[%s18120_s11 + $0xd0] sm:$0xff]  ;;  %v2511_v0 = vld [vmem:[%s18121_s10 + $0x120] sm:$0xff] }
0x1288   :  { %2799 = vmatpush1.bf16.msra.mxu0 %v10222_v26  ;;  %2841 = vmatprep.subr.bf16.mxu1 %v10233_v34  ;;  %v2476_v34 = vld [vmem:[%s18121_s10 + $0x8] sm:$0xff]  ;;  %v10250_v62 = vcombine.low %v2629_v41, %v2633_v63 }
0x1289   :  { %2800 = vmatprep.subr.bf16.mxu0 %v10231_v22  ;;  %v10251_v22 = vcombine.high %v2629_v41, %v2633_v63  ;;  %v10260_v18 = vcombine.low %v2476_v34, %v2480_v49  ;;  %v2524_v41 = vld [vmem:[%s18121_s10 + $0x188] sm:$0xff] }
0x128a   :  { %v2528_v63 = vld [vmem:[%s18121_s10 + $0x1a8] sm:$0xff] }
0x128b   :  { %2842 = vmatpush1.bf16.msra.mxu1 %v10232_v2  ;;  %v10261_v2 = vcombine.high %v2476_v34, %v2480_v49  ;;  %v10308_v49 = vcombine.low %v2524_v41, %v2528_v63 }
0x128c   :  { %2801 = vmatpush1.bf16.msra.mxu0 %v10230_v58  ;;  %2843 = vmatprep.subr.bf16.mxu1 %v10241_v53  ;;  %v10259_v58 = vcombine.high %v2475_v10, %v2479_v54  ;;  %v2487_v53 = vld [vmem:[%s18121_s10 + $0x60] sm:$0xff]  ;;  %v2532_v10 = vld [vmem:[%s18121_s10 + $0x1c8] sm:$0xff] }
0x128d   :  { %2802 = vmatprep.subr.bf16.mxu0 %v10239_v38  ;;  %v2483_v38 = vld [vmem:[%s18121_s10 + $0x40] sm:$0xff]  ;;  %v2536_v54 = vld [vmem:[%s18121_s10 + $0x1e8] sm:$0xff] }
0x128f   :  { %2844 = vmatpush1.bf16.msra.mxu1 %v10240_v37  ;;  %v10269_v37 = vcombine.high %v2484_v59, %v2488_v16  ;;  %v10316_v16 = vcombine.low %v2532_v10, %v2536_v54 }
0x1290   :  { %v13607_v39 = vpop.eup %13606  ;;  %2803 = vmatpush1.bf16.msra.mxu0 %v10238_v19  ;;  %2845 = vmatprep.subr.bf16.mxu1 %v10249_v47  ;;  %v10267_v19 = vcombine.high %v2483_v38, %v2487_v53  ;;  %v18172_v47 = vld [vmem:[#allocation4_spill] sm:$0xff] }
0x1291   :  { %2445 = vrot.lane.b32.xlu1 %v13607_v39, %s13622_s22  ;;  %v13609_v5 = vpop.eup %13608  ;;  %2804 = vmatprep.subr.bf16.mxu0 %v10247_v46  ;;  %v2491_v46 = vld [vmem:[%s18121_s10 + $0x80] sm:$0xff] }
0x1292   :  { %v2436_v7 = vadd.f32 1.0, %v13609_v5  ;;  %v10237_v5 = vcombine.high %v2614_v31, %v2618_v29 }
0x1293   :  { %2846 = vmatpush1.bf16.msra.mxu1 %v10248_v42  ;;  %v2495_v42 = vld [vmem:[%s18121_s10 + $0xa0] sm:$0xff] }
0x1294   :  { %13610 = vrcp.f32 %v2436_v7  ;;  %2805 = vmatpush1.bf16.msra.mxu0 %v10246_v23  ;;  %2921 = vmatprep.subr.bf16.mxu1 %v10229_v8  ;;  %v2621_v7 = vld [vmem:[%s18120_s11 + $0x90] sm:$0xff]  ;;  %v14942_v23 = vpack.c.bf16 %v18172_v47, %v18172_v47  ;;  %v10275_v35 = vcombine.high %v2491_v46, %v2495_v42  ;;  %v10274_v8 = vcombine.low %v2491_v46, %v2495_v42  ;;  %v2548_v46 = vld [vmem:[%s18121_s10 + $0x248] sm:$0xff] }
0x1295   :  { %2880 = vmatprep.subr.bf16.mxu0 %v10227_v45  ;;  %v2499_v45 = vld [vmem:[%s18121_s10 + $0xc0] sm:$0xff]  ;;  %v2552_v47 = vld [vmem:[%s18121_s10 + $0x268] sm:$0xff] }
0x1296   :  { %v10282_v30 = vcombine.low %v2499_v45, %v2503_v52 }
0x129e   :  { %v13611_v9 = vpop.eup %13610 }
0x129f   :  { %v2443_v33 = vmul.f32 %v13611_v9, %v14783_v56  ;;  %v13623_v56 = vmov 0  }
0x12a0   :  { %2830 = vmatprep.mubr.bf16.mxu0 %v13623_v56  ;;  %2871 = vmatprep.mubr.bf16.mxu1 %v13623_v56 }
0x1303   :  { %v2446_v27 = vpop.permute.xlu1 %2445 }
0x1304   :  { %v2448_v40 = vmul.f32 %v13611_v9, %v2446_v27  ;;  %v2625_v9 = vld [vmem:[%s18120_s11 + $0xb0] sm:$0xff]  ;;  %v2622_v27 = vld [vmem:[%s18120_s11 + $0x98] sm:$0xff] }
0x1305   :  { %v10243_v28 = vcombine.high %v2621_v7, %v2625_v9  ;;  %v10242_v60 = vcombine.low %v2621_v7, %v2625_v9  ;;  %v2516_v7 = vld [vmem:[%s18121_s10 + $0x148] sm:$0xff] }
0x1306   :  { %2450 = vrot.lane.b32.xlu0 %v2448_v40, %s13622_s22  ;;  %v2626_v40 = vld [vmem:[%s18120_s11 + $0xb8] sm:$0xff]  ;;  %v2520_v9 = vld [vmem:[%s18121_s10 + $0x168] sm:$0xff] }
0x1307   :  { %v10245_v26 = vcombine.high %v2622_v27, %v2626_v40  ;;  %v10244_v12 = vcombine.low %v2622_v27, %v2626_v40  ;;  %v10300_v55 = vcombine.low %v2516_v7, %v2520_v9 }
0x1378   :  { %v2451_v15 = vpop.permute.xlu0 %2450 }
0x1379   :  { %v2453_v20 = vadd.f32 %v2451_v15, %v2443_v33  ;;  %v2492_v33 = vld [vmem:[%s18121_s10 + $0x88] sm:$0xff] }
0x137a   :  { %v2496_v15 = vld [vmem:[%s18121_s10 + $0xa8] sm:$0xff] }
0x137b   :  { %13612 = vtanh.f32 %v2453_v20  ;;  %v10266_v20 = vcombine.low %v2483_v38, %v2487_v53  ;;  %v10277_v44 = vcombine.high %v2492_v33, %v2496_v15  ;;  %v2540_v38 = vld [vmem:[%s18121_s10 + $0x208] sm:$0xff] }
0x137c   :  { %13614 = vpow2.f32 %v10220_v24  ;;  %v10283_v24 = vcombine.high %v2499_v45, %v2503_v52  ;;  %v2544_v53 = vld [vmem:[%s18121_s10 + $0x228] sm:$0xff] }
0x137d   :  { %v2560_v45 = vld [vmem:[%s18121_s10 + $0x2a8] sm:$0xff] }
0x1385   :  { %v13613_v50 = vpop.eup %13612 }
0x1386   :  { %2456 = vrot.lane.b32.xlu1 %v13613_v50, %s13622_s22  ;;  %v13615_v13 = vpop.eup %13614  ;;  %v10276_v50 = vcombine.low %v2492_v33, %v2496_v15  ;;  %v10324_v33 = vcombine.low %v2540_v38, %v2544_v53 }
0x1387   :  { %v2437_v32 = vadd.f32 1.0, %v13615_v13 }
0x1389   :  { %13616 = vrcp.f32 %v2437_v32  ;;  %v2507_v32 = vld [vmem:[%s18121_s10 + $0x100] sm:$0xff] }
0x138a   :  { %v10291_v29 = vcombine.high %v2507_v32, %v2511_v0  ;;  %v10290_v27 = vcombine.low %v2507_v32, %v2511_v0  ;;  %v2568_v32 = vld [vmem:[%s18121_s10 + $0x2e8] sm:$0xff] }
0x1393   :  { %v13617_v17 = vpop.eup %13616 }
0x13f8   :  { %v2457_v1 = vpop.permute.xlu1 %2456 }
0x13f9   :  { %v2459_v39 = vmul.f32 %v13617_v17, %v2457_v1  ;;  %v2508_v17 = vld [vmem:[%s18121_s10 + $0x108] sm:$0xff] }
0x13fa   :  { %v2512_v1 = vld [vmem:[%s18121_s10 + $0x128] sm:$0xff] }
0x13fb   :  { %v14881_v36 = vpack.c.bf16 %v2459_v39, %v2459_v39  ;;  %v10293_v39 = vcombine.high %v2508_v17, %v2512_v1  ;;  %v10292_v40 = vcombine.low %v2508_v17, %v2512_v1 }
0x13fd   :  { %10254 = vmatmul.mubr.msk.bf16.vlgmr.msra.gmra.mrb[12].mxu0 %vm156_vm1, %v14881_v36  ;;  %10255 = vmatmul.mubr.msk.bf16.vlgmr.msra.gmra.mrb[12].mxu1 %vm156_vm1, %v14881_v36 }
0x13fe   :  { %2881 = vmatpush1.bf16.msra.mxu0 %v10226_v43  ;;  %2922 = vmatpush1.bf16.msra.mxu1 %v10228_v4  ;;  %v2500_v43 = vld [vmem:[%s18121_s10 + $0xc8] sm:$0xff] }
0x13ff   :  { %2882 = vmatprep.subr.bf16.mxu0 %v10235_v57  ;;  %2923 = vmatprep.subr.bf16.mxu1 %v10237_v5  ;;  %v2504_v4 = vld [vmem:[%s18121_s10 + $0xe8] sm:$0xff]  ;;  %v2515_v57 = vld [vmem:[%s18121_s10 + $0x140] sm:$0xff] }
0x1400   :  { %2912 = vmatprep.mubr.bf16.mxu0 %v13623_v56  ;;  %2953 = vmatprep.mubr.bf16.mxu1 %v13623_v56  ;;  %v10285_v13 = vcombine.high %v2500_v43, %v2504_v4  ;;  %v10284_v31 = vcombine.low %v2500_v43, %v2504_v4  ;;  %v2519_v5 = vld [vmem:[%s18121_s10 + $0x160] sm:$0xff]  ;;  %v10332_v43 = vcombine.low %v2548_v46, %v2552_v47 }
0x1401   :  { %v10298_v6 = vcombine.low %v2515_v57, %v2519_v5 }
0x1402   :  { %2883 = vmatpush1.bf16.msra.mxu0 %v10234_v3  ;;  %2924 = vmatpush1.bf16.msra.mxu1 %v10236_v14  ;;  %v10299_v3 = vcombine.high %v2515_v57, %v2519_v5  ;;  %v10301_v14 = vcombine.high %v2516_v7, %v2520_v9  ;;  %v2576_v57 = vld [vmem:[%s18121_s10 + $0x328] sm:$0xff] }
0x1403   :  { %2884 = vmatprep.subr.bf16.mxu0 %v10243_v28  ;;  %2925 = vmatprep.subr.bf16.mxu1 %v10245_v26  ;;  %v2523_v28 = vld [vmem:[%s18121_s10 + $0x180] sm:$0xff] }
0x1404   :  { %v2527_v26 = vld [vmem:[%s18121_s10 + $0x1a0] sm:$0xff] }
0x1405   :  { %v10306_v34 = vcombine.low %v2523_v28, %v2527_v26 }
0x1406   :  { %2885 = vmatpush1.bf16.msra.mxu0 %v10242_v60  ;;  %2926 = vmatpush1.bf16.msra.mxu1 %v10244_v12  ;;  %v10307_v60 = vcombine.high %v2523_v28, %v2527_v26  ;;  %v10309_v12 = vcombine.high %v2524_v41, %v2528_v63  ;;  %v2584_v28 = vld [vmem:[%s18121_s10 + $0x368] sm:$0xff] }
0x1407   :  { %2886 = vmatprep.subr.bf16.mxu0 %v10251_v22  ;;  %2927 = vmatprep.subr.bf16.mxu1 %v10253_v51  ;;  %v2531_v22 = vld [vmem:[%s18121_s10 + $0x1c0] sm:$0xff] }
0x1408   :  { %v2535_v51 = vld [vmem:[%s18121_s10 + $0x1e0] sm:$0xff] }
0x1409   :  { %v10314_v59 = vcombine.low %v2531_v22, %v2535_v51 }
0x140a   :  { %2887 = vmatpush1.bf16.msra.mxu0 %v10250_v62  ;;  %2928 = vmatpush1.bf16.msra.mxu1 %v10252_v48  ;;  %v10315_v62 = vcombine.high %v2531_v22, %v2535_v51  ;;  %v10317_v48 = vcombine.high %v2532_v10, %v2536_v54  ;;  %v2592_v22 = vld [vmem:[%s18121_s10 + $0x3a8] sm:$0xff] }
0x140b   :  { %3602 = vmatprep.subr.bf16.mxu0 %v10259_v58  ;;  %3643 = vmatprep.subr.bf16.mxu1 %v10261_v2  ;;  %v2539_v58 = vld [vmem:[%s18121_s10 + $0x200] sm:$0xff] }
0x140c   :  { %v2543_v2 = vld [vmem:[%s18121_s10 + $0x220] sm:$0xff] }
0x140d   :  { %10256 = vmatmul.mubr.msk.bf16.vlgmr.msra.gmra.mrb[16].mxu0 %vm156_vm1, %v14881_v36  ;;  %10257 = vmatmul.mubr.msk.bf16.vlgmr.msra.gmra.mrb[16].mxu1 %vm156_vm1, %v14881_v36  ;;  %v10322_v42 = vcombine.low %v2539_v58, %v2543_v2 }
0x140e   :  { %3603 = vmatpush1.bf16.msra.mxu0 %v10258_v11  ;;  %3644 = vmatpush1.bf16.msra.mxu1 %v10260_v18  ;;  %v10323_v11 = vcombine.high %v2539_v58, %v2543_v2  ;;  %v10325_v18 = vcombine.high %v2540_v38, %v2544_v53  ;;  %v2600_v58 = vld [vmem:[%s18121_s10 + $0x3e8] sm:$0xff] }
0x140f   :  { %3604 = vmatprep.subr.bf16.mxu0 %v10267_v19  ;;  %3645 = vmatprep.subr.bf16.mxu1 %v10269_v37  ;;  %v2547_v19 = vld [vmem:[%s18121_s10 + $0x240] sm:$0xff] }
0x1410   :  { %3634 = vmatprep.mubr.bf16.mxu0 %v14942_v23  ;;  %3675 = vmatprep.mubr.bf16.mxu1 %v14942_v23  ;;  %v2551_v37 = vld [vmem:[%s18121_s10 + $0x260] sm:$0xff] }
0x1411   :  { %v10331_v15 = vcombine.high %v2547_v19, %v2551_v37  ;;  %v10330_v52 = vcombine.low %v2547_v19, %v2551_v37  ;;  %v2482_v19 = vld [vmem:[%s18121_s10 + $0x38] sm:$0xff] }
0x1412   :  { %3605 = vmatpush1.bf16.msra.mxu0 %v10266_v20  ;;  %3646 = vmatpush1.bf16.msra.mxu1 %v10268_v25  ;;  %v10333_v20 = vcombine.high %v2548_v46, %v2552_v47  ;;  %v2555_v25 = vld [vmem:[%s18121_s10 + $0x280] sm:$0xff] }
0x1413   :  { %3606 = vmatprep.subr.bf16.mxu0 %v10275_v35  ;;  %3647 = vmatprep.subr.bf16.mxu1 %v10277_v44  ;;  %v2559_v35 = vld [vmem:[%s18121_s10 + $0x2a0] sm:$0xff]  ;;  %v2556_v44 = vld [vmem:[%s18121_s10 + $0x288] sm:$0xff] }
0x1414   :  { %v10339_v4 = vcombine.high %v2555_v25, %v2559_v35  ;;  %v10338_v0 = vcombine.low %v2555_v25, %v2559_v35  ;;  %v10340_v17 = vcombine.low %v2556_v44, %v2560_v45  ;;  %v2490_v25 = vld [vmem:[%s18121_s10 + $0x78] sm:$0xff]  ;;  %v13618_v35 = vld.sshfl [vmem:[%s18155_s2] sm:$0x33 pattern:$0x76325410] }
0x1416   :  { %3607 = vmatpush1.bf16.msra.mxu0 %v10274_v8  ;;  %3648 = vmatpush1.bf16.msra.mxu1 %v10276_v50  ;;  %v10341_v8 = vcombine.high %v2556_v44, %v2560_v45  ;;  %v2563_v50 = vld [vmem:[%s18121_s10 + $0x2c0] sm:$0xff]  ;;  %v15142_v44 = vpack.c.bf16 %v13618_v35, %v13618_v35 }
0x1417   :  { %3608 = vmatprep.subr.bf16.mxu0 %v10283_v24  ;;  %3649 = vmatprep.subr.bf16.mxu1 %v10285_v13  ;;  %v2567_v24 = vld [vmem:[%s18121_s10 + $0x2e0] sm:$0xff]  ;;  %v2564_v13 = vld [vmem:[%s18121_s10 + $0x2c8] sm:$0xff] }
0x1418   :  { %v10347_v1 = vcombine.high %v2563_v50, %v2567_v24  ;;  %v10346_v5 = vcombine.low %v2563_v50, %v2567_v24  ;;  %v10348_v7 = vcombine.low %v2564_v13, %v2568_v32  ;;  %v2497_v50 = vld [vmem:[%s18121_s10 + $0xb0] sm:$0xff]  ;;  %v2494_v24 = vld [vmem:[%s18121_s10 + $0x98] sm:$0xff] }
0x141a   :  { %3609 = vmatpush1.bf16.msra.mxu0 %v10282_v30  ;;  %3650 = vmatpush1.bf16.msra.mxu1 %v10284_v31  ;;  %v10349_v30 = vcombine.high %v2564_v13, %v2568_v32  ;;  %v2571_v31 = vld [vmem:[%s18121_s10 + $0x300] sm:$0xff]  ;;  %v2498_v13 = vld [vmem:[%s18121_s10 + $0xb8] sm:$0xff] }
0x141b   :  { %3610 = vmatprep.subr.bf16.mxu0 %v10291_v29  ;;  %3651 = vmatprep.subr.bf16.mxu1 %v10293_v39  ;;  %v2575_v29 = vld [vmem:[%s18121_s10 + $0x320] sm:$0xff]  ;;  %v2572_v39 = vld [vmem:[%s18121_s10 + $0x308] sm:$0xff] }
0x141c   :  { %v10355_v9 = vcombine.high %v2571_v31, %v2575_v29  ;;  %v10354_v26 = vcombine.low %v2571_v31, %v2575_v29  ;;  %v10356_v41 = vcombine.low %v2572_v39, %v2576_v57  ;;  %v2505_v31 = vld [vmem:[%s18121_s10 + $0xf0] sm:$0xff]  ;;  %v2502_v29 = vld [vmem:[%s18121_s10 + $0xd8] sm:$0xff] }
0x141e   :  { %3611 = vmatpush1.bf16.msra.mxu0 %v10290_v27  ;;  %3652 = vmatpush1.bf16.msra.mxu1 %v10292_v40  ;;  %v10357_v27 = vcombine.high %v2572_v39, %v2576_v57  ;;  %v2579_v40 = vld [vmem:[%s18121_s10 + $0x340] sm:$0xff]  ;;  %v2506_v39 = vld [vmem:[%s18121_s10 + $0xf8] sm:$0xff] }
0x141f   :  { %3612 = vmatprep.subr.bf16.mxu0 %v10299_v3  ;;  %3653 = vmatprep.subr.bf16.mxu1 %v10301_v14  ;;  %v2583_v3 = vld [vmem:[%s18121_s10 + $0x360] sm:$0xff]  ;;  %v2580_v14 = vld [vmem:[%s18121_s10 + $0x348] sm:$0xff] }
0x1420   :  { %v10363_v63 = vcombine.high %v2579_v40, %v2583_v3  ;;  %v10362_v51 = vcombine.low %v2579_v40, %v2583_v3  ;;  %v10364_v10 = vcombine.low %v2580_v14, %v2584_v28  ;;  %v2513_v40 = vld [vmem:[%s18121_s10 + $0x130] sm:$0xff]  ;;  %v2510_v3 = vld [vmem:[%s18121_s10 + $0x118] sm:$0xff] }
0x1422   :  { %3613 = vmatpush1.bf16.msra.mxu0 %v10298_v6  ;;  %3654 = vmatpush1.bf16.msra.mxu1 %v10300_v55  ;;  %v10365_v6 = vcombine.high %v2580_v14, %v2584_v28  ;;  %v2587_v55 = vld [vmem:[%s18121_s10 + $0x380] sm:$0xff]  ;;  %v2514_v14 = vld [vmem:[%s18121_s10 + $0x138] sm:$0xff] }
0x1423   :  { %3614 = vmatprep.subr.bf16.mxu0 %v10307_v60  ;;  %3655 = vmatprep.subr.bf16.mxu1 %v10309_v12  ;;  %v2591_v60 = vld [vmem:[%s18121_s10 + $0x3a0] sm:$0xff]  ;;  %v2588_v12 = vld [vmem:[%s18121_s10 + $0x388] sm:$0xff] }
0x1424   :  { %v10371_v54 = vcombine.high %v2587_v55, %v2591_v60  ;;  %v10370_v2 = vcombine.low %v2587_v55, %v2591_v60  ;;  %v10372_v38 = vcombine.low %v2588_v12, %v2592_v22  ;;  %v2521_v55 = vld [vmem:[%s18121_s10 + $0x170] sm:$0xff]  ;;  %v2518_v60 = vld [vmem:[%s18121_s10 + $0x158] sm:$0xff] }
0x1426   :  { %3615 = vmatpush1.bf16.msra.mxu0 %v10306_v34  ;;  %3656 = vmatpush1.bf16.msra.mxu1 %v10308_v49  ;;  %v10373_v34 = vcombine.high %v2588_v12, %v2592_v22  ;;  %v2595_v49 = vld [vmem:[%s18121_s10 + $0x3c0] sm:$0xff]  ;;  %v2522_v12 = vld [vmem:[%s18121_s10 + $0x178] sm:$0xff] }
0x1427   :  { %3616 = vmatprep.subr.bf16.mxu0 %v10315_v62  ;;  %3657 = vmatprep.subr.bf16.mxu1 %v10317_v48  ;;  %v2599_v62 = vld [vmem:[%s18121_s10 + $0x3e0] sm:$0xff]  ;;  %v2596_v48 = vld [vmem:[%s18121_s10 + $0x3c8] sm:$0xff] }
0x1428   :  { %v10379_v53 = vcombine.high %v2595_v49, %v2599_v62  ;;  %v10378_v37 = vcombine.low %v2595_v49, %v2599_v62  ;;  %v10380_v46 = vcombine.low %v2596_v48, %v2600_v58  ;;  %v2529_v49 = vld [vmem:[%s18121_s10 + $0x1b0] sm:$0xff]  ;;  %v2526_v62 = vld [vmem:[%s18121_s10 + $0x198] sm:$0xff] }
0x142a   :  { %3617 = vmatpush1.bf16.msra.mxu0 %v10314_v59  ;;  %3658 = vmatpush1.bf16.msra.mxu1 %v10316_v16  ;;  %v10381_v59 = vcombine.high %v2596_v48, %v2600_v58  ;;  %v2477_v16 = vld [vmem:[%s18121_s10 + $0x10] sm:$0xff]  ;;  %v2530_v48 = vld [vmem:[%s18121_s10 + $0x1b8] sm:$0xff] }
0x142b   :  { %3618 = vmatprep.subr.bf16.mxu0 %v10323_v11  ;;  %3659 = vmatprep.subr.bf16.mxu1 %v10325_v18  ;;  %v2481_v11 = vld [vmem:[%s18121_s10 + $0x30] sm:$0xff]  ;;  %v2478_v18 = vld [vmem:[%s18121_s10 + $0x18] sm:$0xff] }
0x142c   :  { %v10263_v47 = vcombine.high %v2477_v16, %v2481_v11  ;;  %v10262_v45 = vcombine.low %v2477_v16, %v2481_v11  ;;  %v2537_v16 = vld [vmem:[%s18121_s10 + $0x1f0] sm:$0xff]  ;;  %v2534_v11 = vld [vmem:[%s18121_s10 + $0x1d8] sm:$0xff] }
0x142e   :  { %3619 = vmatpush1.bf16.msra.mxu0 %v10322_v42  ;;  %3660 = vmatpush1.bf16.msra.mxu1 %v10324_v33  ;;  %v10265_v42 = vcombine.high %v2478_v18, %v2482_v19  ;;  %v2485_v33 = vld [vmem:[%s18121_s10 + $0x50] sm:$0xff] }
0x142f   :  { %3620 = vmatprep.subr.bf16.mxu0 %v10331_v15  ;;  %3661 = vmatprep.subr.bf16.mxu1 %v10333_v20  ;;  %v2489_v15 = vld [vmem:[%s18121_s10 + $0x70] sm:$0xff]  ;;  %v2486_v20 = vld [vmem:[%s18121_s10 + $0x58] sm:$0xff] }
0x1430   :  { %v10270_v32 = vcombine.low %v2485_v33, %v2489_v15 }
0x1432   :  { %3621 = vmatpush1.bf16.msra.mxu0 %v10330_v52  ;;  %3662 = vmatpush1.bf16.msra.mxu1 %v10332_v43  ;;  %v10264_v52 = vcombine.low %v2478_v18, %v2482_v19  ;;  %v10271_v43 = vcombine.high %v2485_v33, %v2489_v15  ;;  %v2538_v18 = vld [vmem:[%s18121_s10 + $0x1f8] sm:$0xff]  ;;  %v2545_v33 = vld [vmem:[%s18121_s10 + $0x230] sm:$0xff] }
0x1433   :  { %3622 = vmatprep.subr.bf16.mxu0 %v10339_v4  ;;  %3663 = vmatprep.subr.bf16.mxu1 %v10341_v8  ;;  %v10273_v4 = vcombine.high %v2486_v20, %v2490_v25  ;;  %v2493_v8 = vld [vmem:[%s18121_s10 + $0x90] sm:$0xff]  ;;  %v2542_v15 = vld [vmem:[%s18121_s10 + $0x218] sm:$0xff]  ;;  %v10320_v35 = vcombine.low %v2534_v11, %v2538_v18 }
0x1434   :  { %v10278_v57 = vcombine.low %v2493_v8, %v2497_v50 }
0x1436   :  { %3623 = vmatpush1.bf16.msra.mxu0 %v10338_v0  ;;  %3664 = vmatpush1.bf16.msra.mxu1 %v10340_v17  ;;  %v10272_v0 = vcombine.low %v2486_v20, %v2490_v25  ;;  %v10279_v17 = vcombine.high %v2493_v8, %v2497_v50  ;;  %v2546_v20 = vld [vmem:[%s18121_s10 + $0x238] sm:$0xff] }
0x1437   :  { %3624 = vmatprep.subr.bf16.mxu0 %v10347_v1  ;;  %3665 = vmatprep.subr.bf16.mxu1 %v10349_v30  ;;  %v10281_v1 = vcombine.high %v2494_v24, %v2498_v13  ;;  %v2501_v30 = vld [vmem:[%s18121_s10 + $0xd0] sm:$0xff]  ;;  %v2550_v8 = vld [vmem:[%s18121_s10 + $0x258] sm:$0xff] }
0x1438   :  { %v10286_v28 = vcombine.low %v2501_v30, %v2505_v31  ;;  %v2554_v50 = vld [vmem:[%s18121_s10 + $0x278] sm:$0xff] }
0x143a   :  { %3625 = vmatpush1.bf16.msra.mxu0 %v10346_v5  ;;  %3666 = vmatpush1.bf16.msra.mxu1 %v10348_v7  ;;  %v10280_v5 = vcombine.low %v2494_v24, %v2498_v13  ;;  %v10287_v7 = vcombine.high %v2501_v30, %v2505_v31  ;;  %v10328_v13 = vcombine.low %v2542_v15, %v2546_v20  ;;  %v2558_v30 = vld [vmem:[%s18121_s10 + $0x298] sm:$0xff] }
0x143b   :  { %3626 = vmatprep.subr.bf16.mxu0 %v10355_v9  ;;  %3667 = vmatprep.subr.bf16.mxu1 %v10357_v27  ;;  %v10289_v9 = vcombine.high %v2502_v29, %v2506_v39  ;;  %v2509_v27 = vld [vmem:[%s18121_s10 + $0x110] sm:$0xff]  ;;  %v2562_v31 = vld [vmem:[%s18121_s10 + $0x2b8] sm:$0xff] }
0x143c   :  { %v10294_v22 = vcombine.low %v2509_v27, %v2513_v40 }
0x143e   :  { %3627 = vmatpush1.bf16.msra.mxu0 %v10354_v26  ;;  %3668 = vmatpush1.bf16.msra.mxu1 %v10356_v41  ;;  %v10288_v26 = vcombine.low %v2502_v29, %v2506_v39  ;;  %v10295_v41 = vcombine.high %v2509_v27, %v2513_v40  ;;  %v10336_v39 = vcombine.low %v2550_v8, %v2554_v50  ;;  %v2566_v27 = vld [vmem:[%s18121_s10 + $0x2d8] sm:$0xff] }
0x143f   :  { %3628 = vmatprep.subr.bf16.mxu0 %v10363_v63  ;;  %3669 = vmatprep.subr.bf16.mxu1 %v10365_v6  ;;  %v10297_v63 = vcombine.high %v2510_v3, %v2514_v14  ;;  %v2517_v6 = vld [vmem:[%s18121_s10 + $0x150] sm:$0xff]  ;;  %v2570_v40 = vld [vmem:[%s18121_s10 + $0x2f8] sm:$0xff] }
0x1440   :  { %v10302_v58 = vcombine.low %v2517_v6, %v2521_v55 }
0x1442   :  { %3629 = vmatpush1.bf16.msra.mxu0 %v10362_v51  ;;  %3670 = vmatpush1.bf16.msra.mxu1 %v10364_v10  ;;  %v10296_v51 = vcombine.low %v2510_v3, %v2514_v14  ;;  %v10303_v10 = vcombine.high %v2517_v6, %v2521_v55  ;;  %v10344_v14 = vcombine.low %v2558_v30, %v2562_v31  ;;  %v2574_v6 = vld [vmem:[%s18121_s10 + $0x318] sm:$0xff] }
0x1443   :  { %3630 = vmatprep.subr.bf16.mxu0 %v10371_v54  ;;  %3671 = vmatprep.subr.bf16.mxu1 %v10373_v34  ;;  %v10305_v54 = vcombine.high %v2518_v60, %v2522_v12  ;;  %v2525_v34 = vld [vmem:[%s18121_s10 + $0x190] sm:$0xff]  ;;  %v2578_v55 = vld [vmem:[%s18121_s10 + $0x338] sm:$0xff] }
0x1444   :  { %v10310_v19 = vcombine.low %v2525_v34, %v2529_v49 }
0x1446   :  { %3631 = vmatpush1.bf16.msra.mxu0 %v10370_v2  ;;  %3672 = vmatpush1.bf16.msra.mxu1 %v10372_v38  ;;  %v10304_v2 = vcombine.low %v2518_v60, %v2522_v12  ;;  %v10311_v38 = vcombine.high %v2525_v34, %v2529_v49  ;;  %v10352_v12 = vcombine.low %v2566_v27, %v2570_v40  ;;  %v2582_v34 = vld [vmem:[%s18121_s10 + $0x358] sm:$0xff] }
0x1447   :  { %3632 = vmatprep.subr.bf16.mxu0 %v10379_v53  ;;  %3673 = vmatprep.subr.bf16.mxu1 %v10381_v59  ;;  %v10313_v53 = vcombine.high %v2526_v62, %v2530_v48  ;;  %v2533_v59 = vld [vmem:[%s18121_s10 + $0x1d0] sm:$0xff]  ;;  %v2586_v49 = vld [vmem:[%s18121_s10 + $0x378] sm:$0xff] }
0x1448   :  { %v10318_v25 = vcombine.low %v2533_v59, %v2537_v16 }
0x144a   :  { %3633 = vmatpush1.bf16.msra.mxu0 %v10378_v37  ;;  %3674 = vmatpush1.bf16.msra.mxu1 %v10380_v46  ;;  %v10312_v37 = vcombine.low %v2526_v62, %v2530_v48  ;;  %v10319_v46 = vcombine.high %v2533_v59, %v2537_v16  ;;  %v10360_v48 = vcombine.low %v2574_v6, %v2578_v55  ;;  %v2590_v59 = vld [vmem:[%s18121_s10 + $0x398] sm:$0xff] }
0x144b   :  { %3684 = vmatprep.subr.bf16.mxu0 %v10263_v47  ;;  %3725 = vmatprep.subr.bf16.mxu1 %v10265_v42  ;;  %v10321_v47 = vcombine.high %v2534_v11, %v2538_v18  ;;  %v2541_v42 = vld [vmem:[%s18121_s10 + $0x210] sm:$0xff]  ;;  %v2594_v16 = vld [vmem:[%s18121_s10 + $0x3b8] sm:$0xff]  ;;  %v10368_v18 = vcombine.low %v2582_v34, %v2586_v49 }
0x144c   :  { %v10326_v24 = vcombine.low %v2541_v42, %v2545_v33 }
0x144d   :  { %3635 = vmatmul.mubr.bf16.vlgmr.msra.gmra.mrb[20].mxu0 %v15142_v44  ;;  %3676 = vmatmul.mubr.bf16.vlgmr.msra.gmra.mrb[20].mxu1 %v15142_v44 }
0x144e   :  { %3685 = vmatpush1.bf16.msra.mxu0 %v10262_v45  ;;  %3726 = vmatpush1.bf16.msra.mxu1 %v10264_v52  ;;  %v2549_v45 = vld [vmem:[%s18121_s10 + $0x250] sm:$0xff]  ;;  %v10327_v52 = vcombine.high %v2541_v42, %v2545_v33  ;;  %v2598_v42 = vld [vmem:[%s18121_s10 + $0x3d8] sm:$0xff] }
0x144f   :  { %3686 = vmatprep.subr.bf16.mxu0 %v10271_v43  ;;  %3727 = vmatprep.subr.bf16.mxu1 %v10273_v4  ;;  %v10329_v43 = vcombine.high %v2542_v15, %v2546_v20  ;;  %v2553_v4 = vld [vmem:[%s18121_s10 + $0x270] sm:$0xff]  ;;  %v2602_v33 = vld [vmem:[%s18121_s10 + $0x3f8] sm:$0xff]  ;;  %v10376_v20 = vcombine.low %v2590_v59, %v2594_v16 }
0x1450   :  { %3716 = vmatprep.mubr.bf16.mxu0 %v14942_v23  ;;  %3757 = vmatprep.mubr.bf16.mxu1 %v14942_v23  ;;  %v10334_v29 = vcombine.low %v2549_v45, %v2553_v4 }
0x1452   :  { %3687 = vmatpush1.bf16.msra.mxu0 %v10270_v32  ;;  %3728 = vmatpush1.bf16.msra.mxu1 %v10272_v0  ;;  %v2557_v32 = vld [vmem:[%s18121_s10 + $0x290] sm:$0xff]  ;;  %v10335_v0 = vcombine.high %v2549_v45, %v2553_v4  ;;  %v12519_v4 = vld [vmem:[%s18122_s13 + $0xc] ss:$16 sps:$4 sm:$0xff]  }
0x1453   :  { %3688 = vmatprep.subr.bf16.mxu0 %v10279_v17  ;;  %3729 = vmatprep.subr.bf16.mxu1 %v10281_v1  ;;  %v10337_v17 = vcombine.high %v2550_v8, %v2554_v50  ;;  %v2561_v1 = vld [vmem:[%s18121_s10 + $0x2b0] sm:$0xff]  ;;  %v12517_v50 = vld [vmem:[%s18122_s13 + $0x8] ss:$16 sps:$4 sm:$0xff]  }
0x1454   :  { %v10342_v3 = vcombine.low %v2557_v32, %v2561_v1  ;;  %v12514_v8 = vld [vmem:[%s18122_s13] ss:$16 sps:$4 sm:$0xff]  }
0x1456   :  { %3689 = vmatpush1.bf16.msra.mxu0 %v10278_v57  ;;  %3730 = vmatpush1.bf16.msra.mxu1 %v10280_v5  ;;  %v2565_v57 = vld [vmem:[%s18121_s10 + $0x2d0] sm:$0xff]  ;;  %v10343_v5 = vcombine.high %v2557_v32, %v2561_v1  ;;  %v12531_v1 = vld [vmem:[%s18122_s13 + $0x4c] ss:$16 sps:$4 sm:$0xff]  }
0x1457   :  { %3690 = vmatprep.subr.bf16.mxu0 %v10287_v7  ;;  %3731 = vmatprep.subr.bf16.mxu1 %v10289_v9  ;;  %v10345_v7 = vcombine.high %v2558_v30, %v2562_v31  ;;  %v2569_v9 = vld [vmem:[%s18121_s10 + $0x2f0] sm:$0xff]  ;;  %v12529_v31 = vld [vmem:[%s18122_s13 + $0x48] ss:$16 sps:$4 sm:$0xff]  }
0x1458   :  { %v10350_v60 = vcombine.low %v2565_v57, %v2569_v9  ;;  %v12520_v32 = vld [vmem:[%s18122_s13 + $0x20] ss:$16 sps:$4 sm:$0xff]  }
0x1459   :  { %v12526_v30 = vld [vmem:[%s18122_s13 + $0x40] ss:$16 sps:$4 sm:$0xff]  }
0x145a   :  { %3691 = vmatpush1.bf16.msra.mxu0 %v10286_v28  ;;  %3732 = vmatpush1.bf16.msra.mxu1 %v10288_v26  ;;  %v2573_v28 = vld [vmem:[%s18121_s10 + $0x310] sm:$0xff]  ;;  %v10351_v26 = vcombine.high %v2565_v57, %v2569_v9  ;;  %v12543_v9 = vld [vmem:[%s18122_s13 + $0x8c] ss:$16 sps:$4 sm:$0xff]  }
0x145b   :  { %3692 = vmatprep.subr.bf16.mxu0 %v10295_v41  ;;  %3733 = vmatprep.subr.bf16.mxu1 %v10297_v63  ;;  %v10353_v41 = vcombine.high %v2566_v27, %v2570_v40  ;;  %v2577_v63 = vld [vmem:[%s18121_s10 + $0x330] sm:$0xff]  ;;  %v12541_v40 = vld [vmem:[%s18122_s13 + $0x88] ss:$16 sps:$4 sm:$0xff]  }
0x145c   :  { %v10358_v62 = vcombine.low %v2573_v28, %v2577_v63  ;;  %v12532_v57 = vld [vmem:[%s18122_s13 + $0x60] ss:$16 sps:$4 sm:$0xff]  }
0x145d   :  { %v12538_v27 = vld [vmem:[%s18122_s13 + $0x80] ss:$16 sps:$4 sm:$0xff]  }
0x145e   :  { %3693 = vmatpush1.bf16.msra.mxu0 %v10294_v22  ;;  %3734 = vmatpush1.bf16.msra.mxu1 %v10296_v51  ;;  %v2581_v22 = vld [vmem:[%s18121_s10 + $0x350] sm:$0xff]  ;;  %v10359_v51 = vcombine.high %v2573_v28, %v2577_v63  ;;  %v12555_v63 = vld [vmem:[%s18122_s13 + $0xcc] ss:$16 sps:$4 sm:$0xff]  }
0x145f   :  { %3694 = vmatprep.subr.bf16.mxu0 %v10303_v10  ;;  %3735 = vmatprep.subr.bf16.mxu1 %v10305_v54  ;;  %v10361_v10 = vcombine.high %v2574_v6, %v2578_v55  ;;  %v2585_v54 = vld [vmem:[%s18121_s10 + $0x370] sm:$0xff]  ;;  %v12553_v55 = vld [vmem:[%s18122_s13 + $0xc8] ss:$16 sps:$4 sm:$0xff]  }
0x1460   :  { %v10366_v11 = vcombine.low %v2581_v22, %v2585_v54  ;;  %v12544_v28 = vld [vmem:[%s18122_s13 + $0xa0] ss:$16 sps:$4 sm:$0xff]  }
0x1461   :  { %v12550_v6 = vld [vmem:[%s18122_s13 + $0xc0] ss:$16 sps:$4 sm:$0xff]  }
0x1462   :  { %3695 = vmatpush1.bf16.msra.mxu0 %v10302_v58  ;;  %3736 = vmatpush1.bf16.msra.mxu1 %v10304_v2  ;;  %v2589_v58 = vld [vmem:[%s18121_s10 + $0x390] sm:$0xff]  ;;  %v10367_v2 = vcombine.high %v2581_v22, %v2585_v54  ;;  %v12567_v54 = vld [vmem:[%s18122_s13 + $0x10c] ss:$16 sps:$4 sm:$0xff]  }
0x1463   :  { %3696 = vmatprep.subr.bf16.mxu0 %v10311_v38  ;;  %3737 = vmatprep.subr.bf16.mxu1 %v10313_v53  ;;  %v10369_v38 = vcombine.high %v2582_v34, %v2586_v49  ;;  %v2593_v53 = vld [vmem:[%s18121_s10 + $0x3b0] sm:$0xff]  ;;  %v12565_v49 = vld [vmem:[%s18122_s13 + $0x108] ss:$16 sps:$4 sm:$0xff]  }
0x1464   :  { %v10374_v15 = vcombine.low %v2589_v58, %v2593_v53  ;;  %v12556_v22 = vld [vmem:[%s18122_s13 + $0xe0] ss:$16 sps:$4 sm:$0xff]  }
0x1465   :  { %v12562_v34 = vld [vmem:[%s18122_s13 + $0x100] ss:$16 sps:$4 sm:$0xff]  }
0x1466   :  { %3697 = vmatpush1.bf16.msra.mxu0 %v10310_v19  ;;  %3738 = vmatpush1.bf16.msra.mxu1 %v10312_v37  ;;  %v2597_v19 = vld [vmem:[%s18121_s10 + $0x3d0] sm:$0xff]  ;;  %v10375_v37 = vcombine.high %v2589_v58, %v2593_v53  ;;  %v12579_v53 = vld [vmem:[%s18122_s13 + $0x14c] ss:$16 sps:$4 sm:$0xff]  }
0x1467   :  { %3698 = vmatprep.subr.bf16.mxu0 %v10319_v46  ;;  %3739 = vmatprep.subr.bf16.mxu1 %v10321_v47  ;;  %v10377_v46 = vcombine.high %v2590_v59, %v2594_v16  ;;  %v2601_v47 = vld [vmem:[%s18121_s10 + $0x3f0] sm:$0xff]  ;;  %v12577_v16 = vld [vmem:[%s18122_s13 + $0x148] ss:$16 sps:$4 sm:$0xff]  }
0x1468   :  { %v10382_v45 = vcombine.low %v2597_v19, %v2601_v47  ;;  %v12568_v58 = vld [vmem:[%s18122_s13 + $0x120] ss:$16 sps:$4 sm:$0xff]  }
0x1469   :  { %v12574_v59 = vld [vmem:[%s18122_s13 + $0x140] ss:$16 sps:$4 sm:$0xff]  }
0x146a   :  { %3699 = vmatpush1.bf16.msra.mxu0 %v10318_v25  ;;  %3740 = vmatpush1.bf16.msra.mxu1 %v10320_v35  ;;  %v10383_v25 = vcombine.high %v2597_v19, %v2601_v47  ;;  %v10385_v35 = vcombine.high %v2598_v42, %v2602_v33  ;;  %v12580_v19 = vld [vmem:[%s18122_s13 + $0x160] ss:$16 sps:$4 sm:$0xff]   ;;  %v12591_v47 = vld [vmem:[%s18122_s13 + $0x18c] ss:$16 sps:$4 sm:$0xff]  }
0x146b   :  { %3700 = vmatprep.subr.bf16.mxu0 %v10327_v52  ;;  %3741 = vmatprep.subr.bf16.mxu1 %v10329_v43  ;;  %v10384_v52 = vcombine.low %v2598_v42, %v2602_v33  ;;  %v12516_v43 = vld [vmem:[%s18122_s13 + $0x4] ss:$16 sps:$4 sm:$0xff]   ;;  %v12586_v42 = vld [vmem:[%s18122_s13 + $0x180] ss:$16 sps:$4 sm:$0xff]   ;;  %v12589_v33 = vld [vmem:[%s18122_s13 + $0x188] ss:$16 sps:$4 sm:$0xff]  }
0x146e   :  { %3701 = vmatpush1.bf16.msra.mxu0 %v10326_v24  ;;  %3742 = vmatpush1.bf16.msra.mxu1 %v10328_v13  ;;  %v12522_v24 = vld [vmem:[%s18122_s13 + $0x24] ss:$16 sps:$4 sm:$0xff]   ;;  %v12525_v13 = vld [vmem:[%s18122_s13 + $0x2c] ss:$16 sps:$4 sm:$0xff]  }
0x146f   :  { %3702 = vmatprep.subr.bf16.mxu0 %v10335_v0  ;;  %3743 = vmatprep.subr.bf16.mxu1 %v10337_v17  ;;  %v12523_v0 = vld [vmem:[%s18122_s13 + $0x28] ss:$16 sps:$4 sm:$0xff]   ;;  %v12528_v17 = vld [vmem:[%s18122_s13 + $0x44] ss:$16 sps:$4 sm:$0xff]  }
0x1472   :  { %3703 = vmatpush1.bf16.msra.mxu0 %v10334_v29  ;;  %3744 = vmatpush1.bf16.msra.mxu1 %v10336_v39  ;;  %v12534_v29 = vld [vmem:[%s18122_s13 + $0x64] ss:$16 sps:$4 sm:$0xff]   ;;  %v12537_v39 = vld [vmem:[%s18122_s13 + $0x6c] ss:$16 sps:$4 sm:$0xff]  }
0x1473   :  { %3704 = vmatprep.subr.bf16.mxu0 %v10343_v5  ;;  %3745 = vmatprep.subr.bf16.mxu1 %v10345_v7  ;;  %v12535_v5 = vld [vmem:[%s18122_s13 + $0x68] ss:$16 sps:$4 sm:$0xff]   ;;  %v12540_v7 = vld [vmem:[%s18122_s13 + $0x84] ss:$16 sps:$4 sm:$0xff]  }
0x1476   :  { %3705 = vmatpush1.bf16.msra.mxu0 %v10342_v3  ;;  %3746 = vmatpush1.bf16.msra.mxu1 %v10344_v14  ;;  %v12546_v3 = vld [vmem:[%s18122_s13 + $0xa4] ss:$16 sps:$4 sm:$0xff]   ;;  %v12549_v14 = vld [vmem:[%s18122_s13 + $0xac] ss:$16 sps:$4 sm:$0xff]  }
0x1477   :  { %3706 = vmatprep.subr.bf16.mxu0 %v10351_v26  ;;  %3747 = vmatprep.subr.bf16.mxu1 %v10353_v41  ;;  %v12547_v26 = vld [vmem:[%s18122_s13 + $0xa8] ss:$16 sps:$4 sm:$0xff]   ;;  %v12552_v41 = vld [vmem:[%s18122_s13 + $0xc4] ss:$16 sps:$4 sm:$0xff]  }
0x147a   :  { %3707 = vmatpush1.bf16.msra.mxu0 %v10350_v60  ;;  %3748 = vmatpush1.bf16.msra.mxu1 %v10352_v12  ;;  %v12558_v60 = vld [vmem:[%s18122_s13 + $0xe4] ss:$16 sps:$4 sm:$0xff]   ;;  %v12561_v12 = vld [vmem:[%s18122_s13 + $0xec] ss:$16 sps:$4 sm:$0xff]  }
0x147b   :  { %3708 = vmatprep.subr.bf16.mxu0 %v10359_v51  ;;  %3749 = vmatprep.subr.bf16.mxu1 %v10361_v10  ;;  %v12559_v51 = vld [vmem:[%s18122_s13 + $0xe8] ss:$16 sps:$4 sm:$0xff]   ;;  %v12564_v10 = vld [vmem:[%s18122_s13 + $0x104] ss:$16 sps:$4 sm:$0xff]  }
0x147e   :  { %3709 = vmatpush1.bf16.msra.mxu0 %v10358_v62  ;;  %3750 = vmatpush1.bf16.msra.mxu1 %v10360_v48  ;;  %v12570_v62 = vld [vmem:[%s18122_s13 + $0x124] ss:$16 sps:$4 sm:$0xff]   ;;  %v12573_v48 = vld [vmem:[%s18122_s13 + $0x12c] ss:$16 sps:$4 sm:$0xff]  }
0x147f   :  { %3710 = vmatprep.subr.bf16.mxu0 %v10367_v2  ;;  %3751 = vmatprep.subr.bf16.mxu1 %v10369_v38  ;;  %v12571_v2 = vld [vmem:[%s18122_s13 + $0x128] ss:$16 sps:$4 sm:$0xff]   ;;  %v12576_v38 = vld [vmem:[%s18122_s13 + $0x144] ss:$16 sps:$4 sm:$0xff]  }
0x1482   :  { %3711 = vmatpush1.bf16.msra.mxu0 %v10366_v11  ;;  %3752 = vmatpush1.bf16.msra.mxu1 %v10368_v18  ;;  %v12582_v11 = vld [vmem:[%s18122_s13 + $0x164] ss:$16 sps:$4 sm:$0xff]   ;;  %v12585_v18 = vld [vmem:[%s18122_s13 + $0x16c] ss:$16 sps:$4 sm:$0xff]  }
0x1483   :  { %3712 = vmatprep.subr.bf16.mxu0 %v10375_v37  ;;  %3753 = vmatprep.subr.bf16.mxu1 %v10377_v46  ;;  %v12583_v37 = vld [vmem:[%s18122_s13 + $0x168] ss:$16 sps:$4 sm:$0xff]   ;;  %v12588_v46 = vld [vmem:[%s18122_s13 + $0x184] ss:$16 sps:$4 sm:$0xff]  }
0x1486   :  { %3713 = vmatpush1.bf16.msra.mxu0 %v10374_v15  ;;  %3754 = vmatpush1.bf16.msra.mxu1 %v10376_v20  ;;  %v12594_v15 = vld [vmem:[%s18122_s13 + $0x1a4] ss:$16 sps:$4 sm:$0xff]   ;;  %v12597_v20 = vld [vmem:[%s18122_s13 + $0x1ac] ss:$16 sps:$4 sm:$0xff]  }
0x1487   :  { %3714 = vmatprep.subr.bf16.mxu0 %v10383_v25  ;;  %3755 = vmatprep.subr.bf16.mxu1 %v10385_v35  ;;  %v12592_v25 = vld [vmem:[%s18122_s13 + $0x1a0] ss:$16 sps:$4 sm:$0xff]   ;;  %v12595_v35 = vld [vmem:[%s18122_s13 + $0x1a8] ss:$16 sps:$4 sm:$0xff]  }
0x148a   :  { %3715 = vmatpush1.bf16.msra.mxu0 %v10382_v45  ;;  %3756 = vmatpush1.bf16.msra.mxu1 %v10384_v52  ;;  %v12600_v45 = vld [vmem:[%s18122_s13 + $0x1c4] ss:$16 sps:$4 sm:$0xff]   ;;  %v12603_v52 = vld [vmem:[%s18122_s13 + $0x1cc] ss:$16 sps:$4 sm:$0xff]  }
0x148b   :  { %5390 = vmatprep.subr.bf16.mxu0 %v12516_v43  ;;  %5554 = vmatprep.subr.bf16.mxu1 %v12519_v4  ;;  %v12598_v43 = vld [vmem:[%s18122_s13 + $0x1c0] ss:$16 sps:$4 sm:$0xff]   ;;  %v12601_v4 = vld [vmem:[%s18122_s13 + $0x1c8] ss:$16 sps:$4 sm:$0xff]  }
0x148d   :  { %3717 = vmatmul.mubr.bf16.vlgmr.msra.gmra.mrb[24].mxu0 %v15142_v44  ;;  %3758 = vmatmul.mubr.bf16.vlgmr.msra.gmra.mrb[24].mxu1 %v15142_v44 }
0x148e   :  { %5391 = vmatpush1.bf16.msra.mxu0 %v12514_v8  ;;  %5555 = vmatpush1.bf16.msra.mxu1 %v12517_v50  ;;  %v12606_v8 = vld [vmem:[%s18122_s13 + $0x1e4] ss:$16 sps:$4 sm:$0xff]   ;;  %v12609_v50 = vld [vmem:[%s18122_s13 + $0x1ec] ss:$16 sps:$4 sm:$0xff]  }
0x148f   :  { %5392 = vmatprep.subr.bf16.mxu0 %v12522_v24  ;;  %5556 = vmatprep.subr.bf16.mxu1 %v12525_v13  ;;  %v12604_v24 = vld [vmem:[%s18122_s13 + $0x1e0] ss:$16 sps:$4 sm:$0xff]   ;;  %v12607_v13 = vld [vmem:[%s18122_s13 + $0x1e8] ss:$16 sps:$4 sm:$0xff]  }
0x1492   :  { %5393 = vmatpush1.bf16.msra.mxu0 %v12520_v32  ;;  %5557 = vmatpush1.bf16.msra.mxu1 %v12523_v0  ;;  %v12612_v32 = vld [vmem:[%s18122_s13 + $0x204] ss:$16 sps:$4 sm:$0xff]   ;;  %v12615_v0 = vld [vmem:[%s18122_s13 + $0x20c] ss:$16 sps:$4 sm:$0xff]  }
0x1493   :  { %5394 = vmatprep.subr.bf16.mxu0 %v12528_v17  ;;  %5558 = vmatprep.subr.bf16.mxu1 %v12531_v1 }
0x1496   :  { %5395 = vmatpush1.bf16.msra.mxu0 %v12526_v30  ;;  %5559 = vmatpush1.bf16.msra.mxu1 %v12529_v31 }
0x1497   :  { %5396 = vmatprep.subr.bf16.mxu0 %v12534_v29  ;;  %5560 = vmatprep.subr.bf16.mxu1 %v12537_v39 }
0x149a   :  { %5397 = vmatpush1.bf16.msra.mxu0 %v12532_v57  ;;  %5561 = vmatpush1.bf16.msra.mxu1 %v12535_v5 }
0x149b   :  { %5398 = vmatprep.subr.bf16.mxu0 %v12540_v7  ;;  %5562 = vmatprep.subr.bf16.mxu1 %v12543_v9 }
0x149e   :  { %5399 = vmatpush1.bf16.msra.mxu0 %v12538_v27  ;;  %5563 = vmatpush1.bf16.msra.mxu1 %v12541_v40 }
0x149f   :  { %5400 = vmatprep.subr.bf16.mxu0 %v12546_v3  ;;  %5564 = vmatprep.subr.bf16.mxu1 %v12549_v14 }
0x14a2   :  { %5401 = vmatpush1.bf16.msra.mxu0 %v12544_v28  ;;  %5565 = vmatpush1.bf16.msra.mxu1 %v12547_v26 }
0x14a3   :  { %5402 = vmatprep.subr.bf16.mxu0 %v12552_v41  ;;  %5566 = vmatprep.subr.bf16.mxu1 %v12555_v63  ;;  %v15527_v41 = vld [vmem:[%s18123_s12] sm:$0xff]  ;;  %v18173_v63 = vld [vmem:[#allocation5_spill] sm:$0xff] }
0x14a6   :  { %5403 = vmatpush1.bf16.msra.mxu0 %v12550_v6  ;;  %5567 = vmatpush1.bf16.msra.mxu1 %v12553_v55  ;;  %v15530_v6 = vsub.s32 3, %v18173_v63  ;;  %v3771_v55 = vrot.slane %v15527_v41, %v14132_v61 }
0x14a7   :  { %5404 = vmatprep.subr.bf16.mxu0 %v12558_v60  ;;  %5568 = vmatprep.subr.bf16.mxu1 %v12561_v12 }
0x14aa   :  { %5405 = vmatpush1.bf16.msra.mxu0 %v12556_v22  ;;  %5569 = vmatpush1.bf16.msra.mxu1 %v12559_v51  ;;  %v3775_v22 = vrot.slane %v15527_v41, %v18171_v21  ;;  %v3783_v51 = vrot.slane %v15527_v41, %v15530_v6 }
0x14ab   :  { %5406 = vmatprep.subr.bf16.mxu0 %v12564_v10  ;;  %5570 = vmatprep.subr.bf16.mxu1 %v12567_v54 }
0x14ae   :  { %5407 = vmatpush1.bf16.msra.mxu0 %v12562_v34  ;;  %5571 = vmatpush1.bf16.msra.mxu1 %v12565_v49 }
0x14af   :  { %5408 = vmatprep.subr.bf16.mxu0 %v12570_v62  ;;  %5572 = vmatprep.subr.bf16.mxu1 %v12573_v48 }
0x14b2   :  { %5409 = vmatpush1.bf16.msra.mxu0 %v12568_v58  ;;  %5573 = vmatpush1.bf16.msra.mxu1 %v12571_v2 }
0x14b3   :  { %5410 = vmatprep.subr.bf16.mxu0 %v12576_v38  ;;  %5574 = vmatprep.subr.bf16.mxu1 %v12579_v53 }
0x14b6   :  { %5411 = vmatpush1.bf16.msra.mxu0 %v12574_v59  ;;  %5575 = vmatpush1.bf16.msra.mxu1 %v12577_v16 }
0x14b7   :  { %5412 = vmatprep.subr.bf16.mxu0 %v12582_v11  ;;  %5576 = vmatprep.subr.bf16.mxu1 %v12585_v18 }
0x14ba   :  { %5413 = vmatpush1.bf16.msra.mxu0 %v12580_v19  ;;  %5577 = vmatpush1.bf16.msra.mxu1 %v12583_v37  ;;  %v12610_v37 = vld [vmem:[%s18122_s13 + $0x200] ss:$16 sps:$4 sm:$0xff]  }
0x14bb   :  { %5414 = vmatprep.subr.bf16.mxu0 %v12588_v46  ;;  %5578 = vmatprep.subr.bf16.mxu1 %v12591_v47  ;;  %v12613_v46 = vld [vmem:[%s18122_s13 + $0x208] ss:$16 sps:$4 sm:$0xff]  }
0x14be   :  { %5415 = vmatpush1.bf16.msra.mxu0 %v12586_v42  ;;  %5579 = vmatpush1.bf16.msra.mxu1 %v12589_v33  ;;  %v12618_v33 = vld [vmem:[%s18122_s13 + $0x224] ss:$16 sps:$4 sm:$0xff]  }
0x14bf   :  { %5416 = vmatprep.subr.bf16.mxu0 %v12594_v15  ;;  %5580 = vmatprep.subr.bf16.mxu1 %v12597_v20  ;;  %v12616_v20 = vld [vmem:[%s18122_s13 + $0x220] ss:$16 sps:$4 sm:$0xff]  }
0x14c2   :  { %5417 = vmatpush1.bf16.msra.mxu0 %v12592_v25  ;;  %5581 = vmatpush1.bf16.msra.mxu1 %v12595_v35  ;;  %v12619_v25 = vld [vmem:[%s18122_s13 + $0x228] ss:$16 sps:$4 sm:$0xff]   ;;  %v12621_v35 = vld [vmem:[%s18122_s13 + $0x22c] ss:$16 sps:$4 sm:$0xff]  }
0x14c3   :  { %5418 = vmatprep.subr.bf16.mxu0 %v12600_v45  ;;  %5582 = vmatprep.subr.bf16.mxu1 %v12603_v52  ;;  %v12624_v52 = vld [vmem:[%s18122_s13 + $0x244] ss:$16 sps:$4 sm:$0xff]  }
0x14c6   :  { %5419 = vmatpush1.bf16.msra.mxu0 %v12598_v43  ;;  %5583 = vmatpush1.bf16.msra.mxu1 %v12601_v4  ;;  %v12627_v43 = vld [vmem:[%s18122_s13 + $0x24c] ss:$16 sps:$4 sm:$0xff]   ;;  %v12622_v4 = vld [vmem:[%s18122_s13 + $0x240] ss:$16 sps:$4 sm:$0xff]  }
0x14c7   :  { %5420 = vmatprep.subr.bf16.mxu0 %v12606_v8  ;;  %5584 = vmatprep.subr.bf16.mxu1 %v12609_v50  ;;  %v12625_v8 = vld [vmem:[%s18122_s13 + $0x248] ss:$16 sps:$4 sm:$0xff]   ;;  %v12630_v50 = vld [vmem:[%s18122_s13 + $0x264] ss:$16 sps:$4 sm:$0xff]  }
0x14ca   :  { %5421 = vmatpush1.bf16.msra.mxu0 %v12604_v24  ;;  %5585 = vmatpush1.bf16.msra.mxu1 %v12607_v13  ;;  %v12633_v24 = vld [vmem:[%s18122_s13 + $0x26c] ss:$16 sps:$4 sm:$0xff]   ;;  %v12628_v13 = vld [vmem:[%s18122_s13 + $0x260] ss:$16 sps:$4 sm:$0xff]  }
0x14cb   :  { %5431 = vmatprep.subr.bf16.mxu0 %v12612_v32  ;;  %5595 = vmatprep.subr.bf16.mxu1 %v12615_v0  ;;  %v12631_v32 = vld [vmem:[%s18122_s13 + $0x268] ss:$16 sps:$4 sm:$0xff]   ;;  %v12636_v0 = vld [vmem:[%s18122_s13 + $0x284] ss:$16 sps:$4 sm:$0xff]  }
0x14d0   :  { %v2832_v17 = vpop.f32.mrb[12].mxu0  ;;  %v2873_v1 = vpop.f32.mrb[12].mxu1 }
0x14d1   :  { %v2834_v30 = vpop.f32.mrb[13].mxu0  ;;  %v2875_v31 = vpop.f32.mrb[13].mxu1 }
0x14d2   :  { %v2836_v29 = vpop.f32.mrb[14].mxu0  ;;  %v2877_v39 = vpop.f32.mrb[14].mxu1 }
0x14d3   :  { %v2837_v57 = vpop.f32.mrb[15].mxu0  ;;  %v2878_v5 = vpop.f32.mrb[15].mxu1  ;;  %v12645_v29 = vld [vmem:[%s18122_s13 + $0x2ac] ss:$16 sps:$4 sm:$0xff]   ;;  %v12640_v39 = vld [vmem:[%s18122_s13 + $0x2a0] ss:$16 sps:$4 sm:$0xff]  }
0x14d4   :  { %v12643_v57 = vld [vmem:[%s18122_s13 + $0x2a8] ss:$16 sps:$4 sm:$0xff]   ;;  %v12648_v5 = vld [vmem:[%s18122_s13 + $0x2c4] ss:$16 sps:$4 sm:$0xff]  }
0x14e0   :  { %v15516_v7 = vpop.f32.mrb[16].mxu0  ;;  %v15518_v9 = vpop.f32.mrb[16].mxu1 }
0x14e1   :  { %v15520_v27 = vpop.f32.mrb[17].mxu0  ;;  %v15522_v40 = vpop.f32.mrb[17].mxu1 }
0x14e2   :  { %v2918_v3 = vpop.f32.mrb[18].mxu0  ;;  %v2959_v14 = vpop.f32.mrb[18].mxu1 }
0x14e3   :  { %v2919_v28 = vpop.f32.mrb[19].mxu0  ;;  %v2960_v26 = vpop.f32.mrb[19].mxu1  ;;  %v12651_v3 = vld [vmem:[%s18122_s13 + $0x2cc] ss:$16 sps:$4 sm:$0xff]   ;;  %v12646_v14 = vld [vmem:[%s18122_s13 + $0x2c0] ss:$16 sps:$4 sm:$0xff]  }
0x14e4   :  { %v12649_v28 = vld [vmem:[%s18122_s13 + $0x2c8] ss:$16 sps:$4 sm:$0xff]   ;;  %v12654_v26 = vld [vmem:[%s18122_s13 + $0x2e4] ss:$16 sps:$4 sm:$0xff]  }
0x1520   :  { %v3636_v60 = vpop.f32.mrb[20].mxu0  ;;  %v3677_v12 = vpop.f32.mrb[20].mxu1 }
0x1521   :  { %v3637_v10 = vadd.f32 %v3636_v60, %v2832_v17  ;;  %v15538_v54 = vadd.f32 %v3677_v12, %v2873_v1  ;;  %v3638_v34 = vpop.f32.mrb[21].mxu0  ;;  %v3679_v49 = vpop.f32.mrb[21].mxu1  ;;  %v12639_v17 = vld [vmem:[%s18122_s13 + $0x28c] ss:$16 sps:$4 sm:$0xff]   ;;  %v12634_v1 = vld [vmem:[%s18122_s13 + $0x280] ss:$16 sps:$4 sm:$0xff]  }
0x1522   :  { %v3639_v62 = vadd.f32 %v3638_v34, %v2834_v30  ;;  %v3680_v48 = vadd.f32 %v3679_v49, %v2875_v31  ;;  %v3640_v58 = vpop.f32.mrb[22].mxu0  ;;  %v3681_v2 = vpop.f32.mrb[22].mxu1  ;;  %v12637_v30 = vld [vmem:[%s18122_s13 + $0x288] ss:$16 sps:$4 sm:$0xff]   ;;  %v12642_v31 = vld [vmem:[%s18122_s13 + $0x2a4] ss:$16 sps:$4 sm:$0xff]  }
0x1523   :  { %v3808_v38 = vadd.f32 %v3771_v55, %v3637_v10  ;;  %v3641_v53 = vpop.f32.mrb[23].mxu0  ;;  %v3682_v59 = vpop.f32.mrb[23].mxu1  ;;  %v12657_v55 = vld [vmem:[%s18122_s13 + $0x2ec] ss:$16 sps:$4 sm:$0xff]   ;;  %v12652_v60 = vld [vmem:[%s18122_s13 + $0x2e0] ss:$16 sps:$4 sm:$0xff]  }
0x1524   :  { %v3809_v16 = vadd.f32 %v3775_v22, %v3639_v62  ;;  %v3811_v11 = vadd.f32 %v3783_v51, %v3680_v48  ;;  %v12655_v12 = vld [vmem:[%s18122_s13 + $0x2e8] ss:$16 sps:$4 sm:$0xff]   ;;  %v12660_v22 = vld [vmem:[%s18122_s13 + $0x304] ss:$16 sps:$4 sm:$0xff]   ;;  %v12663_v51 = vld [vmem:[%s18122_s13 + $0x30c] ss:$16 sps:$4 sm:$0xff]  }
0x1525   :  { %v3816_v18 = vmax.f32 %v3808_v38, 0.0  ;;  %v12658_v10 = vld [vmem:[%s18122_s13 + $0x300] ss:$16 sps:$4 sm:$0xff]   ;;  %v12661_v34 = vld [vmem:[%s18122_s13 + $0x308] ss:$16 sps:$4 sm:$0xff]  }
0x1526   :  { %v3817_v19 = vmax.f32 %v3809_v16, 0.0  ;;  %v3819_v47 = vmax.f32 %v3811_v11, 0.0  ;;  %v12666_v49 = vld [vmem:[%s18122_s13 + $0x324] ss:$16 sps:$4 sm:$0xff]   ;;  %v12669_v62 = vld [vmem:[%s18122_s13 + $0x32c] ss:$16 sps:$4 sm:$0xff]  }
0x1527   :  { %v3824_v15 = vpack.c.bf16 %v3816_v18, %v3816_v18  ;;  %v12664_v48 = vld [vmem:[%s18122_s13 + $0x320] ss:$16 sps:$4 sm:$0xff]   ;;  %v12667_v58 = vld [vmem:[%s18122_s13 + $0x328] ss:$16 sps:$4 sm:$0xff]   ;;  %v12672_v2 = vld [vmem:[%s18122_s13 + $0x344] ss:$16 sps:$4 sm:$0xff]  }
0x1528   :  { %v3825_v42 = vpack.c.bf16 %v3817_v19, %v3817_v19  ;;  %v3827_v45 = vpack.c.bf16 %v3819_v47, %v3819_v47  ;;  %v12675_v38 = vld [vmem:[%s18122_s13 + $0x34c] ss:$16 sps:$4 sm:$0xff]   ;;  %v12670_v53 = vld [vmem:[%s18122_s13 + $0x340] ss:$16 sps:$4 sm:$0xff]   ;;  %v12673_v59 = vld [vmem:[%s18122_s13 + $0x348] ss:$16 sps:$4 sm:$0xff]  }
0x1529   :  { %v12678_v16 = vld [vmem:[%s18122_s13 + $0x364] ss:$16 sps:$4 sm:$0xff]   ;;  %v12681_v11 = vld [vmem:[%s18122_s13 + $0x36c] ss:$16 sps:$4 sm:$0xff]   ;;  %v12676_v18 = vld [vmem:[%s18122_s13 + $0x360] ss:$16 sps:$4 sm:$0xff]  }
0x152a   :  { %5422 = vmatprep.mubr.bf16.mxu0 %v3825_v42  ;;  %5586 = vmatprep.mubr.bf16.mxu1 %v3825_v42  ;;  %v12679_v19 = vld [vmem:[%s18122_s13 + $0x368] ss:$16 sps:$4 sm:$0xff]   ;;  %v12682_v47 = vld [vmem:[%s18122_s13 + $0x380] ss:$16 sps:$4 sm:$0xff]  }
0x152b   :  { %5423 = vmatmul.mubr.bf16.vlgmr.msra.gmra.mrb[28].mxu0 %v3824_v15  ;;  %5587 = vmatmul.mubr.bf16.vlgmr.msra.gmra.mrb[28].mxu1 %v3824_v15  ;;  %v12685_v42 = vld [vmem:[%s18122_s13 + $0x388] ss:$16 sps:$4 sm:$0xff]   ;;  %v12690_v15 = vld [vmem:[%s18122_s13 + $0x3a4] ss:$16 sps:$4 sm:$0xff]  }
0x152c   :  { %5432 = vmatpush1.bf16.msra.mxu0 %v12610_v37  ;;  %5596 = vmatpush1.bf16.msra.mxu1 %v12613_v46  ;;  %v12684_v37 = vld [vmem:[%s18122_s13 + $0x384] ss:$16 sps:$4 sm:$0xff]   ;;  %v12687_v46 = vld [vmem:[%s18122_s13 + $0x38c] ss:$16 sps:$4 sm:$0xff]  }
0x152d   :  { %5463 = vmatprep.mubr.bf16.mxu0 %v3827_v45  ;;  %5627 = vmatprep.mubr.bf16.mxu1 %v3827_v45  ;;  %v3790_v45 = vsub.s32 5, %v18173_v63 }
0x152e   :  { %5433 = vmatprep.subr.bf16.mxu0 %v12618_v33  ;;  %5597 = vmatprep.subr.bf16.mxu1 %v12621_v35  ;;  %v15691_v33 = vsub.s32 2, %v18173_v63  ;;  %v12691_v35 = vld [vmem:[%s18122_s13 + $0x3a8] ss:$16 sps:$4 sm:$0xff]  }
0x1530   :  { %5434 = vmatpush1.bf16.msra.mxu0 %v12616_v20  ;;  %5598 = vmatpush1.bf16.msra.mxu1 %v12619_v25  ;;  %v12693_v20 = vld [vmem:[%s18122_s13 + $0x3ac] ss:$16 sps:$4 sm:$0xff]   ;;  %v12688_v25 = vld [vmem:[%s18122_s13 + $0x3a0] ss:$16 sps:$4 sm:$0xff]  }
0x1531   :  { %5435 = vmatprep.subr.bf16.mxu0 %v12624_v52  ;;  %5599 = vmatprep.subr.bf16.mxu1 %v12627_v43  ;;  %v3779_v52 = vrot.slane %v15527_v41, %v15691_v33  ;;  %v12696_v43 = vld [vmem:[%s18122_s13 + $0x3c4] ss:$16 sps:$4 sm:$0xff]  }
0x1534   :  { %5436 = vmatpush1.bf16.msra.mxu0 %v12622_v4  ;;  %5600 = vmatpush1.bf16.msra.mxu1 %v12625_v8  ;;  %v12699_v4 = vld [vmem:[%s18122_s13 + $0x3cc] ss:$16 sps:$4 sm:$0xff]   ;;  %v12694_v8 = vld [vmem:[%s18122_s13 + $0x3c0] ss:$16 sps:$4 sm:$0xff]  }
0x1535   :  { %5437 = vmatprep.subr.bf16.mxu0 %v12630_v50  ;;  %5601 = vmatprep.subr.bf16.mxu1 %v12633_v24  ;;  %v12697_v50 = vld [vmem:[%s18122_s13 + $0x3c8] ss:$16 sps:$4 sm:$0xff]  }
0x1538   :  { %5438 = vmatpush1.bf16.msra.mxu0 %v12628_v13  ;;  %5602 = vmatpush1.bf16.msra.mxu1 %v12631_v32  ;;  %v3791_v32 = vrot.slane %v15527_v41, %v3790_v45 }
0x1539   :  { %5439 = vmatprep.subr.bf16.mxu0 %v12636_v0  ;;  %5603 = vmatprep.subr.bf16.mxu1 %v12639_v17  ;;  %v3810_v0 = vadd.f32 %v3779_v52, %v15538_v54  ;;  %v12747_v52 = vld [vmem:[%s18122_s13 + $0x4cc] ss:$16 sps:$4 sm:$0xff]  }
0x153c   :  { %5440 = vmatpush1.bf16.msra.mxu0 %v12634_v1  ;;  %5604 = vmatpush1.bf16.msra.mxu1 %v12637_v30 }
0x153d   :  { %5441 = vmatprep.subr.bf16.mxu0 %v12642_v31  ;;  %5605 = vmatprep.subr.bf16.mxu1 %v12645_v29  ;;  %v12702_v29 = vld [vmem:[%s18122_s13 + $0x3e4] ss:$16 sps:$4 sm:$0xff]  }
0x1540   :  { %5442 = vmatpush1.bf16.msra.mxu0 %v12640_v39  ;;  %5606 = vmatpush1.bf16.msra.mxu1 %v12643_v57  ;;  %v12705_v39 = vld [vmem:[%s18122_s13 + $0x3ec] ss:$16 sps:$4 sm:$0xff]   ;;  %v12703_v57 = vld [vmem:[%s18122_s13 + $0x3e8] ss:$16 sps:$4 sm:$0xff]  }
0x1541   :  { %5443 = vmatprep.subr.bf16.mxu0 %v12648_v5  ;;  %5607 = vmatprep.subr.bf16.mxu1 %v12651_v3 }
0x1544   :  { %5444 = vmatpush1.bf16.msra.mxu0 %v12646_v14  ;;  %5608 = vmatpush1.bf16.msra.mxu1 %v12649_v28 }
0x1545   :  { %5445 = vmatprep.subr.bf16.mxu0 %v12654_v26  ;;  %5609 = vmatprep.subr.bf16.mxu1 %v12657_v55  ;;  %v3818_v55 = vmax.f32 %v3810_v0, 0.0  ;;  %v12759_v0 = vld [vmem:[%s18122_s13 + $0x50c] ss:$16 sps:$4 sm:$0xff]  }
0x1548   :  { %5446 = vmatpush1.bf16.msra.mxu0 %v12652_v60  ;;  %5610 = vmatpush1.bf16.msra.mxu1 %v12655_v12  ;;  %v12706_v12 = vld [vmem:[%s18122_s13 + $0x400] ss:$16 sps:$4 sm:$0xff]  }
0x1549   :  { %5447 = vmatprep.subr.bf16.mxu0 %v12660_v22  ;;  %5611 = vmatprep.subr.bf16.mxu1 %v12663_v51  ;;  %v3826_v51 = vpack.c.bf16 %v3818_v55, %v3818_v55  ;;  %v12772_v55 = vld [vmem:[%s18122_s13 + $0x560] ss:$16 sps:$4 sm:$0xff]  }
0x154c   :  { %5448 = vmatpush1.bf16.msra.mxu0 %v12658_v10  ;;  %5612 = vmatpush1.bf16.msra.mxu1 %v12661_v34  ;;  %v12709_v10 = vld [vmem:[%s18122_s13 + $0x408] ss:$16 sps:$4 sm:$0xff]   ;;  %v12714_v34 = vld [vmem:[%s18122_s13 + $0x424] ss:$16 sps:$4 sm:$0xff]  }
0x154d   :  { %5449 = vmatprep.subr.bf16.mxu0 %v12666_v49  ;;  %5613 = vmatprep.subr.bf16.mxu1 %v12669_v62  ;;  %v12717_v49 = vld [vmem:[%s18122_s13 + $0x42c] ss:$16 sps:$4 sm:$0xff]   ;;  %v12712_v62 = vld [vmem:[%s18122_s13 + $0x420] ss:$16 sps:$4 sm:$0xff]  }
0x1550   :  { %5450 = vmatpush1.bf16.msra.mxu0 %v12664_v48  ;;  %5614 = vmatpush1.bf16.msra.mxu1 %v12667_v58  ;;  %v12715_v48 = vld [vmem:[%s18122_s13 + $0x428] ss:$16 sps:$4 sm:$0xff]   ;;  %v12720_v58 = vld [vmem:[%s18122_s13 + $0x444] ss:$16 sps:$4 sm:$0xff]  }
0x1551   :  { %5451 = vmatprep.subr.bf16.mxu0 %v12672_v2  ;;  %5615 = vmatprep.subr.bf16.mxu1 %v12675_v38  ;;  %v12723_v2 = vld [vmem:[%s18122_s13 + $0x44c] ss:$16 sps:$4 sm:$0xff]   ;;  %v12718_v38 = vld [vmem:[%s18122_s13 + $0x440] ss:$16 sps:$4 sm:$0xff]  }
0x1554   :  { %5452 = vmatpush1.bf16.msra.mxu0 %v12670_v53  ;;  %5616 = vmatpush1.bf16.msra.mxu1 %v12673_v59  ;;  %v12721_v53 = vld [vmem:[%s18122_s13 + $0x448] ss:$16 sps:$4 sm:$0xff]   ;;  %v12726_v59 = vld [vmem:[%s18122_s13 + $0x464] ss:$16 sps:$4 sm:$0xff]  }
0x1555   :  { %5453 = vmatprep.subr.bf16.mxu0 %v12678_v16  ;;  %5617 = vmatprep.subr.bf16.mxu1 %v12681_v11  ;;  %v12729_v16 = vld [vmem:[%s18122_s13 + $0x46c] ss:$16 sps:$4 sm:$0xff]   ;;  %v12724_v11 = vld [vmem:[%s18122_s13 + $0x460] ss:$16 sps:$4 sm:$0xff]  }
0x1558   :  { %5454 = vmatpush1.bf16.msra.mxu0 %v12676_v18  ;;  %5618 = vmatpush1.bf16.msra.mxu1 %v12679_v19  ;;  %v12727_v18 = vld [vmem:[%s18122_s13 + $0x468] ss:$16 sps:$4 sm:$0xff]   ;;  %v12732_v19 = vld [vmem:[%s18122_s13 + $0x484] ss:$16 sps:$4 sm:$0xff]  }
0x1559   :  { %5455 = vmatprep.subr.bf16.mxu0 %v12684_v37  ;;  %5619 = vmatprep.subr.bf16.mxu1 %v12687_v46  ;;  %v12735_v37 = vld [vmem:[%s18122_s13 + $0x48c] ss:$16 sps:$4 sm:$0xff]   ;;  %v12730_v46 = vld [vmem:[%s18122_s13 + $0x480] ss:$16 sps:$4 sm:$0xff]  }
0x155c   :  { %5456 = vmatpush1.bf16.msra.mxu0 %v12682_v47  ;;  %5620 = vmatpush1.bf16.msra.mxu1 %v12685_v42  ;;  %v12733_v47 = vld [vmem:[%s18122_s13 + $0x488] ss:$16 sps:$4 sm:$0xff]   ;;  %v12738_v42 = vld [vmem:[%s18122_s13 + $0x4a4] ss:$16 sps:$4 sm:$0xff]  }
0x155d   :  { %5457 = vmatprep.subr.bf16.mxu0 %v12690_v15  ;;  %5621 = vmatprep.subr.bf16.mxu1 %v12693_v20  ;;  %v12741_v15 = vld [vmem:[%s18122_s13 + $0x4ac] ss:$16 sps:$4 sm:$0xff]   ;;  %v12736_v20 = vld [vmem:[%s18122_s13 + $0x4a0] ss:$16 sps:$4 sm:$0xff]  }
0x1560   :  { %5458 = vmatpush1.bf16.msra.mxu0 %v12688_v25  ;;  %5622 = vmatpush1.bf16.msra.mxu1 %v12691_v35  ;;  %v3718_v24 = vpop.f32.mrb[24].mxu0  ;;  %v3759_v13 = vpop.f32.mrb[24].mxu1  ;;  %v12739_v25 = vld [vmem:[%s18122_s13 + $0x4a8] ss:$16 sps:$4 sm:$0xff]   ;;  %v12744_v35 = vld [vmem:[%s18122_s13 + $0x4c4] ss:$16 sps:$4 sm:$0xff]  }
0x1561   :  { %v15725_v17 = vadd.f32 %v3718_v24, %v15516_v7  ;;  %v15728_v1 = vadd.f32 %v3759_v13, %v15518_v9  ;;  %v3720_v30 = vpop.f32.mrb[25].mxu0  ;;  %v3761_v31 = vpop.f32.mrb[25].mxu1  ;;  %5459 = vmatprep.subr.bf16.mxu0 %v12696_v43  ;;  %5623 = vmatprep.subr.bf16.mxu1 %v12699_v4  ;;  %v12700_v9 = vld [vmem:[%s18122_s13 + $0x3e0] ss:$16 sps:$4 sm:$0xff]   ;;  %v12745_v4 = vld [vmem:[%s18122_s13 + $0x4c8] ss:$16 sps:$4 sm:$0xff]  }
0x1562   :  { %v3721_v54 = vadd.f32 %v3720_v30, %v15520_v27  ;;  %v15738_v7 = vadd.f32 %v3761_v31, %v15522_v40  ;;  %v3722_v5 = vpop.f32.mrb[26].mxu0  ;;  %v3763_v3 = vpop.f32.mrb[26].mxu1  ;;  %v12708_v27 = vld [vmem:[%s18122_s13 + $0x404] ss:$16 sps:$4 sm:$0xff]   ;;  %v12711_v40 = vld [vmem:[%s18122_s13 + $0x40c] ss:$16 sps:$4 sm:$0xff]  }
0x1563   :  { %v3723_v14 = vpop.f32.mrb[27].mxu0  ;;  %v3764_v28 = vpop.f32.mrb[27].mxu1  ;;  %v12742_v43 = vld [vmem:[%s18122_s13 + $0x4c0] ss:$16 sps:$4 sm:$0xff]   ;;  %v12751_v13 = vld [vmem:[%s18122_s13 + $0x4e8] ss:$16 sps:$4 sm:$0xff]  }
0x1564   :  { %v3813_v26 = vadd.f32 %v3791_v32, %v3721_v54  ;;  %5460 = vmatpush1.bf16.msra.mxu0 %v12694_v8  ;;  %5624 = vmatpush1.bf16.msra.mxu1 %v12697_v50  ;;  %v12750_v8 = vld [vmem:[%s18122_s13 + $0x4e4] ss:$16 sps:$4 sm:$0xff]   ;;  %v12753_v50 = vld [vmem:[%s18122_s13 + $0x4ec] ss:$16 sps:$4 sm:$0xff]   ;;  %v12748_v24 = vld [vmem:[%s18122_s13 + $0x4e0] ss:$16 sps:$4 sm:$0xff]  }
0x1565   :  { %5461 = vmatprep.subr.bf16.mxu0 %v12702_v29  ;;  %5625 = vmatprep.subr.bf16.mxu1 %v12705_v39  ;;  %v12756_v32 = vld [vmem:[%s18122_s13 + $0x504] ss:$16 sps:$4 sm:$0xff]   ;;  %v12754_v30 = vld [vmem:[%s18122_s13 + $0x500] ss:$16 sps:$4 sm:$0xff]   ;;  %v12757_v31 = vld [vmem:[%s18122_s13 + $0x508] ss:$16 sps:$4 sm:$0xff]  }
0x1566   :  { %v3821_v60 = vmax.f32 %v3813_v26, 0.0  ;;  %v12762_v29 = vld [vmem:[%s18122_s13 + $0x524] ss:$16 sps:$4 sm:$0xff]   ;;  %v12765_v39 = vld [vmem:[%s18122_s13 + $0x52c] ss:$16 sps:$4 sm:$0xff]  }
0x1567   :  { %v12760_v54 = vld [vmem:[%s18122_s13 + $0x520] ss:$16 sps:$4 sm:$0xff]   ;;  %v12771_v5 = vld [vmem:[%s18122_s13 + $0x54c] ss:$16 sps:$4 sm:$0xff]   ;;  %v12769_v14 = vld [vmem:[%s18122_s13 + $0x548] ss:$16 sps:$4 sm:$0xff]  }
0x1568   :  { %v3829_v22 = vpack.c.bf16 %v3821_v60, %v3821_v60  ;;  %5462 = vmatpush1.bf16.msra.mxu0 %v12700_v9  ;;  %5626 = vmatpush1.bf16.msra.mxu1 %v12703_v57  ;;  %v12763_v9 = vld [vmem:[%s18122_s13 + $0x528] ss:$16 sps:$4 sm:$0xff]   ;;  %v12768_v57 = vld [vmem:[%s18122_s13 + $0x544] ss:$16 sps:$4 sm:$0xff]   ;;  %v12766_v3 = vld [vmem:[%s18122_s13 + $0x540] ss:$16 sps:$4 sm:$0xff]  }
0x1569   :  { %5472 = vmatprep.subr.bf16.mxu0 %v12708_v27  ;;  %5636 = vmatprep.subr.bf16.mxu1 %v12711_v40  ;;  %v12774_v28 = vld [vmem:[%s18122_s13 + $0x564] ss:$16 sps:$4 sm:$0xff]   ;;  %v12777_v26 = vld [vmem:[%s18122_s13 + $0x56c] ss:$16 sps:$4 sm:$0xff]   ;;  %v12775_v27 = vld [vmem:[%s18122_s13 + $0x568] ss:$16 sps:$4 sm:$0xff]  }
0x156a   :  { %v12780_v40 = vld [vmem:[%s18122_s13 + $0x584] ss:$16 sps:$4 sm:$0xff]   ;;  %v12783_v60 = vld [vmem:[%s18122_s13 + $0x58c] ss:$16 sps:$4 sm:$0xff]  }
0x156b   :  { %5464 = vmatmul.mubr.bf16.vlgmr.msra.gmra.mrb[28].mxu0 %v3826_v51  ;;  %5628 = vmatmul.mubr.bf16.vlgmr.msra.gmra.mrb[28].mxu1 %v3826_v51  ;;  %v12781_v51 = vld [vmem:[%s18122_s13 + $0x588] ss:$16 sps:$4 sm:$0xff]  }
0x156c   :  { %5473 = vmatpush1.bf16.msra.mxu0 %v12706_v12  ;;  %5504 = vmatprep.mubr.bf16.mxu0 %v3829_v22  ;;  %v12778_v12 = vld [vmem:[%s18122_s13 + $0x580] ss:$16 sps:$4 sm:$0xff]  }
0x156d   :  { %5637 = vmatpush1.bf16.msra.mxu1 %v12709_v10  ;;  %5668 = vmatprep.mubr.bf16.mxu1 %v3829_v22  ;;  %v3786_v22 = vsub.s32 4, %v18173_v63  ;;  %v12786_v10 = vld [vmem:[%s18122_s13 + $0x5a4] ss:$16 sps:$4 sm:$0xff]  }
0x156e   :  { %5474 = vmatprep.subr.bf16.mxu0 %v12714_v34  ;;  %5638 = vmatprep.subr.bf16.mxu1 %v12717_v49  ;;  %v12789_v34 = vld [vmem:[%s18122_s13 + $0x5ac] ss:$16 sps:$4 sm:$0xff]   ;;  %v3798_v49 = vsub.s32 7, %v18173_v63 }
0x1570   :  { %5475 = vmatpush1.bf16.msra.mxu0 %v12712_v62  ;;  %v12784_v62 = vld [vmem:[%s18122_s13 + $0x5a0] ss:$16 sps:$4 sm:$0xff]  }
0x1571   :  { %5639 = vmatpush1.bf16.msra.mxu1 %v12715_v48  ;;  %5476 = vmatprep.subr.bf16.mxu0 %v12720_v58  ;;  %v3787_v48 = vrot.slane %v15527_v41, %v3786_v22  ;;  %v12787_v58 = vld [vmem:[%s18122_s13 + $0x5a8] ss:$16 sps:$4 sm:$0xff]  }
0x1572   :  { %5640 = vmatprep.subr.bf16.mxu1 %v12723_v2  ;;  %v12792_v2 = vld [vmem:[%s18122_s13 + $0x5c4] ss:$16 sps:$4 sm:$0xff]  }
0x1574   :  { %5477 = vmatpush1.bf16.msra.mxu0 %v12718_v38  ;;  %v12795_v38 = vld [vmem:[%s18122_s13 + $0x5cc] ss:$16 sps:$4 sm:$0xff]  }
0x1575   :  { %5641 = vmatpush1.bf16.msra.mxu1 %v12721_v53  ;;  %5478 = vmatprep.subr.bf16.mxu0 %v12726_v59  ;;  %v3799_v53 = vrot.slane %v15527_v41, %v3798_v49  ;;  %v12790_v59 = vld [vmem:[%s18122_s13 + $0x5c0] ss:$16 sps:$4 sm:$0xff]   ;;  %v12801_v41 = vld [vmem:[%s18122_s13 + $0x5ec] ss:$16 sps:$4 sm:$0xff]  }
0x1576   :  { %5642 = vmatprep.subr.bf16.mxu1 %v12729_v16  ;;  %v3812_v16 = vadd.f32 %v3787_v48, %v15725_v17  ;;  %v12796_v17 = vld [vmem:[%s18122_s13 + $0x5e0] ss:$16 sps:$4 sm:$0xff]  }
0x1577   :  { %v12850_v48 = vld [vmem:[%s18122_s13 + $0x700] ss:$16 sps:$4 sm:$0xff]  }
0x1578   :  { %5479 = vmatpush1.bf16.msra.mxu0 %v12724_v11  ;;  %v12793_v11 = vld [vmem:[%s18122_s13 + $0x5c8] ss:$16 sps:$4 sm:$0xff]  }
0x1579   :  { %5643 = vmatpush1.bf16.msra.mxu1 %v12727_v18  ;;  %5480 = vmatprep.subr.bf16.mxu0 %v12732_v19  ;;  %v12798_v18 = vld [vmem:[%s18122_s13 + $0x5e4] ss:$16 sps:$4 sm:$0xff]   ;;  %v3815_v19 = vadd.f32 %v3799_v53, %v15738_v7  ;;  %v12807_v7 = vld [vmem:[%s18122_s13 + $0x60c] ss:$16 sps:$4 sm:$0xff]   ;;  %v12856_v53 = vld [vmem:[%s18122_s13 + $0x720] ss:$16 sps:$4 sm:$0xff]  }
0x157a   :  { %5644 = vmatprep.subr.bf16.mxu1 %v12735_v37  ;;  %v3820_v37 = vmax.f32 %v3812_v16, 0.0  ;;  %v12864_v16 = vld [vmem:[%s18122_s13 + $0x744] ss:$16 sps:$4 sm:$0xff]  }
0x157c   :  { %5481 = vmatpush1.bf16.msra.mxu0 %v12730_v46  ;;  %v12799_v46 = vld [vmem:[%s18122_s13 + $0x5e8] ss:$16 sps:$4 sm:$0xff]  }
0x157d   :  { %5645 = vmatpush1.bf16.msra.mxu1 %v12733_v47  ;;  %5482 = vmatprep.subr.bf16.mxu0 %v12738_v42  ;;  %v12804_v47 = vld [vmem:[%s18122_s13 + $0x604] ss:$16 sps:$4 sm:$0xff]   ;;  %v3823_v42 = vmax.f32 %v3815_v19, 0.0 }
0x157e   :  { %5646 = vmatprep.subr.bf16.mxu1 %v12741_v15  ;;  %v12802_v15 = vld [vmem:[%s18122_s13 + $0x600] ss:$16 sps:$4 sm:$0xff]   ;;  %v12870_v19 = vld [vmem:[%s18122_s13 + $0x764] ss:$16 sps:$4 sm:$0xff]  }
0x1580   :  { %5483 = vmatpush1.bf16.msra.mxu0 %v12736_v20  ;;  %v3828_v20 = vpack.c.bf16 %v3820_v37, %v3820_v37  ;;  %v12868_v37 = vld [vmem:[%s18122_s13 + $0x760] ss:$16 sps:$4 sm:$0xff]  }
0x1581   :  { %5647 = vmatpush1.bf16.msra.mxu1 %v12739_v25  ;;  %5484 = vmatprep.subr.bf16.mxu0 %v12744_v35  ;;  %v12805_v25 = vld [vmem:[%s18122_s13 + $0x608] ss:$16 sps:$4 sm:$0xff]   ;;  %v12810_v35 = vld [vmem:[%s18122_s13 + $0x624] ss:$16 sps:$4 sm:$0xff]  }
0x1582   :  { %5648 = vmatprep.subr.bf16.mxu1 %v12747_v52  ;;  %v3831_v52 = vpack.c.bf16 %v3823_v42, %v3823_v42  ;;  %v12874_v42 = vld [vmem:[%s18122_s13 + $0x780] ss:$16 sps:$4 sm:$0xff]  }
0x1584   :  { %5485 = vmatpush1.bf16.msra.mxu0 %v12742_v43  ;;  %v12813_v43 = vld [vmem:[%s18122_s13 + $0x62c] ss:$16 sps:$4 sm:$0xff]  }
0x1585   :  { %5649 = vmatpush1.bf16.msra.mxu1 %v12745_v4  ;;  %5486 = vmatprep.subr.bf16.mxu0 %v12750_v8  ;;  %v12808_v4 = vld [vmem:[%s18122_s13 + $0x620] ss:$16 sps:$4 sm:$0xff]   ;;  %v12811_v8 = vld [vmem:[%s18122_s13 + $0x628] ss:$16 sps:$4 sm:$0xff]  }
0x1586   :  { %5650 = vmatprep.subr.bf16.mxu1 %v12753_v50  ;;  %v12816_v50 = vld [vmem:[%s18122_s13 + $0x644] ss:$16 sps:$4 sm:$0xff]  }
0x1588   :  { %5487 = vmatpush1.bf16.msra.mxu0 %v12748_v24  ;;  %v12819_v24 = vld [vmem:[%s18122_s13 + $0x64c] ss:$16 sps:$4 sm:$0xff]  }
0x1589   :  { %5651 = vmatpush1.bf16.msra.mxu1 %v12751_v13  ;;  %5488 = vmatprep.subr.bf16.mxu0 %v12756_v32  ;;  %v12814_v13 = vld [vmem:[%s18122_s13 + $0x640] ss:$16 sps:$4 sm:$0xff]   ;;  %v12817_v32 = vld [vmem:[%s18122_s13 + $0x648] ss:$16 sps:$4 sm:$0xff]  }
0x158a   :  { %5652 = vmatprep.subr.bf16.mxu1 %v12759_v0  ;;  %v12822_v0 = vld [vmem:[%s18122_s13 + $0x664] ss:$16 sps:$4 sm:$0xff]  }
0x158c   :  { %5489 = vmatpush1.bf16.msra.mxu0 %v12754_v30  ;;  %v12825_v30 = vld [vmem:[%s18122_s13 + $0x66c] ss:$16 sps:$4 sm:$0xff]  }
0x158d   :  { %5653 = vmatpush1.bf16.msra.mxu1 %v12757_v31  ;;  %5490 = vmatprep.subr.bf16.mxu0 %v12762_v29  ;;  %v12820_v31 = vld [vmem:[%s18122_s13 + $0x660] ss:$16 sps:$4 sm:$0xff]   ;;  %v12823_v29 = vld [vmem:[%s18122_s13 + $0x668] ss:$16 sps:$4 sm:$0xff]  }
0x158e   :  { %5654 = vmatprep.subr.bf16.mxu1 %v12765_v39  ;;  %v12828_v39 = vld [vmem:[%s18122_s13 + $0x684] ss:$16 sps:$4 sm:$0xff]  }
0x1590   :  { %5491 = vmatpush1.bf16.msra.mxu0 %v12760_v54  ;;  %v12831_v54 = vld [vmem:[%s18122_s13 + $0x68c] ss:$16 sps:$4 sm:$0xff]  }
0x1591   :  { %5655 = vmatpush1.bf16.msra.mxu1 %v12763_v9  ;;  %5492 = vmatprep.subr.bf16.mxu0 %v12768_v57  ;;  %v12826_v9 = vld [vmem:[%s18122_s13 + $0x680] ss:$16 sps:$4 sm:$0xff]   ;;  %v12829_v57 = vld [vmem:[%s18122_s13 + $0x688] ss:$16 sps:$4 sm:$0xff]  }
0x1592   :  { %5656 = vmatprep.subr.bf16.mxu1 %v12771_v5  ;;  %v12834_v5 = vld [vmem:[%s18122_s13 + $0x6a4] ss:$16 sps:$4 sm:$0xff]  }
0x1594   :  { %5493 = vmatpush1.bf16.msra.mxu0 %v12766_v3  ;;  %v12837_v3 = vld [vmem:[%s18122_s13 + $0x6ac] ss:$16 sps:$4 sm:$0xff]  }
0x1595   :  { %5657 = vmatpush1.bf16.msra.mxu1 %v12769_v14  ;;  %5494 = vmatprep.subr.bf16.mxu0 %v12774_v28  ;;  %v12832_v14 = vld [vmem:[%s18122_s13 + $0x6a0] ss:$16 sps:$4 sm:$0xff]   ;;  %v12835_v28 = vld [vmem:[%s18122_s13 + $0x6a8] ss:$16 sps:$4 sm:$0xff]  }
0x1596   :  { %5658 = vmatprep.subr.bf16.mxu1 %v12777_v26  ;;  %v12840_v26 = vld [vmem:[%s18122_s13 + $0x6c4] ss:$16 sps:$4 sm:$0xff]  }
0x1598   :  { %5495 = vmatpush1.bf16.msra.mxu0 %v12772_v55  ;;  %v12843_v55 = vld [vmem:[%s18122_s13 + $0x6cc] ss:$16 sps:$4 sm:$0xff]  }
0x1599   :  { %5659 = vmatpush1.bf16.msra.mxu1 %v12775_v27  ;;  %5496 = vmatprep.subr.bf16.mxu0 %v12780_v40  ;;  %v12838_v27 = vld [vmem:[%s18122_s13 + $0x6c0] ss:$16 sps:$4 sm:$0xff]   ;;  %v12841_v40 = vld [vmem:[%s18122_s13 + $0x6c8] ss:$16 sps:$4 sm:$0xff]  }
0x159a   :  { %5660 = vmatprep.subr.bf16.mxu1 %v12783_v60  ;;  %v12846_v60 = vld [vmem:[%s18122_s13 + $0x6e4] ss:$16 sps:$4 sm:$0xff]  }
0x159c   :  { %5497 = vmatpush1.bf16.msra.mxu0 %v12778_v12  ;;  %v12849_v12 = vld [vmem:[%s18122_s13 + $0x6ec] ss:$16 sps:$4 sm:$0xff]  }
0x159d   :  { %5661 = vmatpush1.bf16.msra.mxu1 %v12781_v51  ;;  %5498 = vmatprep.subr.bf16.mxu0 %v12786_v10  ;;  %v12844_v51 = vld [vmem:[%s18122_s13 + $0x6e0] ss:$16 sps:$4 sm:$0xff]   ;;  %v12847_v10 = vld [vmem:[%s18122_s13 + $0x6e8] ss:$16 sps:$4 sm:$0xff]  }
0x159e   :  { %5662 = vmatprep.subr.bf16.mxu1 %v12789_v34  ;;  %v12852_v34 = vld [vmem:[%s18122_s13 + $0x704] ss:$16 sps:$4 sm:$0xff]  }
0x15a0   :  { %5499 = vmatpush1.bf16.msra.mxu0 %v12784_v62  ;;  %v12855_v62 = vld [vmem:[%s18122_s13 + $0x70c] ss:$16 sps:$4 sm:$0xff]  }
0x15a1   :  { %5663 = vmatpush1.bf16.msra.mxu1 %v12787_v58  ;;  %5500 = vmatprep.subr.bf16.mxu0 %v12792_v2  ;;  %v12853_v58 = vld [vmem:[%s18122_s13 + $0x708] ss:$16 sps:$4 sm:$0xff]   ;;  %v12858_v2 = vld [vmem:[%s18122_s13 + $0x724] ss:$16 sps:$4 sm:$0xff]  }
0x15a2   :  { %5664 = vmatprep.subr.bf16.mxu1 %v12795_v38  ;;  %v12861_v38 = vld [vmem:[%s18122_s13 + $0x72c] ss:$16 sps:$4 sm:$0xff]  }
0x15a4   :  { %5501 = vmatpush1.bf16.msra.mxu0 %v12790_v59  ;;  %v12859_v59 = vld [vmem:[%s18122_s13 + $0x728] ss:$16 sps:$4 sm:$0xff]  }
0x15a5   :  { %5665 = vmatpush1.bf16.msra.mxu1 %v12793_v11  ;;  %5502 = vmatprep.subr.bf16.mxu0 %v12798_v18  ;;  %v12867_v11 = vld [vmem:[%s18122_s13 + $0x74c] ss:$16 sps:$4 sm:$0xff]   ;;  %v12862_v18 = vld [vmem:[%s18122_s13 + $0x740] ss:$16 sps:$4 sm:$0xff]  }
0x15a6   :  { %5666 = vmatprep.subr.bf16.mxu1 %v12801_v41  ;;  %v12865_v41 = vld [vmem:[%s18122_s13 + $0x748] ss:$16 sps:$4 sm:$0xff]  }
0x15a8   :  { %5503 = vmatpush1.bf16.msra.mxu0 %v12796_v17  ;;  %v12873_v17 = vld [vmem:[%s18122_s13 + $0x76c] ss:$16 sps:$4 sm:$0xff]  }
0x15a9   :  { %5667 = vmatpush1.bf16.msra.mxu1 %v12799_v46  ;;  %5513 = vmatprep.subr.bf16.mxu0 %v12804_v47  ;;  %v12871_v46 = vld [vmem:[%s18122_s13 + $0x768] ss:$16 sps:$4 sm:$0xff]   ;;  %v12876_v47 = vld [vmem:[%s18122_s13 + $0x784] ss:$16 sps:$4 sm:$0xff]  }
0x15aa   :  { %5677 = vmatprep.subr.bf16.mxu1 %v12807_v7  ;;  %v12879_v7 = vld [vmem:[%s18122_s13 + $0x78c] ss:$16 sps:$4 sm:$0xff]  }
0x15ab   :  { %5505 = vmatmul.mubr.bf16.vlgmr.msra.gmra.mrb[28].mxu0 %v3828_v20 }
0x15ac   :  { %5669 = vmatmul.mubr.bf16.vlgmr.msra.gmra.mrb[28].mxu1 %v3828_v20  ;;  %5514 = vmatpush1.bf16.msra.mxu0 %v12802_v15  ;;  %v3794_v15 = vsub.s32 6, %v18173_v63  ;;  %v12877_v20 = vld [vmem:[%s18122_s13 + $0x788] ss:$16 sps:$4 sm:$0xff]   ;;  %v13366_v63 = vld [vmem:[%s18122_s13 + $0xfc0] ss:$16 sps:$4 sm:$0xff]  }
0x15ad   :  { %5545 = vmatprep.mubr.bf16.mxu0 %v3831_v52  ;;  %5678 = vmatpush1.bf16.msra.mxu1 %v12805_v25  ;;  %v12882_v25 = vld [vmem:[%s18122_s13 + $0x7a4] ss:$16 sps:$4 sm:$0xff]  }
0x15ae   :  { %5709 = vmatprep.mubr.bf16.mxu1 %v3831_v52  ;;  %5515 = vmatprep.subr.bf16.mxu0 %v12810_v35  ;;  %v12885_v35 = vld [vmem:[%s18122_s13 + $0x7ac] ss:$16 sps:$4 sm:$0xff]   ;;  %v12880_v52 = vld [vmem:[%s18122_s13 + $0x7a0] ss:$16 sps:$4 sm:$0xff]  }
0x15af   :  { %5679 = vmatprep.subr.bf16.mxu1 %v12813_v43  ;;  %v13619_v43 = vld [vmem:[%s18123_s12] sm:$0xff] }
0x15b0   :  { %5516 = vmatpush1.bf16.msra.mxu0 %v12808_v4  ;;  %v3795_v4 = vrot.slane %v13619_v43, %v3794_v15  ;;  %v12898_v43 = vld [vmem:[%s18124_s15] ss:$8 sps:$4 sm:$0xff]  }
0x15b1   :  { %5680 = vmatpush1.bf16.msra.mxu1 %v12811_v8  ;;  %5517 = vmatprep.subr.bf16.mxu0 %v12816_v50  ;;  %v12883_v8 = vld [vmem:[%s18122_s13 + $0x7a8] ss:$16 sps:$4 sm:$0xff]   ;;  %v12888_v50 = vld [vmem:[%s18122_s13 + $0x7c4] ss:$16 sps:$4 sm:$0xff]  }
0x15b2   :  { %5681 = vmatprep.subr.bf16.mxu1 %v12819_v24  ;;  %v12891_v24 = vld [vmem:[%s18122_s13 + $0x7cc] ss:$16 sps:$4 sm:$0xff]  }
0x15b4   :  { %5518 = vmatpush1.bf16.msra.mxu0 %v12814_v13  ;;  %v12886_v13 = vld [vmem:[%s18122_s13 + $0x7c0] ss:$16 sps:$4 sm:$0xff]  }
0x15b5   :  { %5682 = vmatpush1.bf16.msra.mxu1 %v12817_v32  ;;  %5519 = vmatprep.subr.bf16.mxu0 %v12822_v0  ;;  %v3814_v32 = vadd.f32 %v3795_v4, %v15728_v1  ;;  %v12889_v0 = vld [vmem:[%s18122_s13 + $0x7c8] ss:$16 sps:$4 sm:$0xff]   ;;  %v10839_v1 = vld [vmem:[%s18120_s11 + $0x120] sm:$0xff] }
0x15b6   :  { %5683 = vmatprep.subr.bf16.mxu1 %v12825_v30  ;;  %v12894_v30 = vld [vmem:[%s18122_s13 + $0x7e4] ss:$16 sps:$4 sm:$0xff]  }
0x15b7   :  { %v12900_v4 = vld [vmem:[%s18124_s15 + $0x4] ss:$8 sps:$4 sm:$0xff]  }
0x15b8   :  { %5520 = vmatpush1.bf16.msra.mxu0 %v12820_v31  ;;  %v12897_v31 = vld [vmem:[%s18122_s13 + $0x7ec] ss:$16 sps:$4 sm:$0xff]  }
0x15b9   :  { %5684 = vmatpush1.bf16.msra.mxu1 %v12823_v29  ;;  %5521 = vmatprep.subr.bf16.mxu0 %v12828_v39  ;;  %v10835_v29 = vld [vmem:[%s18120_s11 + $0x100] sm:$0xff] }
0x15ba   :  { %5685 = vmatprep.subr.bf16.mxu1 %v12831_v54  ;;  %v12892_v39 = vld [vmem:[%s18122_s13 + $0x7e0] ss:$16 sps:$4 sm:$0xff]   ;;  %v3822_v54 = vmax.f32 %v3814_v32, 0.0 }
0x15bc   :  { %5522 = vmatpush1.bf16.msra.mxu0 %v12826_v9  ;;  %v12895_v9 = vld [vmem:[%s18122_s13 + $0x7e8] ss:$16 sps:$4 sm:$0xff]  }
0x15bd   :  { %5686 = vmatpush1.bf16.msra.mxu1 %v12829_v57  ;;  %5523 = vmatprep.subr.bf16.mxu0 %v12834_v5  ;;  %v10868_v57 = vcombine.high %v10835_v29, %v10839_v1  ;;  %v10843_v5 = vld [vmem:[%s18120_s11 + $0x140] sm:$0xff] }
0x15be   :  { %5687 = vmatprep.subr.bf16.mxu1 %v12837_v3  ;;  %v10847_v3 = vld [vmem:[%s18120_s11 + $0x160] sm:$0xff] }
0x15c0   :  { %5524 = vmatpush1.bf16.msra.mxu0 %v12832_v14  ;;  %v3830_v14 = vpack.c.bf16 %v3822_v54, %v3822_v54  ;;  %v12904_v54 = vld [vmem:[%s18124_s15 + $0x20] ss:$8 sps:$4 sm:$0xff]  }
0x15c1   :  { %5688 = vmatpush1.bf16.msra.mxu1 %v12835_v28  ;;  %5525 = vmatprep.subr.bf16.mxu0 %v12840_v26  ;;  %v10867_v28 = vcombine.low %v10835_v29, %v10839_v1  ;;  %v10876_v26 = vcombine.high %v10843_v5, %v10847_v3  ;;  %v10865_v29 = vld [vmem:[%s18120_s11 + $0x1f0] sm:$0xff]  ;;  %v12906_v1 = vld [vmem:[%s18124_s15 + $0x24] ss:$8 sps:$4 sm:$0xff]  }
0x15c2   :  { %5689 = vmatprep.subr.bf16.mxu1 %v12843_v55  ;;  %v10851_v55 = vld [vmem:[%s18120_s11 + $0x180] sm:$0xff] }
0x15c4   :  { %5526 = vmatpush1.bf16.msra.mxu0 %v12838_v27  ;;  %v10855_v27 = vld [vmem:[%s18120_s11 + $0x1a0] sm:$0xff] }
0x15c5   :  { %5690 = vmatpush1.bf16.msra.mxu1 %v12841_v40  ;;  %5527 = vmatprep.subr.bf16.mxu0 %v12846_v60  ;;  %v10875_v40 = vcombine.low %v10843_v5, %v10847_v3  ;;  %v10884_v60 = vcombine.high %v10851_v55, %v10855_v27  ;;  %v10842_v5 = vld [vmem:[%s18120_s11 + $0x138] sm:$0xff] }
0x15c6   :  { %5691 = vmatprep.subr.bf16.mxu1 %v12849_v12  ;;  %v10859_v12 = vld [vmem:[%s18120_s11 + $0x1c0] sm:$0xff]  ;;  %v12909_v3 = vld [vmem:[%s18124_s15 + $0x34] ss:$8 sps:$4 sm:$0xff]  }
0x15c8   :  { %5528 = vmatpush1.bf16.msra.mxu0 %v12844_v51  ;;  %v10863_v51 = vld [vmem:[%s18120_s11 + $0x1e0] sm:$0xff] }
0x15c9   :  { %5692 = vmatpush1.bf16.msra.mxu1 %v12847_v10  ;;  %5529 = vmatprep.subr.bf16.mxu0 %v12852_v34  ;;  %v10883_v10 = vcombine.low %v10851_v55, %v10855_v27  ;;  %v10892_v34 = vcombine.high %v10859_v12, %v10863_v51  ;;  %v10846_v55 = vld [vmem:[%s18120_s11 + $0x158] sm:$0xff] }
0x15ca   :  { %5693 = vmatprep.subr.bf16.mxu1 %v12855_v62  ;;  %v10836_v62 = vld [vmem:[%s18120_s11 + $0x108] sm:$0xff]  ;;  %v10850_v27 = vld [vmem:[%s18120_s11 + $0x178] sm:$0xff] }
0x15cc   :  { %5530 = vmatpush1.bf16.msra.mxu0 %v12850_v48  ;;  %v10840_v48 = vld [vmem:[%s18120_s11 + $0x128] sm:$0xff] }
0x15cd   :  { %5694 = vmatpush1.bf16.msra.mxu1 %v12853_v58  ;;  %5531 = vmatprep.subr.bf16.mxu0 %v12858_v2  ;;  %v10891_v58 = vcombine.low %v10859_v12, %v10863_v51  ;;  %v10870_v2 = vcombine.high %v10836_v62, %v10840_v48  ;;  %v12910_v12 = vld [vmem:[%s18124_s15 + $0x40] ss:$8 sps:$4 sm:$0xff]  }
0x15ce   :  { %5695 = vmatprep.subr.bf16.mxu1 %v12861_v38  ;;  %v10844_v38 = vld [vmem:[%s18120_s11 + $0x148] sm:$0xff] }
0x15d0   :  { %5532 = vmatpush1.bf16.msra.mxu0 %v12856_v53  ;;  %v10848_v53 = vld [vmem:[%s18120_s11 + $0x168] sm:$0xff] }
0x15d1   :  { %5696 = vmatpush1.bf16.msra.mxu1 %v12859_v59  ;;  %5533 = vmatprep.subr.bf16.mxu0 %v12864_v16  ;;  %v10869_v59 = vcombine.low %v10836_v62, %v10840_v48  ;;  %v10878_v16 = vcombine.high %v10844_v38, %v10848_v53  ;;  %v12915_v62 = vld [vmem:[%s18124_s15 + $0x54] ss:$8 sps:$4 sm:$0xff]   ;;  %v10882_v48 = vcombine.high %v10846_v55, %v10850_v27 }
0x15d2   :  { %5697 = vmatprep.subr.bf16.mxu1 %v12867_v11  ;;  %v10852_v11 = vld [vmem:[%s18120_s11 + $0x188] sm:$0xff] }
0x15d4   :  { %5534 = vmatpush1.bf16.msra.mxu0 %v12862_v18  ;;  %v10856_v18 = vld [vmem:[%s18120_s11 + $0x1a8] sm:$0xff] }
0x15d5   :  { %5698 = vmatpush1.bf16.msra.mxu1 %v12865_v41  ;;  %5535 = vmatprep.subr.bf16.mxu0 %v12870_v19  ;;  %v10877_v41 = vcombine.low %v10844_v38, %v10848_v53  ;;  %v10886_v19 = vcombine.high %v10852_v11, %v10856_v18  ;;  %v10862_v38 = vld [vmem:[%s18120_s11 + $0x1d8] sm:$0xff] }
0x15d6   :  { %5699 = vmatprep.subr.bf16.mxu1 %v12873_v17  ;;  %v10860_v17 = vld [vmem:[%s18120_s11 + $0x1c8] sm:$0xff]  ;;  %v10866_v53 = vld [vmem:[%s18120_s11 + $0x1f8] sm:$0xff] }
0x15d8   :  { %5536 = vmatpush1.bf16.msra.mxu0 %v12868_v37  ;;  %v10864_v37 = vld [vmem:[%s18120_s11 + $0x1e8] sm:$0xff] }
0x15d9   :  { %5700 = vmatpush1.bf16.msra.mxu1 %v12871_v46  ;;  %5537 = vmatprep.subr.bf16.mxu0 %v12876_v47  ;;  %v10885_v46 = vcombine.low %v10852_v11, %v10856_v18  ;;  %v10894_v47 = vcombine.high %v10860_v17, %v10864_v37  ;;  %v12916_v11 = vld [vmem:[%s18124_s15 + $0x60] ss:$8 sps:$4 sm:$0xff]  }
0x15da   :  { %5701 = vmatprep.subr.bf16.mxu1 %v12879_v7  ;;  %v10837_v7 = vld [vmem:[%s18120_s11 + $0x110] sm:$0xff] }
0x15dc   :  { %5538 = vmatpush1.bf16.msra.mxu0 %v12874_v42  ;;  %v10841_v42 = vld [vmem:[%s18120_s11 + $0x130] sm:$0xff] }
0x15dd   :  { %5702 = vmatpush1.bf16.msra.mxu1 %v12877_v20  ;;  %5539 = vmatprep.subr.bf16.mxu0 %v12882_v25  ;;  %v10893_v20 = vcombine.low %v10860_v17, %v10864_v37  ;;  %v10845_v25 = vld [vmem:[%s18120_s11 + $0x150] sm:$0xff]  ;;  %v10898_v17 = vcombine.high %v10862_v38, %v10866_v53 }
0x15de   :  { %5703 = vmatprep.subr.bf16.mxu1 %v12885_v35  ;;  %v10849_v35 = vld [vmem:[%s18120_s11 + $0x170] sm:$0xff] }
0x15df   :  { %v10880_v32 = vcombine.high %v10845_v25, %v10849_v35  ;;  %v12919_v37 = vld [vmem:[%s18124_s15 + $0x70] ss:$8 sps:$4 sm:$0xff]  }
0x15e0   :  { %5540 = vmatpush1.bf16.msra.mxu0 %v12880_v52  ;;  %v10872_v52 = vcombine.high %v10837_v7, %v10841_v42 }
0x15e1   :  { %5704 = vmatpush1.bf16.msra.mxu1 %v12883_v8  ;;  %5541 = vmatprep.subr.bf16.mxu0 %v12888_v50  ;;  %v10871_v8 = vcombine.low %v10837_v7, %v10841_v42  ;;  %v10853_v50 = vld [vmem:[%s18120_s11 + $0x190] sm:$0xff]  ;;  %v10719_v7 = vld [vmem:[%s18121_s10 + $0x460] sm:$0xff] }
0x15e2   :  { %5705 = vmatprep.subr.bf16.mxu1 %v12891_v24  ;;  %v10857_v24 = vld [vmem:[%s18120_s11 + $0x1b0] sm:$0xff]  ;;  %v12924_v42 = vld [vmem:[%s18124_s15 + $0x84] ss:$8 sps:$4 sm:$0xff]  }
0x15e4   :  { %5542 = vmatpush1.bf16.msra.mxu0 %v12886_v13  ;;  %v12903_v13 = vld [vmem:[%s18124_s15 + $0x14] ss:$8 sps:$4 sm:$0xff]  }
0x15e5   :  { %5706 = vmatpush1.bf16.msra.mxu1 %v12889_v0  ;;  %5543 = vmatprep.subr.bf16.mxu0 %v12894_v30  ;;  %v12901_v0 = vld [vmem:[%s18124_s15 + $0x10] ss:$8 sps:$4 sm:$0xff]   ;;  %v10879_v30 = vcombine.low %v10845_v25, %v10849_v35  ;;  %v12922_v25 = vld [vmem:[%s18124_s15 + $0x80] ss:$8 sps:$4 sm:$0xff]  }
0x15e6   :  { %5707 = vmatprep.subr.bf16.mxu1 %v12897_v31  ;;  %v10861_v31 = vld [vmem:[%s18120_s11 + $0x1d0] sm:$0xff] }
0x15e8   :  { %5544 = vmatpush1.bf16.msra.mxu0 %v12892_v39  ;;  %v10888_v39 = vcombine.high %v10853_v50, %v10857_v24 }
0x15e9   :  { %5708 = vmatpush1.bf16.msra.mxu1 %v12895_v9  ;;  %6122 = vmatprep.subr.bf16.mxu0 %v12900_v4  ;;  %v10887_v9 = vcombine.low %v10853_v50, %v10857_v24  ;;  %v12925_v4 = vld [vmem:[%s18124_s15 + $0x90] ss:$8 sps:$4 sm:$0xff]   ;;  %v12930_v24 = vld [vmem:[%s18124_s15 + $0xa4] ss:$8 sps:$4 sm:$0xff]  }
0x15ea   :  { %6639 = vmatprep.subr.bf16.mxu1 %v10868_v57  ;;  %v10838_v57 = vld [vmem:[%s18120_s11 + $0x118] sm:$0xff] }
0x15eb   :  { %5546 = vmatmul.mubr.bf16.vlgmr.msra.gmra.mrb[28].mxu0 %v3830_v14  ;;  %v10873_v51 = vcombine.low %v10838_v57, %v10842_v5 }
0x15ec   :  { %5710 = vmatmul.mubr.bf16.vlgmr.msra.gmra.mrb[28].mxu1 %v3830_v14  ;;  %6123 = vmatpush1.bf16.msra.mxu0 %v12898_v43  ;;  %v10896_v14 = vcombine.high %v10861_v31, %v10865_v29  ;;  %v10727_v43 = vld [vmem:[%s18121_s10 + $0x4a0] sm:$0xff] }
0x15ed   :  { %6640 = vmatpush1.bf16.msra.mxu1 %v10867_v28  ;;  %6671 = vmatprep.mubr.bf16.mxu1 %v13623_v56  ;;  %v12907_v28 = vld [vmem:[%s18124_s15 + $0x30] ss:$8 sps:$4 sm:$0xff]  }
0x15ee   :  { %6641 = vmatprep.subr.bf16.mxu1 %v10876_v26  ;;  %6124 = vmatprep.subr.bf16.mxu0 %v12903_v13  ;;  %v10895_v26 = vcombine.low %v10861_v31, %v10865_v29  ;;  %v12933_v31 = vld [vmem:[%s18124_s15 + $0xb4] ss:$8 sps:$4 sm:$0xff]   ;;  %v12931_v29 = vld [vmem:[%s18124_s15 + $0xb0] ss:$8 sps:$4 sm:$0xff]  }
0x15f0   :  { %6125 = vmatpush1.bf16.msra.mxu0 %v12901_v0 }
0x15f1   :  { %6642 = vmatpush1.bf16.msra.mxu1 %v10875_v40  ;;  %6126 = vmatprep.subr.bf16.mxu0 %v12906_v1  ;;  %v12912_v40 = vld [vmem:[%s18124_s15 + $0x44] ss:$8 sps:$4 sm:$0xff]  }
0x15f2   :  { %6643 = vmatprep.subr.bf16.mxu1 %v10884_v60  ;;  %v10874_v60 = vcombine.high %v10838_v57, %v10842_v5  ;;  %v12934_v5 = vld [vmem:[%s18124_s15 + $0xc0] ss:$8 sps:$4 sm:$0xff]  }
0x15f4   :  { %6127 = vmatpush1.bf16.msra.mxu0 %v12904_v54  ;;  %v10743_v54 = vld [vmem:[%s18121_s10 + $0x520] sm:$0xff] }
0x15f5   :  { %6644 = vmatpush1.bf16.msra.mxu1 %v10883_v10  ;;  %6128 = vmatprep.subr.bf16.mxu0 %v12909_v3  ;;  %v10854_v10 = vld [vmem:[%s18120_s11 + $0x198] sm:$0xff] }
0x15f6   :  { %6645 = vmatprep.subr.bf16.mxu1 %v10892_v34  ;;  %v10858_v34 = vld [vmem:[%s18120_s11 + $0x1b8] sm:$0xff] }
0x15f7   :  { %v10889_v18 = vcombine.low %v10854_v10, %v10858_v34 }
0x15f8   :  { %6129 = vmatpush1.bf16.msra.mxu0 %v12907_v28  ;;  %v10751_v28 = vld [vmem:[%s18121_s10 + $0x560] sm:$0xff] }
0x15f9   :  { %6646 = vmatpush1.bf16.msra.mxu1 %v10891_v58  ;;  %6130 = vmatprep.subr.bf16.mxu0 %v12912_v40  ;;  %v12913_v58 = vld [vmem:[%s18124_s15 + $0x50] ss:$8 sps:$4 sm:$0xff]  }
0x15fa   :  { %6680 = vmatprep.subr.bf16.mxu1 %v10870_v2  ;;  %v10881_v2 = vcombine.low %v10846_v55, %v10850_v27  ;;  %v12937_v27 = vld [vmem:[%s18124_s15 + $0xd0] ss:$8 sps:$4 sm:$0xff]  }
0x15fc   :  { %10899 = vmatmul.mubr.msk.bf16.vlgmr.msra.gmra.mrb[32].mxu1 %vm156_vm1, %v14881_v36  ;;  %6131 = vmatpush1.bf16.msra.mxu0 %v12910_v12  ;;  %v10759_v12 = vld [vmem:[%s18121_s10 + $0x5a0] sm:$0xff] }
0x15fd   :  { %6681 = vmatpush1.bf16.msra.mxu1 %v10869_v59  ;;  %6712 = vmatprep.mubr.bf16.mxu1 %v13623_v56  ;;  %v12918_v59 = vld [vmem:[%s18124_s15 + $0x64] ss:$8 sps:$4 sm:$0xff]  }
0x15fe   :  { %6682 = vmatprep.subr.bf16.mxu1 %v10878_v16  ;;  %6132 = vmatprep.subr.bf16.mxu0 %v12915_v62  ;;  %v10890_v16 = vcombine.high %v10854_v10, %v10858_v34  ;;  %v10763_v34 = vld [vmem:[%s18121_s10 + $0x5c0] sm:$0xff] }
0x15ff   :  { %v10767_v62 = vld [vmem:[%s18121_s10 + $0x5e0] sm:$0xff] }
0x1600   :  { %6133 = vmatpush1.bf16.msra.mxu0 %v12913_v58  ;;  %v12942_v58 = vld [vmem:[%s18124_s15 + $0xe4] ss:$8 sps:$4 sm:$0xff]  }
0x1601   :  { %6683 = vmatpush1.bf16.msra.mxu1 %v10877_v41  ;;  %6134 = vmatprep.subr.bf16.mxu0 %v12918_v59  ;;  %v10707_v41 = vld [vmem:[%s18121_s10 + $0x400] sm:$0xff]  ;;  %v12945_v59 = vld [vmem:[%s18124_s15 + $0xf4] ss:$8 sps:$4 sm:$0xff]  }
0x1602   :  { %6684 = vmatprep.subr.bf16.mxu1 %v10886_v19  ;;  %v12921_v19 = vld [vmem:[%s18124_s15 + $0x74] ss:$8 sps:$4 sm:$0xff]  }
0x1604   :  { %6135 = vmatpush1.bf16.msra.mxu0 %v12916_v11  ;;  %v10775_v11 = vld [vmem:[%s18121_s10 + $0x620] sm:$0xff] }
0x1605   :  { %6685 = vmatpush1.bf16.msra.mxu1 %v10885_v46  ;;  %6136 = vmatprep.subr.bf16.mxu0 %v12921_v19  ;;  %v10897_v46 = vcombine.low %v10862_v38, %v10866_v53  ;;  %v10960_v53 = vcombine.high %v10763_v34, %v10767_v62  ;;  %v12948_v19 = vld [vmem:[%s18124_s15 + $0x104] ss:$8 sps:$4 sm:$0xff]  }
0x1606   :  { %6686 = vmatprep.subr.bf16.mxu1 %v10894_v47  ;;  %v10715_v47 = vld [vmem:[%s18121_s10 + $0x440] sm:$0xff] }
0x1607   :  { %v10912_v50 = vcombine.high %v10715_v47, %v10719_v7  ;;  %v10911_v13 = vcombine.low %v10715_v47, %v10719_v7  ;;  %v10787_v7 = vld [vmem:[%s18121_s10 + $0x680] sm:$0xff] }
0x1608   :  { %6137 = vmatpush1.bf16.msra.mxu0 %v12919_v37  ;;  %v10783_v37 = vld [vmem:[%s18121_s10 + $0x660] sm:$0xff] }
0x1609   :  { %6687 = vmatpush1.bf16.msra.mxu1 %v10893_v20  ;;  %6138 = vmatprep.subr.bf16.mxu0 %v12924_v42  ;;  %v10791_v42 = vld [vmem:[%s18121_s10 + $0x6a0] sm:$0xff] }
0x160a   :  { %6721 = vmatprep.subr.bf16.mxu1 %v10872_v52  ;;  %v10723_v52 = vld [vmem:[%s18121_s10 + $0x480] sm:$0xff] }
0x160b   :  { %v10920_v0 = vcombine.high %v10723_v52, %v10727_v43  ;;  %v10919_v1 = vcombine.low %v10723_v52, %v10727_v43  ;;  %v10799_v52 = vld [vmem:[%s18121_s10 + $0x6e0] sm:$0xff]  ;;  %v10983_v43 = vcombine.low %v10787_v7, %v10791_v42 }
0x160c   :  { %10900 = vmatmul.mubr.msk.bf16.vlgmr.msra.gmra.mrb[36].mxu1 %vm156_vm1, %v14881_v36  ;;  %6139 = vmatpush1.bf16.msra.mxu0 %v12922_v25  ;;  %v10984_v25 = vcombine.high %v10787_v7, %v10791_v42  ;;  %v10769_v7 = vld [vmem:[%s18121_s10 + $0x5f0] sm:$0xff] }
0x160d   :  { %6722 = vmatpush1.bf16.msra.mxu1 %v10871_v8  ;;  %6753 = vmatprep.mubr.bf16.mxu1 %v13623_v56  ;;  %v12927_v8 = vld [vmem:[%s18124_s15 + $0x94] ss:$8 sps:$4 sm:$0xff]  }
0x160e   :  { %6723 = vmatprep.subr.bf16.mxu1 %v10880_v32  ;;  %6140 = vmatprep.subr.bf16.mxu0 %v12927_v8  ;;  %v10731_v32 = vld [vmem:[%s18121_s10 + $0x4c0] sm:$0xff] }
0x160f   :  { %v10803_v8 = vld [vmem:[%s18121_s10 + $0x700] sm:$0xff] }
0x1610   :  { %6141 = vmatpush1.bf16.msra.mxu0 %v12925_v4 }
0x1611   :  { %6724 = vmatpush1.bf16.msra.mxu1 %v10879_v30  ;;  %v10735_v30 = vld [vmem:[%s18121_s10 + $0x4e0] sm:$0xff]  ;;  %6142 = vmatprep.subr.bf16.mxu0 %v12930_v24 }
0x1612   :  { %6725 = vmatprep.subr.bf16.mxu1 %v10888_v39  ;;  %v10739_v39 = vld [vmem:[%s18121_s10 + $0x500] sm:$0xff]  ;;  %v10928_v57 = vcombine.high %v10731_v32, %v10735_v30  ;;  %v10927_v3 = vcombine.low %v10731_v32, %v10735_v30 }
0x1613   :  { %v10936_v55 = vcombine.high %v10739_v39, %v10743_v54  ;;  %v10935_v40 = vcombine.low %v10739_v39, %v10743_v54  ;;  %v10811_v32 = vld [vmem:[%s18121_s10 + $0x740] sm:$0xff] }
0x1614   :  { %v10827_v54 = vld [vmem:[%s18121_s10 + $0x7c0] sm:$0xff] }
0x1615   :  { %6726 = vmatpush1.bf16.msra.mxu1 %v10887_v9  ;;  %v12936_v9 = vld [vmem:[%s18124_s15 + $0xc4] ss:$8 sps:$4 sm:$0xff]  }
0x1616   :  { %6727 = vmatprep.subr.bf16.mxu1 %v10896_v14  ;;  %v10747_v14 = vld [vmem:[%s18121_s10 + $0x540] sm:$0xff] }
0x1617   :  { %v10943_v10 = vcombine.low %v10747_v14, %v10751_v28 }
0x1619   :  { %6728 = vmatpush1.bf16.msra.mxu1 %v10895_v26  ;;  %v12939_v26 = vld [vmem:[%s18124_s15 + $0xd4] ss:$8 sps:$4 sm:$0xff]  }
0x161a   :  { %6762 = vmatprep.subr.bf16.mxu1 %v10874_v60  ;;  %v10755_v60 = vld [vmem:[%s18121_s10 + $0x580] sm:$0xff] }
0x161b   :  { %v10951_v38 = vcombine.low %v10755_v60, %v10759_v12 }
0x161c   :  { %10901 = vmatmul.mubr.msk.bf16.vlgmr.msra.gmra.mrb[40].mxu1 %vm156_vm1, %v14881_v36 }
0x161d   :  { %6763 = vmatpush1.bf16.msra.mxu1 %v10873_v51  ;;  %6794 = vmatprep.mubr.bf16.mxu1 %v13623_v56  ;;  %v10711_v56 = vld [vmem:[%s18121_s10 + $0x420] sm:$0xff]  ;;  %v10944_v51 = vcombine.high %v10747_v14, %v10751_v28  ;;  %v10713_v14 = vld [vmem:[%s18121_s10 + $0x430] sm:$0xff] }
0x161e   :  { %6764 = vmatprep.subr.bf16.mxu1 %v10882_v48  ;;  %v10904_v20 = vcombine.high %v10707_v41, %v10711_v56  ;;  %v10903_v35 = vcombine.low %v10707_v41, %v10711_v56  ;;  %v10952_v48 = vcombine.high %v10755_v60, %v10759_v12  ;;  %v10959_v41 = vcombine.low %v10763_v34, %v10767_v62  ;;  %v10725_v12 = vld [vmem:[%s18121_s10 + $0x490] sm:$0xff] }
0x161f   :  { %v10733_v62 = vld [vmem:[%s18121_s10 + $0x4d0] sm:$0xff] }
0x1621   :  { %6765 = vmatpush1.bf16.msra.mxu1 %v10881_v2  ;;  %v12940_v2 = vld [vmem:[%s18124_s15 + $0xe0] ss:$8 sps:$4 sm:$0xff]  }
0x1622   :  { %6766 = vmatprep.subr.bf16.mxu1 %v10890_v16  ;;  %v10771_v16 = vld [vmem:[%s18121_s10 + $0x600] sm:$0xff] }
0x1623   :  { %v10968_v56 = vcombine.high %v10771_v16, %v10775_v11 }
0x1625   :  { %6767 = vmatpush1.bf16.msra.mxu1 %v10889_v18  ;;  %v12943_v18 = vld [vmem:[%s18124_s15 + $0xf0] ss:$8 sps:$4 sm:$0xff]  }
0x1626   :  { %6768 = vmatprep.subr.bf16.mxu1 %v10898_v17  ;;  %v10779_v17 = vld [vmem:[%s18121_s10 + $0x640] sm:$0xff] }
0x1627   :  { %v10976_v47 = vcombine.high %v10779_v17, %v10783_v37 }
0x1629   :  { %6769 = vmatpush1.bf16.msra.mxu1 %v10897_v46  ;;  %v10967_v46 = vcombine.low %v10771_v16, %v10775_v11  ;;  %v10749_v11 = vld [vmem:[%s18121_s10 + $0x550] sm:$0xff] }
0x162a   :  { %7443 = vmatprep.subr.bf16.mxu1 %v10904_v20  ;;  %v10975_v20 = vcombine.low %v10779_v17, %v10783_v37  ;;  %v10761_v17 = vld [vmem:[%s18121_s10 + $0x5b0] sm:$0xff] }
0x162c   :  { %10902 = vmatmul.mubr.msk.bf16.vlgmr.msra.gmra.mrb[44].mxu1 %vm156_vm1, %v14881_v36  ;;  %v12928_v36 = vld [vmem:[%s18124_s15 + $0xa0] ss:$8 sps:$4 sm:$0xff]  }
0x162d   :  { %7444 = vmatpush1.bf16.msra.mxu1 %v10903_v35  ;;  %7475 = vmatprep.mubr.bf16.mxu1 %v14942_v23  ;;  %v10795_v35 = vld [vmem:[%s18121_s10 + $0x6c0] sm:$0xff] }
0x162e   :  { %7445 = vmatprep.subr.bf16.mxu1 %v10912_v50  ;;  %6143 = vmatpush1.bf16.msra.mxu0 %v12928_v36  ;;  %v10992_v4 = vcombine.high %v10795_v35, %v10799_v52  ;;  %v10807_v50 = vld [vmem:[%s18121_s10 + $0x720] sm:$0xff]  ;;  %v10991_v24 = vcombine.low %v10795_v35, %v10799_v52  ;;  %v10777_v35 = vld [vmem:[%s18121_s10 + $0x630] sm:$0xff] }
0x162f   :  { %6144 = vmatprep.subr.bf16.mxu0 %v12933_v31  ;;  %v10999_v30 = vcombine.low %v10803_v8, %v10807_v50  ;;  %v10819_v31 = vld [vmem:[%s18121_s10 + $0x780] sm:$0xff] }
0x1631   :  { %7446 = vmatpush1.bf16.msra.mxu1 %v10911_v13  ;;  %v11000_v13 = vcombine.high %v10803_v8, %v10807_v50  ;;  %v10785_v8 = vld [vmem:[%s18121_s10 + $0x670] sm:$0xff] }
0x1632   :  { %7447 = vmatprep.subr.bf16.mxu1 %v10920_v0  ;;  %6145 = vmatpush1.bf16.msra.mxu0 %v12931_v29  ;;  %v10815_v0 = vld [vmem:[%s18121_s10 + $0x760] sm:$0xff] }
0x1633   :  { %6146 = vmatprep.subr.bf16.mxu0 %v12936_v9  ;;  %v11008_v36 = vcombine.high %v10811_v32, %v10815_v0  ;;  %v10823_v29 = vld [vmem:[%s18121_s10 + $0x7a0] sm:$0xff] }
0x1634   :  { %v11016_v39 = vcombine.high %v10819_v31, %v10823_v29  ;;  %v10831_v9 = vld [vmem:[%s18121_s10 + $0x7e0] sm:$0xff] }
0x1635   :  { %7448 = vmatpush1.bf16.msra.mxu1 %v10919_v1  ;;  %v11007_v1 = vcombine.low %v10811_v32, %v10815_v0  ;;  %v11023_v28 = vcombine.low %v10827_v54, %v10831_v9  ;;  %v10793_v32 = vld [vmem:[%s18121_s10 + $0x6b0] sm:$0xff] }
0x1636   :  { %7449 = vmatprep.subr.bf16.mxu1 %v10928_v57  ;;  %6147 = vmatpush1.bf16.msra.mxu0 %v12934_v5  ;;  %v11015_v57 = vcombine.low %v10819_v31, %v10823_v29  ;;  %v11024_v5 = vcombine.high %v10827_v54, %v10831_v9  ;;  %v10801_v31 = vld [vmem:[%s18121_s10 + $0x6f0] sm:$0xff] }
0x1637   :  { %6148 = vmatprep.subr.bf16.mxu0 %v12939_v26  ;;  %v10809_v54 = vld [vmem:[%s18121_s10 + $0x730] sm:$0xff] }
0x1639   :  { %7450 = vmatpush1.bf16.msra.mxu1 %v10927_v3  ;;  %v10709_v3 = vld [vmem:[%s18121_s10 + $0x410] sm:$0xff] }
0x163a   :  { %7451 = vmatprep.subr.bf16.mxu1 %v10936_v55  ;;  %6149 = vmatpush1.bf16.msra.mxu0 %v12937_v27  ;;  %v10908_v26 = vcombine.high %v10709_v3, %v10713_v14  ;;  %v10717_v55 = vld [vmem:[%s18121_s10 + $0x450] sm:$0xff] }
0x163b   :  { %6150 = vmatprep.subr.bf16.mxu0 %v12942_v58  ;;  %v10721_v27 = vld [vmem:[%s18121_s10 + $0x470] sm:$0xff] }
0x163c   :  { %v10916_v60 = vcombine.high %v10717_v55, %v10721_v27 }
0x163d   :  { %7452 = vmatpush1.bf16.msra.mxu1 %v10935_v40  ;;  %v10907_v40 = vcombine.low %v10709_v3, %v10713_v14  ;;  %v10817_v3 = vld [vmem:[%s18121_s10 + $0x770] sm:$0xff] }
0x163e   :  { %7453 = vmatprep.subr.bf16.mxu1 %v10944_v51  ;;  %6151 = vmatpush1.bf16.msra.mxu0 %v12940_v2  ;;  %v10729_v51 = vld [vmem:[%s18121_s10 + $0x4b0] sm:$0xff] }
0x163f   :  { %6152 = vmatprep.subr.bf16.mxu0 %v12945_v59  ;;  %v10924_v34 = vcombine.high %v10725_v12, %v10729_v51  ;;  %v10923_v58 = vcombine.low %v10725_v12, %v10729_v51  ;;  %v10833_v12 = vld [vmem:[%s18121_s10 + $0x7f0] sm:$0xff] }
0x1641   :  { %7454 = vmatpush1.bf16.msra.mxu1 %v10943_v10  ;;  %v10915_v10 = vcombine.low %v10717_v55, %v10721_v27  ;;  %v10825_v55 = vld [vmem:[%s18121_s10 + $0x7b0] sm:$0xff] }
0x1642   :  { %7455 = vmatprep.subr.bf16.mxu1 %v10952_v48  ;;  %6153 = vmatpush1.bf16.msra.mxu0 %v12943_v18  ;;  %v10737_v48 = vld [vmem:[%s18121_s10 + $0x4f0] sm:$0xff] }
0x1643   :  { %6163 = vmatprep.subr.bf16.mxu0 %v12948_v19  ;;  %v10932_v2 = vcombine.high %v10733_v62, %v10737_v48  ;;  %v10931_v59 = vcombine.low %v10733_v62, %v10737_v48  ;;  %v10753_v18 = vld [vmem:[%s18121_s10 + $0x570] sm:$0xff] }
0x1644   :  { %v10757_v19 = vld [vmem:[%s18121_s10 + $0x590] sm:$0xff]  ;;  %v10947_v37 = vcombine.low %v10749_v11, %v10753_v18 }
0x1645   :  { %7456 = vmatpush1.bf16.msra.mxu1 %v10951_v38  ;;  %v10741_v38 = vld [vmem:[%s18121_s10 + $0x510] sm:$0xff]  ;;  %v10955_v42 = vcombine.low %v10757_v19, %v10761_v17 }
0x1646   :  { %7457 = vmatprep.subr.bf16.mxu1 %v10960_v53  ;;  %v10745_v53 = vld [vmem:[%s18121_s10 + $0x530] sm:$0xff] }
0x1647   :  { %v10940_v16 = vcombine.high %v10741_v38, %v10745_v53  ;;  %v12996_v62 = vld [vmem:[%s18122_s13 + $0x804] ss:$16 sps:$4 sm:$0xff]   ;;  %v12994_v48 = vld [vmem:[%s18122_s13 + $0x800] ss:$16 sps:$4 sm:$0xff]  }
0x1649   :  { %7458 = vmatpush1.bf16.msra.mxu1 %v10959_v41  ;;  %v10939_v41 = vcombine.low %v10741_v38, %v10745_v53  ;;  %v13002_v38 = vld [vmem:[%s18122_s13 + $0x844] ss:$16 sps:$4 sm:$0xff]   ;;  %v13000_v53 = vld [vmem:[%s18122_s13 + $0x840] ss:$16 sps:$4 sm:$0xff]  }
0x164a   :  { %7459 = vmatprep.subr.bf16.mxu1 %v10968_v56  ;;  %v10948_v56 = vcombine.high %v10749_v11, %v10753_v18  ;;  %v13008_v11 = vld [vmem:[%s18122_s13 + $0x884] ss:$16 sps:$4 sm:$0xff]   ;;  %v4088_v18 = vld [vmem:[%s18125_s14] sm:$0xf] }
0x164d   :  { %7460 = vmatpush1.bf16.msra.mxu1 %v10967_v46  ;;  %v10956_v46 = vcombine.high %v10757_v19, %v10761_v17  ;;  %v4093_v19 = vrot.slane %v4088_v18, %v14132_v61  ;;  %v4101_v17 = vrot.slane %v4088_v18, %v15691_v33 }
0x164e   :  { %7461 = vmatprep.subr.bf16.mxu1 %v10976_v47  ;;  %v10765_v47 = vld [vmem:[%s18121_s10 + $0x5d0] sm:$0xff] }
0x164f   :  { %v10963_v52 = vcombine.low %v10765_v47, %v10769_v7 }
0x1651   :  { %7462 = vmatpush1.bf16.msra.mxu1 %v10975_v20  ;;  %v10964_v20 = vcombine.high %v10765_v47, %v10769_v7  ;;  %v13009_v47 = vld [vmem:[%s18122_s13 + $0x8a0] ss:$16 sps:$4 sm:$0xff]  }
0x1652   :  { %7463 = vmatprep.subr.bf16.mxu1 %v10984_v25  ;;  %v10773_v25 = vld [vmem:[%s18121_s10 + $0x610] sm:$0xff] }
0x1653   :  { %v10971_v50 = vcombine.low %v10773_v25, %v10777_v35 }
0x1655   :  { %7464 = vmatpush1.bf16.msra.mxu1 %v10983_v43  ;;  %v10972_v43 = vcombine.high %v10773_v25, %v10777_v35 }
0x1656   :  { %7465 = vmatprep.subr.bf16.mxu1 %v10992_v4  ;;  %v10781_v4 = vld [vmem:[%s18121_s10 + $0x650] sm:$0xff] }
0x1657   :  { %v10979_v0 = vcombine.low %v10781_v4, %v10785_v8 }
0x1659   :  { %7466 = vmatpush1.bf16.msra.mxu1 %v10991_v24  ;;  %v10980_v24 = vcombine.high %v10781_v4, %v10785_v8 }
0x165a   :  { %7467 = vmatprep.subr.bf16.mxu1 %v11000_v13  ;;  %v10789_v13 = vld [vmem:[%s18121_s10 + $0x690] sm:$0xff] }
0x165b   :  { %v10987_v29 = vcombine.low %v10789_v13, %v10793_v32 }
0x165d   :  { %7468 = vmatpush1.bf16.msra.mxu1 %v10999_v30  ;;  %v10988_v30 = vcombine.high %v10789_v13, %v10793_v32 }
0x165e   :  { %7469 = vmatprep.subr.bf16.mxu1 %v11008_v36  ;;  %v10797_v36 = vld [vmem:[%s18121_s10 + $0x6d0] sm:$0xff] }
0x165f   :  { %v10995_v9 = vcombine.low %v10797_v36, %v10801_v31 }
0x1661   :  { %7470 = vmatpush1.bf16.msra.mxu1 %v11007_v1  ;;  %v10996_v1 = vcombine.high %v10797_v36, %v10801_v31  ;;  %v13017_v31 = vld [vmem:[%s18122_s13 + $0x8e4] ss:$16 sps:$4 sm:$0xff]  }
0x1662   :  { %7471 = vmatprep.subr.bf16.mxu1 %v11016_v39  ;;  %v10805_v39 = vld [vmem:[%s18121_s10 + $0x710] sm:$0xff] }
0x1663   :  { %v11003_v14 = vcombine.low %v10805_v39, %v10809_v54 }
0x1665   :  { %7472 = vmatpush1.bf16.msra.mxu1 %v11015_v57  ;;  %v11004_v57 = vcombine.high %v10805_v39, %v10809_v54  ;;  %v12946_v39 = vld [vmem:[%s18124_s15 + $0x100] ss:$8 sps:$4 sm:$0xff]  }
0x1666   :  { %7473 = vmatprep.subr.bf16.mxu1 %v11024_v5  ;;  %v10813_v5 = vld [vmem:[%s18121_s10 + $0x750] sm:$0xff] }
0x1667   :  { %v11011_v27 = vcombine.low %v10813_v5, %v10817_v3 }
0x1669   :  { %7474 = vmatpush1.bf16.msra.mxu1 %v11023_v28  ;;  %v11012_v28 = vcombine.high %v10813_v5, %v10817_v3  ;;  %v13020_v3 = vld [vmem:[%s18122_s13 + $0x904] ss:$16 sps:$4 sm:$0xff]  }
0x166a   :  { %7525 = vmatprep.subr.bf16.mxu1 %v10908_v26  ;;  %v10821_v26 = vld [vmem:[%s18121_s10 + $0x790] sm:$0xff] }
0x166b   :  { %v11019_v51 = vcombine.low %v10821_v26, %v10825_v55 }
0x166c   :  { %7476 = vmatmul.mubr.bf16.vlgmr.msra.gmra.mrb[48].mxu1 %v15142_v44 }
0x166d   :  { %7526 = vmatpush1.bf16.msra.mxu1 %v10907_v40  ;;  %7557 = vmatprep.mubr.bf16.mxu1 %v14942_v23  ;;  %v11020_v40 = vcombine.high %v10821_v26, %v10825_v55  ;;  %v13018_v26 = vld [vmem:[%s18122_s13 + $0x900] ss:$16 sps:$4 sm:$0xff]   ;;  %v13023_v55 = vld [vmem:[%s18122_s13 + $0x924] ss:$16 sps:$4 sm:$0xff]  }
0x166e   :  { %7527 = vmatprep.subr.bf16.mxu1 %v10916_v60  ;;  %v10829_v60 = vld [vmem:[%s18121_s10 + $0x7d0] sm:$0xff] }
0x1671   :  { %7528 = vmatpush1.bf16.msra.mxu1 %v10915_v10  ;;  %v11028_v10 = vcombine.high %v10829_v60, %v10833_v12 }
0x1672   :  { %7529 = vmatprep.subr.bf16.mxu1 %v10924_v34  ;;  %v11027_v34 = vcombine.low %v10829_v60, %v10833_v12  ;;  %v13021_v60 = vld [vmem:[%s18122_s13 + $0x920] ss:$16 sps:$4 sm:$0xff]   ;;  %v13026_v12 = vld [vmem:[%s18122_s13 + $0x944] ss:$16 sps:$4 sm:$0xff]  }
0x1675   :  { %7530 = vmatpush1.bf16.msra.mxu1 %v10923_v58  ;;  %v12999_v58 = vld [vmem:[%s18122_s13 + $0x824] ss:$16 sps:$4 sm:$0xff]  }
0x1676   :  { %7531 = vmatprep.subr.bf16.mxu1 %v10932_v2  ;;  %v12997_v2 = vld [vmem:[%s18122_s13 + $0x820] ss:$16 sps:$4 sm:$0xff]  }
0x1679   :  { %7532 = vmatpush1.bf16.msra.mxu1 %v10931_v59  ;;  %v13005_v59 = vld [vmem:[%s18122_s13 + $0x864] ss:$16 sps:$4 sm:$0xff]  }
0x167a   :  { %7533 = vmatprep.subr.bf16.mxu1 %v10940_v16  ;;  %v13003_v16 = vld [vmem:[%s18122_s13 + $0x860] ss:$16 sps:$4 sm:$0xff]  }
0x167d   :  { %7534 = vmatpush1.bf16.msra.mxu1 %v10939_v41  ;;  %v13006_v41 = vld [vmem:[%s18122_s13 + $0x880] ss:$16 sps:$4 sm:$0xff]  }
0x167e   :  { %7535 = vmatprep.subr.bf16.mxu1 %v10948_v56  ;;  %v13011_v56 = vld [vmem:[%s18122_s13 + $0x8a4] ss:$16 sps:$4 sm:$0xff]  }
0x1681   :  { %7536 = vmatpush1.bf16.msra.mxu1 %v10947_v37  ;;  %v4097_v37 = vrot.slane %v4088_v18, %v18171_v21 }
0x1682   :  { %7537 = vmatprep.subr.bf16.mxu1 %v10956_v46  ;;  %v4105_v46 = vrot.slane %v4088_v18, %v15530_v6  ;;  %v12961_v18 = vld [vmem:[%s18124_s15 + $0x150] ss:$8 sps:$4 sm:$0xff]  }
0x1685   :  { %7538 = vmatpush1.bf16.msra.mxu1 %v10955_v42  ;;  %v13014_v42 = vld [vmem:[%s18122_s13 + $0x8c4] ss:$16 sps:$4 sm:$0xff]  }
0x1686   :  { %7539 = vmatprep.subr.bf16.mxu1 %v10964_v20 }
0x1689   :  { %7540 = vmatpush1.bf16.msra.mxu1 %v10963_v52 }
0x168a   :  { %7541 = vmatprep.subr.bf16.mxu1 %v10972_v43 }
0x168d   :  { %7542 = vmatpush1.bf16.msra.mxu1 %v10971_v50 }
0x168e   :  { %7543 = vmatprep.subr.bf16.mxu1 %v10980_v24 }
0x1691   :  { %7544 = vmatpush1.bf16.msra.mxu1 %v10979_v0  ;;  %v13012_v0 = vld [vmem:[%s18122_s13 + $0x8c0] ss:$16 sps:$4 sm:$0xff]  }
0x1692   :  { %7545 = vmatprep.subr.bf16.mxu1 %v10988_v30 }
0x1695   :  { %7546 = vmatpush1.bf16.msra.mxu1 %v10987_v29 }
0x1696   :  { %7547 = vmatprep.subr.bf16.mxu1 %v10996_v1 }
0x1699   :  { %7548 = vmatpush1.bf16.msra.mxu1 %v10995_v9  ;;  %v12951_v9 = vld [vmem:[%s18124_s15 + $0x114] ss:$8 sps:$4 sm:$0xff]  }
0x169a   :  { %7549 = vmatprep.subr.bf16.mxu1 %v11004_v57  ;;  %v13015_v57 = vld [vmem:[%s18122_s13 + $0x8e0] ss:$16 sps:$4 sm:$0xff]  }
0x169d   :  { %7550 = vmatpush1.bf16.msra.mxu1 %v11003_v14  ;;  %v12949_v14 = vld [vmem:[%s18124_s15 + $0x110] ss:$8 sps:$4 sm:$0xff]  }
0x169e   :  { %7551 = vmatprep.subr.bf16.mxu1 %v11012_v28  ;;  %v12954_v28 = vld [vmem:[%s18124_s15 + $0x124] ss:$8 sps:$4 sm:$0xff]  }
0x16a1   :  { %7552 = vmatpush1.bf16.msra.mxu1 %v11011_v27  ;;  %v12952_v27 = vld [vmem:[%s18124_s15 + $0x120] ss:$8 sps:$4 sm:$0xff]  }
0x16a2   :  { %7553 = vmatprep.subr.bf16.mxu1 %v11020_v40  ;;  %v12957_v40 = vld [vmem:[%s18124_s15 + $0x134] ss:$8 sps:$4 sm:$0xff]  }
0x16a5   :  { %7554 = vmatpush1.bf16.msra.mxu1 %v11019_v51 }
0x16a6   :  { %7555 = vmatprep.subr.bf16.mxu1 %v11028_v10 }
0x16a9   :  { %7556 = vmatpush1.bf16.msra.mxu1 %v11027_v34  ;;  %v12955_v34 = vld [vmem:[%s18124_s15 + $0x130] ss:$8 sps:$4 sm:$0xff]  }
0x16aa   :  { %9234 = vmatprep.subr.bf16.mxu1 %v12996_v62 }
0x16ac   :  { %7558 = vmatmul.mubr.bf16.vlgmr.msra.gmra.mrb[52].mxu1 %v15142_v44 }
0x16ad   :  { %9235 = vmatpush1.bf16.msra.mxu1 %v12994_v48  ;;  %v12960_v48 = vld [vmem:[%s18124_s15 + $0x144] ss:$8 sps:$4 sm:$0xff]  }
0x16ae   :  { %9236 = vmatprep.subr.bf16.mxu1 %v12999_v58  ;;  %v13024_v58 = vld [vmem:[%s18122_s13 + $0x940] ss:$16 sps:$4 sm:$0xff]  }
0x16b1   :  { %9237 = vmatpush1.bf16.msra.mxu1 %v12997_v2 }
0x16b2   :  { %9238 = vmatprep.subr.bf16.mxu1 %v13002_v38  ;;  %v13029_v38 = vld [vmem:[%s18122_s13 + $0x964] ss:$16 sps:$4 sm:$0xff]  }
0x16b5   :  { %9239 = vmatpush1.bf16.msra.mxu1 %v13000_v53  ;;  %v12958_v53 = vld [vmem:[%s18124_s15 + $0x140] ss:$8 sps:$4 sm:$0xff]  }
0x16b6   :  { %9240 = vmatprep.subr.bf16.mxu1 %v13005_v59  ;;  %v12963_v59 = vld [vmem:[%s18124_s15 + $0x154] ss:$8 sps:$4 sm:$0xff]  }
0x16b9   :  { %9241 = vmatpush1.bf16.msra.mxu1 %v13003_v16  ;;  %v13027_v16 = vld [vmem:[%s18122_s13 + $0x960] ss:$16 sps:$4 sm:$0xff]  }
0x16ba   :  { %9242 = vmatprep.subr.bf16.mxu1 %v13008_v11  ;;  %v13032_v11 = vld [vmem:[%s18122_s13 + $0x984] ss:$16 sps:$4 sm:$0xff]  }
0x16bd   :  { %9243 = vmatpush1.bf16.msra.mxu1 %v13006_v41  ;;  %v12966_v41 = vld [vmem:[%s18124_s15 + $0x164] ss:$8 sps:$4 sm:$0xff]  }
0x16be   :  { %v5547_v7 = vpop.f32.mrb[28].mxu0  ;;  %9244 = vmatprep.subr.bf16.mxu1 %v13011_v56  ;;  %v13030_v56 = vld [vmem:[%s18122_s13 + $0x980] ss:$16 sps:$4 sm:$0xff]  }
0x16bf   :  { %v12418_v20 = vadd.f32 %v5547_v7, %v4093_v19  ;;  %v5711_v25 = vpop.f32.mrb[28].mxu1  ;;  %v5549_v35 = vpop.f32.mrb[29].mxu0  ;;  %v13035_v19 = vld [vmem:[%s18122_s13 + $0x9a4] ss:$16 sps:$4 sm:$0xff]  }
0x16c0   :  { %v16596_v52 = vadd.f32 %v5711_v25, %v4101_v17  ;;  %v12419_v43 = vadd.f32 %v5549_v35, %v4097_v37  ;;  %v5713_v4 = vpop.f32.mrb[29].mxu1  ;;  %v5551_v8 = vpop.f32.mrb[30].mxu0  ;;  %v12964_v17 = vld [vmem:[%s18124_s15 + $0x160] ss:$8 sps:$4 sm:$0xff]   ;;  %v12969_v37 = vld [vmem:[%s18124_s15 + $0x174] ss:$8 sps:$4 sm:$0xff]  }
0x16c1   :  { %v5718_v50 = vmax.f32 %v12418_v20, 0.0  ;;  %v12421_v24 = vadd.f32 %v5713_v4, %v4105_v46  ;;  %v5715_v13 = vpop.f32.mrb[30].mxu1  ;;  %v5552_v32 = vpop.f32.mrb[31].mxu0  ;;  %9245 = vmatpush1.bf16.msra.mxu1 %v13009_v47  ;;  %v13033_v46 = vld [vmem:[%s18122_s13 + $0x9a0] ss:$16 sps:$4 sm:$0xff]  }
0x16c2   :  { %v5719_v30 = vmax.f32 %v12419_v43, 0.0  ;;  %v5716_v36 = vpop.f32.mrb[31].mxu1  ;;  %9246 = vmatprep.subr.bf16.mxu1 %v13014_v42  ;;  %v13038_v47 = vld [vmem:[%s18122_s13 + $0x9c4] ss:$16 sps:$4 sm:$0xff]   ;;  %v12967_v20 = vld [vmem:[%s18124_s15 + $0x170] ss:$8 sps:$4 sm:$0xff]  }
0x16c3   :  { %v5721_v29 = vmax.f32 %v12421_v24, 0.0  ;;  %v5722_v54 = vpack.c.bf16 %v5718_v50, %v5718_v50  ;;  %v12972_v35 = vld [vmem:[%s18124_s15 + $0x184] ss:$8 sps:$4 sm:$0xff]   ;;  %v13036_v43 = vld [vmem:[%s18122_s13 + $0x9c0] ss:$16 sps:$4 sm:$0xff]  }
0x16c4   :  { %v5723_v1 = vpack.c.bf16 %v5719_v30, %v5719_v30  ;;  %v13041_v8 = vld [vmem:[%s18122_s13 + $0x9e4] ss:$16 sps:$4 sm:$0xff]   ;;  %v12970_v50 = vld [vmem:[%s18124_s15 + $0x180] ss:$8 sps:$4 sm:$0xff]   ;;  %v12973_v32 = vld [vmem:[%s18124_s15 + $0x190] ss:$8 sps:$4 sm:$0xff]  }
0x16c5   :  { %9247 = vmatpush1.bf16.msra.mxu1 %v13012_v0  ;;  %v5725_v5 = vpack.c.bf16 %v5721_v29, %v5721_v29  ;;  %v12975_v24 = vld [vmem:[%s18124_s15 + $0x194] ss:$8 sps:$4 sm:$0xff]   ;;  %v13039_v13 = vld [vmem:[%s18122_s13 + $0x9e0] ss:$16 sps:$4 sm:$0xff]   ;;  %v12978_v0 = vld [vmem:[%s18124_s15 + $0x1a4] ss:$8 sps:$4 sm:$0xff]  }
0x16c6   :  { %6154 = vmatprep.mubr.bf16.mxu0 %v5723_v1  ;;  %9248 = vmatprep.subr.bf16.mxu1 %v13017_v31  ;;  %v12976_v30 = vld [vmem:[%s18124_s15 + $0x1a0] ss:$8 sps:$4 sm:$0xff]   ;;  %v12981_v36 = vld [vmem:[%s18124_s15 + $0x1b4] ss:$8 sps:$4 sm:$0xff]   ;;  %v12979_v1 = vld [vmem:[%s18124_s15 + $0x1b0] ss:$8 sps:$4 sm:$0xff]  }
0x16c7   :  { %6155 = vmatmul.mubr.bf16.vlgmr.msra.gmra.mrb[32].mxu0 %v5722_v54  ;;  %v12984_v54 = vld [vmem:[%s18124_s15 + $0x1c4] ss:$8 sps:$4 sm:$0xff]  }
0x16c8   :  { %6164 = vmatpush1.bf16.msra.mxu0 %v12946_v39  ;;  %6195 = vmatprep.mubr.bf16.mxu0 %v5725_v5  ;;  %v12987_v5 = vld [vmem:[%s18124_s15 + $0x1d4] ss:$8 sps:$4 sm:$0xff]  }
0x16c9   :  { %6165 = vmatprep.subr.bf16.mxu0 %v12951_v9  ;;  %9249 = vmatpush1.bf16.msra.mxu1 %v13015_v57  ;;  %v12982_v57 = vld [vmem:[%s18124_s15 + $0x1c0] ss:$8 sps:$4 sm:$0xff]  }
0x16ca   :  { %9250 = vmatprep.subr.bf16.mxu1 %v13020_v3  ;;  %v12985_v3 = vld [vmem:[%s18124_s15 + $0x1d0] ss:$8 sps:$4 sm:$0xff]  }
0x16cc   :  { %6166 = vmatpush1.bf16.msra.mxu0 %v12949_v14  ;;  %v12990_v14 = vld [vmem:[%s18124_s15 + $0x1e4] ss:$8 sps:$4 sm:$0xff]  }
0x16cd   :  { %6167 = vmatprep.subr.bf16.mxu0 %v12954_v28  ;;  %9251 = vmatpush1.bf16.msra.mxu1 %v13018_v26  ;;  %v12988_v28 = vld [vmem:[%s18124_s15 + $0x1e0] ss:$8 sps:$4 sm:$0xff]   ;;  %v12993_v26 = vld [vmem:[%s18124_s15 + $0x1f4] ss:$8 sps:$4 sm:$0xff]  }
0x16ce   :  { %9252 = vmatprep.subr.bf16.mxu1 %v13023_v55 }
0x16cf   :  { %v16640_v51 = vpop.f32.mrb[32].mxu1 }
0x16d0   :  { %6168 = vmatpush1.bf16.msra.mxu0 %v12952_v27  ;;  %v16642_v10 = vpop.f32.mrb[33].mxu1 }
0x16d1   :  { %v6677_v62 = vpop.f32.mrb[34].mxu1  ;;  %6169 = vmatprep.subr.bf16.mxu0 %v12957_v40  ;;  %9253 = vmatpush1.bf16.msra.mxu1 %v13021_v60  ;;  %v12991_v40 = vld [vmem:[%s18124_s15 + $0x1f0] ss:$8 sps:$4 sm:$0xff]   ;;  %v5720_v60 = vmax.f32 %v16596_v52, 0.0  ;;  %v6207_v52 = vld [vmem:[%s18126_s17 + $0x8] sm:$0xff] }
0x16d2   :  { %v6678_v2 = vpop.f32.mrb[35].mxu1  ;;  %9254 = vmatprep.subr.bf16.mxu1 %v13026_v12 }
0x16d3   :  { %v5724_v62 = vpack.c.bf16 %v5720_v60, %v5720_v60  ;;  %v6206_v2 = vld [vmem:[%s18126_s17] sm:$0xff] }
0x16d4   :  { %6170 = vmatpush1.bf16.msra.mxu0 %v12955_v34 }
0x16d5   :  { %6171 = vmatprep.subr.bf16.mxu0 %v12960_v48  ;;  %9255 = vmatpush1.bf16.msra.mxu1 %v13024_v58  ;;  %v6222_v48 = vld [vmem:[%s18126_s17 + $0x80] sm:$0xff]  ;;  %v6223_v58 = vld [vmem:[%s18126_s17 + $0x88] sm:$0xff] }
0x16d6   :  { %9256 = vmatprep.subr.bf16.mxu1 %v13029_v38  ;;  %v12354_v38 = vpack.c.bf16 %v6223_v58, %v6222_v48 }
0x16d8   :  { %6172 = vmatpush1.bf16.msra.mxu0 %v12958_v53  ;;  %v6224_v53 = vld [vmem:[%s18126_s17 + $0x90] sm:$0xff] }
0x16d9   :  { %6173 = vmatprep.subr.bf16.mxu0 %v12963_v59  ;;  %9257 = vmatpush1.bf16.msra.mxu1 %v13027_v16  ;;  %v6225_v59 = vld [vmem:[%s18126_s17 + $0x98] sm:$0xff]  ;;  %v12356_v16 = vpack.c.bf16 %v6207_v52, %v6206_v2 }
0x16da   :  { %9258 = vmatprep.subr.bf16.mxu1 %v13032_v11  ;;  %v12358_v11 = vpack.c.bf16 %v6225_v59, %v6224_v53 }
0x16dc   :  { %6174 = vmatpush1.bf16.msra.mxu0 %v12961_v18  ;;  %v6208_v18 = vld [vmem:[%s18126_s17 + $0x10] sm:$0xff] }
0x16dd   :  { %6175 = vmatprep.subr.bf16.mxu0 %v12966_v41  ;;  %9259 = vmatpush1.bf16.msra.mxu1 %v13030_v56  ;;  %v6209_v41 = vld [vmem:[%s18126_s17 + $0x18] sm:$0xff]  ;;  %v6226_v56 = vld [vmem:[%s18126_s17 + $0xa0] sm:$0xff] }
0x16de   :  { %9260 = vmatprep.subr.bf16.mxu1 %v13035_v19  ;;  %v6227_v19 = vld [vmem:[%s18126_s17 + $0xa8] sm:$0xff] }
0x16df   :  { %v16692_v7 = vpop.f32.mrb[36].mxu1 }
0x16e0   :  { %6176 = vmatpush1.bf16.msra.mxu0 %v12964_v17  ;;  %v16694_v42 = vpop.f32.mrb[37].mxu1  ;;  %v12360_v17 = vpack.c.bf16 %v6209_v41, %v6208_v18 }
0x16e1   :  { %v6718_v25 = vpop.f32.mrb[38].mxu1  ;;  %6177 = vmatprep.subr.bf16.mxu0 %v12969_v37  ;;  %9261 = vmatpush1.bf16.msra.mxu1 %v13033_v46  ;;  %v12362_v37 = vpack.c.bf16 %v6227_v19, %v6226_v56  ;;  %v6210_v46 = vld [vmem:[%s18126_s17 + $0x20] sm:$0xff] }
0x16e2   :  { %v6719_v4 = vpop.f32.mrb[39].mxu1  ;;  %9262 = vmatprep.subr.bf16.mxu1 %v13038_v47  ;;  %v6211_v47 = vld [vmem:[%s18126_s17 + $0x28] sm:$0xff]  ;;  %v6229_v25 = vld [vmem:[%s18126_s17 + $0xb8] sm:$0xff] }
0x16e3   :  { %v6212_v4 = vld [vmem:[%s18126_s17 + $0x30] sm:$0xff] }
0x16e4   :  { %6178 = vmatpush1.bf16.msra.mxu0 %v12967_v20  ;;  %v6228_v20 = vld [vmem:[%s18126_s17 + $0xb0] sm:$0xff] }
0x16e5   :  { %6179 = vmatprep.subr.bf16.mxu0 %v12972_v35  ;;  %9263 = vmatpush1.bf16.msra.mxu1 %v13036_v43  ;;  %v12364_v35 = vpack.c.bf16 %v6211_v47, %v6210_v46  ;;  %v12366_v43 = vpack.c.bf16 %v6229_v25, %v6228_v20  ;;  %v10708_v47 = vld [vmem:[%s18121_s10 + $0x408] sm:$0xff] }
0x16e6   :  { %9264 = vmatprep.subr.bf16.mxu1 %v13041_v8  ;;  %v6213_v8 = vld [vmem:[%s18126_s17 + $0x38] sm:$0xff]  ;;  %v10712_v20 = vld [vmem:[%s18121_s10 + $0x428] sm:$0xff] }
0x16e7   :  { %v10906_v25 = vcombine.high %v10708_v47, %v10712_v20 }
0x16e8   :  { %6180 = vmatpush1.bf16.msra.mxu0 %v12970_v50  ;;  %v6230_v50 = vld [vmem:[%s18126_s17 + $0xc0] sm:$0xff] }
0x16e9   :  { %6181 = vmatprep.subr.bf16.mxu0 %v12975_v24  ;;  %9265 = vmatpush1.bf16.msra.mxu1 %v13039_v13  ;;  %v6231_v24 = vld [vmem:[%s18126_s17 + $0xc8] sm:$0xff]  ;;  %v12368_v13 = vpack.c.bf16 %v6213_v8, %v6212_v4 }
0x16ec   :  { %6182 = vmatpush1.bf16.msra.mxu0 %v12973_v32  ;;  %v12370_v32 = vpack.c.bf16 %v6231_v24, %v6230_v50 }
0x16ed   :  { %6183 = vmatprep.subr.bf16.mxu0 %v12978_v0  ;;  %v6214_v0 = vld [vmem:[%s18126_s17 + $0x40] sm:$0xff] }
0x16ef   :  { %v16729_v31 = vpop.f32.mrb[40].mxu1 }
0x16f0   :  { %6184 = vmatpush1.bf16.msra.mxu0 %v12976_v30  ;;  %v16731_v29 = vpop.f32.mrb[41].mxu1  ;;  %v6215_v30 = vld [vmem:[%s18126_s17 + $0x48] sm:$0xff] }
0x16f1   :  { %v6759_v39 = vpop.f32.mrb[42].mxu1  ;;  %6185 = vmatprep.subr.bf16.mxu0 %v12981_v36  ;;  %v6232_v36 = vld [vmem:[%s18126_s17 + $0xd0] sm:$0xff] }
0x16f2   :  { %v6760_v9 = vpop.f32.mrb[43].mxu1  ;;  %v12372_v39 = vpack.c.bf16 %v6215_v30, %v6214_v0 }
0x16f3   :  { %v6216_v9 = vld [vmem:[%s18126_s17 + $0x50] sm:$0xff] }
0x16f4   :  { %6186 = vmatpush1.bf16.msra.mxu0 %v12979_v1  ;;  %v6233_v1 = vld [vmem:[%s18126_s17 + $0xd8] sm:$0xff] }
0x16f5   :  { %6187 = vmatprep.subr.bf16.mxu0 %v12984_v54  ;;  %v12374_v54 = vpack.c.bf16 %v6233_v1, %v6232_v36 }
0x16f8   :  { %6188 = vmatpush1.bf16.msra.mxu0 %v12982_v57  ;;  %v6217_v57 = vld [vmem:[%s18126_s17 + $0x58] sm:$0xff] }
0x16f9   :  { %6189 = vmatprep.subr.bf16.mxu0 %v12987_v5  ;;  %v6234_v5 = vld [vmem:[%s18126_s17 + $0xe0] sm:$0xff] }
0x16fc   :  { %6190 = vmatpush1.bf16.msra.mxu0 %v12985_v3  ;;  %v6235_v3 = vld [vmem:[%s18126_s17 + $0xe8] sm:$0xff] }
0x16fd   :  { %6191 = vmatprep.subr.bf16.mxu0 %v12990_v14  ;;  %v12376_v14 = vpack.c.bf16 %v6217_v57, %v6216_v9  ;;  %v10720_v9 = vld [vmem:[%s18121_s10 + $0x468] sm:$0xff] }
0x16ff   :  { %v16757_v55 = vpop.f32.mrb[44].mxu1 }
0x1700   :  { %6192 = vmatpush1.bf16.msra.mxu0 %v12988_v28  ;;  %v16759_v27 = vpop.f32.mrb[45].mxu1  ;;  %v12378_v28 = vpack.c.bf16 %v6235_v3, %v6234_v5 }
0x1701   :  { %v6800_v12 = vpop.f32.mrb[46].mxu1  ;;  %6193 = vmatprep.subr.bf16.mxu0 %v12993_v26  ;;  %v6218_v26 = vld [vmem:[%s18126_s17 + $0x60] sm:$0xff] }
0x1702   :  { %v6801_v34 = vpop.f32.mrb[47].mxu1  ;;  %v16852_v12 = vld [vmem:[%s18123_s12 + $0x8] sm:$0xff] }
0x1703   :  { %v7613_v34 = vrot.slane %v16852_v12, %v14132_v61  ;;  %v7617_v48 = vrot.slane %v16852_v12, %v18171_v21 }
0x1704   :  { %6194 = vmatpush1.bf16.msra.mxu0 %v12991_v40  ;;  %v6219_v40 = vld [vmem:[%s18126_s17 + $0x68] sm:$0xff] }
0x1705   :  { %12355 = vmatprep.subr.bf16.mxu0 %v12354_v38  ;;  %v12380_v60 = vpack.c.bf16 %v6219_v40, %v6218_v26  ;;  %v10728_v26 = vld [vmem:[%s18121_s10 + $0x4a8] sm:$0xff] }
0x1707   :  { %6196 = vmatmul.mubr.bf16.vlgmr.msra.gmra.mrb[32].mxu0 %v5724_v62 }
0x1708   :  { %12357 = vmatpush3.bf16.msra.mxu0 %v12356_v16 }
0x1709   :  { %12359 = vmatprep.subr.bf16.mxu0 %v12358_v11 }
0x170c   :  { %12361 = vmatpush3.bf16.msra.mxu0 %v12360_v17  ;;  %v6220_v17 = vld [vmem:[%s18126_s17 + $0x70] sm:$0xff] }
0x170d   :  { %12363 = vmatprep.subr.bf16.mxu0 %v12362_v37  ;;  %v6221_v37 = vld [vmem:[%s18126_s17 + $0x78] sm:$0xff] }
0x170e   :  { %v12384_v46 = vpack.c.bf16 %v6221_v37, %v6220_v17  ;;  %v10764_v37 = vld [vmem:[%s18121_s10 + $0x5c8] sm:$0xff] }
0x1710   :  { %12365 = vmatpush3.bf16.msra.mxu0 %v12364_v35  ;;  %v10905_v35 = vcombine.low %v10708_v47, %v10712_v20 }
0x1711   :  { %12367 = vmatprep.subr.bf16.mxu0 %v12366_v43 }
0x1714   :  { %12369 = vmatpush3.bf16.msra.mxu0 %v12368_v13 }
0x1715   :  { %12371 = vmatprep.subr.bf16.mxu0 %v12370_v32  ;;  %v5790_v32 = vld [vmem:[%s18127_s16] sm:$0x3] }
0x1716   :  { %v5795_v0 = vrot.slane %v5790_v32, %v14132_v61  ;;  %v5799_v30 = vrot.slane %v5790_v32, %v18171_v21 }
0x1718   :  { %12373 = vmatpush3.bf16.msra.mxu0 %v12372_v39 }
0x1719   :  { %12375 = vmatprep.subr.bf16.mxu0 %v12374_v54 }
0x171c   :  { %12377 = vmatpush3.bf16.msra.mxu0 %v12376_v14 }
0x171d   :  { %12379 = vmatprep.subr.bf16.mxu0 %v12378_v28  ;;  %v10724_v28 = vld [vmem:[%s18121_s10 + $0x488] sm:$0xff] }
0x1720   :  { %12381 = vmatpush3.bf16.msra.mxu0 %v12380_v60  ;;  %v10922_v60 = vcombine.high %v10724_v28, %v10728_v26 }
0x173f   :  { %v7477_v62 = vpop.f32.mrb[48].mxu1 }
0x1740   :  { %v7478_v58 = vadd.f32 %v7477_v62, %v16640_v51  ;;  %v7479_v2 = vpop.f32.mrb[49].mxu1  ;;  %v6236_v51 = vld [vmem:[%s18126_s17 + $0xf0] sm:$0xff]  ;;  %v10736_v62 = vld [vmem:[%s18121_s10 + $0x4e8] sm:$0xff] }
0x1741   :  { %v7480_v38 = vadd.f32 %v7479_v2, %v16642_v10  ;;  %v7481_v52 = vpop.f32.mrb[50].mxu1  ;;  %v6237_v10 = vld [vmem:[%s18126_s17 + $0xf8] sm:$0xff]  ;;  %v10740_v2 = vld [vmem:[%s18121_s10 + $0x508] sm:$0xff] }
0x1742   :  { %v7650_v53 = vadd.f32 %v7613_v34, %v7478_v58  ;;  %v7482_v59 = vpop.f32.mrb[51].mxu1  ;;  %v12382_v19 = vpack.c.bf16 %v6237_v10, %v6236_v51  ;;  %v10732_v34 = vld [vmem:[%s18121_s10 + $0x4c8] sm:$0xff] }
0x1743   :  { %v7651_v16 = vadd.f32 %v7617_v48, %v7480_v38  ;;  %v10921_v48 = vcombine.low %v10724_v28, %v10728_v26  ;;  %v10930_v58 = vcombine.high %v10732_v34, %v10736_v62  ;;  %v10744_v38 = vld [vmem:[%s18121_s10 + $0x528] sm:$0xff]  ;;  %v10929_v52 = vcombine.low %v10732_v34, %v10736_v62 }
0x1744   :  { %v7658_v11 = vmax.f32 %v7650_v53, 0.0  ;;  %12383 = vmatprep.subr.bf16.mxu0 %v12382_v19  ;;  %v10938_v53 = vcombine.high %v10740_v2, %v10744_v38  ;;  %v10748_v59 = vld [vmem:[%s18121_s10 + $0x548] sm:$0xff] }
0x1745   :  { %v7659_v18 = vmax.f32 %v7651_v16, 0.0  ;;  %12385 = vmatpush3.bf16.msra.mxu0 %v12384_v46  ;;  %v10752_v16 = vld [vmem:[%s18121_s10 + $0x568] sm:$0xff] }
0x1746   :  { %v16862_v56 = vpack.c.bf16 %v7658_v11, %v7658_v11  ;;  %7484 = vmatprep.subr.bf16.mxu0 %v10906_v25  ;;  %v10937_v11 = vcombine.low %v10740_v2, %v10744_v38  ;;  %v10756_v51 = vld [vmem:[%s18121_s10 + $0x588] sm:$0xff]  ;;  %v10945_v19 = vcombine.low %v10748_v59, %v10752_v16 }
0x1747   :  { %v16860_v41 = vpack.c.bf16 %v7659_v18, %v7659_v18  ;;  %v10946_v18 = vcombine.high %v10748_v59, %v10752_v16  ;;  %v10760_v10 = vld [vmem:[%s18121_s10 + $0x5a8] sm:$0xff]  ;;  %v10710_v59 = vld [vmem:[%s18121_s10 + $0x418] sm:$0xff] }
0x1748   :  { %v10954_v17 = vcombine.high %v10756_v51, %v10760_v10  ;;  %v10768_v46 = vld [vmem:[%s18121_s10 + $0x5e8] sm:$0xff]  ;;  %v10953_v47 = vcombine.low %v10756_v51, %v10760_v10  ;;  %v10714_v16 = vld [vmem:[%s18121_s10 + $0x438] sm:$0xff] }
0x1749   :  { %9266 = vmatprep.mubr.bf16.mxu1 %v16860_v41  ;;  %v10962_v20 = vcombine.high %v10764_v37, %v10768_v46  ;;  %v10772_v25 = vld [vmem:[%s18121_s10 + $0x608] sm:$0xff]  ;;  %v10718_v51 = vld [vmem:[%s18121_s10 + $0x458] sm:$0xff] }
0x174a   :  { %9267 = vmatmul.mubr.bf16.vlgmr.msra.gmra.mrb[56].mxu1 %v16862_v56  ;;  %v10812_v28 = vld [vmem:[%s18121_s10 + $0x748] sm:$0xff]  ;;  %v10722_v10 = vld [vmem:[%s18121_s10 + $0x478] sm:$0xff] }
0x174b   :  { %v10816_v26 = vld [vmem:[%s18121_s10 + $0x768] sm:$0xff] }
0x174c   :  { %v10820_v34 = vld [vmem:[%s18121_s10 + $0x788] sm:$0xff] }
0x174d   :  { %v10824_v62 = vld [vmem:[%s18121_s10 + $0x7a8] sm:$0xff] }
0x174e   :  { %v10828_v2 = vld [vmem:[%s18121_s10 + $0x7c8] sm:$0xff] }
0x174f   :  { %v10832_v38 = vld [vmem:[%s18121_s10 + $0x7e8] sm:$0xff] }
0x177f   :  { %v7559_v43 = vpop.f32.mrb[52].mxu1 }
0x1780   :  { %v16885_v4 = vadd.f32 %v7559_v43, %v16729_v31  ;;  %v7561_v8 = vpop.f32.mrb[53].mxu1  ;;  %v10961_v43 = vcombine.low %v10764_v37, %v10768_v46  ;;  %v10726_v37 = vld [vmem:[%s18121_s10 + $0x498] sm:$0xff] }
0x1781   :  { %v16888_v50 = vadd.f32 %v7561_v8, %v16731_v29  ;;  %v7563_v24 = vpop.f32.mrb[54].mxu1  ;;  %v10716_v29 = vld [vmem:[%s18121_s10 + $0x448] sm:$0xff]  ;;  %v10730_v46 = vld [vmem:[%s18121_s10 + $0x4b8] sm:$0xff] }
0x1782   :  { %v7564_v13 = vpop.f32.mrb[55].mxu1  ;;  %v10914_v14 = vcombine.high %v10716_v29, %v10720_v9  ;;  %v10913_v40 = vcombine.low %v10716_v29, %v10720_v9  ;;  %v10780_v24 = vld [vmem:[%s18121_s10 + $0x648] sm:$0xff] }
0x1783   :  { %v10784_v13 = vld [vmem:[%s18121_s10 + $0x668] sm:$0xff] }
0x17da   :  { %v6197_v36 = vpop.f32.mrb[32].mxu0 }
0x17db   :  { %v12422_v1 = vadd.f32 %v6197_v36, %v5795_v0  ;;  %v6199_v39 = vpop.f32.mrb[33].mxu0  ;;  %v10978_v0 = vcombine.high %v10780_v24, %v10784_v13  ;;  %v10792_v36 = vld [vmem:[%s18121_s10 + $0x6a8] sm:$0xff] }
0x17dc   :  { %v12423_v54 = vadd.f32 %v6199_v39, %v5799_v30  ;;  %v6201_v31 = vpop.f32.mrb[34].mxu0  ;;  %v10788_v30 = vld [vmem:[%s18121_s10 + $0x688] sm:$0xff] }
0x17dd   :  { %v6202_v57 = vpop.f32.mrb[35].mxu0  ;;  %v6204_v3 = vmax.f32 %v12422_v1, 0.0  ;;  %v10977_v1 = vcombine.low %v10780_v24, %v10784_v13  ;;  %v10986_v39 = vcombine.high %v10788_v30, %v10792_v36  ;;  %v10800_v31 = vld [vmem:[%s18121_s10 + $0x6e8] sm:$0xff]  ;;  %v10985_v29 = vcombine.low %v10788_v30, %v10792_v36  ;;  %v10742_v24 = vld [vmem:[%s18121_s10 + $0x518] sm:$0xff] }
0x17de   :  { %v6205_v5 = vmax.f32 %v12423_v54, 0.0  ;;  %v10796_v54 = vld [vmem:[%s18121_s10 + $0x6c8] sm:$0xff]  ;;  %v10754_v30 = vld [vmem:[%s18121_s10 + $0x578] sm:$0xff] }
0x17df   :  { %v10994_v9 = vcombine.high %v10796_v54, %v10800_v31  ;;  %v10804_v57 = vld [vmem:[%s18121_s10 + $0x708] sm:$0xff] }
0x17e0   :  { %6309 = vmatprep.mubr.f32.mxu0 %v6205_v5  ;;  %v10808_v5 = vld [vmem:[%s18121_s10 + $0x728] sm:$0xff] }
0x17e1   :  { %6310 = vmatmul.mubr.f32.vlgmr.msra.gmra.mrb[36].mxu0 %v6204_v3  ;;  %v10993_v3 = vcombine.low %v10796_v54, %v10800_v31  ;;  %v10762_v54 = vld [vmem:[%s18121_s10 + $0x5b8] sm:$0xff] }
0x17e2   :  { %7485 = vmatpush1.bf16.msra.mxu0 %v10905_v35  ;;  %7516 = vmatprep.mubr.bf16.mxu0 %v14942_v23  ;;  %v10776_v35 = vld [vmem:[%s18121_s10 + $0x628] sm:$0xff] }
0x17e3   :  { %7486 = vmatprep.subr.bf16.mxu0 %v10914_v14  ;;  %v10970_v8 = vcombine.high %v10772_v25, %v10776_v35  ;;  %v10969_v32 = vcombine.low %v10772_v25, %v10776_v35  ;;  %v11002_v14 = vcombine.high %v10804_v57, %v10808_v5  ;;  %v10734_v25 = vld [vmem:[%s18121_s10 + $0x4d8] sm:$0xff] }
0x17e4   :  { %v10738_v35 = vld [vmem:[%s18121_s10 + $0x4f8] sm:$0xff] }
0x17e5   :  { %v10933_v13 = vcombine.low %v10734_v25, %v10738_v35 }
0x17e6   :  { %7487 = vmatpush1.bf16.msra.mxu0 %v10913_v40  ;;  %v11001_v40 = vcombine.low %v10804_v57, %v10808_v5  ;;  %v10770_v57 = vld [vmem:[%s18121_s10 + $0x5f8] sm:$0xff] }
0x17e7   :  { %7488 = vmatprep.subr.bf16.mxu0 %v10922_v60  ;;  %v11010_v60 = vcombine.high %v10812_v28, %v10816_v26 }
0x17ea   :  { %7489 = vmatpush1.bf16.msra.mxu0 %v10921_v48  ;;  %v11009_v48 = vcombine.low %v10812_v28, %v10816_v26  ;;  %v10778_v28 = vld [vmem:[%s18121_s10 + $0x638] sm:$0xff] }
0x17eb   :  { %7490 = vmatprep.subr.bf16.mxu0 %v10930_v58  ;;  %v11018_v58 = vcombine.high %v10820_v34, %v10824_v62 }
0x17ee   :  { %7491 = vmatpush1.bf16.msra.mxu0 %v10929_v52  ;;  %v11017_v52 = vcombine.low %v10820_v34, %v10824_v62  ;;  %v13098_v62 = vld [vmem:[%s18122_s13 + $0xa24] ss:$16 sps:$4 sm:$0xff]  }
0x17ef   :  { %7492 = vmatprep.subr.bf16.mxu0 %v10938_v53  ;;  %v11026_v53 = vcombine.high %v10828_v2, %v10832_v38 }
0x17f2   :  { %7493 = vmatpush1.bf16.msra.mxu0 %v10937_v11  ;;  %v11025_v11 = vcombine.low %v10828_v2, %v10832_v38  ;;  %v13096_v2 = vld [vmem:[%s18122_s13 + $0xa20] ss:$16 sps:$4 sm:$0xff]  }
0x17f3   :  { %7494 = vmatprep.subr.bf16.mxu0 %v10946_v18  ;;  %v10910_v18 = vcombine.high %v10710_v59, %v10714_v16 }
0x17f6   :  { %7495 = vmatpush1.bf16.msra.mxu0 %v10945_v19  ;;  %v10909_v19 = vcombine.low %v10710_v59, %v10714_v16  ;;  %v10790_v59 = vld [vmem:[%s18121_s10 + $0x698] sm:$0xff] }
0x17f7   :  { %7496 = vmatprep.subr.bf16.mxu0 %v10954_v17  ;;  %v10918_v17 = vcombine.high %v10718_v51, %v10722_v10  ;;  %v10794_v16 = vld [vmem:[%s18121_s10 + $0x6b8] sm:$0xff] }
0x17fa   :  { %7497 = vmatpush1.bf16.msra.mxu0 %v10953_v47  ;;  %v10917_v47 = vcombine.low %v10718_v51, %v10722_v10  ;;  %v13110_v51 = vld [vmem:[%s18122_s13 + $0xa64] ss:$16 sps:$4 sm:$0xff]   ;;  %v10990_v10 = vcombine.high %v10790_v59, %v10794_v16 }
0x17fb   :  { %7498 = vmatprep.subr.bf16.mxu0 %v10962_v20  ;;  %v10926_v20 = vcombine.high %v10726_v37, %v10730_v46 }
0x17fe   :  { %7499 = vmatpush1.bf16.msra.mxu0 %v10961_v43  ;;  %v10925_v43 = vcombine.low %v10726_v37, %v10730_v46  ;;  %v13108_v37 = vld [vmem:[%s18122_s13 + $0xa60] ss:$16 sps:$4 sm:$0xff]   ;;  %v10989_v46 = vcombine.low %v10790_v59, %v10794_v16  ;;  %v13045_v59 = vld [vmem:[%s18122_s13 + $0x828] ss:$16 sps:$4 sm:$0xff]   ;;  %v13158_v16 = vld [vmem:[%s18122_s13 + $0xb64] ss:$16 sps:$4 sm:$0xff]  }
0x17ff   :  { %7500 = vmatprep.subr.bf16.mxu0 %v10970_v8  ;;  %v10934_v8 = vcombine.high %v10734_v25, %v10738_v35  ;;  %v10806_v25 = vld [vmem:[%s18121_s10 + $0x718] sm:$0xff] }
0x1800   :  { %v10810_v35 = vld [vmem:[%s18121_s10 + $0x738] sm:$0xff] }
0x1802   :  { %7501 = vmatpush1.bf16.msra.mxu0 %v10969_v32 }
0x1803   :  { %7502 = vmatprep.subr.bf16.mxu0 %v10978_v0  ;;  %v10750_v0 = vld [vmem:[%s18121_s10 + $0x558] sm:$0xff] }
0x1804   :  { %v10949_v31 = vcombine.low %v10750_v0, %v10754_v30 }
0x1806   :  { %7503 = vmatpush1.bf16.msra.mxu0 %v10977_v1  ;;  %v10950_v1 = vcombine.high %v10750_v0, %v10754_v30  ;;  %v13120_v0 = vld [vmem:[%s18122_s13 + $0xaa0] ss:$16 sps:$4 sm:$0xff]   ;;  %v11005_v30 = vcombine.low %v10806_v25, %v10810_v35 }
0x1807   :  { %7504 = vmatprep.subr.bf16.mxu0 %v10986_v39  ;;  %v10758_v39 = vld [vmem:[%s18121_s10 + $0x598] sm:$0xff] }
0x1808   :  { %v10957_v5 = vcombine.low %v10758_v39, %v10762_v54 }
0x180a   :  { %7505 = vmatpush1.bf16.msra.mxu0 %v10985_v29  ;;  %v10958_v29 = vcombine.high %v10758_v39, %v10762_v54  ;;  %v10822_v39 = vld [vmem:[%s18121_s10 + $0x798] sm:$0xff] }
0x180b   :  { %7506 = vmatprep.subr.bf16.mxu0 %v10994_v9  ;;  %v10766_v9 = vld [vmem:[%s18121_s10 + $0x5d8] sm:$0xff] }
0x180c   :  { %v10965_v26 = vcombine.low %v10766_v9, %v10770_v57  ;;  %v10826_v54 = vld [vmem:[%s18121_s10 + $0x7b8] sm:$0xff] }
0x180e   :  { %7507 = vmatpush1.bf16.msra.mxu0 %v10993_v3  ;;  %v10966_v3 = vcombine.high %v10766_v9, %v10770_v57  ;;  %v13134_v9 = vld [vmem:[%s18122_s13 + $0xae4] ss:$16 sps:$4 sm:$0xff]   ;;  %v11022_v57 = vcombine.high %v10822_v39, %v10826_v54 }
0x180f   :  { %7508 = vmatprep.subr.bf16.mxu0 %v11002_v14  ;;  %v10774_v14 = vld [vmem:[%s18121_s10 + $0x618] sm:$0xff] }
0x1810   :  { %v10974_v34 = vcombine.high %v10774_v14, %v10778_v28  ;;  %v10973_v38 = vcombine.low %v10774_v14, %v10778_v28  ;;  %v13132_v14 = vld [vmem:[%s18122_s13 + $0xae0] ss:$16 sps:$4 sm:$0xff]   ;;  %v11021_v28 = vcombine.low %v10822_v39, %v10826_v54  ;;  %v13071_v39 = vld [vmem:[%s18122_s13 + $0x92c] ss:$16 sps:$4 sm:$0xff]   ;;  %v13069_v54 = vld [vmem:[%s18122_s13 + $0x928] ss:$16 sps:$4 sm:$0xff]  }
0x1812   :  { %7509 = vmatpush1.bf16.msra.mxu0 %v11001_v40  ;;  %v13090_v40 = vld [vmem:[%s18122_s13 + $0xa00] ss:$16 sps:$4 sm:$0xff]  }
0x1813   :  { %7510 = vmatprep.subr.bf16.mxu0 %v11010_v60  ;;  %v13092_v60 = vld [vmem:[%s18122_s13 + $0xa04] ss:$16 sps:$4 sm:$0xff]  }
0x1814   :  { %9275 = vmatprep.subr.bf16.mxu1 %v13092_v60  ;;  %v13138_v60 = vld [vmem:[%s18122_s13 + $0xb00] ss:$16 sps:$4 sm:$0xff]  }
0x1815   :  { %9276 = vmatpush1.bf16.msra.mxu1 %v13090_v40 }
0x1816   :  { %7511 = vmatpush1.bf16.msra.mxu0 %v11009_v48  ;;  %v10782_v48 = vld [vmem:[%s18121_s10 + $0x658] sm:$0xff]  ;;  %9277 = vmatprep.subr.bf16.mxu1 %v13098_v62  ;;  %v13146_v62 = vld [vmem:[%s18122_s13 + $0xb24] ss:$16 sps:$4 sm:$0xff]  }
0x1817   :  { %7512 = vmatprep.subr.bf16.mxu0 %v11018_v58  ;;  %v10786_v58 = vld [vmem:[%s18121_s10 + $0x678] sm:$0xff] }
0x1819   :  { %9278 = vmatpush1.bf16.msra.mxu1 %v13096_v2  ;;  %v13042_v2 = vld [vmem:[%s18122_s13 + $0x808] ss:$16 sps:$4 sm:$0xff]  }
0x181a   :  { %7513 = vmatpush1.bf16.msra.mxu0 %v11017_v52  ;;  %v13104_v52 = vld [vmem:[%s18122_s13 + $0xa44] ss:$16 sps:$4 sm:$0xff]  }
0x181b   :  { %7514 = vmatprep.subr.bf16.mxu0 %v11026_v53  ;;  %v10982_v53 = vcombine.high %v10782_v48, %v10786_v58  ;;  %9279 = vmatprep.subr.bf16.mxu1 %v13104_v52  ;;  %v13152_v52 = vld [vmem:[%s18122_s13 + $0xb44] ss:$16 sps:$4 sm:$0xff]  }
0x181e   :  { %7515 = vmatpush1.bf16.msra.mxu0 %v11025_v11  ;;  %v13102_v11 = vld [vmem:[%s18122_s13 + $0xa40] ss:$16 sps:$4 sm:$0xff]  }
0x181f   :  { %7566 = vmatprep.subr.bf16.mxu0 %v10910_v18  ;;  %v10981_v18 = vcombine.low %v10782_v48, %v10786_v58  ;;  %9280 = vmatpush1.bf16.msra.mxu1 %v13102_v11  ;;  %v13044_v48 = vld [vmem:[%s18122_s13 + $0x80c] ss:$16 sps:$4 sm:$0xff]   ;;  %v13144_v58 = vld [vmem:[%s18122_s13 + $0xb20] ss:$16 sps:$4 sm:$0xff]  }
0x1820   :  { %9281 = vmatprep.subr.bf16.mxu1 %v13110_v51  ;;  %v13156_v11 = vld [vmem:[%s18122_s13 + $0xb60] ss:$16 sps:$4 sm:$0xff]   ;;  %v13053_v51 = vld [vmem:[%s18122_s13 + $0x86c] ss:$16 sps:$4 sm:$0xff]  }
0x1821   :  { %7517 = vmatmul.mubr.bf16.vlgmr.msra.gmra.mrb[40].mxu0 %v15142_v44 }
0x1822   :  { %7567 = vmatpush1.bf16.msra.mxu0 %v10909_v19  ;;  %7598 = vmatprep.mubr.bf16.mxu0 %v14942_v23  ;;  %v10746_v23 = vld [vmem:[%s18121_s10 + $0x538] sm:$0xff] }
0x1823   :  { %7568 = vmatprep.subr.bf16.mxu0 %v10918_v17  ;;  %v10942_v32 = vcombine.high %v10742_v24, %v10746_v23  ;;  %v10941_v36 = vcombine.low %v10742_v24, %v10746_v23  ;;  %v10798_v19 = vld [vmem:[%s18121_s10 + $0x6d8] sm:$0xff]  ;;  %9282 = vmatpush1.bf16.msra.mxu1 %v13108_v37  ;;  %v13122_v24 = vld [vmem:[%s18122_s13 + $0xaa4] ss:$16 sps:$4 sm:$0xff]   ;;  %v11006_v23 = vcombine.high %v10806_v25, %v10810_v35 }
0x1824   :  { %v10802_v17 = vld [vmem:[%s18121_s10 + $0x6f8] sm:$0xff] }
0x1825   :  { %v13056_v37 = vld [vmem:[%s18122_s13 + $0x88c] ss:$16 sps:$4 sm:$0xff]   ;;  %v13057_v25 = vld [vmem:[%s18122_s13 + $0x8a8] ss:$16 sps:$4 sm:$0xff]  }
0x1826   :  { %7569 = vmatpush1.bf16.msra.mxu0 %v10917_v47  ;;  %v13116_v47 = vld [vmem:[%s18122_s13 + $0xa84] ss:$16 sps:$4 sm:$0xff]   ;;  %v13062_v35 = vld [vmem:[%s18122_s13 + $0x8cc] ss:$16 sps:$4 sm:$0xff]  }
0x1827   :  { %7570 = vmatprep.subr.bf16.mxu0 %v10926_v20  ;;  %v10998_v20 = vcombine.high %v10798_v19, %v10802_v17  ;;  %9283 = vmatprep.subr.bf16.mxu1 %v13116_v47  ;;  %v13054_v47 = vld [vmem:[%s18122_s13 + $0x888] ss:$16 sps:$4 sm:$0xff]  }
0x182a   :  { %7571 = vmatpush1.bf16.msra.mxu0 %v10925_v43  ;;  %v13114_v43 = vld [vmem:[%s18122_s13 + $0xa80] ss:$16 sps:$4 sm:$0xff]  }
0x182b   :  { %7572 = vmatprep.subr.bf16.mxu0 %v10934_v8  ;;  %v10997_v8 = vcombine.low %v10798_v19, %v10802_v17  ;;  %9284 = vmatpush1.bf16.msra.mxu1 %v13114_v43  ;;  %v13051_v19 = vld [vmem:[%s18122_s13 + $0x868] ss:$16 sps:$4 sm:$0xff]   ;;  %v13170_v17 = vld [vmem:[%s18122_s13 + $0xba4] ss:$16 sps:$4 sm:$0xff]  }
0x182c   :  { %9285 = vmatprep.subr.bf16.mxu1 %v13122_v24  ;;  %v13176_v43 = vld [vmem:[%s18122_s13 + $0xbc4] ss:$16 sps:$4 sm:$0xff]   ;;  %v13060_v24 = vld [vmem:[%s18122_s13 + $0x8c8] ss:$16 sps:$4 sm:$0xff]  }
0x182e   :  { %7573 = vmatpush1.bf16.msra.mxu0 %v10933_v13  ;;  %v10814_v13 = vld [vmem:[%s18121_s10 + $0x758] sm:$0xff] }
0x182f   :  { %7574 = vmatprep.subr.bf16.mxu0 %v10942_v32  ;;  %v10818_v32 = vld [vmem:[%s18121_s10 + $0x778] sm:$0xff]  ;;  %9286 = vmatpush1.bf16.msra.mxu1 %v13120_v0 }
0x1830   :  { %v13063_v0 = vld [vmem:[%s18122_s13 + $0x8e8] ss:$16 sps:$4 sm:$0xff]  }
0x1832   :  { %7575 = vmatpush1.bf16.msra.mxu0 %v10941_v36  ;;  %v13128_v36 = vld [vmem:[%s18122_s13 + $0xac4] ss:$16 sps:$4 sm:$0xff]  }
0x1833   :  { %7576 = vmatprep.subr.bf16.mxu0 %v10950_v1  ;;  %v11014_v1 = vcombine.high %v10814_v13, %v10818_v32  ;;  %9287 = vmatprep.subr.bf16.mxu1 %v13128_v36  ;;  %v13188_v36 = vld [vmem:[%s18122_s13 + $0xc04] ss:$16 sps:$4 sm:$0xff]  }
0x1836   :  { %7577 = vmatpush1.bf16.msra.mxu0 %v10949_v31  ;;  %v13126_v31 = vld [vmem:[%s18122_s13 + $0xac0] ss:$16 sps:$4 sm:$0xff]  }
0x1837   :  { %7578 = vmatprep.subr.bf16.mxu0 %v10958_v29  ;;  %v11013_v29 = vcombine.low %v10814_v13, %v10818_v32  ;;  %9288 = vmatpush1.bf16.msra.mxu1 %v13126_v31  ;;  %v13182_v13 = vld [vmem:[%s18122_s13 + $0xbe4] ss:$16 sps:$4 sm:$0xff]   ;;  %v13180_v32 = vld [vmem:[%s18122_s13 + $0xbe0] ss:$16 sps:$4 sm:$0xff]   ;;  %v13074_v31 = vld [vmem:[%s18122_s13 + $0x94c] ss:$16 sps:$4 sm:$0xff]  }
0x1838   :  { %9289 = vmatprep.subr.bf16.mxu1 %v13134_v9  ;;  %v13077_v9 = vld [vmem:[%s18122_s13 + $0x96c] ss:$16 sps:$4 sm:$0xff]  }
0x183a   :  { %7579 = vmatpush1.bf16.msra.mxu0 %v10957_v5  ;;  %v10830_v5 = vld [vmem:[%s18121_s10 + $0x7d8] sm:$0xff] }
0x183b   :  { %7580 = vmatprep.subr.bf16.mxu0 %v10966_v3  ;;  %v10834_v3 = vld [vmem:[%s18121_s10 + $0x7f8] sm:$0xff]  ;;  %9290 = vmatpush1.bf16.msra.mxu1 %v13132_v14 }
0x183c   :  { %v11030_v40 = vcombine.high %v10830_v5, %v10834_v3  ;;  %v13083_v14 = vld [vmem:[%s18122_s13 + $0x9ac] ss:$16 sps:$4 sm:$0xff]  }
0x183e   :  { %7581 = vmatpush1.bf16.msra.mxu0 %v10965_v26  ;;  %v13140_v26 = vld [vmem:[%s18122_s13 + $0xb04] ss:$16 sps:$4 sm:$0xff]  }
0x183f   :  { %7582 = vmatprep.subr.bf16.mxu0 %v10974_v34  ;;  %v11029_v34 = vcombine.low %v10830_v5, %v10834_v3  ;;  %9291 = vmatprep.subr.bf16.mxu1 %v13140_v26  ;;  %v13080_v5 = vld [vmem:[%s18122_s13 + $0x98c] ss:$16 sps:$4 sm:$0xff]   ;;  %v13078_v3 = vld [vmem:[%s18122_s13 + $0x988] ss:$16 sps:$4 sm:$0xff]  }
0x1840   :  { %9292 = vmatpush1.bf16.msra.mxu1 %v13138_v60  ;;  %v13086_v26 = vld [vmem:[%s18122_s13 + $0x9cc] ss:$16 sps:$4 sm:$0xff]  }
0x1841   :  { %9293 = vmatprep.subr.bf16.mxu1 %v13146_v62  ;;  %v13089_v60 = vld [vmem:[%s18122_s13 + $0x9ec] ss:$16 sps:$4 sm:$0xff]  }
0x1842   :  { %7583 = vmatpush1.bf16.msra.mxu0 %v10973_v38  ;;  %v13047_v38 = vld [vmem:[%s18122_s13 + $0x82c] ss:$16 sps:$4 sm:$0xff]  }
0x1843   :  { %7584 = vmatprep.subr.bf16.mxu0 %v10982_v53  ;;  %v13150_v53 = vld [vmem:[%s18122_s13 + $0xb40] ss:$16 sps:$4 sm:$0xff]   ;;  %v13095_v62 = vld [vmem:[%s18122_s13 + $0xa0c] ss:$16 sps:$4 sm:$0xff]  }
0x1844   :  { %9294 = vmatpush1.bf16.msra.mxu1 %v13144_v58  ;;  %v13101_v58 = vld [vmem:[%s18122_s13 + $0xa2c] ss:$16 sps:$4 sm:$0xff]  }
0x1845   :  { %9295 = vmatprep.subr.bf16.mxu1 %v13152_v52  ;;  %v13105_v52 = vld [vmem:[%s18122_s13 + $0xa48] ss:$16 sps:$4 sm:$0xff]  }
0x1846   :  { %7585 = vmatpush1.bf16.msra.mxu0 %v10981_v18  ;;  %v13164_v18 = vld [vmem:[%s18122_s13 + $0xb84] ss:$16 sps:$4 sm:$0xff]  }
0x1847   :  { %7586 = vmatprep.subr.bf16.mxu0 %v10990_v10  ;;  %v13162_v10 = vld [vmem:[%s18122_s13 + $0xb80] ss:$16 sps:$4 sm:$0xff]  }
0x1848   :  { %9296 = vmatpush1.bf16.msra.mxu1 %v13150_v53  ;;  %v13111_v53 = vld [vmem:[%s18122_s13 + $0xa68] ss:$16 sps:$4 sm:$0xff]  }
0x1849   :  { %9297 = vmatprep.subr.bf16.mxu1 %v13158_v16  ;;  %v13117_v16 = vld [vmem:[%s18122_s13 + $0xa88] ss:$16 sps:$4 sm:$0xff]  }
0x184a   :  { %7587 = vmatpush1.bf16.msra.mxu0 %v10989_v46  ;;  %v13168_v46 = vld [vmem:[%s18122_s13 + $0xba0] ss:$16 sps:$4 sm:$0xff]  }
0x184b   :  { %7588 = vmatprep.subr.bf16.mxu0 %v10998_v20  ;;  %v13059_v20 = vld [vmem:[%s18122_s13 + $0x8ac] ss:$16 sps:$4 sm:$0xff]  }
0x184c   :  { %9298 = vmatpush1.bf16.msra.mxu1 %v13156_v11  ;;  %v13123_v11 = vld [vmem:[%s18122_s13 + $0xaa8] ss:$16 sps:$4 sm:$0xff]  }
0x184d   :  { %9299 = vmatprep.subr.bf16.mxu1 %v13164_v18 }
0x184e   :  { %7589 = vmatpush1.bf16.msra.mxu0 %v10997_v8  ;;  %v13174_v8 = vld [vmem:[%s18122_s13 + $0xbc0] ss:$16 sps:$4 sm:$0xff]  }
0x184f   :  { %7590 = vmatprep.subr.bf16.mxu0 %v11006_v23  ;;  %v13065_v23 = vld [vmem:[%s18122_s13 + $0x8ec] ss:$16 sps:$4 sm:$0xff]  }
0x1850   :  { %9300 = vmatpush1.bf16.msra.mxu1 %v13162_v10 }
0x1851   :  { %9301 = vmatprep.subr.bf16.mxu1 %v13170_v17  ;;  %v13129_v17 = vld [vmem:[%s18122_s13 + $0xac8] ss:$16 sps:$4 sm:$0xff]  }
0x1852   :  { %7591 = vmatpush1.bf16.msra.mxu0 %v11005_v30  ;;  %v13068_v30 = vld [vmem:[%s18122_s13 + $0x90c] ss:$16 sps:$4 sm:$0xff]  }
0x1853   :  { %7592 = vmatprep.subr.bf16.mxu0 %v11014_v1  ;;  %v13066_v1 = vld [vmem:[%s18122_s13 + $0x908] ss:$16 sps:$4 sm:$0xff]  }
0x1854   :  { %9302 = vmatpush1.bf16.msra.mxu1 %v13168_v46 }
0x1855   :  { %9303 = vmatprep.subr.bf16.mxu1 %v13176_v43  ;;  %v13147_v43 = vld [vmem:[%s18122_s13 + $0xb28] ss:$16 sps:$4 sm:$0xff]  }
0x1856   :  { %7593 = vmatpush1.bf16.msra.mxu0 %v11013_v29  ;;  %v13072_v29 = vld [vmem:[%s18122_s13 + $0x948] ss:$16 sps:$4 sm:$0xff]  }
0x1857   :  { %7594 = vmatprep.subr.bf16.mxu0 %v11022_v57  ;;  %v13075_v57 = vld [vmem:[%s18122_s13 + $0x968] ss:$16 sps:$4 sm:$0xff]  }
0x1858   :  { %9304 = vmatpush1.bf16.msra.mxu1 %v13174_v8  ;;  %v13155_v8 = vld [vmem:[%s18122_s13 + $0xb4c] ss:$16 sps:$4 sm:$0xff]  }
0x1859   :  { %9305 = vmatprep.subr.bf16.mxu1 %v13182_v13  ;;  %v13159_v13 = vld [vmem:[%s18122_s13 + $0xb68] ss:$16 sps:$4 sm:$0xff]  }
0x185a   :  { %7595 = vmatpush1.bf16.msra.mxu0 %v11021_v28  ;;  %v13081_v28 = vld [vmem:[%s18122_s13 + $0x9a8] ss:$16 sps:$4 sm:$0xff]  }
0x185b   :  { %7596 = vmatprep.subr.bf16.mxu0 %v11030_v40  ;;  %v13084_v40 = vld [vmem:[%s18122_s13 + $0x9c8] ss:$16 sps:$4 sm:$0xff]  }
0x185c   :  { %9306 = vmatpush1.bf16.msra.mxu1 %v13180_v32  ;;  %v13167_v32 = vld [vmem:[%s18122_s13 + $0xb8c] ss:$16 sps:$4 sm:$0xff]  }
0x185d   :  { %9316 = vmatprep.subr.bf16.mxu1 %v13188_v36  ;;  %v13171_v36 = vld [vmem:[%s18122_s13 + $0xba8] ss:$16 sps:$4 sm:$0xff]  }
0x185e   :  { %7597 = vmatpush1.bf16.msra.mxu0 %v11029_v34  ;;  %v13087_v34 = vld [vmem:[%s18122_s13 + $0x9e8] ss:$16 sps:$4 sm:$0xff]  }
0x185f   :  { %9398 = vmatprep.subr.bf16.mxu0 %v13044_v48  ;;  %v13093_v48 = vld [vmem:[%s18122_s13 + $0xa08] ss:$16 sps:$4 sm:$0xff]  }
0x1861   :  { %7599 = vmatmul.mubr.bf16.vlgmr.msra.gmra.mrb[44].mxu0 %v15142_v44  ;;  %v13050_v44 = vld [vmem:[%s18122_s13 + $0x84c] ss:$16 sps:$4 sm:$0xff]  }
0x1862   :  { %9399 = vmatpush1.bf16.msra.mxu0 %v13042_v2  ;;  %9430 = vmatprep.mubr.bf16.mxu0 %v16860_v41  ;;  %v13048_v41 = vld [vmem:[%s18122_s13 + $0x848] ss:$16 sps:$4 sm:$0xff]  }
0x1863   :  { %9400 = vmatprep.subr.bf16.mxu0 %v13047_v38  ;;  %v13099_v2 = vld [vmem:[%s18122_s13 + $0xa28] ss:$16 sps:$4 sm:$0xff]   ;;  %v13107_v38 = vld [vmem:[%s18122_s13 + $0xa4c] ss:$16 sps:$4 sm:$0xff]  }
0x1866   :  { %9401 = vmatpush1.bf16.msra.mxu0 %v13045_v59  ;;  %v13119_v59 = vld [vmem:[%s18122_s13 + $0xa8c] ss:$16 sps:$4 sm:$0xff]  }
0x1867   :  { %9402 = vmatprep.subr.bf16.mxu0 %v13050_v44  ;;  %v13125_v44 = vld [vmem:[%s18122_s13 + $0xaac] ss:$16 sps:$4 sm:$0xff]  }
0x186a   :  { %9403 = vmatpush1.bf16.msra.mxu0 %v13048_v41  ;;  %v13131_v41 = vld [vmem:[%s18122_s13 + $0xacc] ss:$16 sps:$4 sm:$0xff]  }
0x186b   :  { %9404 = vmatprep.subr.bf16.mxu0 %v13053_v51  ;;  %v10706_v51 = vld [vmem:[%s18128_s18] ss:$0 sm:$0xff] }
0x186e   :  { %9405 = vmatpush1.bf16.msra.mxu0 %v13051_v19 }
0x186f   :  { %9406 = vmatprep.subr.bf16.mxu0 %v13056_v37  ;;  %v13137_v37 = vld [vmem:[%s18122_s13 + $0xaec] ss:$16 sps:$4 sm:$0xff]  }
0x1872   :  { %9407 = vmatpush1.bf16.msra.mxu0 %v13054_v47  ;;  %v13135_v47 = vld [vmem:[%s18122_s13 + $0xae8] ss:$16 sps:$4 sm:$0xff]  }
0x1873   :  { %9408 = vmatprep.subr.bf16.mxu0 %v13059_v20  ;;  %v13143_v20 = vld [vmem:[%s18122_s13 + $0xb0c] ss:$16 sps:$4 sm:$0xff]  }
0x1876   :  { %9409 = vmatpush1.bf16.msra.mxu0 %v13057_v25  ;;  %v13141_v25 = vld [vmem:[%s18122_s13 + $0xb08] ss:$16 sps:$4 sm:$0xff]  }
0x1877   :  { %9410 = vmatprep.subr.bf16.mxu0 %v13062_v35  ;;  %v13149_v35 = vld [vmem:[%s18122_s13 + $0xb2c] ss:$16 sps:$4 sm:$0xff]  }
0x187a   :  { %9411 = vmatpush1.bf16.msra.mxu0 %v13060_v24  ;;  %v13153_v24 = vld [vmem:[%s18122_s13 + $0xb48] ss:$16 sps:$4 sm:$0xff]  }
0x187b   :  { %9412 = vmatprep.subr.bf16.mxu0 %v13065_v23  ;;  %v13161_v23 = vld [vmem:[%s18122_s13 + $0xb6c] ss:$16 sps:$4 sm:$0xff]  }
0x187e   :  { %9413 = vmatpush1.bf16.msra.mxu0 %v13063_v0  ;;  %v13165_v0 = vld [vmem:[%s18122_s13 + $0xb88] ss:$16 sps:$4 sm:$0xff]  }
0x187f   :  { %9414 = vmatprep.subr.bf16.mxu0 %v13068_v30  ;;  %v13173_v30 = vld [vmem:[%s18122_s13 + $0xbac] ss:$16 sps:$4 sm:$0xff]  }
0x1882   :  { %9415 = vmatpush1.bf16.msra.mxu0 %v13066_v1  ;;  %v13179_v1 = vld [vmem:[%s18122_s13 + $0xbcc] ss:$16 sps:$4 sm:$0xff]  }
0x1883   :  { %9416 = vmatprep.subr.bf16.mxu0 %v13071_v39  ;;  %v13177_v39 = vld [vmem:[%s18122_s13 + $0xbc8] ss:$16 sps:$4 sm:$0xff]  }
0x1886   :  { %9417 = vmatpush1.bf16.msra.mxu0 %v13069_v54  ;;  %v13185_v54 = vld [vmem:[%s18122_s13 + $0xbec] ss:$16 sps:$4 sm:$0xff]  }
0x1887   :  { %9418 = vmatprep.subr.bf16.mxu0 %v13074_v31  ;;  %v13183_v31 = vld [vmem:[%s18122_s13 + $0xbe8] ss:$16 sps:$4 sm:$0xff]  }
0x188a   :  { %9419 = vmatpush1.bf16.msra.mxu0 %v13072_v29  ;;  %v13191_v29 = vld [vmem:[%s18122_s13 + $0xc0c] ss:$16 sps:$4 sm:$0xff]  }
0x188b   :  { %9420 = vmatprep.subr.bf16.mxu0 %v13077_v9  ;;  %v7633_v9 = vrot.slane %v16852_v12, %v3790_v45 }
0x188e   :  { %9421 = vmatpush1.bf16.msra.mxu0 %v13075_v57  ;;  %v7621_v57 = vrot.slane %v16852_v12, %v15691_v33 }
0x188f   :  { %9422 = vmatprep.subr.bf16.mxu0 %v13080_v5 }
0x1892   :  { %9423 = vmatpush1.bf16.msra.mxu0 %v13078_v3  ;;  %v7625_v3 = vrot.slane %v16852_v12, %v15530_v6 }
0x1893   :  { %9424 = vmatprep.subr.bf16.mxu0 %v13083_v14 }
0x1896   :  { %9425 = vmatpush1.bf16.msra.mxu0 %v13081_v28 }
0x1897   :  { %9426 = vmatprep.subr.bf16.mxu0 %v13086_v26 }
0x189a   :  { %9427 = vmatpush1.bf16.msra.mxu0 %v13084_v40 }
0x189b   :  { %9428 = vmatprep.subr.bf16.mxu0 %v13089_v60  ;;  %v7655_v60 = vadd.f32 %v7633_v9, %v16888_v50  ;;  %v13197_v50 = vld [vmem:[%s18122_s13 + $0xc2c] ss:$16 sps:$4 sm:$0xff]  }
0x189c   :  { %v13245_v9 = vld [vmem:[%s18122_s13 + $0xd2c] ss:$16 sps:$4 sm:$0xff]  }
0x189e   :  { %9429 = vmatpush1.bf16.msra.mxu0 %v13087_v34 }
0x189f   :  { %9439 = vmatprep.subr.bf16.mxu0 %v13095_v62 }
0x18a1   :  { %9431 = vmatmul.mubr.bf16.vlgmr.msra.gmra.mrb[48].mxu0 %v16862_v56  ;;  %v13113_v56 = vld [vmem:[%s18122_s13 + $0xa6c] ss:$16 sps:$4 sm:$0xff]  }
0x18a2   :  { %9440 = vmatpush1.bf16.msra.mxu0 %v13093_v48 }
0x18a3   :  { %9441 = vmatprep.subr.bf16.mxu0 %v13101_v58 }
0x18a6   :  { %9442 = vmatpush1.bf16.msra.mxu0 %v13099_v2  ;;  %v7663_v2 = vmax.f32 %v7655_v60, 0.0  ;;  %v13257_v60 = vld [vmem:[%s18122_s13 + $0xd6c] ss:$16 sps:$4 sm:$0xff]  }
0x18a7   :  { %9443 = vmatprep.subr.bf16.mxu0 %v13107_v38 }
0x18aa   :  { %9444 = vmatpush1.bf16.msra.mxu0 %v13105_v52  ;;  %v13186_v52 = vld [vmem:[%s18122_s13 + $0xc00] ss:$16 sps:$4 sm:$0xff]  }
0x18ab   :  { %9445 = vmatprep.subr.bf16.mxu0 %v13113_v56  ;;  %v7671_v56 = vpack.c.bf16 %v7663_v2, %v7663_v2  ;;  %v13261_v2 = vld [vmem:[%s18122_s13 + $0xd88] ss:$16 sps:$4 sm:$0xff]  }
0x18ae   :  { %9446 = vmatpush1.bf16.msra.mxu0 %v13111_v53  ;;  %v13192_v53 = vld [vmem:[%s18122_s13 + $0xc20] ss:$16 sps:$4 sm:$0xff]  }
0x18af   :  { %9447 = vmatprep.subr.bf16.mxu0 %v13119_v59  ;;  %v13195_v59 = vld [vmem:[%s18122_s13 + $0xc28] ss:$16 sps:$4 sm:$0xff]  }
0x18b2   :  { %9448 = vmatpush1.bf16.msra.mxu0 %v13117_v16  ;;  %v13200_v16 = vld [vmem:[%s18122_s13 + $0xc44] ss:$16 sps:$4 sm:$0xff]  }
0x18b3   :  { %9449 = vmatprep.subr.bf16.mxu0 %v13125_v44  ;;  %v13203_v44 = vld [vmem:[%s18122_s13 + $0xc4c] ss:$16 sps:$4 sm:$0xff]  }
0x18b4   :  { %v11740_v18 = vpop.f32.mrb[36].mxu0 }
0x18b5   :  { %v11741_v10 = vpop.f32.mrb[37].mxu0 }
0x18b6   :  { %v11742_v19 = vadd.f32 %v11741_v10, %v11740_v18  ;;  %9450 = vmatpush1.bf16.msra.mxu0 %v13123_v11  ;;  %v13198_v11 = vld [vmem:[%s18122_s13 + $0xc40] ss:$16 sps:$4 sm:$0xff]   ;;  %v13206_v18 = vld [vmem:[%s18122_s13 + $0xc64] ss:$16 sps:$4 sm:$0xff]  }
0x18b7   :  { %9451 = vmatprep.subr.bf16.mxu0 %v13131_v41  ;;  %v13201_v41 = vld [vmem:[%s18122_s13 + $0xc48] ss:$16 sps:$4 sm:$0xff]   ;;  %v13204_v10 = vld [vmem:[%s18122_s13 + $0xc60] ss:$16 sps:$4 sm:$0xff]  }
0x18b8   :  { %v6312_v46 = vadd.f32 %v11742_v19, %v10706_v51  ;;  %v13209_v51 = vld [vmem:[%s18122_s13 + $0xc6c] ss:$16 sps:$4 sm:$0xff]   ;;  %v13207_v19 = vld [vmem:[%s18122_s13 + $0xc68] ss:$16 sps:$4 sm:$0xff]  }
0x18ba   :  { %6316 = vst.msk [vmem:[%s18129_s19] sm:$0x3] %vm6315_vm2, %v6312_v46  ;;  %9452 = vmatpush1.bf16.msra.mxu0 %v13129_v17  ;;  %v13212_v17 = vld [vmem:[%s18122_s13 + $0xc84] ss:$16 sps:$4 sm:$0xff]   ;;  %v13210_v46 = vld [vmem:[%s18122_s13 + $0xc80] ss:$16 sps:$4 sm:$0xff]  }
0x18bb   :  { %9453 = vmatprep.subr.bf16.mxu0 %v13137_v37  ;;  %v13215_v37 = vld [vmem:[%s18122_s13 + $0xc8c] ss:$16 sps:$4 sm:$0xff]  }
0x18be   :  { %9454 = vmatpush1.bf16.msra.mxu0 %v13135_v47  ;;  %v13213_v47 = vld [vmem:[%s18122_s13 + $0xc88] ss:$16 sps:$4 sm:$0xff]  }
0x18bf   :  { %9455 = vmatprep.subr.bf16.mxu0 %v13143_v20  ;;  %v13218_v20 = vld [vmem:[%s18122_s13 + $0xca4] ss:$16 sps:$4 sm:$0xff]  }
0x18c2   :  { %9456 = vmatpush1.bf16.msra.mxu0 %v13141_v25  ;;  %v13221_v25 = vld [vmem:[%s18122_s13 + $0xcac] ss:$16 sps:$4 sm:$0xff]  }
0x18c3   :  { %9457 = vmatprep.subr.bf16.mxu0 %v13149_v35  ;;  %v13216_v35 = vld [vmem:[%s18122_s13 + $0xca0] ss:$16 sps:$4 sm:$0xff]  }
0x18c6   :  { %9458 = vmatpush1.bf16.msra.mxu0 %v13147_v43  ;;  %v13219_v43 = vld [vmem:[%s18122_s13 + $0xca8] ss:$16 sps:$4 sm:$0xff]  }
0x18c7   :  { %9459 = vmatprep.subr.bf16.mxu0 %v13155_v8  ;;  %v13224_v8 = vld [vmem:[%s18122_s13 + $0xcc4] ss:$16 sps:$4 sm:$0xff]  }
0x18ca   :  { %9460 = vmatpush1.bf16.msra.mxu0 %v13153_v24  ;;  %v13227_v24 = vld [vmem:[%s18122_s13 + $0xccc] ss:$16 sps:$4 sm:$0xff]  }
0x18cb   :  { %9461 = vmatprep.subr.bf16.mxu0 %v13161_v23  ;;  %v13222_v23 = vld [vmem:[%s18122_s13 + $0xcc0] ss:$16 sps:$4 sm:$0xff]  }
0x18ce   :  { %9462 = vmatpush1.bf16.msra.mxu0 %v13159_v13  ;;  %v13225_v13 = vld [vmem:[%s18122_s13 + $0xcc8] ss:$16 sps:$4 sm:$0xff]  }
0x18cf   :  { %9463 = vmatprep.subr.bf16.mxu0 %v13167_v32  ;;  %v13230_v32 = vld [vmem:[%s18122_s13 + $0xce4] ss:$16 sps:$4 sm:$0xff]  }
0x18d2   :  { %9464 = vmatpush1.bf16.msra.mxu0 %v13165_v0  ;;  %v13233_v0 = vld [vmem:[%s18122_s13 + $0xcec] ss:$16 sps:$4 sm:$0xff]  }
0x18d3   :  { %9465 = vmatprep.subr.bf16.mxu0 %v13173_v30  ;;  %v13228_v30 = vld [vmem:[%s18122_s13 + $0xce0] ss:$16 sps:$4 sm:$0xff]  }
0x18d6   :  { %9466 = vmatpush1.bf16.msra.mxu0 %v13171_v36  ;;  %v13231_v36 = vld [vmem:[%s18122_s13 + $0xce8] ss:$16 sps:$4 sm:$0xff]  }
0x18d7   :  { %9467 = vmatprep.subr.bf16.mxu0 %v13179_v1  ;;  %v13236_v1 = vld [vmem:[%s18122_s13 + $0xd04] ss:$16 sps:$4 sm:$0xff]  }
0x18da   :  { %9468 = vmatpush1.bf16.msra.mxu0 %v13177_v39  ;;  %v13239_v39 = vld [vmem:[%s18122_s13 + $0xd0c] ss:$16 sps:$4 sm:$0xff]  }
0x18db   :  { %9469 = vmatprep.subr.bf16.mxu0 %v13185_v54  ;;  %v13234_v54 = vld [vmem:[%s18122_s13 + $0xd00] ss:$16 sps:$4 sm:$0xff]  }
0x18de   :  { %9470 = vmatpush1.bf16.msra.mxu0 %v13183_v31  ;;  %v13237_v31 = vld [vmem:[%s18122_s13 + $0xd08] ss:$16 sps:$4 sm:$0xff]  }
0x18df   :  { %9480 = vmatprep.subr.bf16.mxu0 %v13191_v29  ;;  %v13242_v29 = vld [vmem:[%s18122_s13 + $0xd24] ss:$16 sps:$4 sm:$0xff]  }
0x18f4   :  { %v7518_v5 = vpop.f32.mrb[40].mxu0 }
0x18f5   :  { %v7519_v14 = vadd.f32 %v7518_v5, %v16692_v7  ;;  %v7520_v28 = vpop.f32.mrb[41].mxu0  ;;  %v13189_v7 = vld [vmem:[%s18122_s13 + $0xc08] ss:$16 sps:$4 sm:$0xff]  }
0x18f6   :  { %v7521_v26 = vadd.f32 %v7520_v28, %v16694_v42  ;;  %v7522_v40 = vpop.f32.mrb[42].mxu0  ;;  %v13194_v42 = vld [vmem:[%s18122_s13 + $0xc24] ss:$16 sps:$4 sm:$0xff]   ;;  %v13243_v5 = vld [vmem:[%s18122_s13 + $0xd28] ss:$16 sps:$4 sm:$0xff]  }
0x18f7   :  { %v7652_v34 = vadd.f32 %v7621_v57, %v7519_v14  ;;  %v7523_v62 = vpop.f32.mrb[43].mxu0  ;;  %v13240_v57 = vld [vmem:[%s18122_s13 + $0xd20] ss:$16 sps:$4 sm:$0xff]   ;;  %v13251_v14 = vld [vmem:[%s18122_s13 + $0xd4c] ss:$16 sps:$4 sm:$0xff]  }
0x18f8   :  { %v7653_v48 = vadd.f32 %v7625_v3, %v7521_v26  ;;  %v13248_v3 = vld [vmem:[%s18122_s13 + $0xd44] ss:$16 sps:$4 sm:$0xff]   ;;  %v13246_v28 = vld [vmem:[%s18122_s13 + $0xd40] ss:$16 sps:$4 sm:$0xff]   ;;  %v13249_v26 = vld [vmem:[%s18122_s13 + $0xd48] ss:$16 sps:$4 sm:$0xff]  }
0x18f9   :  { %v7660_v58 = vmax.f32 %v7652_v34, 0.0  ;;  %v13254_v40 = vld [vmem:[%s18122_s13 + $0xd64] ss:$16 sps:$4 sm:$0xff]   ;;  %v13252_v34 = vld [vmem:[%s18122_s13 + $0xd60] ss:$16 sps:$4 sm:$0xff]  }
0x18fa   :  { %v7661_v45 = vmax.f32 %v7653_v48, 0.0  ;;  %v13255_v62 = vld [vmem:[%s18122_s13 + $0xd68] ss:$16 sps:$4 sm:$0xff]   ;;  %v13260_v48 = vld [vmem:[%s18122_s13 + $0xd84] ss:$16 sps:$4 sm:$0xff]  }
0x18fb   :  { %v7668_v12 = vpack.c.bf16 %v7660_v58, %v7660_v58  ;;  %v13263_v58 = vld [vmem:[%s18122_s13 + $0xd8c] ss:$16 sps:$4 sm:$0xff]  }
0x18fc   :  { %v7669_v38 = vpack.c.bf16 %v7661_v45, %v7661_v45  ;;  %v13258_v45 = vld [vmem:[%s18122_s13 + $0xd80] ss:$16 sps:$4 sm:$0xff]  }
0x18fe   :  { %9307 = vmatprep.mubr.bf16.mxu1 %v7669_v38  ;;  %9471 = vmatprep.mubr.bf16.mxu0 %v7669_v38  ;;  %v13266_v38 = vld [vmem:[%s18122_s13 + $0xda4] ss:$16 sps:$4 sm:$0xff]  }
0x18ff   :  { %9308 = vmatmul.mubr.bf16.vlgmr.msra.gmra.mrb[56].mxu1 %v7668_v12  ;;  %9472 = vmatmul.mubr.bf16.vlgmr.msra.gmra.mrb[48].mxu0 %v7668_v12  ;;  %v13267_v12 = vld [vmem:[%s18122_s13 + $0xda8] ss:$16 sps:$4 sm:$0xff]  }
0x1900   :  { %9317 = vmatpush1.bf16.msra.mxu1 %v13186_v52  ;;  %9481 = vmatpush1.bf16.msra.mxu0 %v13189_v7  ;;  %v13269_v52 = vld [vmem:[%s18122_s13 + $0xdac] ss:$16 sps:$4 sm:$0xff]   ;;  %v13264_v7 = vld [vmem:[%s18122_s13 + $0xda0] ss:$16 sps:$4 sm:$0xff]  }
0x1901   :  { %9348 = vmatprep.mubr.bf16.mxu1 %v7671_v56  ;;  %9512 = vmatprep.mubr.bf16.mxu0 %v7671_v56  ;;  %v13272_v56 = vld [vmem:[%s18122_s13 + $0xdc4] ss:$16 sps:$4 sm:$0xff]  }
0x1902   :  { %9318 = vmatprep.subr.bf16.mxu1 %v13194_v42  ;;  %9482 = vmatprep.subr.bf16.mxu0 %v13197_v50  ;;  %v17562_v42 = vld [vmem:[%s18123_s12 + $0x8] sm:$0xff] }
0x1903   :  { %v7629_v50 = vrot.slane %v17562_v42, %v3786_v22  ;;  %v13270_v22 = vld [vmem:[%s18122_s13 + $0xdc0] ss:$16 sps:$4 sm:$0xff]  }
0x1904   :  { %9319 = vmatpush1.bf16.msra.mxu1 %v13192_v53  ;;  %9483 = vmatpush1.bf16.msra.mxu0 %v13195_v59  ;;  %v13275_v53 = vld [vmem:[%s18122_s13 + $0xdcc] ss:$16 sps:$4 sm:$0xff]  }
0x1905   :  { %9320 = vmatprep.subr.bf16.mxu1 %v13200_v16  ;;  %9484 = vmatprep.subr.bf16.mxu0 %v13203_v44  ;;  %v7641_v16 = vrot.slane %v17562_v42, %v3798_v49  ;;  %v13273_v44 = vld [vmem:[%s18122_s13 + $0xdc8] ss:$16 sps:$4 sm:$0xff]   ;;  %v13278_v49 = vld [vmem:[%s18122_s13 + $0xde4] ss:$16 sps:$4 sm:$0xff]  }
0x1908   :  { %9321 = vmatpush1.bf16.msra.mxu1 %v13198_v11  ;;  %9485 = vmatpush1.bf16.msra.mxu0 %v13201_v41  ;;  %v7654_v11 = vadd.f32 %v7629_v50, %v16885_v4  ;;  %v13279_v4 = vld [vmem:[%s18122_s13 + $0xde8] ss:$16 sps:$4 sm:$0xff]  }
0x1909   :  { %9322 = vmatprep.subr.bf16.mxu1 %v13206_v18  ;;  %9486 = vmatprep.subr.bf16.mxu0 %v13209_v51  ;;  %v13281_v51 = vld [vmem:[%s18122_s13 + $0xdec] ss:$16 sps:$4 sm:$0xff]   ;;  %v13333_v50 = vld [vmem:[%s18122_s13 + $0xf08] ss:$16 sps:$4 sm:$0xff]  }
0x190c   :  { %9323 = vmatpush1.bf16.msra.mxu1 %v13204_v10  ;;  %9487 = vmatpush1.bf16.msra.mxu0 %v13207_v19 }
0x190d   :  { %9324 = vmatprep.subr.bf16.mxu1 %v13212_v17  ;;  %9488 = vmatprep.subr.bf16.mxu0 %v13215_v37 }
0x1910   :  { %9325 = vmatpush1.bf16.msra.mxu1 %v13210_v46  ;;  %9489 = vmatpush1.bf16.msra.mxu0 %v13213_v47  ;;  %v7662_v46 = vmax.f32 %v7654_v11, 0.0  ;;  %v13287_v47 = vld [vmem:[%s18122_s13 + $0xe0c] ss:$16 sps:$4 sm:$0xff]   ;;  %v13342_v11 = vld [vmem:[%s18122_s13 + $0xf40] ss:$16 sps:$4 sm:$0xff]  }
0x1911   :  { %9326 = vmatprep.subr.bf16.mxu1 %v13218_v20  ;;  %9490 = vmatprep.subr.bf16.mxu0 %v13221_v25 }
0x1914   :  { %9327 = vmatpush1.bf16.msra.mxu1 %v13216_v35  ;;  %9491 = vmatpush1.bf16.msra.mxu0 %v13219_v43  ;;  %v13282_v35 = vld [vmem:[%s18122_s13 + $0xe00] ss:$16 sps:$4 sm:$0xff]   ;;  %v7670_v43 = vpack.c.bf16 %v7662_v46, %v7662_v46  ;;  %v13362_v46 = vld [vmem:[%s18122_s13 + $0xfa4] ss:$16 sps:$4 sm:$0xff]  }
0x1915   :  { %9328 = vmatprep.subr.bf16.mxu1 %v13224_v8  ;;  %9492 = vmatprep.subr.bf16.mxu0 %v13227_v24  ;;  %v13285_v8 = vld [vmem:[%s18122_s13 + $0xe08] ss:$16 sps:$4 sm:$0xff]   ;;  %v13290_v24 = vld [vmem:[%s18122_s13 + $0xe24] ss:$16 sps:$4 sm:$0xff]  }
0x1918   :  { %9329 = vmatpush1.bf16.msra.mxu1 %v13222_v23  ;;  %9493 = vmatpush1.bf16.msra.mxu0 %v13225_v13  ;;  %v13293_v23 = vld [vmem:[%s18122_s13 + $0xe2c] ss:$16 sps:$4 sm:$0xff]   ;;  %v13288_v13 = vld [vmem:[%s18122_s13 + $0xe20] ss:$16 sps:$4 sm:$0xff]  }
0x1919   :  { %9330 = vmatprep.subr.bf16.mxu1 %v13230_v32  ;;  %9494 = vmatprep.subr.bf16.mxu0 %v13233_v0  ;;  %v13291_v32 = vld [vmem:[%s18122_s13 + $0xe28] ss:$16 sps:$4 sm:$0xff]   ;;  %v13296_v0 = vld [vmem:[%s18122_s13 + $0xe44] ss:$16 sps:$4 sm:$0xff]  }
0x191c   :  { %9331 = vmatpush1.bf16.msra.mxu1 %v13228_v30  ;;  %9495 = vmatpush1.bf16.msra.mxu0 %v13231_v36  ;;  %v13299_v30 = vld [vmem:[%s18122_s13 + $0xe4c] ss:$16 sps:$4 sm:$0xff]   ;;  %v13294_v36 = vld [vmem:[%s18122_s13 + $0xe40] ss:$16 sps:$4 sm:$0xff]  }
0x191d   :  { %9332 = vmatprep.subr.bf16.mxu1 %v13236_v1  ;;  %9496 = vmatprep.subr.bf16.mxu0 %v13239_v39  ;;  %v13297_v1 = vld [vmem:[%s18122_s13 + $0xe48] ss:$16 sps:$4 sm:$0xff]   ;;  %v13302_v39 = vld [vmem:[%s18122_s13 + $0xe64] ss:$16 sps:$4 sm:$0xff]  }
0x1920   :  { %9333 = vmatpush1.bf16.msra.mxu1 %v13234_v54  ;;  %9497 = vmatpush1.bf16.msra.mxu0 %v13237_v31  ;;  %v13305_v54 = vld [vmem:[%s18122_s13 + $0xe6c] ss:$16 sps:$4 sm:$0xff]   ;;  %v13300_v31 = vld [vmem:[%s18122_s13 + $0xe60] ss:$16 sps:$4 sm:$0xff]  }
0x1921   :  { %9334 = vmatprep.subr.bf16.mxu1 %v13242_v29  ;;  %9498 = vmatprep.subr.bf16.mxu0 %v13245_v9  ;;  %v13303_v29 = vld [vmem:[%s18122_s13 + $0xe68] ss:$16 sps:$4 sm:$0xff]   ;;  %v13308_v9 = vld [vmem:[%s18122_s13 + $0xe84] ss:$16 sps:$4 sm:$0xff]  }
0x1924   :  { %9335 = vmatpush1.bf16.msra.mxu1 %v13240_v57  ;;  %9499 = vmatpush1.bf16.msra.mxu0 %v13243_v5  ;;  %v13311_v57 = vld [vmem:[%s18122_s13 + $0xe8c] ss:$16 sps:$4 sm:$0xff]   ;;  %v13306_v5 = vld [vmem:[%s18122_s13 + $0xe80] ss:$16 sps:$4 sm:$0xff]  }
0x1925   :  { %9336 = vmatprep.subr.bf16.mxu1 %v13248_v3  ;;  %9500 = vmatprep.subr.bf16.mxu0 %v13251_v14  ;;  %v13309_v3 = vld [vmem:[%s18122_s13 + $0xe88] ss:$16 sps:$4 sm:$0xff]   ;;  %v13314_v14 = vld [vmem:[%s18122_s13 + $0xea4] ss:$16 sps:$4 sm:$0xff]  }
0x1928   :  { %9337 = vmatpush1.bf16.msra.mxu1 %v13246_v28  ;;  %9501 = vmatpush1.bf16.msra.mxu0 %v13249_v26  ;;  %v13317_v28 = vld [vmem:[%s18122_s13 + $0xeac] ss:$16 sps:$4 sm:$0xff]   ;;  %v13312_v26 = vld [vmem:[%s18122_s13 + $0xea0] ss:$16 sps:$4 sm:$0xff]  }
0x1929   :  { %9338 = vmatprep.subr.bf16.mxu1 %v13254_v40  ;;  %9502 = vmatprep.subr.bf16.mxu0 %v13257_v60  ;;  %v13315_v40 = vld [vmem:[%s18122_s13 + $0xea8] ss:$16 sps:$4 sm:$0xff]   ;;  %v13320_v60 = vld [vmem:[%s18122_s13 + $0xec4] ss:$16 sps:$4 sm:$0xff]  }
0x192c   :  { %9339 = vmatpush1.bf16.msra.mxu1 %v13252_v34  ;;  %9503 = vmatpush1.bf16.msra.mxu0 %v13255_v62  ;;  %v13323_v34 = vld [vmem:[%s18122_s13 + $0xecc] ss:$16 sps:$4 sm:$0xff]   ;;  %v13318_v62 = vld [vmem:[%s18122_s13 + $0xec0] ss:$16 sps:$4 sm:$0xff]  }
0x192d   :  { %9340 = vmatprep.subr.bf16.mxu1 %v13260_v48  ;;  %9504 = vmatprep.subr.bf16.mxu0 %v13263_v58  ;;  %v13321_v48 = vld [vmem:[%s18122_s13 + $0xec8] ss:$16 sps:$4 sm:$0xff]   ;;  %v13326_v58 = vld [vmem:[%s18122_s13 + $0xee4] ss:$16 sps:$4 sm:$0xff]  }
0x1930   :  { %9341 = vmatpush1.bf16.msra.mxu1 %v13258_v45  ;;  %9505 = vmatpush1.bf16.msra.mxu0 %v13261_v2  ;;  %v13329_v45 = vld [vmem:[%s18122_s13 + $0xeec] ss:$16 sps:$4 sm:$0xff]   ;;  %v13324_v2 = vld [vmem:[%s18122_s13 + $0xee0] ss:$16 sps:$4 sm:$0xff]  }
0x1931   :  { %9342 = vmatprep.subr.bf16.mxu1 %v13266_v38  ;;  %9506 = vmatprep.subr.bf16.mxu0 %v13269_v52  ;;  %v13327_v38 = vld [vmem:[%s18122_s13 + $0xee8] ss:$16 sps:$4 sm:$0xff]   ;;  %v13332_v52 = vld [vmem:[%s18122_s13 + $0xf04] ss:$16 sps:$4 sm:$0xff]  }
0x1934   :  { %9343 = vmatpush1.bf16.msra.mxu1 %v13264_v7  ;;  %9507 = vmatpush1.bf16.msra.mxu0 %v13267_v12  ;;  %v7600_v59 = vpop.f32.mrb[44].mxu0  ;;  %v13335_v7 = vld [vmem:[%s18122_s13 + $0xf0c] ss:$16 sps:$4 sm:$0xff]   ;;  %v13330_v12 = vld [vmem:[%s18122_s13 + $0xf00] ss:$16 sps:$4 sm:$0xff]  }
0x1935   :  { %v17584_v41 = vadd.f32 %v7600_v59, %v16757_v55  ;;  %v7602_v18 = vpop.f32.mrb[45].mxu0  ;;  %9344 = vmatprep.subr.bf16.mxu1 %v13272_v56  ;;  %9508 = vmatprep.subr.bf16.mxu0 %v13275_v53  ;;  %v13276_v55 = vld [vmem:[%s18122_s13 + $0xde0] ss:$16 sps:$4 sm:$0xff]   ;;  %v13338_v56 = vld [vmem:[%s18122_s13 + $0xf24] ss:$16 sps:$4 sm:$0xff]  }
0x1936   :  { %v7603_v10 = vadd.f32 %v7602_v18, %v16759_v27  ;;  %v7604_v19 = vpop.f32.mrb[46].mxu0  ;;  %v13284_v27 = vld [vmem:[%s18122_s13 + $0xe04] ss:$16 sps:$4 sm:$0xff]   ;;  %v13341_v53 = vld [vmem:[%s18122_s13 + $0xf2c] ss:$16 sps:$4 sm:$0xff]  }
0x1937   :  { %v7605_v17 = vpop.f32.mrb[47].mxu0  ;;  %v13336_v59 = vld [vmem:[%s18122_s13 + $0xf20] ss:$16 sps:$4 sm:$0xff]   ;;  %v13345_v18 = vld [vmem:[%s18122_s13 + $0xf48] ss:$16 sps:$4 sm:$0xff]  }
0x1938   :  { %v7657_v37 = vadd.f32 %v7641_v16, %v7603_v10  ;;  %9345 = vmatpush1.bf16.msra.mxu1 %v13270_v22  ;;  %9509 = vmatpush1.bf16.msra.mxu0 %v13273_v44  ;;  %v13339_v16 = vld [vmem:[%s18122_s13 + $0xf28] ss:$16 sps:$4 sm:$0xff]   ;;  %v13344_v22 = vld [vmem:[%s18122_s13 + $0xf44] ss:$16 sps:$4 sm:$0xff]   ;;  %v13347_v44 = vld [vmem:[%s18122_s13 + $0xf4c] ss:$16 sps:$4 sm:$0xff]  }
0x1939   :  { %9346 = vmatprep.subr.bf16.mxu1 %v13278_v49  ;;  %9510 = vmatprep.subr.bf16.mxu0 %v13281_v51  ;;  %v13350_v49 = vld [vmem:[%s18122_s13 + $0xf64] ss:$16 sps:$4 sm:$0xff]   ;;  %v13353_v51 = vld [vmem:[%s18122_s13 + $0xf6c] ss:$16 sps:$4 sm:$0xff]   ;;  %v13348_v10 = vld [vmem:[%s18122_s13 + $0xf60] ss:$16 sps:$4 sm:$0xff]  }
0x193a   :  { %v7665_v20 = vmax.f32 %v7657_v37, 0.0  ;;  %v13351_v19 = vld [vmem:[%s18122_s13 + $0xf68] ss:$16 sps:$4 sm:$0xff]   ;;  %v13356_v17 = vld [vmem:[%s18122_s13 + $0xf84] ss:$16 sps:$4 sm:$0xff]  }
0x193b   :  { %v13359_v37 = vld [vmem:[%s18122_s13 + $0xf8c] ss:$16 sps:$4 sm:$0xff]  }
0x193c   :  { %v7673_v25 = vpack.c.bf16 %v7665_v20, %v7665_v20  ;;  %9347 = vmatpush1.bf16.msra.mxu1 %v13276_v55  ;;  %9511 = vmatpush1.bf16.msra.mxu0 %v13279_v4  ;;  %v13354_v55 = vld [vmem:[%s18122_s13 + $0xf80] ss:$16 sps:$4 sm:$0xff]   ;;  %v13357_v4 = vld [vmem:[%s18122_s13 + $0xf88] ss:$16 sps:$4 sm:$0xff]   ;;  %v7637_v20 = vrot.slane %v17562_v42, %v3794_v15 }
0x193d   :  { %9357 = vmatprep.subr.bf16.mxu1 %v13284_v27  ;;  %9521 = vmatprep.subr.bf16.mxu0 %v13287_v47  ;;  %v13365_v27 = vld [vmem:[%s18122_s13 + $0xfac] ss:$16 sps:$4 sm:$0xff]   ;;  %v13360_v47 = vld [vmem:[%s18122_s13 + $0xfa0] ss:$16 sps:$4 sm:$0xff]   ;;  %v13369_v42 = vld [vmem:[%s18122_s13 + $0xfc8] ss:$16 sps:$4 sm:$0xff]  }
0x193e   :  { %v7656_v15 = vadd.f32 %v7637_v20, %v17584_v41  ;;  %v13372_v41 = vld [vmem:[%s18122_s13 + $0xfe0] ss:$16 sps:$4 sm:$0xff]  }
0x193f   :  { %9349 = vmatmul.mubr.bf16.vlgmr.msra.gmra.mrb[56].mxu1 %v7670_v43  ;;  %9513 = vmatmul.mubr.bf16.vlgmr.msra.gmra.mrb[48].mxu0 %v7670_v43  ;;  %v13371_v43 = vld [vmem:[%s18122_s13 + $0xfcc] ss:$16 sps:$4 sm:$0xff]  }
0x1940   :  { %9358 = vmatpush1.bf16.msra.mxu1 %v13282_v35  ;;  %9389 = vmatprep.mubr.bf16.mxu1 %v7673_v25  ;;  %v13368_v35 = vld [vmem:[%s18122_s13 + $0xfc4] ss:$16 sps:$4 sm:$0xff]  }
0x1941   :  { %9522 = vmatpush1.bf16.msra.mxu0 %v13285_v8  ;;  %9553 = vmatprep.mubr.bf16.mxu0 %v7673_v25  ;;  %v13363_v25 = vld [vmem:[%s18122_s13 + $0xfa8] ss:$16 sps:$4 sm:$0xff]   ;;  %v13374_v8 = vld [vmem:[%s18122_s13 + $0xfe4] ss:$16 sps:$4 sm:$0xff]  }
0x1942   :  { %9359 = vmatprep.subr.bf16.mxu1 %v13290_v24  ;;  %9523 = vmatprep.subr.bf16.mxu0 %v13293_v23  ;;  %v13377_v24 = vld [vmem:[%s18122_s13 + $0xfec] ss:$16 sps:$4 sm:$0xff]   ;;  %v7664_v23 = vmax.f32 %v7656_v15, 0.0 }
0x1944   :  { %9360 = vmatpush1.bf16.msra.mxu1 %v13288_v13  ;;  %v13375_v13 = vld [vmem:[%s18122_s13 + $0xfe8] ss:$16 sps:$4 sm:$0xff]  }
0x1945   :  { %9524 = vmatpush1.bf16.msra.mxu0 %v13291_v32  ;;  %9361 = vmatprep.subr.bf16.mxu1 %v13296_v0  ;;  %v13380_v32 = vld [vmem:[%s18124_s15 + $0x204] ss:$8 sps:$4 sm:$0xff]   ;;  %v13378_v0 = vld [vmem:[%s18124_s15 + $0x200] ss:$8 sps:$4 sm:$0xff]  }
0x1946   :  { %9525 = vmatprep.subr.bf16.mxu0 %v13299_v30  ;;  %v7672_v30 = vpack.c.bf16 %v7664_v23, %v7664_v23  ;;  %v11699_v23 = vld [vmem:[%s18126_s17 + $0x1c8] sm:$0xff] }
0x1948   :  { %9362 = vmatpush1.bf16.msra.mxu1 %v13294_v36  ;;  %v13383_v36 = vld [vmem:[%s18124_s15 + $0x214] ss:$8 sps:$4 sm:$0xff]  }
0x1949   :  { %9526 = vmatpush1.bf16.msra.mxu0 %v13297_v1  ;;  %9363 = vmatprep.subr.bf16.mxu1 %v13302_v39  ;;  %v13381_v1 = vld [vmem:[%s18124_s15 + $0x210] ss:$8 sps:$4 sm:$0xff]   ;;  %v13386_v39 = vld [vmem:[%s18124_s15 + $0x224] ss:$8 sps:$4 sm:$0xff]  }
0x194a   :  { %9527 = vmatprep.subr.bf16.mxu0 %v13305_v54  ;;  %v13384_v54 = vld [vmem:[%s18124_s15 + $0x220] ss:$8 sps:$4 sm:$0xff]  }
0x194c   :  { %9364 = vmatpush1.bf16.msra.mxu1 %v13300_v31  ;;  %v13389_v31 = vld [vmem:[%s18124_s15 + $0x234] ss:$8 sps:$4 sm:$0xff]  }
0x194d   :  { %9528 = vmatpush1.bf16.msra.mxu0 %v13303_v29  ;;  %9365 = vmatprep.subr.bf16.mxu1 %v13308_v9  ;;  %v13387_v29 = vld [vmem:[%s18124_s15 + $0x230] ss:$8 sps:$4 sm:$0xff]   ;;  %v13392_v9 = vld [vmem:[%s18124_s15 + $0x244] ss:$8 sps:$4 sm:$0xff]  }
0x194e   :  { %9529 = vmatprep.subr.bf16.mxu0 %v13311_v57  ;;  %v13390_v57 = vld [vmem:[%s18124_s15 + $0x240] ss:$8 sps:$4 sm:$0xff]  }
0x1950   :  { %9366 = vmatpush1.bf16.msra.mxu1 %v13306_v5  ;;  %v13395_v5 = vld [vmem:[%s18124_s15 + $0x254] ss:$8 sps:$4 sm:$0xff]  }
0x1951   :  { %9530 = vmatpush1.bf16.msra.mxu0 %v13309_v3  ;;  %9367 = vmatprep.subr.bf16.mxu1 %v13314_v14  ;;  %v13393_v3 = vld [vmem:[%s18124_s15 + $0x250] ss:$8 sps:$4 sm:$0xff]   ;;  %v13398_v14 = vld [vmem:[%s18124_s15 + $0x264] ss:$8 sps:$4 sm:$0xff]  }
0x1952   :  { %9531 = vmatprep.subr.bf16.mxu0 %v13317_v28  ;;  %v13396_v28 = vld [vmem:[%s18124_s15 + $0x260] ss:$8 sps:$4 sm:$0xff]  }
0x1954   :  { %9368 = vmatpush1.bf16.msra.mxu1 %v13312_v26  ;;  %v13401_v26 = vld [vmem:[%s18124_s15 + $0x274] ss:$8 sps:$4 sm:$0xff]  }
0x1955   :  { %9532 = vmatpush1.bf16.msra.mxu0 %v13315_v40  ;;  %9369 = vmatprep.subr.bf16.mxu1 %v13320_v60  ;;  %v13399_v40 = vld [vmem:[%s18124_s15 + $0x270] ss:$8 sps:$4 sm:$0xff]   ;;  %v13404_v60 = vld [vmem:[%s18124_s15 + $0x284] ss:$8 sps:$4 sm:$0xff]  }
0x1956   :  { %9533 = vmatprep.subr.bf16.mxu0 %v13323_v34  ;;  %v13402_v34 = vld [vmem:[%s18124_s15 + $0x280] ss:$8 sps:$4 sm:$0xff]  }
0x1958   :  { %9370 = vmatpush1.bf16.msra.mxu1 %v13318_v62  ;;  %v13407_v62 = vld [vmem:[%s18124_s15 + $0x294] ss:$8 sps:$4 sm:$0xff]  }
0x1959   :  { %9534 = vmatpush1.bf16.msra.mxu0 %v13321_v48  ;;  %9371 = vmatprep.subr.bf16.mxu1 %v13326_v58  ;;  %v13405_v48 = vld [vmem:[%s18124_s15 + $0x290] ss:$8 sps:$4 sm:$0xff]   ;;  %v13410_v58 = vld [vmem:[%s18124_s15 + $0x2a4] ss:$8 sps:$4 sm:$0xff]  }
0x195a   :  { %9535 = vmatprep.subr.bf16.mxu0 %v13329_v45  ;;  %v13408_v45 = vld [vmem:[%s18124_s15 + $0x2a0] ss:$8 sps:$4 sm:$0xff]  }
0x195c   :  { %9372 = vmatpush1.bf16.msra.mxu1 %v13324_v2  ;;  %v13413_v2 = vld [vmem:[%s18124_s15 + $0x2b4] ss:$8 sps:$4 sm:$0xff]  }
0x195d   :  { %9536 = vmatpush1.bf16.msra.mxu0 %v13327_v38  ;;  %9373 = vmatprep.subr.bf16.mxu1 %v13332_v52  ;;  %v13411_v38 = vld [vmem:[%s18124_s15 + $0x2b0] ss:$8 sps:$4 sm:$0xff]   ;;  %v13416_v52 = vld [vmem:[%s18124_s15 + $0x2c4] ss:$8 sps:$4 sm:$0xff]  }
0x195e   :  { %9537 = vmatprep.subr.bf16.mxu0 %v13335_v7  ;;  %v13414_v7 = vld [vmem:[%s18124_s15 + $0x2c0] ss:$8 sps:$4 sm:$0xff]  }
0x1960   :  { %9374 = vmatpush1.bf16.msra.mxu1 %v13330_v12  ;;  %v13419_v12 = vld [vmem:[%s18124_s15 + $0x2d4] ss:$8 sps:$4 sm:$0xff]  }
0x1961   :  { %9538 = vmatpush1.bf16.msra.mxu0 %v13333_v50  ;;  %9375 = vmatprep.subr.bf16.mxu1 %v13338_v56  ;;  %v13417_v50 = vld [vmem:[%s18124_s15 + $0x2d0] ss:$8 sps:$4 sm:$0xff]   ;;  %v13422_v56 = vld [vmem:[%s18124_s15 + $0x2e4] ss:$8 sps:$4 sm:$0xff]  }
0x1962   :  { %9539 = vmatprep.subr.bf16.mxu0 %v13341_v53  ;;  %v13420_v53 = vld [vmem:[%s18124_s15 + $0x2e0] ss:$8 sps:$4 sm:$0xff]  }
0x1964   :  { %9376 = vmatpush1.bf16.msra.mxu1 %v13336_v59  ;;  %v13425_v59 = vld [vmem:[%s18124_s15 + $0x2f4] ss:$8 sps:$4 sm:$0xff]  }
0x1965   :  { %9540 = vmatpush1.bf16.msra.mxu0 %v13339_v16  ;;  %9377 = vmatprep.subr.bf16.mxu1 %v13344_v22  ;;  %v13423_v16 = vld [vmem:[%s18124_s15 + $0x2f0] ss:$8 sps:$4 sm:$0xff]   ;;  %v13428_v22 = vld [vmem:[%s18124_s15 + $0x304] ss:$8 sps:$4 sm:$0xff]  }
0x1966   :  { %9541 = vmatprep.subr.bf16.mxu0 %v13347_v44  ;;  %v11690_v44 = vld [vmem:[%s18126_s17 + $0x180] sm:$0xff] }
0x1968   :  { %9378 = vmatpush1.bf16.msra.mxu1 %v13342_v11  ;;  %v11691_v11 = vld [vmem:[%s18126_s17 + $0x188] sm:$0xff] }
0x1969   :  { %9542 = vmatpush1.bf16.msra.mxu0 %v13345_v18  ;;  %9379 = vmatprep.subr.bf16.mxu1 %v13350_v49  ;;  %v11674_v18 = vld [vmem:[%s18126_s17 + $0x100] sm:$0xff]  ;;  %v12386_v49 = vpack.c.bf16 %v11691_v11, %v11690_v44  ;;  %v13429_v11 = vld [vmem:[%s18124_s15 + $0x310] ss:$8 sps:$4 sm:$0xff]  }
0x196a   :  { %9543 = vmatprep.subr.bf16.mxu0 %v13353_v51  ;;  %v11675_v51 = vld [vmem:[%s18126_s17 + $0x108] sm:$0xff] }
0x196c   :  { %9380 = vmatpush1.bf16.msra.mxu1 %v13348_v10  ;;  %v11692_v10 = vld [vmem:[%s18126_s17 + $0x190] sm:$0xff] }
0x196d   :  { %9544 = vmatpush1.bf16.msra.mxu0 %v13351_v19  ;;  %9381 = vmatprep.subr.bf16.mxu1 %v13356_v17  ;;  %v11693_v19 = vld [vmem:[%s18126_s17 + $0x198] sm:$0xff]  ;;  %v12388_v17 = vpack.c.bf16 %v11675_v51, %v11674_v18  ;;  %v13434_v18 = vld [vmem:[%s18124_s15 + $0x324] ss:$8 sps:$4 sm:$0xff]  }
0x196e   :  { %9545 = vmatprep.subr.bf16.mxu0 %v13359_v37  ;;  %v12390_v37 = vpack.c.bf16 %v11693_v19, %v11692_v10  ;;  %v13437_v51 = vld [vmem:[%s18124_s15 + $0x334] ss:$8 sps:$4 sm:$0xff]   ;;  %v13435_v10 = vld [vmem:[%s18124_s15 + $0x330] ss:$8 sps:$4 sm:$0xff]   ;;  %v13440_v19 = vld [vmem:[%s18124_s15 + $0x344] ss:$8 sps:$4 sm:$0xff]  }
0x1970   :  { %9382 = vmatpush1.bf16.msra.mxu1 %v13354_v55  ;;  %v11676_v55 = vld [vmem:[%s18126_s17 + $0x110] sm:$0xff] }
0x1971   :  { %9546 = vmatpush1.bf16.msra.mxu0 %v13357_v4  ;;  %9383 = vmatprep.subr.bf16.mxu1 %v13362_v46  ;;  %v11677_v4 = vld [vmem:[%s18126_s17 + $0x118] sm:$0xff]  ;;  %v11694_v46 = vld [vmem:[%s18126_s17 + $0x1a0] sm:$0xff] }
0x1972   :  { %9547 = vmatprep.subr.bf16.mxu0 %v13365_v27  ;;  %v11695_v27 = vld [vmem:[%s18126_s17 + $0x1a8] sm:$0xff] }
0x1973   :  { %v12394_v20 = vpack.c.bf16 %v11695_v27, %v11694_v46  ;;  %v13444_v46 = vld [vmem:[%s18124_s15 + $0x360] ss:$8 sps:$4 sm:$0xff]   ;;  %v13449_v27 = vld [vmem:[%s18124_s15 + $0x374] ss:$8 sps:$4 sm:$0xff]  }
0x1974   :  { %9384 = vmatpush1.bf16.msra.mxu1 %v13360_v47  ;;  %v12392_v47 = vpack.c.bf16 %v11677_v4, %v11676_v55  ;;  %v13441_v55 = vld [vmem:[%s18124_s15 + $0x350] ss:$8 sps:$4 sm:$0xff]   ;;  %v13446_v4 = vld [vmem:[%s18124_s15 + $0x364] ss:$8 sps:$4 sm:$0xff]  }
0x1975   :  { %9548 = vmatpush1.bf16.msra.mxu0 %v13363_v25  ;;  %9385 = vmatprep.subr.bf16.mxu1 %v13368_v35  ;;  %v11678_v25 = vld [vmem:[%s18126_s17 + $0x120] sm:$0xff]  ;;  %v11679_v35 = vld [vmem:[%s18126_s17 + $0x128] sm:$0xff] }
0x1976   :  { %9549 = vmatprep.subr.bf16.mxu0 %v13371_v43  ;;  %v11696_v43 = vld [vmem:[%s18126_s17 + $0x1b0] sm:$0xff]  ;;  %v12396_v15 = vpack.c.bf16 %v11679_v35, %v11678_v25  ;;  %v13450_v25 = vld [vmem:[%s18124_s15 + $0x380] ss:$8 sps:$4 sm:$0xff]  }
0x1977   :  { %v13455_v35 = vld [vmem:[%s18124_s15 + $0x394] ss:$8 sps:$4 sm:$0xff]  }
0x1978   :  { %9386 = vmatpush1.bf16.msra.mxu1 %v13366_v63  ;;  %v11697_v63 = vld [vmem:[%s18126_s17 + $0x1b8] sm:$0xff] }
0x1979   :  { %9550 = vmatpush1.bf16.msra.mxu0 %v13369_v42  ;;  %9387 = vmatprep.subr.bf16.mxu1 %v13374_v8  ;;  %v12398_v42 = vpack.c.bf16 %v11697_v63, %v11696_v43  ;;  %v11680_v8 = vld [vmem:[%s18126_s17 + $0x130] sm:$0xff]  ;;  %v13458_v63 = vld [vmem:[%s18124_s15 + $0x3a4] ss:$8 sps:$4 sm:$0xff]  }
0x197a   :  { %9551 = vmatprep.subr.bf16.mxu0 %v13377_v24  ;;  %v11681_v24 = vld [vmem:[%s18126_s17 + $0x138] sm:$0xff] }
0x197b   :  { %v13453_v43 = vld [vmem:[%s18124_s15 + $0x390] ss:$8 sps:$4 sm:$0xff]  }
0x197c   :  { %9388 = vmatpush1.bf16.msra.mxu1 %v13372_v41  ;;  %v11698_v41 = vld [vmem:[%s18126_s17 + $0x1c0] sm:$0xff] }
0x197d   :  { %9552 = vmatpush1.bf16.msra.mxu0 %v13375_v13  ;;  %9968 = vmatprep.subr.bf16.mxu1 %v13380_v32  ;;  %v12400_v13 = vpack.c.bf16 %v11681_v24, %v11680_v8  ;;  %v12402_v32 = vpack.c.bf16 %v11699_v23, %v11698_v41  ;;  %v13459_v8 = vld [vmem:[%s18124_s15 + $0x3b0] ss:$8 sps:$4 sm:$0xff]   ;;  %v13464_v24 = vld [vmem:[%s18124_s15 + $0x3c4] ss:$8 sps:$4 sm:$0xff]   ;;  %v13462_v41 = vld [vmem:[%s18124_s15 + $0x3c0] ss:$8 sps:$4 sm:$0xff]  }
0x197e   :  { %12387 = vmatprep.subr.bf16.mxu0 %v12386_v49  ;;  %v13432_v49 = vld [vmem:[%s18124_s15 + $0x320] ss:$8 sps:$4 sm:$0xff]   ;;  %v13467_v23 = vld [vmem:[%s18124_s15 + $0x3d4] ss:$8 sps:$4 sm:$0xff]  }
0x197f   :  { %9390 = vmatmul.mubr.bf16.vlgmr.msra.gmra.mrb[56].mxu1 %v7672_v30 }
0x1980   :  { %9554 = vmatmul.mubr.bf16.vlgmr.msra.gmra.mrb[48].mxu0 %v7672_v30  ;;  %9969 = vmatpush1.bf16.msra.mxu1 %v13378_v0  ;;  %v11682_v0 = vld [vmem:[%s18126_s17 + $0x140] sm:$0xff]  ;;  %v11683_v30 = vld [vmem:[%s18126_s17 + $0x148] sm:$0xff] }
0x1981   :  { %9970 = vmatprep.subr.bf16.mxu1 %v13383_v36  ;;  %12389 = vmatpush3.bf16.msra.mxu0 %v12388_v17  ;;  %v11700_v36 = vld [vmem:[%s18126_s17 + $0x1d0] sm:$0xff]  ;;  %v13438_v17 = vld [vmem:[%s18124_s15 + $0x340] ss:$8 sps:$4 sm:$0xff]  }
0x1982   :  { %12391 = vmatprep.subr.bf16.mxu0 %v12390_v37  ;;  %v13443_v37 = vld [vmem:[%s18124_s15 + $0x354] ss:$8 sps:$4 sm:$0xff]  }
0x1984   :  { %9971 = vmatpush1.bf16.msra.mxu1 %v13381_v1  ;;  %v11701_v1 = vld [vmem:[%s18126_s17 + $0x1d8] sm:$0xff] }
0x1985   :  { %9972 = vmatprep.subr.bf16.mxu1 %v13386_v39  ;;  %12393 = vmatpush3.bf16.msra.mxu0 %v12392_v47  ;;  %v12404_v39 = vpack.c.bf16 %v11683_v30, %v11682_v0  ;;  %v13447_v47 = vld [vmem:[%s18124_s15 + $0x370] ss:$8 sps:$4 sm:$0xff]   ;;  %v13470_v0 = vld [vmem:[%s18124_s15 + $0x3e4] ss:$8 sps:$4 sm:$0xff]   ;;  %v13468_v30 = vld [vmem:[%s18124_s15 + $0x3e0] ss:$8 sps:$4 sm:$0xff]  }
0x1986   :  { %12395 = vmatprep.subr.bf16.mxu0 %v12394_v20  ;;  %v13452_v20 = vld [vmem:[%s18124_s15 + $0x384] ss:$8 sps:$4 sm:$0xff]  }
0x1988   :  { %9973 = vmatpush1.bf16.msra.mxu1 %v13384_v54  ;;  %v12406_v54 = vpack.c.bf16 %v11701_v1, %v11700_v36  ;;  %v13473_v1 = vld [vmem:[%s18124_s15 + $0x3f4] ss:$8 sps:$4 sm:$0xff]  }
0x1989   :  { %9974 = vmatprep.subr.bf16.mxu1 %v13389_v31  ;;  %12397 = vmatpush3.bf16.msra.mxu0 %v12396_v15  ;;  %v11684_v31 = vld [vmem:[%s18126_s17 + $0x150] sm:$0xff]  ;;  %v13456_v15 = vld [vmem:[%s18124_s15 + $0x3a0] ss:$8 sps:$4 sm:$0xff]  }
0x198a   :  { %12399 = vmatprep.subr.bf16.mxu0 %v12398_v42  ;;  %v13461_v42 = vld [vmem:[%s18124_s15 + $0x3b4] ss:$8 sps:$4 sm:$0xff]  }
0x198c   :  { %9975 = vmatpush1.bf16.msra.mxu1 %v13387_v29  ;;  %v11685_v29 = vld [vmem:[%s18126_s17 + $0x158] sm:$0xff] }
0x198d   :  { %9976 = vmatprep.subr.bf16.mxu1 %v13392_v9  ;;  %12401 = vmatpush3.bf16.msra.mxu0 %v12400_v13  ;;  %v11702_v9 = vld [vmem:[%s18126_s17 + $0x1e0] sm:$0xff]  ;;  %v13465_v13 = vld [vmem:[%s18124_s15 + $0x3d0] ss:$8 sps:$4 sm:$0xff]  }
0x198e   :  { %12403 = vmatprep.subr.bf16.mxu0 %v12402_v32 }
0x1990   :  { %9977 = vmatpush1.bf16.msra.mxu1 %v13390_v57  ;;  %v11703_v57 = vld [vmem:[%s18126_s17 + $0x1e8] sm:$0xff] }
0x1991   :  { %9978 = vmatprep.subr.bf16.mxu1 %v13395_v5  ;;  %12405 = vmatpush3.bf16.msra.mxu0 %v12404_v39  ;;  %v12408_v5 = vpack.c.bf16 %v11685_v29, %v11684_v31  ;;  %v11686_v31 = vld [vmem:[%s18126_s17 + $0x160] sm:$0xff]  ;;  %v11687_v29 = vld [vmem:[%s18126_s17 + $0x168] sm:$0xff] }
0x1992   :  { %12407 = vmatprep.subr.bf16.mxu0 %v12406_v54 }
0x1994   :  { %9979 = vmatpush1.bf16.msra.mxu1 %v13393_v3  ;;  %v12410_v3 = vpack.c.bf16 %v11703_v57, %v11702_v9  ;;  %v12412_v9 = vpack.c.bf16 %v11687_v29, %v11686_v31  ;;  %v11704_v57 = vld [vmem:[%s18126_s17 + $0x1f0] sm:$0xff] }
0x1995   :  { %9980 = vmatprep.subr.bf16.mxu1 %v13398_v14  ;;  %12409 = vmatpush3.bf16.msra.mxu0 %v12408_v5  ;;  %v17975_v14 = vld [vmem:[%s18125_s14 + $0x4] sm:$0xf]  ;;  %v11705_v5 = vld [vmem:[%s18126_s17 + $0x1f8] sm:$0xff] }
0x1996   :  { %12411 = vmatprep.subr.bf16.mxu0 %v12410_v3  ;;  %v7945_v32 = vrot.slane %v17975_v14, %v15691_v33  ;;  %v13471_v33 = vld [vmem:[%s18124_s15 + $0x3f0] ss:$8 sps:$4 sm:$0xff]   ;;  %v12414_v3 = vpack.c.bf16 %v11705_v5, %v11704_v57 }
0x1998   :  { %9981 = vmatpush1.bf16.msra.mxu1 %v13396_v28  ;;  %v7937_v28 = vrot.slane %v17975_v14, %v14132_v61 }
0x1999   :  { %9982 = vmatprep.subr.bf16.mxu1 %v13401_v26  ;;  %v7941_v26 = vrot.slane %v17975_v14, %v18171_v21  ;;  %12413 = vmatpush3.bf16.msra.mxu0 %v12412_v9 }
0x199a   :  { %12415 = vmatprep.subr.bf16.mxu0 %v12414_v3 }
0x199c   :  { %9983 = vmatpush1.bf16.msra.mxu1 %v13399_v40  ;;  %v7949_v40 = vrot.slane %v17975_v14, %v15530_v6  ;;  %v13426_v6 = vld [vmem:[%s18124_s15 + $0x300] ss:$8 sps:$4 sm:$0xff]   ;;  %v11688_v14 = vld [vmem:[%s18126_s17 + $0x170] sm:$0xff] }
0x199d   :  { %9984 = vmatprep.subr.bf16.mxu1 %v13404_v60 }
0x19a0   :  { %9985 = vmatpush1.bf16.msra.mxu1 %v13402_v34 }
0x19a1   :  { %9986 = vmatprep.subr.bf16.mxu1 %v13407_v62 }
0x19a4   :  { %9987 = vmatpush1.bf16.msra.mxu1 %v13405_v48 }
0x19a5   :  { %9988 = vmatprep.subr.bf16.mxu1 %v13410_v58 }
0x19a8   :  { %9989 = vmatpush1.bf16.msra.mxu1 %v13408_v45 }
0x19a9   :  { %9990 = vmatprep.subr.bf16.mxu1 %v13413_v2 }
0x19ac   :  { %9991 = vmatpush1.bf16.msra.mxu1 %v13411_v38 }
0x19ad   :  { %9992 = vmatprep.subr.bf16.mxu1 %v13416_v52 }
0x19b0   :  { %9993 = vmatpush1.bf16.msra.mxu1 %v13414_v7 }
0x19b1   :  { %9994 = vmatprep.subr.bf16.mxu1 %v13419_v12 }
0x19b4   :  { %9995 = vmatpush1.bf16.msra.mxu1 %v13417_v50 }
0x19b5   :  { %9996 = vmatprep.subr.bf16.mxu1 %v13422_v56 }
0x19b8   :  { %9997 = vmatpush1.bf16.msra.mxu1 %v13420_v53 }
0x19b9   :  { %9998 = vmatprep.subr.bf16.mxu1 %v13425_v59 }
0x19bc   :  { %9999 = vmatpush1.bf16.msra.mxu1 %v13423_v16 }
0x19bd   :  { %10009 = vmatprep.subr.bf16.mxu1 %v13428_v22  ;;  %v13431_v22 = vld [vmem:[%s18124_s15 + $0x314] ss:$8 sps:$4 sm:$0xff]  }
0x1a52   :  { %v9391_v60 = vpop.f32.mrb[56].mxu1 }
0x1a53   :  { %v12424_v34 = vadd.f32 %v9391_v60, %v7937_v28  ;;  %v17983_v62 = vpop.f32.mrb[48].mxu0  ;;  %v9393_v48 = vpop.f32.mrb[57].mxu1  ;;  %v11689_v28 = vld [vmem:[%s18126_s17 + $0x178] sm:$0xff] }
0x1a54   :  { %v12425_v58 = vadd.f32 %v9393_v48, %v7941_v26  ;;  %v9557_v45 = vpop.f32.mrb[49].mxu0  ;;  %v9395_v2 = vpop.f32.mrb[58].mxu1  ;;  %v12426_v36 = vadd.f32 %v17983_v62, %v7945_v32  ;;  %v12416_v26 = vpack.c.bf16 %v11689_v28, %v11688_v14 }
0x1a55   :  { %v9562_v38 = vmax.f32 %v12424_v34, 0.0  ;;  %v12427_v52 = vadd.f32 %v9557_v45, %v7949_v40  ;;  %v9559_v7 = vpop.f32.mrb[50].mxu0  ;;  %v9396_v12 = vpop.f32.mrb[59].mxu1  ;;  %v11609_v40 = vld [vmem:[%s18127_s16 + $0x2] sm:$0x3]  ;;  %s13624_s16 = smov 1  }
0x1a56   :  { %v9563_v50 = vmax.f32 %v12425_v58, 0.0  ;;  %v9560_v56 = vpop.f32.mrb[51].mxu0  ;;  %v9564_v39 = vmax.f32 %v12426_v36, 0.0  ;;  %12417 = vmatpush3.bf16.msra.mxu0 %v12416_v26  ;;  %v9641_v60 = vrot.slane %v11609_v40, %v14132_v61  ;;  %v9645_v34 = vrot.slane %v11609_v40, %v18171_v21 }
0x1a57   :  { %v9565_v53 = vmax.f32 %v12427_v52, 0.0  ;;  %v9566_v16 = vpack.c.bf16 %v9562_v38, %v9562_v38 }
0x1a58   :  { %v9567_v59 = vpack.c.bf16 %v9563_v50, %v9563_v50  ;;  %v9568_v54 = vpack.c.bf16 %v9564_v39, %v9564_v39  ;;  %v11707_v50 = vld [vmem:[%s18128_s18 + $0x1] ss:$0 sm:$0xff] }
0x1a59   :  { %v9569_v44 = vpack.c.bf16 %v9565_v53, %v9565_v53 }
0x1a5a   :  { %10000 = vmatprep.mubr.bf16.mxu1 %v9567_v59 }
0x1a5b   :  { %10001 = vmatmul.mubr.bf16.vlgmr.msra.gmra.mrb[60].mxu1 %v9566_v16 }
0x1a5c   :  { %10010 = vmatpush1.bf16.msra.mxu1 %v13426_v6  ;;  %10041 = vmatprep.mubr.bf16.mxu1 %v9569_v44 }
0x1a5d   :  { %10011 = vmatprep.subr.bf16.mxu1 %v13431_v22 }
0x1a60   :  { %10012 = vmatpush1.bf16.msra.mxu1 %v13429_v11 }
0x1a61   :  { %10013 = vmatprep.subr.bf16.mxu1 %v13434_v18 }
0x1a64   :  { %10014 = vmatpush1.bf16.msra.mxu1 %v13432_v49 }
0x1a65   :  { %10015 = vmatprep.subr.bf16.mxu1 %v13437_v51 }
0x1a68   :  { %10016 = vmatpush1.bf16.msra.mxu1 %v13435_v10 }
0x1a69   :  { %10017 = vmatprep.subr.bf16.mxu1 %v13440_v19 }
0x1a6c   :  { %10018 = vmatpush1.bf16.msra.mxu1 %v13438_v17 }
0x1a6d   :  { %10019 = vmatprep.subr.bf16.mxu1 %v13443_v37 }
0x1a70   :  { %10020 = vmatpush1.bf16.msra.mxu1 %v13441_v55 }
0x1a71   :  { %10021 = vmatprep.subr.bf16.mxu1 %v13446_v4 }
0x1a74   :  { %10022 = vmatpush1.bf16.msra.mxu1 %v13444_v46 }
0x1a75   :  { %10023 = vmatprep.subr.bf16.mxu1 %v13449_v27 }
0x1a78   :  { %10024 = vmatpush1.bf16.msra.mxu1 %v13447_v47 }
0x1a79   :  { %10025 = vmatprep.subr.bf16.mxu1 %v13452_v20 }
0x1a7c   :  { %10026 = vmatpush1.bf16.msra.mxu1 %v13450_v25 }
0x1a7d   :  { %10027 = vmatprep.subr.bf16.mxu1 %v13455_v35 }
0x1a80   :  { %10028 = vmatpush1.bf16.msra.mxu1 %v13453_v43 }
0x1a81   :  { %10029 = vmatprep.subr.bf16.mxu1 %v13458_v63 }
0x1a84   :  { %10030 = vmatpush1.bf16.msra.mxu1 %v13456_v15 }
0x1a85   :  { %10031 = vmatprep.subr.bf16.mxu1 %v13461_v42 }
0x1a88   :  { %10032 = vmatpush1.bf16.msra.mxu1 %v13459_v8 }
0x1a89   :  { %10033 = vmatprep.subr.bf16.mxu1 %v13464_v24 }
0x1a8c   :  { %10034 = vmatpush1.bf16.msra.mxu1 %v13462_v41 }
0x1a8d   :  { %10035 = vmatprep.subr.bf16.mxu1 %v13467_v23 }
0x1a90   :  { %10036 = vmatpush1.bf16.msra.mxu1 %v13465_v13 }
0x1a91   :  { %10037 = vmatprep.subr.bf16.mxu1 %v13470_v0 }
0x1a94   :  { %10038 = vmatpush1.bf16.msra.mxu1 %v13468_v30 }
0x1a95   :  { %10039 = vmatprep.subr.bf16.mxu1 %v13473_v1 }
0x1a98   :  { %10040 = vmatpush1.bf16.msra.mxu1 %v13471_v33 }
0x1a9b   :  { %10042 = vmatmul.mubr.bf16.vlgmr.msra.gmra.mrb[60].mxu1 %v9568_v54 }
0x1b6e   :  { %v10043_v62 = vpop.f32.mrb[60].mxu1 }
0x1b6f   :  { %v12428_v48 = vadd.f32 %v10043_v62, %v9641_v60  ;;  %v10045_v58 = vpop.f32.mrb[61].mxu1 }
0x1b70   :  { %v12429_v45 = vadd.f32 %v10045_v58, %v9645_v34  ;;  %v10047_v2 = vpop.f32.mrb[62].mxu1 }
0x1b71   :  { %v10048_v38 = vpop.f32.mrb[63].mxu1  ;;  %v10050_v7 = vmax.f32 %v12428_v48, 0.0 }
0x1b72   :  { %v10051_v52 = vmax.f32 %v12429_v45, 0.0 }
0x1b74   :  { %10157 = vmatprep.mubr.f32.mxu0 %v10051_v52 }
0x1b75   :  { %10158 = vmatmul.mubr.f32.vlgmr.msra.gmra.mrb[38].mxu0 %v10050_v7 }
0x1c48   :  { %v11775_v12 = vpop.f32.mrb[38].mxu0 }
0x1c49   :  { %v11776_v56 = vpop.f32.mrb[39].mxu0 }
0x1c4a   :  { %v11777_v53 = vadd.f32 %v11776_v56, %v11775_v12 }
0x1c4c   :  { %v10160_v61 = vadd.f32 %v11777_v53, %v11707_v50 }
0x1c4e   :  { %10164 = vrot.lane.b32.xlu0 %v10160_v61, %s13624_s16 }
0x1cc0   :  { %v10165_v21 = vpop.permute.xlu0 %10164 }
0x1cc1   :  { %10168 = vst.msk [vmem:[%s18129_s19] sm:$0x3] %vm10167_vm3, %v10165_v21 }

</bundles_post_ra>
